<compile_context>
chip_gen: v6e
topology: v6e:2x2x1
jax: 0.10.0
libtpu: 0.0.40
codegen_flags: <defaults>
</compile_context>

<pallas_src>
import functools

import jax
import jax.numpy as jnp
from jax import lax
from jax.experimental import pallas as pl
from jax.experimental.pallas import tpu as pltpu


def _resblock_kernel(x_ref, w1_ref, b1_ref, w2_ref, b2_ref, o_ref,
                     pad_ref, col_ref, *, H, W, C, woff):
    """Fused ResidualBlock on one batch element.

    x_ref  : (1, H, W, C)      f32   input (NHWC)
    w*_ref : (9*C, C)          bf16  3x3 weights, taps stacked on the K dim
    b*_ref : (1, C)            f32   biases
    o_ref  : (1, H*W, C)       f32   output in natural matmul layout
    pad_ref: (H+2, WPAD, C)    f32   padded-activation scratch; interior lives at
                                     rows [1,H+1), cols [woff, woff+W)
    col_ref: (H*W, 9*C)        bf16  im2col LHS scratch (K-packed taps)
    """
    # ---- zero ONLY the border strips (the interior is fully overwritten below).
    # Taps read rows [0, H+2) and cols [woff-1, woff+W+1), all covered here.
    zcol = jnp.zeros((H + 2, 8, C), jnp.float32)
    pad_ref[:, 0:8, :] = zcol                              # left border  (incl. col woff-1)
    pad_ref[:, woff + W:woff + W + 8, :] = zcol            # right border (incl. col woff+W)
    zrow = jnp.zeros((1, W, C), jnp.float32)
    pad_ref[0:1, woff:woff + W, :] = zrow                  # top padding row
    pad_ref[H + 1:H + 2, woff:woff + W, :] = zrow          # bottom padding row

    # Interior for conv1 (sublane-aligned store: woff and W are multiples of 8).
    pad_ref[1:H + 1, woff:woff + W, :] = x_ref[0]

    def conv3x3_bias_relu(w_ref, b_ref):
        # Build the K-packed im2col LHS: column block t = kh*3+kw holds the
        # (H*W, C) tap patch, cast to bf16 as part of the (required) store.
        for kh in range(3):
            for kw in range(3):
                t = kh * 3 + kw
                patch = pad_ref[kh:kh + H, woff - 1 + kw:woff - 1 + kw + W, :]
                col_ref[:, t * C:(t + 1) * C] = (
                    patch.reshape(H * W, C).astype(jnp.bfloat16))
        # ONE MXU matmul per conv: (H*W, 9C) x (9C, C), f32 accumulation.
        acc = jnp.dot(col_ref[...], w_ref[...],
                      preferred_element_type=jnp.float32)
        acc = acc + b_ref[...]                             # (1, C) broadcast, f32
        return jnp.maximum(acc, 0.0)

    # conv1 + ReLU; result stays on-chip.
    mid = conv3x3_bias_relu(w1_ref, b1_ref)                # (H*W, C) f32

    # Reuse the same padded slab as conv2's input (aligned interior store; the
    # zero border written above is untouched, so no re-zeroing is needed).
    pad_ref[1:H + 1, woff:woff + W, :] = mid.reshape(H, W, C)

    # conv2 + ReLU + residual skip (skip kept in f32 from the original input).
    out = conv3x3_bias_relu(w2_ref, b2_ref)
    out = out + x_ref[0].reshape(H * W, C)

    o_ref[...] = out[None].astype(o_ref.dtype)


def residual_block_forward(x_nchw, params):
    """x_nchw: (N, 64, H, W) f32 -> (N, 64, H, W), like the PyTorch ResidualBlock."""
    w1, b1, w2, b2 = params
    N, C, H, W = x_nchw.shape
    assert C == 64, "module fixes channels to 64"
    assert w1.shape == (3, 3, C, C) and w2.shape == (3, 3, C, C)
    assert H % 8 == 0 and W % 8 == 0, "spatial dims assumed multiples of 8"

    x = jnp.transpose(x_nchw, (0, 2, 3, 1)).astype(jnp.float32)   # NCHW -> NHWC

    woff = 8                      # sublane-aligned interior column offset
    wpad = woff + W + 8           # left strip + interior + right strip

    # HWIO (3,3,Cin,Cout) -> (9*Cin, Cout); row (kh*3+kw)*C + ci matches im2col.
    w1r = w1.reshape(9 * C, C).astype(jnp.bfloat16)
    w2r = w2.reshape(9 * C, C).astype(jnp.bfloat16)
    b1r = b1.reshape(1, C).astype(jnp.float32)
    b2r = b2.reshape(1, C).astype(jnp.float32)

    kernel = functools.partial(_resblock_kernel, H=H, W=W, C=C, woff=woff)

    out = pl.pallas_call(
        kernel,
        out_shape=jax.ShapeDtypeStruct((N, H * W, C), jnp.float32),
        grid_spec=pltpu.PrefetchScalarGridSpec(
            num_scalar_prefetch=0,
            grid=(N,),
            in_specs=[
                pl.BlockSpec((1, H, W, C), lambda n: (n, 0, 0, 0)),
                pl.BlockSpec((9 * C, C), lambda n: (0, 0)),   # weights: constant
                pl.BlockSpec((1, C), lambda n: (0, 0)),       # block index ->
                pl.BlockSpec((9 * C, C), lambda n: (0, 0)),   # stay resident in VMEM
                pl.BlockSpec((1, C), lambda n: (0, 0)),
            ],
            out_specs=pl.BlockSpec((1, H * W, C), lambda n: (n, 0, 0)),
            scratch_shapes=[
                pltpu.VMEM((H + 2, wpad, C), jnp.float32),     # padded activations
                pltpu.VMEM((H * W, 9 * C), jnp.bfloat16),      # im2col LHS (K-packed)
            ],
        ),
        compiler_params=pltpu.CompilerParams(
            dimension_semantics=("parallel",)),
    )(x, w1r, b1r, w2r, b2r)

    out = out.reshape(N, H, W, C)              # free: contiguous NHWC
    return jnp.transpose(out, (0, 3, 1, 2))    # NHWC -> NCHW


if __name__ == "__main__":
    key = jax.random.PRNGKey(0)
    k1, k2, k3, k4, kx = jax.random.split(key, 5)

    N, C, H, W = 2, 64, 16, 16                 # channels fixed to 64 by the module
    w1 = jax.random.normal(k1, (3, 3, C, C), jnp.float32) * 0.05   # HWIO
    b1 = jax.random.normal(k2, (C,), jnp.float32) * 0.05
    w2 = jax.random.normal(k3, (3, 3, C, C), jnp.float32) * 0.05
    b2 = jax.random.normal(k4, (C,), jnp.float32) * 0.05
    x = jax.random.normal(kx, (N, C, H, W), jnp.float32)           # NCHW like torch

    fwd = jax.jit(residual_block_forward)
    y = fwd(x, (w1, b1, w2, b2))
    jax.block_until_ready(y)

    # Pure-JAX f32 reference.
    def reference(x_nchw):
        xh = jnp.transpose(x_nchw, (0, 2, 3, 1))
        dn = lax.conv_dimension_numbers(xh.shape, w1.shape, ("NHWC", "HWIO", "NHWC"))

        def conv_relu(h, w, b):
            h = lax.conv_general_dilated(h, w, (1, 1), ((1, 1), (1, 1)),
                                         dimension_numbers=dn)
            return jnp.maximum(h + b, 0.0)

        yh = xh + conv_relu(conv_relu(xh, w1, b1), w2, b2)
        return jnp.transpose(yh, (0, 3, 1, 2))

    y_ref = reference(x)

    assert y.shape == (N, C, H, W), y.shape
    assert y.dtype == jnp.float32
    assert bool(jnp.all(jnp.isfinite(y)))
    # bf16 MXU inputs with f32 accumulation vs f32 reference.
    max_err = float(jnp.max(jnp.abs(y - y_ref)))
    assert bool(jnp.allclose(y, y_ref, atol=1.5e-1, rtol=1e-1)), max_err

    print("KERNEL_OK")
</pallas_src>

<mosaic_0001>
module attributes {stable_mosaic.version = 11 : i64} {
  func.func @_resblock_kernel(%arg0: i32, %arg1: memref<1x16x16x64xf32, #tpu.memory_space<vmem>>, %arg2: memref<576x64xbf16, #tpu.memory_space<vmem>>, %arg3: memref<1x64xf32, #tpu.memory_space<vmem>>, %arg4: memref<576x64xbf16, #tpu.memory_space<vmem>>, %arg5: memref<1x64xf32, #tpu.memory_space<vmem>>, %arg6: memref<1x256x64xf32, #tpu.memory_space<vmem>>, %arg7: memref<18x32x64xf32, #tpu.memory_space<vmem>>, %arg8: memref<256x576xbf16, #tpu.memory_space<vmem>>) attributes {dimension_semantics = [#tpu.dimension_semantics<parallel>], iteration_bounds = array<i64: 2>, scalar_prefetch = 0 : i64, scratch_operands = 2 : i64, tpu.core_type = #tpu.core_type<tc>, window_params = [{transform_indices = @transform_0, window_bounds = array<i64: 1, 16, 16, 64>}, {pipeline_mode = #tpu.pipeline_mode<synchronous>, transform_indices = @transform_1, window_bounds = array<i64: 576, 64>}, {pipeline_mode = #tpu.pipeline_mode<synchronous>, transform_indices = @transform_2, window_bounds = array<i64: 1, 64>}, {pipeline_mode = #tpu.pipeline_mode<synchronous>, transform_indices = @transform_3, window_bounds = array<i64: 576, 64>}, {pipeline_mode = #tpu.pipeline_mode<synchronous>, transform_indices = @transform_4, window_bounds = array<i64: 1, 64>}, {transform_indices = @transform_5, window_bounds = array<i64: 1, 256, 64>}]} {
    %cst = arith.constant 0.000000e+00 : f32
    %0 = vector.broadcast %cst : f32 to vector<18x8x64xf32>
    %c0 = arith.constant 0 : index
    %c0_0 = arith.constant 0 : index
    %c0_1 = arith.constant 0 : index
    %1 = vector.load %arg7[%c0, %c0_0, %c0_1] : memref<18x32x64xf32, #tpu.memory_space<vmem>>, vector<18x8x64xf32>
    tpu.vector_store %arg7[%c0, %c0_0, %c0_1], %0 {strides = array<i32>} : memref<18x32x64xf32, #tpu.memory_space<vmem>>, vector<18x8x64xf32>,
    %c0_2 = arith.constant 0 : index
    %c24 = arith.constant 24 : index
    %c0_3 = arith.constant 0 : index
    %2 = vector.load %arg7[%c0_2, %c24, %c0_3] : memref<18x32x64xf32, #tpu.memory_space<vmem>>, vector<18x8x64xf32>
    tpu.vector_store %arg7[%c0_2, %c24, %c0_3], %0 {strides = array<i32>} : memref<18x32x64xf32, #tpu.memory_space<vmem>>, vector<18x8x64xf32>,
    %cst_4 = arith.constant 0.000000e+00 : f32
    %3 = vector.broadcast %cst_4 : f32 to vector<1x16x64xf32>
    %c0_5 = arith.constant 0 : index
    %c8 = arith.constant 8 : index
    %c0_6 = arith.constant 0 : index
    %4 = vector.load %arg7[%c0_5, %c8, %c0_6] : memref<18x32x64xf32, #tpu.memory_space<vmem>>, vector<1x16x64xf32>
    tpu.vector_store %arg7[%c0_5, %c8, %c0_6], %3 {strides = array<i32>} : memref<18x32x64xf32, #tpu.memory_space<vmem>>, vector<1x16x64xf32>,
    %c17 = arith.constant 17 : index
    %c8_7 = arith.constant 8 : index
    %c0_8 = arith.constant 0 : index
    %5 = vector.load %arg7[%c17, %c8_7, %c0_8] : memref<18x32x64xf32, #tpu.memory_space<vmem>>, vector<1x16x64xf32>
    tpu.vector_store %arg7[%c17, %c8_7, %c0_8], %3 {strides = array<i32>} : memref<18x32x64xf32, #tpu.memory_space<vmem>>, vector<1x16x64xf32>,
    %c0_9 = arith.constant 0 : index
    %c0_10 = arith.constant 0 : index
    %c0_11 = arith.constant 0 : index
    %c0_12 = arith.constant 0 : index
    %6 = vector.load %arg1[%c0_9, %c0_10, %c0_11, %c0_12] : memref<1x16x16x64xf32, #tpu.memory_space<vmem>>, vector<1x16x16x64xf32>
    %7 = vector.shape_cast %6 : vector<1x16x16x64xf32> to vector<16x16x64xf32>
    %c1 = arith.constant 1 : index
    %c8_13 = arith.constant 8 : index
    %c0_14 = arith.constant 0 : index
    %8 = vector.load %arg7[%c1, %c8_13, %c0_14] : memref<18x32x64xf32, #tpu.memory_space<vmem>>, vector<16x16x64xf32>
    tpu.vector_store %arg7[%c1, %c8_13, %c0_14], %7 {strides = array<i32>} : memref<18x32x64xf32, #tpu.memory_space<vmem>>, vector<16x16x64xf32>,
    %c0_15 = arith.constant 0 : index
    %c7 = arith.constant 7 : index
    %c0_16 = arith.constant 0 : index
    %9 = vector.load %arg7[%c0_15, %c7, %c0_16] : memref<18x32x64xf32, #tpu.memory_space<vmem>>, vector<16x16x64xf32>
    %10 = vector.shape_cast %9 : vector<16x16x64xf32> to vector<256x64xf32>
    %11 = arith.truncf %10 : vector<256x64xf32> to vector<256x64xbf16>
    %c0_17 = arith.constant 0 : index
    %c0_18 = arith.constant 0 : index
    %12 = vector.load %arg8[%c0_17, %c0_18] : memref<256x576xbf16, #tpu.memory_space<vmem>>, vector<256x64xbf16>
    tpu.vector_store %arg8[%c0_17, %c0_18], %11 {strides = array<i32>} : memref<256x576xbf16, #tpu.memory_space<vmem>>, vector<256x64xbf16>,
    %c0_19 = arith.constant 0 : index
    %c8_20 = arith.constant 8 : index
    %c0_21 = arith.constant 0 : index
    %13 = vector.load %arg7[%c0_19, %c8_20, %c0_21] : memref<18x32x64xf32, #tpu.memory_space<vmem>>, vector<16x16x64xf32>
    %14 = vector.shape_cast %13 : vector<16x16x64xf32> to vector<256x64xf32>
    %15 = arith.truncf %14 : vector<256x64xf32> to vector<256x64xbf16>
    %c0_22 = arith.constant 0 : index
    %c64 = arith.constant 64 : index
    %16 = vector.load %arg8[%c0_22, %c64] : memref<256x576xbf16, #tpu.memory_space<vmem>>, vector<256x64xbf16>
    tpu.vector_store %arg8[%c0_22, %c64], %15 {strides = array<i32>} : memref<256x576xbf16, #tpu.memory_space<vmem>>, vector<256x64xbf16>,
    %c0_23 = arith.constant 0 : index
    %c9 = arith.constant 9 : index
    %c0_24 = arith.constant 0 : index
    %17 = vector.load %arg7[%c0_23, %c9, %c0_24] : memref<18x32x64xf32, #tpu.memory_space<vmem>>, vector<16x16x64xf32>
    %18 = vector.shape_cast %17 : vector<16x16x64xf32> to vector<256x64xf32>
    %19 = arith.truncf %18 : vector<256x64xf32> to vector<256x64xbf16>
    %c0_25 = arith.constant 0 : index
    %c128 = arith.constant 128 : index
    %20 = vector.load %arg8[%c0_25, %c128] : memref<256x576xbf16, #tpu.memory_space<vmem>>, vector<256x64xbf16>
    tpu.vector_store %arg8[%c0_25, %c128], %19 {strides = array<i32>} : memref<256x576xbf16, #tpu.memory_space<vmem>>, vector<256x64xbf16>,
    %c1_26 = arith.constant 1 : index
    %c7_27 = arith.constant 7 : index
    %c0_28 = arith.constant 0 : index
    %21 = vector.load %arg7[%c1_26, %c7_27, %c0_28] : memref<18x32x64xf32, #tpu.memory_space<vmem>>, vector<16x16x64xf32>
    %22 = vector.shape_cast %21 : vector<16x16x64xf32> to vector<256x64xf32>
    %23 = arith.truncf %22 : vector<256x64xf32> to vector<256x64xbf16>
    %c0_29 = arith.constant 0 : index
    %c192 = arith.constant 192 : index
    %24 = vector.load %arg8[%c0_29, %c192] : memref<256x576xbf16, #tpu.memory_space<vmem>>, vector<256x64xbf16>
    tpu.vector_store %arg8[%c0_29, %c192], %23 {strides = array<i32>} : memref<256x576xbf16, #tpu.memory_space<vmem>>, vector<256x64xbf16>,
    %c1_30 = arith.constant 1 : index
    %c8_31 = arith.constant 8 : index
    %c0_32 = arith.constant 0 : index
    %25 = vector.load %arg7[%c1_30, %c8_31, %c0_32] : memref<18x32x64xf32, #tpu.memory_space<vmem>>, vector<16x16x64xf32>
    %26 = vector.shape_cast %25 : vector<16x16x64xf32> to vector<256x64xf32>
    %27 = arith.truncf %26 : vector<256x64xf32> to vector<256x64xbf16>
    %c0_33 = arith.constant 0 : index
    %c256 = arith.constant 256 : index
    %28 = vector.load %arg8[%c0_33, %c256] : memref<256x576xbf16, #tpu.memory_space<vmem>>, vector<256x64xbf16>
    tpu.vector_store %arg8[%c0_33, %c256], %27 {strides = array<i32>} : memref<256x576xbf16, #tpu.memory_space<vmem>>, vector<256x64xbf16>,
    %c1_34 = arith.constant 1 : index
    %c9_35 = arith.constant 9 : index
    %c0_36 = arith.constant 0 : index
    %29 = vector.load %arg7[%c1_34, %c9_35, %c0_36] : memref<18x32x64xf32, #tpu.memory_space<vmem>>, vector<16x16x64xf32>
    %30 = vector.shape_cast %29 : vector<16x16x64xf32> to vector<256x64xf32>
    %31 = arith.truncf %30 : vector<256x64xf32> to vector<256x64xbf16>
    %c0_37 = arith.constant 0 : index
    %c320 = arith.constant 320 : index
    %32 = vector.load %arg8[%c0_37, %c320] : memref<256x576xbf16, #tpu.memory_space<vmem>>, vector<256x64xbf16>
    tpu.vector_store %arg8[%c0_37, %c320], %31 {strides = array<i32>} : memref<256x576xbf16, #tpu.memory_space<vmem>>, vector<256x64xbf16>,
    %c2 = arith.constant 2 : index
    %c7_38 = arith.constant 7 : index
    %c0_39 = arith.constant 0 : index
    %33 = vector.load %arg7[%c2, %c7_38, %c0_39] : memref<18x32x64xf32, #tpu.memory_space<vmem>>, vector<16x16x64xf32>
    %34 = vector.shape_cast %33 : vector<16x16x64xf32> to vector<256x64xf32>
    %35 = arith.truncf %34 : vector<256x64xf32> to vector<256x64xbf16>
    %c0_40 = arith.constant 0 : index
    %c384 = arith.constant 384 : index
    %36 = vector.load %arg8[%c0_40, %c384] : memref<256x576xbf16, #tpu.memory_space<vmem>>, vector<256x64xbf16>
    tpu.vector_store %arg8[%c0_40, %c384], %35 {strides = array<i32>} : memref<256x576xbf16, #tpu.memory_space<vmem>>, vector<256x64xbf16>,
    %c2_41 = arith.constant 2 : index
    %c8_42 = arith.constant 8 : index
    %c0_43 = arith.constant 0 : index
    %37 = vector.load %arg7[%c2_41, %c8_42, %c0_43] : memref<18x32x64xf32, #tpu.memory_space<vmem>>, vector<16x16x64xf32>
    %38 = vector.shape_cast %37 : vector<16x16x64xf32> to vector<256x64xf32>
    %39 = arith.truncf %38 : vector<256x64xf32> to vector<256x64xbf16>
    %c0_44 = arith.constant 0 : index
    %c448 = arith.constant 448 : index
    %40 = vector.load %arg8[%c0_44, %c448] : memref<256x576xbf16, #tpu.memory_space<vmem>>, vector<256x64xbf16>
    tpu.vector_store %arg8[%c0_44, %c448], %39 {strides = array<i32>} : memref<256x576xbf16, #tpu.memory_space<vmem>>, vector<256x64xbf16>,
    %c2_45 = arith.constant 2 : index
    %c9_46 = arith.constant 9 : index
    %c0_47 = arith.constant 0 : index
    %41 = vector.load %arg7[%c2_45, %c9_46, %c0_47] : memref<18x32x64xf32, #tpu.memory_space<vmem>>, vector<16x16x64xf32>
    %42 = vector.shape_cast %41 : vector<16x16x64xf32> to vector<256x64xf32>
    %43 = arith.truncf %42 : vector<256x64xf32> to vector<256x64xbf16>
    %c0_48 = arith.constant 0 : index
    %c512 = arith.constant 512 : index
    %44 = vector.load %arg8[%c0_48, %c512] : memref<256x576xbf16, #tpu.memory_space<vmem>>, vector<256x64xbf16>
    tpu.vector_store %arg8[%c0_48, %c512], %43 {strides = array<i32>} : memref<256x576xbf16, #tpu.memory_space<vmem>>, vector<256x64xbf16>,
    %c0_49 = arith.constant 0 : index
    %c0_50 = arith.constant 0 : index
    %45 = vector.load %arg8[%c0_49, %c0_50] : memref<256x576xbf16, #tpu.memory_space<vmem>>, vector<256x576xbf16>
    %c0_51 = arith.constant 0 : index
    %c0_52 = arith.constant 0 : index
    %46 = vector.load %arg2[%c0_51, %c0_52] : memref<576x64xbf16, #tpu.memory_space<vmem>>, vector<576x64xbf16>
    %cst_53 = arith.constant dense<0.000000e+00> : vector<256x64xf32>
    %47 = tpu.matmul %45, %46, %cst_53 {dimension_numbers = #tpu.dot_dimension_numbers<[1], [0], [0], [1], [0, 0, 1, 1], [], []>} : vector<256x576xbf16>, vector<576x64xbf16>, vector<256x64xf32> -> vector<256x64xf32>
    %c0_54 = arith.constant 0 : index
    %c0_55 = arith.constant 0 : index
    %48 = vector.load %arg3[%c0_54, %c0_55] : memref<1x64xf32, #tpu.memory_space<vmem>>, vector<1x64xf32>
    %49 = vector.broadcast %48 : vector<1x64xf32> to vector<256x64xf32>
    %50 = arith.addf %47, %49 : vector<256x64xf32>
    %cst_56 = arith.constant 0.000000e+00 : f32
    %51 = vector.broadcast %cst_56 : f32 to vector<256x64xf32>
    %52 = arith.maximumf %50, %51 : vector<256x64xf32>
    %53 = vector.shape_cast %52 : vector<256x64xf32> to vector<16x16x64xf32>
    %c1_57 = arith.constant 1 : index
    %c8_58 = arith.constant 8 : index
    %c0_59 = arith.constant 0 : index
    %54 = vector.load %arg7[%c1_57, %c8_58, %c0_59] : memref<18x32x64xf32, #tpu.memory_space<vmem>>, vector<16x16x64xf32>
    tpu.vector_store %arg7[%c1_57, %c8_58, %c0_59], %53 {strides = array<i32>} : memref<18x32x64xf32, #tpu.memory_space<vmem>>, vector<16x16x64xf32>,
    %c0_60 = arith.constant 0 : index
    %c7_61 = arith.constant 7 : index
    %c0_62 = arith.constant 0 : index
    %55 = vector.load %arg7[%c0_60, %c7_61, %c0_62] : memref<18x32x64xf32, #tpu.memory_space<vmem>>, vector<16x16x64xf32>
    %56 = vector.shape_cast %55 : vector<16x16x64xf32> to vector<256x64xf32>
    %57 = arith.truncf %56 : vector<256x64xf32> to vector<256x64xbf16>
    %c0_63 = arith.constant 0 : index
    %c0_64 = arith.constant 0 : index
    %58 = vector.load %arg8[%c0_63, %c0_64] : memref<256x576xbf16, #tpu.memory_space<vmem>>, vector<256x64xbf16>
    tpu.vector_store %arg8[%c0_63, %c0_64], %57 {strides = array<i32>} : memref<256x576xbf16, #tpu.memory_space<vmem>>, vector<256x64xbf16>,
    %c0_65 = arith.constant 0 : index
    %c8_66 = arith.constant 8 : index
    %c0_67 = arith.constant 0 : index
    %59 = vector.load %arg7[%c0_65, %c8_66, %c0_67] : memref<18x32x64xf32, #tpu.memory_space<vmem>>, vector<16x16x64xf32>
    %60 = vector.shape_cast %59 : vector<16x16x64xf32> to vector<256x64xf32>
    %61 = arith.truncf %60 : vector<256x64xf32> to vector<256x64xbf16>
    %c0_68 = arith.constant 0 : index
    %c64_69 = arith.constant 64 : index
    %62 = vector.load %arg8[%c0_68, %c64_69] : memref<256x576xbf16, #tpu.memory_space<vmem>>, vector<256x64xbf16>
    tpu.vector_store %arg8[%c0_68, %c64_69], %61 {strides = array<i32>} : memref<256x576xbf16, #tpu.memory_space<vmem>>, vector<256x64xbf16>,
    %c0_70 = arith.constant 0 : index
    %c9_71 = arith.constant 9 : index
    %c0_72 = arith.constant 0 : index
    %63 = vector.load %arg7[%c0_70, %c9_71, %c0_72] : memref<18x32x64xf32, #tpu.memory_space<vmem>>, vector<16x16x64xf32>
    %64 = vector.shape_cast %63 : vector<16x16x64xf32> to vector<256x64xf32>
    %65 = arith.truncf %64 : vector<256x64xf32> to vector<256x64xbf16>
    %c0_73 = arith.constant 0 : index
    %c128_74 = arith.constant 128 : index
    %66 = vector.load %arg8[%c0_73, %c128_74] : memref<256x576xbf16, #tpu.memory_space<vmem>>, vector<256x64xbf16>
    tpu.vector_store %arg8[%c0_73, %c128_74], %65 {strides = array<i32>} : memref<256x576xbf16, #tpu.memory_space<vmem>>, vector<256x64xbf16>,
    %c1_75 = arith.constant 1 : index
    %c7_76 = arith.constant 7 : index
    %c0_77 = arith.constant 0 : index
    %67 = vector.load %arg7[%c1_75, %c7_76, %c0_77] : memref<18x32x64xf32, #tpu.memory_space<vmem>>, vector<16x16x64xf32>
    %68 = vector.shape_cast %67 : vector<16x16x64xf32> to vector<256x64xf32>
    %69 = arith.truncf %68 : vector<256x64xf32> to vector<256x64xbf16>
    %c0_78 = arith.constant 0 : index
    %c192_79 = arith.constant 192 : index
    %70 = vector.load %arg8[%c0_78, %c192_79] : memref<256x576xbf16, #tpu.memory_space<vmem>>, vector<256x64xbf16>
    tpu.vector_store %arg8[%c0_78, %c192_79], %69 {strides = array<i32>} : memref<256x576xbf16, #tpu.memory_space<vmem>>, vector<256x64xbf16>,
    %c1_80 = arith.constant 1 : index
    %c8_81 = arith.constant 8 : index
    %c0_82 = arith.constant 0 : index
    %71 = vector.load %arg7[%c1_80, %c8_81, %c0_82] : memref<18x32x64xf32, #tpu.memory_space<vmem>>, vector<16x16x64xf32>
    %72 = vector.shape_cast %71 : vector<16x16x64xf32> to vector<256x64xf32>
    %73 = arith.truncf %72 : vector<256x64xf32> to vector<256x64xbf16>
    %c0_83 = arith.constant 0 : index
    %c256_84 = arith.constant 256 : index
    %74 = vector.load %arg8[%c0_83, %c256_84] : memref<256x576xbf16, #tpu.memory_space<vmem>>, vector<256x64xbf16>
    tpu.vector_store %arg8[%c0_83, %c256_84], %73 {strides = array<i32>} : memref<256x576xbf16, #tpu.memory_space<vmem>>, vector<256x64xbf16>,
    %c1_85 = arith.constant 1 : index
    %c9_86 = arith.constant 9 : index
    %c0_87 = arith.constant 0 : index
    %75 = vector.load %arg7[%c1_85, %c9_86, %c0_87] : memref<18x32x64xf32, #tpu.memory_space<vmem>>, vector<16x16x64xf32>
    %76 = vector.shape_cast %75 : vector<16x16x64xf32> to vector<256x64xf32>
    %77 = arith.truncf %76 : vector<256x64xf32> to vector<256x64xbf16>
    %c0_88 = arith.constant 0 : index
    %c320_89 = arith.constant 320 : index
    %78 = vector.load %arg8[%c0_88, %c320_89] : memref<256x576xbf16, #tpu.memory_space<vmem>>, vector<256x64xbf16>
    tpu.vector_store %arg8[%c0_88, %c320_89], %77 {strides = array<i32>} : memref<256x576xbf16, #tpu.memory_space<vmem>>, vector<256x64xbf16>,
    %c2_90 = arith.constant 2 : index
    %c7_91 = arith.constant 7 : index
    %c0_92 = arith.constant 0 : index
    %79 = vector.load %arg7[%c2_90, %c7_91, %c0_92] : memref<18x32x64xf32, #tpu.memory_space<vmem>>, vector<16x16x64xf32>
    %80 = vector.shape_cast %79 : vector<16x16x64xf32> to vector<256x64xf32>
    %81 = arith.truncf %80 : vector<256x64xf32> to vector<256x64xbf16>
    %c0_93 = arith.constant 0 : index
    %c384_94 = arith.constant 384 : index
    %82 = vector.load %arg8[%c0_93, %c384_94] : memref<256x576xbf16, #tpu.memory_space<vmem>>, vector<256x64xbf16>
    tpu.vector_store %arg8[%c0_93, %c384_94], %81 {strides = array<i32>} : memref<256x576xbf16, #tpu.memory_space<vmem>>, vector<256x64xbf16>,
    %c2_95 = arith.constant 2 : index
    %c8_96 = arith.constant 8 : index
    %c0_97 = arith.constant 0 : index
    %83 = vector.load %arg7[%c2_95, %c8_96, %c0_97] : memref<18x32x64xf32, #tpu.memory_space<vmem>>, vector<16x16x64xf32>
    %84 = vector.shape_cast %83 : vector<16x16x64xf32> to vector<256x64xf32>
    %85 = arith.truncf %84 : vector<256x64xf32> to vector<256x64xbf16>
    %c0_98 = arith.constant 0 : index
    %c448_99 = arith.constant 448 : index
    %86 = vector.load %arg8[%c0_98, %c448_99] : memref<256x576xbf16, #tpu.memory_space<vmem>>, vector<256x64xbf16>
    tpu.vector_store %arg8[%c0_98, %c448_99], %85 {strides = array<i32>} : memref<256x576xbf16, #tpu.memory_space<vmem>>, vector<256x64xbf16>,
    %c2_100 = arith.constant 2 : index
    %c9_101 = arith.constant 9 : index
    %c0_102 = arith.constant 0 : index
    %87 = vector.load %arg7[%c2_100, %c9_101, %c0_102] : memref<18x32x64xf32, #tpu.memory_space<vmem>>, vector<16x16x64xf32>
    %88 = vector.shape_cast %87 : vector<16x16x64xf32> to vector<256x64xf32>
    %89 = arith.truncf %88 : vector<256x64xf32> to vector<256x64xbf16>
    %c0_103 = arith.constant 0 : index
    %c512_104 = arith.constant 512 : index
    %90 = vector.load %arg8[%c0_103, %c512_104] : memref<256x576xbf16, #tpu.memory_space<vmem>>, vector<256x64xbf16>
    tpu.vector_store %arg8[%c0_103, %c512_104], %89 {strides = array<i32>} : memref<256x576xbf16, #tpu.memory_space<vmem>>, vector<256x64xbf16>,
    %c0_105 = arith.constant 0 : index
    %c0_106 = arith.constant 0 : index
    %91 = vector.load %arg8[%c0_105, %c0_106] : memref<256x576xbf16, #tpu.memory_space<vmem>>, vector<256x576xbf16>
    %c0_107 = arith.constant 0 : index
    %c0_108 = arith.constant 0 : index
    %92 = vector.load %arg4[%c0_107, %c0_108] : memref<576x64xbf16, #tpu.memory_space<vmem>>, vector<576x64xbf16>
    %cst_109 = arith.constant dense<0.000000e+00> : vector<256x64xf32>
    %93 = tpu.matmul %91, %92, %cst_109 {dimension_numbers = #tpu.dot_dimension_numbers<[1], [0], [0], [1], [0, 0, 1, 1], [], []>} : vector<256x576xbf16>, vector<576x64xbf16>, vector<256x64xf32> -> vector<256x64xf32>
    %c0_110 = arith.constant 0 : index
    %c0_111 = arith.constant 0 : index
    %94 = vector.load %arg5[%c0_110, %c0_111] : memref<1x64xf32, #tpu.memory_space<vmem>>, vector<1x64xf32>
    %95 = vector.broadcast %94 : vector<1x64xf32> to vector<256x64xf32>
    %96 = arith.addf %93, %95 : vector<256x64xf32>
    %cst_112 = arith.constant 0.000000e+00 : f32
    %97 = vector.broadcast %cst_112 : f32 to vector<256x64xf32>
    %98 = arith.maximumf %96, %97 : vector<256x64xf32>
    %c0_113 = arith.constant 0 : index
    %c0_114 = arith.constant 0 : index
    %c0_115 = arith.constant 0 : index
    %c0_116 = arith.constant 0 : index
    %99 = vector.load %arg1[%c0_113, %c0_114, %c0_115, %c0_116] : memref<1x16x16x64xf32, #tpu.memory_space<vmem>>, vector<1x16x16x64xf32>
    %100 = vector.shape_cast %99 : vector<1x16x16x64xf32> to vector<16x16x64xf32>
    %101 = vector.shape_cast %100 : vector<16x16x64xf32> to vector<256x64xf32>
    %102 = arith.addf %98, %101 : vector<256x64xf32>
    %103 = vector.shape_cast %102 : vector<256x64xf32> to vector<1x256x64xf32>
    %c0_117 = arith.constant 0 : index
    %c0_118 = arith.constant 0 : index
    %c0_119 = arith.constant 0 : index
    %104 = vector.load %arg6[%c0_117, %c0_118, %c0_119] : memref<1x256x64xf32, #tpu.memory_space<vmem>>, vector<1x256x64xf32>
    tpu.vector_store %arg6[%c0_117, %c0_118, %c0_119], %103 {strides = array<i32>} : memref<1x256x64xf32, #tpu.memory_space<vmem>>, vector<1x256x64xf32>,
    return
  }
  func.func @transform_0(%arg0: i32) -> (i32, i32, i32, i32) {
    %c0_i32 = arith.constant 0 : i32
    %c0_i32_0 = arith.constant 0 : i32
    %c0_i32_1 = arith.constant 0 : i32
    %c0_i32_2 = arith.constant 0 : i32
    return %arg0, %c0_i32, %c0_i32_0, %c0_i32_1 : i32, i32, i32, i32
  }
  func.func @transform_1(%arg0: i32) -> (i32, i32) {
    %c0_i32 = arith.constant 0 : i32
    %c0_i32_0 = arith.constant 0 : i32
    %c0_i32_1 = arith.constant 0 : i32
    return %c0_i32, %c0_i32_0 : i32, i32
  }
  func.func @transform_2(%arg0: i32) -> (i32, i32) {
    %c0_i32 = arith.constant 0 : i32
    %c0_i32_0 = arith.constant 0 : i32
    %c0_i32_1 = arith.constant 0 : i32
    return %c0_i32, %c0_i32_0 : i32, i32
  }
  func.func @transform_3(%arg0: i32) -> (i32, i32) {
    %c0_i32 = arith.constant 0 : i32
    %c0_i32_0 = arith.constant 0 : i32
    %c0_i32_1 = arith.constant 0 : i32
    return %c0_i32, %c0_i32_0 : i32, i32
  }
  func.func @transform_4(%arg0: i32) -> (i32, i32) {
    %c0_i32 = arith.constant 0 : i32
    %c0_i32_0 = arith.constant 0 : i32
    %c0_i32_1 = arith.constant 0 : i32
    return %c0_i32, %c0_i32_0 : i32, i32
  }
  func.func @transform_5(%arg0: i32) -> (i32, i32, i32) {
    %c0_i32 = arith.constant 0 : i32
    %c0_i32_0 = arith.constant 0 : i32
    %c0_i32_1 = arith.constant 0 : i32
    return %arg0, %c0_i32, %c0_i32_0 : i32, i32, i32
  }
}

</mosaic_0001>

<bundles_post_ra>
// kernel: residual_block_forward.1
= control target key start
LH: loop header
LB: loop body
LE: loop exit
PB: predicated region body
PF: predicated region fallthrough
CT: control target
= control target key end

     0   :  { %10 = vsyncpa [#allocation5], 0  ;;  %s11949_s0 = inlined_call_operand.vmem [shape: f32[2,16,16,64], index: 0, kind: input, shape index: {}]   ;;  %s11950_s1 = inlined_call_operand.vmem [shape: bf16[576,64], index: 1, kind: input, shape index: {}]   ;;  %s11951_s2 = inlined_call_operand.vmem [shape: f32[1,64], index: 2, kind: input, shape index: {}]   ;;  %s11952_s3 = inlined_call_operand.vmem [shape: bf16[576,64], index: 3, kind: input, shape index: {}]   ;;  %s11953_s4 = inlined_call_operand.vmem [shape: f32[1,64], index: 4, kind: input, shape index: {}]   ;;  %s11954_s5 = inlined_call_operand.hbm [shape: f32[2,256,64], index: 5, kind: output, shape index: {}]  }
   0x1   :  { %12 = vsyncpa [#allocation5 + $0x1], 0  ;;  %s9602_s18 = smov 0   ;;  %s9604_s19 = smov 0  }
   0x2   :  { %s9606_s20 = smov 0   ;;  %s9608_s21 = smov 0  }
   0x3 LB: > { %s9623_s22 = sadd.s32 4294967295, %s9565_s21   ;;  %s7214_s23 = sadd.s32 4294967294, %s9565_s21   ;;  %s9565_s21 = sphi %s9608_s21, %s11986_s21   ;;  %s9561_s20 = sphi %s9606_s20, %s11985_s20   ;;  %s9557_s19 = sphi %s9604_s19, %s11984_s19   ;;  %s9553_s18 = sphi %s9602_s18, %s11983_s18  }
   0x4   : > { %s9627_s24 = sadd.s32 1, %s9565_s21   ;;  %s135_s25 = sadd.s32 1, %s9561_s20 }
   0x5   : > { %s132_s26 = ssub.s32 %s9565_s21, %s9627_s24  ;;  %p145_p0 = scmp.ne.s32.totalorder %s9561_s20, %s9557_s19 }
   0x6   : > { %p133_p1 = scmp.eq.s32.totalorder %s132_s26, 0  ;;  %p146_p2 = scmp.eq.s32.totalorder %s9623_s22, 1 }
   0x7   : > { %p151_p3 = scmp.ne.s32.totalorder %s9557_s19, %s9553_s18  ;;  %p152_p4 = scmp.eq.s32.totalorder %s7214_s23, 1 }
   0x8   : > { %s9638_s27 = scalar_select %p133_p1, %s9561_s20, %s135_s25  }
   0x9   : > { %p9640_p5 = por %p146_p2, %p145_p0  ;;  %p9644_p6 = por %p152_p4, %p151_p3 }
   0xa   : > { %p7217_p7 = scmp.ge.s32.totalorder %s9565_s21, 1  ;;  %p190_p8 = scmp.lt.s32.totalorder %s9565_s21, 3 }
   0xc   : > { %p191_p9 = pnand %p7217_p7, %p190_p8 }
   0xe   : > { %194 = sbr.rel (%p191_p9) target bundleno = 1129 (0x469), region = 40 }
  0x13   : > { %vm224_vm0 = vcmask 523264   ;;  %p218_p10 = scmp.lt.s32.totalorder %s9623_s22, 1  ;;  %v9567_v0 = vmov 0.0   ;;  %v9257_v1 = vld [vmem:[%s11950_s1 + $0x78] sm:$0xff]   ;;  %v9259_v3 = vld [vmem:[%s11950_s1 + $0x70] sm:$0xff]   ;;  %v9261_v5 = vld [vmem:[%s11950_s1 + $0x68] sm:$0xff]  }
  0x14   : > { %261 = vst.msk [vmem:[#allocation2 + $0x8] sm:$0xff] %vm224_vm0, %v9567_v0  ;;  %225 = vst.msk [vmem:[#allocation2] sm:$0xff] %vm224_vm0, %v9567_v0  ;;  %v9258_v2 = vld [vmem:[%s11950_s1 + $0x38] sm:$0xff]   ;;  %8646 = vmatprep.subr.bf16.mxu0 %v9257_v1  ;;  %v9260_v4 = vld [vmem:[%s11950_s1 + $0x30] sm:$0xff]   ;;  %s9568_s26 = smov 64   ;;  %vm491_vm1 = vcmask 519168  }
  0x15   : > { %226 = vst.msk [vmem:[#allocation2 + $0x20] sm:$0xff] %vm224_vm0, %v9567_v0  ;;  %227 = vst.msk [vmem:[#allocation2 + $0x40] sm:$0xff] %vm224_vm0, %v9567_v0  ;;  %s219_s7 = scalar_select %p218_p10, %s9623_s22, 1  ;;  %8647 = vmatpush3.bf16.msra.mxu0 %v9258_v2  ;;  %vm748_vm2 = vcmask 1043968  }
  0x16   : > { %228 = vst.msk [vmem:[#allocation2 + $0x60] sm:$0xff] %vm224_vm0, %v9567_v0  ;;  %229 = vst.msk [vmem:[#allocation2 + $0x80] sm:$0xff] %vm224_vm0, %v9567_v0  ;;  %8648 = vmatprep.subr.bf16.mxu0 %v9259_v3  ;;  %s215_s25 = sand.u32 1, %s9557_s19  }
  0x17   : > { %230 = vst.msk [vmem:[#allocation2 + $0xa0] sm:$0xff] %vm224_vm0, %v9567_v0  ;;  %231 = vst.msk [vmem:[#allocation2 + $0xc0] sm:$0xff] %vm224_vm0, %v9567_v0  ;;  %s8068_s12 = sshll.u32 %s219_s7, 8  ;;  %s7218_s30 = sshll.u32 %s215_s25, 8 }
  0x18   : > { %232 = vst.msk [vmem:[#allocation2 + $0xe0] sm:$0xff] %vm224_vm0, %v9567_v0  ;;  %233 = vst.msk [vmem:[#allocation2 + $0x100] sm:$0xff] %vm224_vm0, %v9567_v0  ;;  %s9709_s17 = scalar_lea.vmem %s11949_s0, %s8068_s12  ;;  %s11688_s6 = scalar_lea.vmem [#allocation4], %s7218_s30 }
  0x19   : > { %234 = vst.msk [vmem:[#allocation2 + $0x120] sm:$0xff] %vm224_vm0, %v9567_v0  ;;  %235 = vst.msk [vmem:[#allocation2 + $0x140] sm:$0xff] %vm224_vm0, %v9567_v0  ;;  %v266_v6 = vld [vmem:[%s9709_s17] sm:$0xff]  ;;  %v267_v7 = vld [vmem:[%s9709_s17 + $0x8] sm:$0xff]  ;;  %8649 = vmatpush3.bf16.msra.mxu0 %v9260_v4  ;;  %s8645_s7 = sshll.u32 %s9623_s22, 12  ;;  %s7152_s8 = sshll.u32 %s11688_s6, 4  ;;  %s11901_s8 = int_to_ptr.vmem [resolvable:$true] %s7152_s8 }
  0x1a   : > { %236 = vst.msk [vmem:[#allocation2 + $0x160] sm:$0xff] %vm224_vm0, %v9567_v0  ;;  %237 = vst.msk [vmem:[#allocation2 + $0x180] sm:$0xff] %vm224_vm0, %v9567_v0  ;;  %v268_v8 = vld [vmem:[%s9709_s17 + $0x10] sm:$0xff]  ;;  %v269_v9 = vld [vmem:[%s9709_s17 + $0x18] sm:$0xff]  ;;  %8650 = vmatprep.subr.bf16.mxu0 %v9261_v5  ;;  %s11899_s11 = scalar_lea.hbm %s11954_s5, %s8645_s7  ;;  %s11909_s22 = scalar_lea.sflag [#allocation5], %s215_s25 }
  0x1b   : > { %238 = vst.msk [vmem:[#allocation2 + $0x1a0] sm:$0xff] %vm224_vm0, %v9567_v0  ;;  %239 = vst.msk [vmem:[#allocation2 + $0x1c0] sm:$0xff] %vm224_vm0, %v9567_v0  ;;  %v270_v10 = vld [vmem:[%s9709_s17 + $0x20] sm:$0xff]  ;;  %v271_v11 = vld [vmem:[%s9709_s17 + $0x28] sm:$0xff]  ;;  %s9569_s12 = smov [#allocation4]  }
  0x1c   : > { %240 = vst.msk [vmem:[#allocation2 + $0x1e0] sm:$0xff] %vm224_vm0, %v9567_v0  ;;  %241 = vst.msk [vmem:[#allocation2 + $0x200] sm:$0xff] %vm224_vm0, %v9567_v0  ;;  %v524_v12 = vld [vmem:[#allocation2 + $0x8] sm:$0xff]  ;;  %v272_v14 = vld [vmem:[%s9709_s17 + $0x30] sm:$0xff]  ;;  %s9509_s13 = sshll.u32 %s9569_s12, 4  ;;  %s9510_s13 = int_to_ptr.vmem [resolvable:$false] %s9509_s13 }
  0x1d   : > { %242 = vst.msk [vmem:[#allocation2 + $0x220] sm:$0xff] %vm224_vm0, %v9567_v0  ;;  %243 = vst.msk [vmem:[#allocation2 + $0x18] sm:$0xff] %vm224_vm0, %v9567_v0  ;;  %v8101_v15 = vpack.c.bf16 %v524_v12, %v524_v12  ;;  %v273_v16 = vld [vmem:[%s9709_s17 + $0x38] sm:$0xff]  ;;  %v274_v17 = vld [vmem:[%s9709_s17 + $0x40] sm:$0xff]  ;;  %s9511_s14 = scalar_lea.vmem %s9510_s13, 8192  ;;  %p9512_p0 = scmp.lt.s32.totalorder %s11901_s8, %s9510_s13 }
  0x1e   : > { %244 = vst.msk [vmem:[#allocation2 + $0x38] sm:$0xff] %vm224_vm0, %v9567_v0  ;;  %245 = vst.msk [vmem:[#allocation2 + $0x58] sm:$0xff] %vm224_vm0, %v9567_v0  ;;  %v275_v18 = vld [vmem:[%s9709_s17 + $0x48] sm:$0xff]  ;;  %v276_v19 = vld [vmem:[%s9709_s17 + $0x50] sm:$0xff] }
  0x1f   : > { %246 = vst.msk [vmem:[#allocation2 + $0x78] sm:$0xff] %vm224_vm0, %v9567_v0  ;;  %247 = vst.msk [vmem:[#allocation2 + $0x98] sm:$0xff] %vm224_vm0, %v9567_v0  ;;  %v277_v20 = vld [vmem:[%s9709_s17 + $0x58] sm:$0xff]  ;;  %v278_v21 = vld [vmem:[%s9709_s17 + $0x60] sm:$0xff]  ;;  %652 = vrot.lane.b32.xlu0 %v8101_v15, %s9568_s26 }
  0x20   : > { %248 = vst.msk [vmem:[#allocation2 + $0xb8] sm:$0xff] %vm224_vm0, %v9567_v0  ;;  %249 = vst.msk [vmem:[#allocation2 + $0xd8] sm:$0xff] %vm224_vm0, %v9567_v0  ;;  %v279_v23 = vld [vmem:[%s9709_s17 + $0x68] sm:$0xff]  ;;  %v280_v24 = vld [vmem:[%s9709_s17 + $0x70] sm:$0xff] }
  0x21   : > { %250 = vst.msk [vmem:[#allocation2 + $0xf8] sm:$0xff] %vm224_vm0, %v9567_v0  ;;  %251 = vst.msk [vmem:[#allocation2 + $0x118] sm:$0xff] %vm224_vm0, %v9567_v0  ;;  %v281_v25 = vld [vmem:[%s9709_s17 + $0x78] sm:$0xff]  ;;  %v282_v26 = vld [vmem:[%s9709_s17 + $0x80] sm:$0xff] }
  0x22   : > { %252 = vst.msk [vmem:[#allocation2 + $0x138] sm:$0xff] %vm224_vm0, %v9567_v0  ;;  %253 = vst.msk [vmem:[#allocation2 + $0x158] sm:$0xff] %vm224_vm0, %v9567_v0  ;;  %v283_v27 = vld [vmem:[%s9709_s17 + $0x88] sm:$0xff]  ;;  %v284_v28 = vld [vmem:[%s9709_s17 + $0x90] sm:$0xff] }
  0x23   : > { %254 = vst.msk [vmem:[#allocation2 + $0x178] sm:$0xff] %vm224_vm0, %v9567_v0  ;;  %255 = vst.msk [vmem:[#allocation2 + $0x198] sm:$0xff] %vm224_vm0, %v9567_v0  ;;  %v285_v29 = vld [vmem:[%s9709_s17 + $0x98] sm:$0xff]  ;;  %v286_v30 = vld [vmem:[%s9709_s17 + $0xa0] sm:$0xff] }
  0x24   : > { %256 = vst.msk [vmem:[#allocation2 + $0x1b8] sm:$0xff] %vm224_vm0, %v9567_v0  ;;  %257 = vst.msk [vmem:[#allocation2 + $0x1d8] sm:$0xff] %vm224_vm0, %v9567_v0  ;;  %v287_v31 = vld [vmem:[%s9709_s17 + $0xa8] sm:$0xff]  ;;  %v289_v12 = vld [vmem:[%s9709_s17 + $0xb8] sm:$0xff] }
  0x25   : > { %258 = vst.msk [vmem:[#allocation2 + $0x1f8] sm:$0xff] %vm224_vm0, %v9567_v0  ;;  %259 = vst.msk [vmem:[#allocation2 + $0x218] sm:$0xff] %vm224_vm0, %v9567_v0  ;;  %v292_v15 = vld [vmem:[%s9709_s17 + $0xd0] sm:$0xff] }
  0x26   : > { %260 = vst.msk [vmem:[#allocation2 + $0x238] sm:$0xff] %vm224_vm0, %v9567_v0  ;;  %262 = vst.msk [vmem:[#allocation2 + $0x10] sm:$0xff] %vm224_vm0, %v9567_v0 }
  0x27   : > { %264 = vst.msk [vmem:[#allocation2 + $0x228] sm:$0xff] %vm224_vm0, %v9567_v0  ;;  %265 = vst.msk [vmem:[#allocation2 + $0x230] sm:$0xff] %vm224_vm0, %v9567_v0 }
  0x28   : > { %299 = vst.msk [vmem:[#allocation2 + $0x28] sm:$0xff] %vm224_vm0, %v266_v6  ;;  %300 = vst.msk [vmem:[#allocation2 + $0x30] sm:$0xff] %vm224_vm0, %v267_v7 }
  0x29   : > { %301 = vst.msk [vmem:[#allocation2 + $0x48] sm:$0xff] %vm224_vm0, %v268_v8  ;;  %302 = vst.msk [vmem:[#allocation2 + $0x50] sm:$0xff] %vm224_vm0, %v269_v9 }
  0x2a   : > { %303 = vst.msk [vmem:[#allocation2 + $0x68] sm:$0xff] %vm224_vm0, %v270_v10  ;;  %304 = vst.msk [vmem:[#allocation2 + $0x70] sm:$0xff] %vm224_vm0, %v271_v11  ;;  %v288_v10 = vld [vmem:[%s9709_s17 + $0xb0] sm:$0xff] }
  0x2b   : > { %305 = vst.msk [vmem:[#allocation2 + $0x88] sm:$0xff] %vm224_vm0, %v272_v14  ;;  %306 = vst.msk [vmem:[#allocation2 + $0x90] sm:$0xff] %vm224_vm0, %v273_v16  ;;  %v291_v14 = vld [vmem:[%s9709_s17 + $0xc8] sm:$0xff] }
  0x2c   : > { %307 = vst.msk [vmem:[#allocation2 + $0xa8] sm:$0xff] %vm224_vm0, %v274_v17  ;;  %308 = vst.msk [vmem:[#allocation2 + $0xb0] sm:$0xff] %vm224_vm0, %v275_v18  ;;  %v9262_v16 = vld [vmem:[%s11950_s1 + $0x28] sm:$0xff]   ;;  %v293_v18 = vld [vmem:[%s9709_s17 + $0xd8] sm:$0xff] }
  0x2d   : > { %v525_v13 = vld [vmem:[#allocation2 + $0x10] sm:$0xff]  ;;  %309 = vst.msk [vmem:[#allocation2 + $0xc8] sm:$0xff] %vm224_vm0, %v276_v19  ;;  %310 = vst.msk [vmem:[#allocation2 + $0xd0] sm:$0xff] %vm224_vm0, %v277_v20  ;;  %8651 = vmatpush3.bf16.msra.mxu0 %v9262_v16  ;;  %v9263_v20 = vld [vmem:[%s11950_s1 + $0x60] sm:$0xff]  }
  0x2e   : > { %v8102_v22 = vpack.c.bf16 %v525_v13, %v525_v13  ;;  %311 = vst.msk [vmem:[#allocation2 + $0xe8] sm:$0xff] %vm224_vm0, %v278_v21  ;;  %312 = vst.msk [vmem:[#allocation2 + $0xf0] sm:$0xff] %vm224_vm0, %v279_v23  ;;  %v290_v13 = vld [vmem:[%s9709_s17 + $0xc0] sm:$0xff]  ;;  %8652 = vmatprep.subr.bf16.mxu0 %v9263_v20 }
  0x2f   : > { %313 = vst.msk [vmem:[#allocation2 + $0x108] sm:$0xff] %vm224_vm0, %v280_v24  ;;  %314 = vst.msk [vmem:[#allocation2 + $0x110] sm:$0xff] %vm224_vm0, %v281_v25  ;;  %v973_v32 = vld [vmem:[#allocation2 + $0x27] sm:$0xff]  ;;  %v974_v33 = vld [vmem:[#allocation2 + $0x2f] sm:$0xff] }
  0x30   : > { %315 = vst.msk [vmem:[#allocation2 + $0x128] sm:$0xff] %vm224_vm0, %v282_v26  ;;  %316 = vst.msk [vmem:[#allocation2 + $0x130] sm:$0xff] %vm224_vm0, %v283_v27  ;;  %v526_v34 = vld [vmem:[#allocation2 + $0x28] sm:$0xff]  ;;  %654 = vrot.lane.b32.xlu0 %v8102_v22, %s9568_s26  ;;  %v8165_v35 = vpack.c.bf16 %v973_v32, %v973_v32  ;;  %v8166_v36 = vpack.c.bf16 %v974_v33, %v974_v33  ;;  %v527_v45 = vld [vmem:[#allocation2 + $0x30] sm:$0xff] }
  0x31   : > { %317 = vst.msk [vmem:[#allocation2 + $0x148] sm:$0xff] %vm224_vm0, %v284_v28  ;;  %318 = vst.msk [vmem:[#allocation2 + $0x150] sm:$0xff] %vm224_vm0, %v285_v29  ;;  %v8103_v37 = vpack.c.bf16 %v526_v34, %v526_v34  ;;  %v975_v38 = vld [vmem:[#allocation2 + $0x47] sm:$0xff]  ;;  %v976_v39 = vld [vmem:[#allocation2 + $0x4f] sm:$0xff]  ;;  %v8104_v57 = vpack.c.bf16 %v527_v45, %v527_v45 }
  0x32   : > { %319 = vst.msk [vmem:[#allocation2 + $0x168] sm:$0xff] %vm224_vm0, %v286_v30  ;;  %320 = vst.msk [vmem:[#allocation2 + $0x170] sm:$0xff] %vm224_vm0, %v287_v31  ;;  %v8167_v40 = vpack.c.bf16 %v975_v38, %v975_v38  ;;  %v8168_v41 = vpack.c.bf16 %v976_v39, %v976_v39  ;;  %v977_v42 = vld [vmem:[#allocation2 + $0x67] sm:$0xff]  ;;  %1101 = vrot.lane.b32.xlu1 %v8165_v35, %s9568_s26  ;;  %v978_v44 = vld [vmem:[#allocation2 + $0x6f] sm:$0xff] }
  0x33   : > { %v9761_v43 = vpack.c.bf16 %v977_v42, %v977_v42  ;;  %494 = vst.msk [vmem:[#allocation3 + $0x28] sm:$0xf] %vm491_vm1, %v8165_v35  ;;  %495 = vst.msk [vmem:[#allocation3 + $0x3c] sm:$0xf] %vm491_vm1, %v8166_v36  ;;  %v9765_v46 = vpack.c.bf16 %v978_v44, %v978_v44  ;;  %v979_v47 = vld [vmem:[#allocation2 + $0x87] sm:$0xff]  ;;  %v980_v48 = vld [vmem:[#allocation2 + $0x8f] sm:$0xff] }
  0x34   : > { %496 = vst.msk [vmem:[#allocation3 + $0x50] sm:$0xf] %vm491_vm1, %v8167_v40  ;;  %497 = vst.msk [vmem:[#allocation3 + $0x64] sm:$0xf] %vm491_vm1, %v8168_v41  ;;  %656 = vrot.lane.b32.xlu0 %v8103_v37, %s9568_s26  ;;  %v9770_v49 = vpack.c.bf16 %v979_v47, %v979_v47  ;;  %v9772_v50 = vpack.c.bf16 %v980_v48, %v980_v48  ;;  %v981_v51 = vld [vmem:[#allocation2 + $0xa7] sm:$0xff]  ;;  %v982_v52 = vld [vmem:[#allocation2 + $0xaf] sm:$0xff] }
  0x35   : > { %498 = vst.msk [vmem:[#allocation3 + $0x78] sm:$0xf] %vm491_vm1, %v9761_v43  ;;  %v528_v53 = vld [vmem:[#allocation2 + $0x48] sm:$0xff]  ;;  %v9776_v54 = vpack.c.bf16 %v981_v51, %v981_v51  ;;  %v9778_v55 = vpack.c.bf16 %v982_v52, %v982_v52  ;;  %499 = vst.msk [vmem:[#allocation3 + $0x8c] sm:$0xf] %vm491_vm1, %v9765_v46  ;;  %v529_v8 = vld [vmem:[#allocation2 + $0x50] sm:$0xff] }
  0x36   : > { %v983_v56 = vld [vmem:[#allocation2 + $0xc7] sm:$0xff]  ;;  %1103 = vrot.lane.b32.xlu1 %v8166_v36, %s9568_s26  ;;  %v984_v59 = vld [vmem:[#allocation2 + $0xcf] sm:$0xff]  ;;  %500 = vst.msk [vmem:[#allocation3 + $0xa0] sm:$0xf] %vm491_vm1, %v9770_v49  ;;  %501 = vst.msk [vmem:[#allocation3 + $0xb4] sm:$0xf] %vm491_vm1, %v9772_v50  ;;  %v9796_v63 = vpack.c.bf16 %v528_v53, %v528_v53  ;;  %v9827_v11 = vpack.c.bf16 %v529_v8, %v529_v8 }
  0x37   : > { %v9783_v58 = vpack.c.bf16 %v983_v56, %v983_v56  ;;  %v9789_v60 = vpack.c.bf16 %v984_v59, %v984_v59  ;;  %v985_v61 = vld [vmem:[#allocation2 + $0xe7] sm:$0xff]  ;;  %v986_v62 = vld [vmem:[#allocation2 + $0xef] sm:$0xff]  ;;  %502 = vst.msk [vmem:[#allocation3 + $0xc8] sm:$0xf] %vm491_vm1, %v9776_v54  ;;  %503 = vst.msk [vmem:[#allocation3 + $0xdc] sm:$0xf] %vm491_vm1, %v9778_v55 }
  0x38   : > { %1105 = vrot.lane.b32.xlu0 %v8167_v40, %s9568_s26  ;;  %v9798_v0 = vpack.c.bf16 %v985_v61, %v985_v61  ;;  %v9800_v1 = vpack.c.bf16 %v986_v62, %v986_v62  ;;  %v987_v2 = vld [vmem:[#allocation2 + $0x107] sm:$0xff]  ;;  %v988_v3 = vld [vmem:[#allocation2 + $0x10f] sm:$0xff]  ;;  %321 = vst.msk [vmem:[#allocation2 + $0x188] sm:$0xff] %vm224_vm0, %v288_v10  ;;  %322 = vst.msk [vmem:[#allocation2 + $0x190] sm:$0xff] %vm224_vm0, %v289_v12 }
  0x39   : > { %504 = vst.msk [vmem:[#allocation3 + $0xf0] sm:$0xf] %vm491_vm1, %v9783_v58  ;;  %v9804_v4 = vpack.c.bf16 %v987_v2, %v987_v2  ;;  %v9806_v5 = vpack.c.bf16 %v988_v3, %v988_v3  ;;  %v989_v6 = vld [vmem:[#allocation2 + $0x127] sm:$0xff]  ;;  %505 = vst.msk [vmem:[#allocation3 + $0x104] sm:$0xf] %vm491_vm1, %v9789_v60  ;;  %v531_v19 = vld [vmem:[#allocation2 + $0x70] sm:$0xff] }
  0x3a   : > { %658 = vrot.lane.b32.xlu1 %v8104_v57, %s9568_s26  ;;  %v9811_v7 = vpack.c.bf16 %v989_v6, %v989_v6  ;;  %506 = vst.msk [vmem:[#allocation3 + $0x118] sm:$0xf] %vm491_vm1, %v9798_v0  ;;  %507 = vst.msk [vmem:[#allocation3 + $0x12c] sm:$0xf] %vm491_vm1, %v9800_v1  ;;  %v530_v9 = vld [vmem:[#allocation2 + $0x68] sm:$0xff]  ;;  %v9264_v23 = vld [vmem:[%s11950_s1 + $0x20] sm:$0xff]   ;;  %v9867_v31 = vpack.c.bf16 %v531_v19, %v531_v19 }
  0x3b   : > { %508 = vst.msk [vmem:[#allocation3 + $0x140] sm:$0xf] %vm491_vm1, %v9804_v4  ;;  %509 = vst.msk [vmem:[#allocation3 + $0x154] sm:$0xf] %vm491_vm1, %v9806_v5  ;;  %v9842_v17 = vpack.c.bf16 %v530_v9, %v530_v9  ;;  %v331_v21 = vld [vmem:[#allocation2 + $0x7] sm:$0xff]  ;;  %v9265_v25 = vld [vmem:[%s11950_s1 + $0x58] sm:$0xff]   ;;  %8653 = vmatpush3.bf16.msra.mxu0 %v9264_v23 }
  0x3c   : > { %660 = vrot.lane.b32.xlu0 %v9796_v63, %s9568_s26  ;;  %510 = vst.msk [vmem:[#allocation3 + $0x168] sm:$0xf] %vm491_vm1, %v9811_v7  ;;  %v8069_v22 = vpack.c.bf16 %v331_v21, %v331_v21  ;;  %v294_v24 = vld [vmem:[%s9709_s17 + $0xe0] sm:$0xff]  ;;  %v332_v26 = vld [vmem:[#allocation2 + $0xf] sm:$0xff]  ;;  %8654 = vmatprep.subr.bf16.mxu0 %v9265_v25  ;;  %v9266_v33 = vld [vmem:[%s11950_s1 + $0x18] sm:$0xff]  }
  0x3d   : > { %323 = vst.msk [vmem:[#allocation2 + $0x1a8] sm:$0xff] %vm224_vm0, %v290_v13  ;;  %324 = vst.msk [vmem:[#allocation2 + $0x1b0] sm:$0xff] %vm224_vm0, %v291_v14  ;;  %v781_v27 = vld [vmem:[#allocation2 + $0x9] sm:$0xff]  ;;  %v8070_v29 = vpack.c.bf16 %v332_v26, %v332_v26  ;;  %v782_v38 = vld [vmem:[#allocation2 + $0x11] sm:$0xff] }
  0x3e   : > { %1107 = vrot.lane.b32.xlu1 %v8168_v41, %s9568_s26  ;;  %325 = vst.msk [vmem:[#allocation2 + $0x1c8] sm:$0xff] %vm224_vm0, %v292_v15  ;;  %326 = vst.msk [vmem:[#allocation2 + $0x1d0] sm:$0xff] %vm224_vm0, %v293_v18  ;;  %v532_v28 = vld [vmem:[#allocation2 + $0x88] sm:$0xff]  ;;  %v9863_v30 = vpack.c.bf16 %v781_v27, %v781_v27  ;;  %v533_v35 = vld [vmem:[#allocation2 + $0x90] sm:$0xff]  ;;  %v9888_v39 = vpack.c.bf16 %v782_v38, %v782_v38 }
  0x3f   : > { %327 = vst.msk [vmem:[#allocation2 + $0x1e8] sm:$0xff] %vm224_vm0, %v294_v24  ;;  %v9874_v32 = vpack.c.bf16 %v532_v28, %v532_v28  ;;  %v295_v34 = vld [vmem:[%s9709_s17 + $0xe8] sm:$0xff]  ;;  %8655 = vmatpush3.bf16.msra.mxu0 %v9266_v33  ;;  %v9267_v37 = vld [vmem:[%s11950_s1 + $0x50] sm:$0xff]   ;;  %v9896_v42 = vpack.c.bf16 %v533_v35, %v533_v35  ;;  %v297_v47 = vld [vmem:[%s9709_s17 + $0xf8] sm:$0xff] }
  0x40   : > { %1109 = vrot.lane.b32.xlu0 %v9761_v43, %s9568_s26  ;;  %492 = vst.msk [vmem:[#allocation3] sm:$0xf] %vm491_vm1, %v8069_v22  ;;  %493 = vst.msk [vmem:[#allocation3 + $0x14] sm:$0xf] %vm491_vm1, %v8070_v29  ;;  %v534_v36 = vld [vmem:[#allocation2 + $0xa8] sm:$0xff]  ;;  %v9268_v40 = vld [vmem:[%s11950_s1 + $0x10] sm:$0xff]   ;;  %8656 = vmatprep.subr.bf16.mxu0 %v9267_v37 }
  0x41   : > { %941 = vst.msk [vmem:[#allocation3 + $0x4] sm:$0xf] %vm491_vm1, %v9863_v30  ;;  %v296_v41 = vld [vmem:[%s9709_s17 + $0xf0] sm:$0xff]  ;;  %942 = vst.msk [vmem:[#allocation3 + $0x18] sm:$0xf] %vm491_vm1, %v9888_v39  ;;  %v9269_v43 = vld [vmem:[%s11950_s1 + $0x48] sm:$0xff]   ;;  %v9912_v48 = vpack.c.bf16 %v534_v36, %v534_v36 }
  0x42   : > { %662 = vrot.lane.b32.xlu1 %v9827_v11, %s9568_s26  ;;  %328 = vst.msk [vmem:[#allocation2 + $0x1f0] sm:$0xff] %vm224_vm0, %v295_v34  ;;  %329 = vst.msk [vmem:[#allocation2 + $0x208] sm:$0xff] %vm224_vm0, %v296_v41  ;;  %v783_v44 = vld [vmem:[#allocation2 + $0x29] sm:$0xff]  ;;  %v784_v51 = vld [vmem:[#allocation2 + $0x31] sm:$0xff] }
  0x43   : > { %8657 = vmatpush3.bf16.msra.mxu0 %v9268_v40  ;;  %v9904_v45 = vpack.c.bf16 %v783_v44, %v783_v44  ;;  %330 = vst.msk [vmem:[#allocation2 + $0x210] sm:$0xff] %vm224_vm0, %v297_v47  ;;  %v9922_v52 = vpack.c.bf16 %v784_v51, %v784_v51  ;;  %v9272_v53 = vld [vmem:[%s11950_s1] sm:$0xff]   ;;  %v786_v56 = vld [vmem:[#allocation2 + $0x51] sm:$0xff]  ;;  %v787_v57 = vld [vmem:[#allocation2 + $0x69] sm:$0xff] }
  0x44   : > { %664 = vrot.lane.b32.xlu0 %v9842_v17, %s9568_s26  ;;  %8658 = vmatprep.subr.bf16.mxu0 %v9269_v43  ;;  %v9933_v61 = vpack.c.bf16 %v786_v56, %v786_v56  ;;  %v9935_v62 = vpack.c.bf16 %v787_v57, %v787_v57  ;;  %v788_v2 = vld [vmem:[#allocation2 + $0x71] sm:$0xff]  ;;  %v536_v3 = vld [vmem:[#allocation2 + $0xc8] sm:$0xff] }
  0x45   : > { %943 = vst.msk [vmem:[#allocation3 + $0x2c] sm:$0xf] %vm491_vm1, %v9904_v45  ;;  %944 = vst.msk [vmem:[#allocation3 + $0x40] sm:$0xf] %vm491_vm1, %v9922_v52  ;;  %v9937_v6 = vpack.c.bf16 %v788_v2, %v788_v2  ;;  %v9942_v8 = vld [vmem:[%s11950_s1 + $0x118] sm:$0xff]   ;;  %v789_v9 = vld [vmem:[#allocation2 + $0x89] sm:$0xff]  ;;  %v9966_v21 = vpack.c.bf16 %v536_v3, %v536_v3 }
  0x46   : > { %1111 = vrot.lane.b32.xlu1 %v9765_v46, %s9568_s26  ;;  %v9270_v46 = vld [vmem:[%s11950_s1 + $0x8] sm:$0xff]   ;;  %946 = vst.msk [vmem:[#allocation3 + $0x68] sm:$0xf] %vm491_vm1, %v9933_v61  ;;  %947 = vst.msk [vmem:[#allocation3 + $0x7c] sm:$0xf] %vm491_vm1, %v9935_v62  ;;  %v9954_v12 = vpack.c.bf16 %v789_v9, %v789_v9  ;;  %v790_v13 = vld [vmem:[#allocation2 + $0x91] sm:$0xff] }
  0x47   : > { %8659 = vmatpush3.bf16.msra.mxu0 %v9270_v46  ;;  %v791_v14 = vld [vmem:[#allocation2 + $0xa9] sm:$0xff]  ;;  %v792_v15 = vld [vmem:[#allocation2 + $0xb1] sm:$0xff]  ;;  %948 = vst.msk [vmem:[#allocation3 + $0x90] sm:$0xf] %vm491_vm1, %v9937_v6 }
  0x48   : > { %1113 = vrot.lane.b32.xlu0 %v9770_v49, %s9568_s26  ;;  %v9271_v49 = vld [vmem:[%s11950_s1 + $0x40] sm:$0xff]   ;;  %v9960_v16 = vpack.c.bf16 %v791_v14, %v791_v14  ;;  %v9962_v18 = vpack.c.bf16 %v792_v15, %v792_v15  ;;  %v793_v19 = vld [vmem:[#allocation2 + $0xc9] sm:$0xff]  ;;  %v794_v20 = vld [vmem:[#allocation2 + $0xd1] sm:$0xff]  ;;  %949 = vst.msk [vmem:[#allocation3 + $0xa4] sm:$0xf] %vm491_vm1, %v9954_v12 }
  0x49   : > { %8660 = vmatprep.subr.bf16.mxu0 %v9271_v49  ;;  %v9971_v22 = vpack.c.bf16 %v793_v19, %v793_v19  ;;  %v9973_v23 = vpack.c.bf16 %v794_v20, %v794_v20  ;;  %v537_v24 = vld [vmem:[#allocation2 + $0xd0] sm:$0xff]  ;;  %v538_v26 = vld [vmem:[#allocation2 + $0xe8] sm:$0xff] }
  0x4a   : > { %666 = vrot.lane.b32.xlu1 %v9867_v31, %s9568_s26  ;;  %951 = vst.msk [vmem:[#allocation3 + $0xcc] sm:$0xf] %vm491_vm1, %v9960_v16  ;;  %952 = vst.msk [vmem:[#allocation3 + $0xe0] sm:$0xf] %vm491_vm1, %v9962_v18  ;;  %v796_v27 = vld [vmem:[#allocation2 + $0xf1] sm:$0xff]  ;;  %v9995_v28 = vpack.c.bf16 %v537_v24, %v537_v24  ;;  %v10001_v33 = vpack.c.bf16 %v538_v26, %v538_v26  ;;  %v797_v35 = vld [vmem:[#allocation2 + $0x109] sm:$0xff] }
  0x4b   : > { %8661 = vmatpush3.bf16.msra.mxu0 %v9272_v53  ;;  %953 = vst.msk [vmem:[#allocation3 + $0xf4] sm:$0xf] %vm491_vm1, %v9971_v22  ;;  %954 = vst.msk [vmem:[#allocation3 + $0x108] sm:$0xf] %vm491_vm1, %v9973_v23  ;;  %v9997_v29 = vpack.c.bf16 %v796_v27, %v796_v27  ;;  %v539_v34 = vld [vmem:[#allocation2 + $0xf0] sm:$0xff]  ;;  %v10007_v36 = vpack.c.bf16 %v797_v35, %v797_v35  ;;  %v542_v47 = vld [vmem:[#allocation2 + $0x128] sm:$0xff] }
  0x4c   : > { %668 = vrot.lane.b32.xlu0 %v9874_v32, %s9568_s26  ;;  %9134 = vmatprep.subr.bf16.mxu0 %v9942_v8  ;;  %v10015_v37 = vpack.c.bf16 %v539_v34, %v539_v34  ;;  %v350_v41 = vld [vmem:[#allocation2 + $0x12f] sm:$0xff]  ;;  %v991_v53 = vld [vmem:[#allocation2 + $0x147] sm:$0xff] }
  0x4d   : > { %956 = vst.msk [vmem:[#allocation3 + $0x130] sm:$0xf] %vm491_vm1, %v9997_v29  ;;  %957 = vst.msk [vmem:[#allocation3 + $0x144] sm:$0xf] %vm491_vm1, %v10007_v36  ;;  %v799_v43 = vld [vmem:[#allocation2 + $0x129] sm:$0xff]  ;;  %v8088_v44 = vpack.c.bf16 %v350_v41, %v350_v41  ;;  %v800_v49 = vld [vmem:[#allocation2 + $0x131] sm:$0xff] }
  0x4e   : > { %1115 = vrot.lane.b32.xlu1 %v9772_v50, %s9568_s26  ;;  %v535_v50 = vld [vmem:[#allocation2 + $0xb0] sm:$0xff]  ;;  %v10027_v46 = vpack.c.bf16 %v799_v43, %v799_v43  ;;  %v10038_v51 = vpack.c.bf16 %v800_v49, %v800_v49  ;;  %v351_v56 = vld [vmem:[#allocation2 + $0x147] sm:$0xff] }
  0x4f   : > { %v9946_v10 = vpack.c.bf16 %v535_v50, %v535_v50  ;;  %511 = vst.msk [vmem:[#allocation3 + $0x17c] sm:$0xf] %vm491_vm1, %v8088_v44  ;;  %v352_v57 = vld [vmem:[#allocation2 + $0x14f] sm:$0xff]  ;;  %v993_v26 = vld [vmem:[#allocation2 + $0x167] sm:$0xff] }
  0x50   : > { %1117 = vrot.lane.b32.xlu0 %v9776_v54, %s9568_s26  ;;  %v785_v54 = vld [vmem:[#allocation2 + $0x49] sm:$0xff]  ;;  %959 = vst.msk [vmem:[#allocation3 + $0x16c] sm:$0xf] %vm491_vm1, %v10027_v46  ;;  %960 = vst.msk [vmem:[#allocation3 + $0x180] sm:$0xf] %vm491_vm1, %v10038_v51  ;;  %v8090_v9 = vpack.c.bf16 %v352_v57, %v352_v57  ;;  %v802_v20 = vld [vmem:[#allocation2 + $0x151] sm:$0xff] }
  0x51   : > { %v9931_v59 = vpack.c.bf16 %v785_v54, %v785_v54  ;;  %v8119_v54 = vpack.c.bf16 %v542_v47, %v542_v47  ;;  %v801_v2 = vld [vmem:[#allocation2 + $0x149] sm:$0xff] }
  0x52   : > { %670 = vrot.lane.b32.xlu1 %v9896_v42, %s9568_s26  ;;  %v543_v14 = vld [vmem:[#allocation2 + $0x130] sm:$0xff]  ;;  %v544_v15 = vld [vmem:[#allocation2 + $0x148] sm:$0xff]  ;;  %513 = vst.msk [vmem:[#allocation3 + $0x1a4] sm:$0xf] %vm491_vm1, %v8090_v9 }
  0x53   : > { %945 = vst.msk [vmem:[#allocation3 + $0x54] sm:$0xf] %vm491_vm1, %v9931_v59  ;;  %v992_v19 = vld [vmem:[#allocation2 + $0x14f] sm:$0xff]  ;;  %v8120_v24 = vpack.c.bf16 %v543_v14, %v543_v14  ;;  %v8121_v27 = vpack.c.bf16 %v544_v15, %v544_v15  ;;  %v353_v34 = vld [vmem:[#allocation2 + $0x167] sm:$0xff] }
  0x54   : > { %672 = vrot.lane.b32.xlu0 %v9912_v48, %s9568_s26  ;;  %v354_v35 = vld [vmem:[#allocation2 + $0x16f] sm:$0xff]  ;;  %v8091_v41 = vpack.c.bf16 %v353_v34, %v353_v34 }
  0x55   : > { %v8092_v43 = vpack.c.bf16 %v354_v35, %v354_v35  ;;  %v546_v47 = vld [vmem:[#allocation2 + $0x168] sm:$0xff] }
  0x56   : > { %1119 = vrot.lane.b32.xlu1 %v9778_v55, %s9568_s26  ;;  %v9958_v55 = vpack.c.bf16 %v790_v13, %v790_v13  ;;  %v10046_v13 = vpack.c.bf16 %v801_v2, %v801_v2  ;;  %514 = vst.msk [vmem:[#allocation3 + $0x1b8] sm:$0xf] %vm491_vm1, %v8091_v41  ;;  %v994_v49 = vld [vmem:[#allocation2 + $0x16f] sm:$0xff]  ;;  %v8123_v57 = vpack.c.bf16 %v546_v47, %v546_v47  ;;  %v995_v2 = vld [vmem:[#allocation2 + $0x187] sm:$0xff] }
  0x57   : > { %515 = vst.msk [vmem:[#allocation3 + $0x1cc] sm:$0xf] %vm491_vm1, %v8092_v43  ;;  %v8186_v9 = vpack.c.bf16 %v994_v49, %v994_v49  ;;  %v997_v41 = vld [vmem:[#allocation2 + $0x1a7] sm:$0xff] }
  0x58   : > { %1121 = vrot.lane.b32.xlu0 %v9783_v58, %s9568_s26  ;;  %950 = vst.msk [vmem:[#allocation3 + $0xb8] sm:$0xf] %vm491_vm1, %v9958_v55  ;;  %v795_v58 = vld [vmem:[#allocation2 + $0xe9] sm:$0xff]  ;;  %961 = vst.msk [vmem:[#allocation3 + $0x194] sm:$0xf] %vm491_vm1, %v10046_v13 }
  0x59   : > { %v9987_v25 = vpack.c.bf16 %v795_v58, %v795_v58  ;;  %v10054_v58 = vpack.c.bf16 %v802_v20, %v802_v20  ;;  %v548_v20 = vld [vmem:[#allocation2 + $0x188] sm:$0xff] }
  0x5a   : > { %674 = vrot.lane.b32.xlu1 %v9946_v10, %s9568_s26  ;;  %v357_v43 = vld [vmem:[#allocation2 + $0x1a7] sm:$0xff] }
  0x5b   : > { %955 = vst.msk [vmem:[#allocation3 + $0x11c] sm:$0xf] %vm491_vm1, %v9987_v25  ;;  %962 = vst.msk [vmem:[#allocation3 + $0x1a8] sm:$0xf] %vm491_vm1, %v10054_v58  ;;  %v807_v47 = vld [vmem:[#allocation2 + $0x1a9] sm:$0xff]  ;;  %v8095_v49 = vpack.c.bf16 %v357_v43, %v357_v43  ;;  %v9301_v43 = vld [vmem:[%s11950_s1 + $0xb8] sm:$0xff]  }
  0x5c   : > { %676 = vrot.lane.b32.xlu0 %v9966_v21, %s9568_s26 }
  0x5d   : > { %518 = vst.msk [vmem:[#allocation3 + $0x208] sm:$0xf] %vm491_vm1, %v8095_v49  ;;  %v552_v49 = vld [vmem:[#allocation2 + $0x1c8] sm:$0xff] }
  0x5e   : > { %1123 = vrot.lane.b32.xlu1 %v9789_v60, %s9568_s26  ;;  %v540_v60 = vld [vmem:[#allocation2 + $0x108] sm:$0xff] }
  0x5f   : > { %v10021_v40 = vpack.c.bf16 %v540_v60, %v540_v60  ;;  %v803_v60 = vld [vmem:[#allocation2 + $0x169] sm:$0xff] }
  0x60   : > { %1125 = vrot.lane.b32.xlu0 %v9798_v0, %s9568_s26  ;;  %v798_v0 = vld [vmem:[#allocation2 + $0x111] sm:$0xff]  ;;  %v10060_v44 = vpack.c.bf16 %v803_v60, %v803_v60 }
  0x61   : > { %v10017_v38 = vpack.c.bf16 %v798_v0, %v798_v0  ;;  %v8184_v0 = vpack.c.bf16 %v992_v19, %v992_v19  ;;  %v547_v19 = vld [vmem:[#allocation2 + $0x170] sm:$0xff] }
  0x62   : > { %678 = vrot.lane.b32.xlu1 %v9995_v28, %s9568_s26  ;;  %963 = vst.msk [vmem:[#allocation3 + $0x1bc] sm:$0xf] %vm491_vm1, %v10060_v44  ;;  %v8124_v34 = vpack.c.bf16 %v547_v19, %v547_v19  ;;  %v996_v60 = vld [vmem:[#allocation2 + $0x18f] sm:$0xff]  ;;  %v999_v19 = vld [vmem:[#allocation2 + $0x1c7] sm:$0xff] }
  0x63   : > { %958 = vst.msk [vmem:[#allocation3 + $0x158] sm:$0xf] %vm491_vm1, %v10017_v38 }
  0x64   : > { %680 = vrot.lane.b32.xlu0 %v10001_v33, %s9568_s26 }
  0x66   : > { %1127 = vrot.lane.b32.xlu1 %v9800_v1, %s9568_s26  ;;  %v541_v1 = vld [vmem:[#allocation2 + $0x110] sm:$0xff] }
  0x67   : > { %v10036_v50 = vpack.c.bf16 %v541_v1, %v541_v1  ;;  %v545_v1 = vld [vmem:[#allocation2 + $0x150] sm:$0xff] }
  0x68   : > { %1129 = vrot.lane.b32.xlu0 %v9804_v4, %s9568_s26  ;;  %v990_v4 = vld [vmem:[#allocation2 + $0x12f] sm:$0xff] }
  0x69   : > { %v8182_v3 = vpack.c.bf16 %v990_v4, %v990_v4  ;;  %v8185_v4 = vpack.c.bf16 %v993_v26, %v993_v26  ;;  %v8187_v26 = vpack.c.bf16 %v995_v2, %v995_v2  ;;  %v8189_v2 = vpack.c.bf16 %v997_v41, %v997_v41  ;;  %v809_v41 = vld [vmem:[#allocation2 + $0x1c9] sm:$0xff] }
  0x6a   : > { %682 = vrot.lane.b32.xlu1 %v10015_v37, %s9568_s26 }
  0x6c   : > { %684 = vrot.lane.b32.xlu0 %v10021_v40, %s9568_s26 }
  0x6e   : > { %1131 = vrot.lane.b32.xlu1 %v9806_v5, %s9568_s26  ;;  %v8089_v5 = vpack.c.bf16 %v351_v56, %v351_v56 }
  0x70   : > { %1133 = vrot.lane.b32.xlu0 %v9811_v7, %s9568_s26  ;;  %v8183_v7 = vpack.c.bf16 %v991_v53, %v991_v53  ;;  %512 = vst.msk [vmem:[#allocation3 + $0x190] sm:$0xf] %vm491_vm1, %v8089_v5  ;;  %v804_v53 = vld [vmem:[#allocation2 + $0x171] sm:$0xff] }
  0x71   : > { %v10068_v56 = vpack.c.bf16 %v804_v53, %v804_v53  ;;  %v356_v5 = vld [vmem:[#allocation2 + $0x18f] sm:$0xff] }
  0x72   : > { %686 = vrot.lane.b32.xlu1 %v10036_v50, %s9568_s26  ;;  %v8094_v15 = vpack.c.bf16 %v356_v5, %v356_v5  ;;  %v808_v5 = vld [vmem:[#allocation2 + $0x1b1] sm:$0xff] }
  0x73   : > { %964 = vst.msk [vmem:[#allocation3 + $0x1d0] sm:$0xf] %vm491_vm1, %v10068_v56 }
  0x74   : > { %688 = vrot.lane.b32.xlu0 %v8119_v54, %s9568_s26  ;;  %v8122_v54 = vpack.c.bf16 %v545_v1, %v545_v1  ;;  %517 = vst.msk [vmem:[#allocation3 + $0x1f4] sm:$0xf] %vm491_vm1, %v8094_v15  ;;  %v358_v1 = vld [vmem:[#allocation2 + $0x1af] sm:$0xff] }
  0x75   : > { %v8096_v53 = vpack.c.bf16 %v358_v1, %v358_v1  ;;  %v998_v15 = vld [vmem:[#allocation2 + $0x1af] sm:$0xff] }
  0x76   : > { %1135 = vrot.lane.b32.xlu1 %v8182_v3, %s9568_s26  ;;  %v355_v3 = vld [vmem:[#allocation2 + $0x187] sm:$0xff]  ;;  %v551_v1 = vld [vmem:[#allocation2 + $0x1b0] sm:$0xff] }
  0x77   : > { %v8093_v14 = vpack.c.bf16 %v355_v3, %v355_v3  ;;  %519 = vst.msk [vmem:[#allocation3 + $0x21c] sm:$0xf] %vm491_vm1, %v8096_v53  ;;  %v550_v3 = vld [vmem:[#allocation2 + $0x1a8] sm:$0xff]  ;;  %v9302_v53 = vld [vmem:[%s11950_s1 + $0xf0] sm:$0xff]  }
  0x78   : > { %1137 = vrot.lane.b32.xlu0 %v8183_v7, %s9568_s26  ;;  %v805_v7 = vld [vmem:[#allocation2 + $0x189] sm:$0xff] }
  0x79   : > { %516 = vst.msk [vmem:[#allocation3 + $0x1e0] sm:$0xf] %vm491_vm1, %v8093_v14  ;;  %v10096_v14 = vpack.c.bf16 %v808_v5, %v808_v5  ;;  %v9303_v5 = vld [vmem:[%s11950_s1 + $0xb0] sm:$0xff]  }
  0x7a   : > { %690 = vrot.lane.b32.xlu1 %v8120_v24, %s9568_s26  ;;  %v10074_v24 = vpack.c.bf16 %v805_v7, %v805_v7  ;;  %v8127_v7 = vpack.c.bf16 %v550_v3, %v550_v3 }
  0x7b   : > { %968 = vst.msk [vmem:[#allocation3 + $0x220] sm:$0xf] %vm491_vm1, %v10096_v14 }
  0x7c   : > { %692 = vrot.lane.b32.xlu0 %v8121_v27, %s9568_s26  ;;  %965 = vst.msk [vmem:[#allocation3 + $0x1e4] sm:$0xf] %vm491_vm1, %v10074_v24  ;;  %v806_v27 = vld [vmem:[#allocation2 + $0x191] sm:$0xff] }
  0x7d   : > { %v10082_v35 = vpack.c.bf16 %v806_v27, %v806_v27  ;;  %v360_v27 = vld [vmem:[#allocation2 + $0x1cf] sm:$0xff] }
  0x7e   : > { %1139 = vrot.lane.b32.xlu1 %v8184_v0, %s9568_s26  ;;  %v8125_v0 = vpack.c.bf16 %v548_v20, %v548_v20  ;;  %v359_v20 = vld [vmem:[#allocation2 + $0x1c7] sm:$0xff] }
  0x7f   : > { %966 = vst.msk [vmem:[#allocation3 + $0x1f8] sm:$0xf] %vm491_vm1, %v10082_v35 }
  0x80   : > { %1141 = vrot.lane.b32.xlu0 %v8185_v4, %s9568_s26  ;;  %v8188_v4 = vpack.c.bf16 %v996_v60, %v996_v60  ;;  %v8097_v60 = vpack.c.bf16 %v359_v20, %v359_v20  ;;  %v9306_v20 = vld [vmem:[%s11950_s1 + $0xe8] sm:$0xff]  }
  0x82   : > { %694 = vrot.lane.b32.xlu1 %v8122_v54, %s9568_s26  ;;  %v10088_v54 = vpack.c.bf16 %v807_v47, %v807_v47  ;;  %v10108_v47 = vpack.c.bf16 %v809_v41, %v809_v41  ;;  %520 = vst.msk [vmem:[#allocation3 + $0x230] sm:$0xf] %vm491_vm1, %v8097_v60  ;;  %v9307_v41 = vld [vmem:[%s11950_s1 + $0xa8] sm:$0xff]  }
  0x84   : > { %696 = vrot.lane.b32.xlu0 %v8123_v57, %s9568_s26  ;;  %v549_v57 = vld [vmem:[#allocation2 + $0x190] sm:$0xff]  ;;  %967 = vst.msk [vmem:[#allocation3 + $0x20c] sm:$0xf] %vm491_vm1, %v10088_v54  ;;  %969 = vst.msk [vmem:[#allocation3 + $0x234] sm:$0xf] %vm491_vm1, %v10108_v47 }
  0x86   : > { %1143 = vrot.lane.b32.xlu1 %v8186_v9, %s9568_s26  ;;  %v8126_v9 = vpack.c.bf16 %v549_v57, %v549_v57  ;;  %v810_v57 = vld [vmem:[#allocation2 + $0x1d1] sm:$0xff] }
  0x87   : > { %v10119_v3 = vpack.c.bf16 %v810_v57, %v810_v57  ;;  %v812_v57 = vld [vmem:[#allocation2 + $0x1f1] sm:$0xff] }
  0x88   : > { %1145 = vrot.lane.b32.xlu0 %v8187_v26, %s9568_s26  ;;  %v9300_v26 = vld [vmem:[%s11950_s1 + $0xf8] sm:$0xff]  }
  0x89   : > { %8758 = vmatprep.subr.bf16.mxu1 %v9300_v26  ;;  %970 = vst.msk [vmem:[#allocation3 + $0x248] sm:$0xf] %vm491_vm1, %v10119_v3  ;;  %v362_v26 = vld [vmem:[#allocation2 + $0x1ef] sm:$0xff] }
  0x8a   : > { %698 = vrot.lane.b32.xlu1 %v8124_v34, %s9568_s26  ;;  %v8190_v34 = vpack.c.bf16 %v998_v15, %v998_v15  ;;  %8759 = vmatpush3.bf16.msra.mxu1 %v9301_v43  ;;  %v8129_v15 = vpack.c.bf16 %v552_v49, %v552_v49  ;;  %v8100_v60 = vpack.c.bf16 %v362_v26, %v362_v26  ;;  %v553_v43 = vld [vmem:[#allocation2 + $0x1d0] sm:$0xff]  ;;  %v554_v49 = vld [vmem:[#allocation2 + $0x1e8] sm:$0xff] }
  0x8b   : > { %8760 = vmatprep.subr.bf16.mxu1 %v9302_v53  ;;  %v9308_v53 = vld [vmem:[%s11950_s1 + $0xe0] sm:$0xff]   ;;  %v1229_v26 = vld [vmem:[#allocation2 + $0x28] sm:$0xff] }
  0x8c   : > { %700 = vrot.lane.b32.xlu0 %v8125_v0, %s9568_s26  ;;  %v8098_v0 = vpack.c.bf16 %v360_v27, %v360_v27  ;;  %523 = vst.msk [vmem:[#allocation3 + $0x26c] sm:$0xf] %vm491_vm1, %v8100_v60 }
  0x8e   : > { %1147 = vrot.lane.b32.xlu1 %v8188_v4, %s9568_s26  ;;  %v8191_v4 = vpack.c.bf16 %v999_v19, %v999_v19  ;;  %521 = vst.msk [vmem:[#allocation3 + $0x244] sm:$0xf] %vm491_vm1, %v8098_v0  ;;  %8761 = vmatpush3.bf16.msra.mxu1 %v9303_v5  ;;  %v361_v19 = vld [vmem:[#allocation2 + $0x1e7] sm:$0xff]  ;;  %v8130_v5 = vpack.c.bf16 %v553_v43, %v553_v43 }
  0x8f   : > { %v811_v0 = vld [vmem:[#allocation2 + $0x1e9] sm:$0xff]  ;;  %8762 = vmatprep.subr.bf16.mxu1 %v9306_v20 }
  0x90   : > { %1149 = vrot.lane.b32.xlu0 %v8189_v2, %s9568_s26  ;;  %v8128_v2 = vpack.c.bf16 %v551_v1, %v551_v1  ;;  %v10134_v1 = vpack.c.bf16 %v811_v0, %v811_v0  ;;  %v1003_v20 = vld [vmem:[#allocation2 + $0x207] sm:$0xff]  ;;  %v8197_v0 = vpack.c.bf16 %v1229_v26, %v1229_v26 }
  0x91   : > { %v1678_v43 = vld [vmem:[#allocation2 + $0x47] sm:$0xff] }
  0x92   : > { %702 = vrot.lane.b32.xlu1 %v8126_v9, %s9568_s26  ;;  %v1000_v9 = vld [vmem:[#allocation2 + $0x1cf] sm:$0xff]  ;;  %8763 = vmatpush3.bf16.msra.mxu1 %v9307_v41  ;;  %971 = vst.msk [vmem:[#allocation3 + $0x25c] sm:$0xf] %vm491_vm1, %v10134_v1  ;;  %1389 = vst.msk [vmem:[#allocation3 + $0x8] sm:$0xf] %vm491_vm1, %v8197_v0 }
  0x93   : > { %v8192_v27 = vpack.c.bf16 %v1000_v9, %v1000_v9  ;;  %v10145_v9 = vpack.c.bf16 %v812_v57, %v812_v57  ;;  %8764 = vmatprep.subr.bf16.mxu1 %v9308_v53  ;;  %v1230_v41 = vld [vmem:[#allocation2 + $0x30] sm:$0xff]  ;;  %v8261_v57 = vpack.c.bf16 %v1678_v43, %v1678_v43 }
  0x94   : > { %704 = vrot.lane.b32.xlu0 %v8127_v7, %s9568_s26  ;;  %v1001_v7 = vld [vmem:[#allocation2 + $0x1e7] sm:$0xff]  ;;  %v8198_v53 = vpack.c.bf16 %v1230_v41, %v1230_v41  ;;  %v1232_v43 = vld [vmem:[#allocation2 + $0x50] sm:$0xff] }
  0x95   : > { %972 = vst.msk [vmem:[#allocation3 + $0x270] sm:$0xf] %vm491_vm1, %v10145_v9  ;;  %1838 = vst.msk [vmem:[#allocation3 + $0xc] sm:$0xf] %vm491_vm1, %v8261_v57  ;;  %v9319_v41 = vld [vmem:[%s11950_s1 + $0xc8] sm:$0xff]   ;;  %v8200_v57 = vpack.c.bf16 %v1232_v43, %v1232_v43 }
  0x96   : > { %1151 = vrot.lane.b32.xlu1 %v8190_v34, %s9568_s26  ;;  %v8099_v34 = vpack.c.bf16 %v361_v19, %v361_v19  ;;  %v8131_v19 = vpack.c.bf16 %v554_v49, %v554_v49  ;;  %v555_v49 = vld [vmem:[#allocation2 + $0x1f0] sm:$0xff]  ;;  %1390 = vst.msk [vmem:[#allocation3 + $0x1c] sm:$0xf] %vm491_vm1, %v8198_v53 }
  0x97   : > { %1392 = vst.msk [vmem:[#allocation3 + $0x44] sm:$0xf] %vm491_vm1, %v8200_v57 }
  0x98   : > { %1153 = vrot.lane.b32.xlu0 %v8191_v4, %s9568_s26  ;;  %v8193_v4 = vpack.c.bf16 %v1001_v7, %v1001_v7  ;;  %522 = vst.msk [vmem:[#allocation3 + $0x258] sm:$0xf] %vm491_vm1, %v8099_v34  ;;  %v1002_v7 = vld [vmem:[#allocation2 + $0x1ef] sm:$0xff] }
  0x99   : > { %v8194_v60 = vpack.c.bf16 %v1002_v7, %v1002_v7  ;;  %v1679_v7 = vld [vmem:[#allocation2 + $0x4f] sm:$0xff] }
  0x9a   : > { %706 = vrot.lane.b32.xlu1 %v8128_v2, %s9568_s26  ;;  %v653_v2 = vpop.permute.xlu0 %652 }
  0x9b   : > { %749 = vst.msk [vmem:[#allocation3] sm:$0xf] %vm748_vm2, %v653_v2 }
  0x9c   : > { %708 = vrot.lane.b32.xlu0 %v8129_v15, %s9568_s26  ;;  %v9309_v15 = vld [vmem:[%s11950_s1 + $0xa0] sm:$0xff]  }
  0x9d   : > { %8765 = vmatpush3.bf16.msra.mxu1 %v9309_v15  ;;  %v8195_v15 = vpack.c.bf16 %v1003_v20, %v1003_v20  ;;  %v9316_v20 = vld [vmem:[%s11950_s1 + $0x90] sm:$0xff]  }
  0x9e   : > { %1155 = vrot.lane.b32.xlu1 %v8192_v27, %s9568_s26  ;;  %v9313_v27 = vld [vmem:[%s11950_s1 + $0xd8] sm:$0xff]  }
  0x9f   : > { %8766 = vmatprep.subr.bf16.mxu1 %v9313_v27  ;;  %v8132_v27 = vpack.c.bf16 %v555_v49, %v555_v49 }
  0xa0   : > { %1157 = vrot.lane.b32.xlu0 %v8193_v4, %s9568_s26  ;;  %v9314_v4 = vld [vmem:[%s11950_s1 + $0x98] sm:$0xff]  }
  0xa1   : > { %8767 = vmatpush3.bf16.msra.mxu1 %v9314_v4 }
  0xa2   : > { %710 = vrot.lane.b32.xlu1 %v8130_v5, %s9568_s26  ;;  %v655_v34 = vpop.permute.xlu0 %654  ;;  %v9315_v5 = vld [vmem:[%s11950_s1 + $0xd0] sm:$0xff]  }
  0xa3   : > { %750 = vst.msk [vmem:[#allocation3 + $0x14] sm:$0xf] %vm748_vm2, %v655_v34  ;;  %v1004_v34 = vld [vmem:[#allocation2 + $0x20f] sm:$0xff]  ;;  %8768 = vmatprep.subr.bf16.mxu1 %v9315_v5 }
  0xa4   : > { %v1102_v2 = vpop.permute.xlu1 %1101  ;;  %712 = vrot.lane.b32.xlu0 %v8131_v19, %s9568_s26  ;;  %v8262_v19 = vpack.c.bf16 %v1679_v7, %v1679_v7  ;;  %v8196_v49 = vpack.c.bf16 %v1004_v34, %v1004_v34  ;;  %v2126_v5 = vld [vmem:[#allocation2 + $0x49] sm:$0xff] }
  0xa5   : > { %1197 = vst.msk [vmem:[#allocation3 + $0x4] sm:$0xf] %vm748_vm2, %v1102_v2  ;;  %8769 = vmatpush3.bf16.msra.mxu1 %v9316_v20  ;;  %v1680_v2 = vld [vmem:[#allocation2 + $0x67] sm:$0xff] }
  0xa6   : > { %1159 = vrot.lane.b32.xlu1 %v8194_v60, %s9568_s26  ;;  %v657_v26 = vpop.permute.xlu0 %656  ;;  %1839 = vst.msk [vmem:[#allocation3 + $0x20] sm:$0xf] %vm491_vm1, %v8262_v19  ;;  %v1231_v60 = vld [vmem:[#allocation2 + $0x48] sm:$0xff]  ;;  %8770 = vmatprep.subr.bf16.mxu1 %v9319_v41  ;;  %v8263_v7 = vpack.c.bf16 %v1680_v2, %v1680_v2  ;;  %v8325_v19 = vpack.c.bf16 %v2126_v5, %v2126_v5  ;;  %v9321_v41 = vld [vmem:[%s11950_s1 + $0xc0] sm:$0xff]  }
  0xa7   : > { %751 = vst.msk [vmem:[#allocation3 + $0x28] sm:$0xf] %vm748_vm2, %v657_v26  ;;  %v8199_v53 = vpack.c.bf16 %v1231_v60, %v1231_v60  ;;  %v2127_v26 = vld [vmem:[#allocation2 + $0x51] sm:$0xff]  ;;  %v2128_v34 = vld [vmem:[#allocation2 + $0x69] sm:$0xff] }
  0xa8   : > { %v1104_v0 = vpop.permute.xlu1 %1103  ;;  %1161 = vrot.lane.b32.xlu0 %v8195_v15, %s9568_s26  ;;  %v9320_v15 = vld [vmem:[%s11950_s1 + $0x88] sm:$0xff]   ;;  %v2129_v60 = vld [vmem:[#allocation2 + $0x71] sm:$0xff]  ;;  %1840 = vst.msk [vmem:[#allocation3 + $0x34] sm:$0xf] %vm491_vm1, %v8263_v7  ;;  %2286 = vst.msk [vmem:[#allocation3 + $0x10] sm:$0xf] %vm491_vm1, %v8325_v19  ;;  %v8327_v43 = vpack.c.bf16 %v2128_v34, %v2128_v34 }
  0xa9   : > { %1198 = vst.msk [vmem:[#allocation3 + $0x18] sm:$0xf] %vm748_vm2, %v1104_v0  ;;  %8771 = vmatpush3.bf16.msra.mxu1 %v9320_v15  ;;  %v1234_v19 = vld [vmem:[#allocation2 + $0x70] sm:$0xff]  ;;  %v1682_v34 = vld [vmem:[#allocation2 + $0x87] sm:$0xff] }
  0xaa   : > { %714 = vrot.lane.b32.xlu1 %v8132_v27, %s9568_s26  ;;  %v1106_v4 = vpop.permute.xlu0 %1105  ;;  %1391 = vst.msk [vmem:[#allocation3 + $0x30] sm:$0xf] %vm491_vm1, %v8199_v53  ;;  %v8326_v27 = vpack.c.bf16 %v2127_v26, %v2127_v26  ;;  %8772 = vmatprep.subr.bf16.mxu1 %v9321_v41  ;;  %2288 = vst.msk [vmem:[#allocation3 + $0x38] sm:$0xf] %vm491_vm1, %v8327_v43  ;;  %v9284_v26 = vld [vmem:[%s11950_s1 + $0x110] sm:$0xff]   ;;  %v8265_v41 = vpack.c.bf16 %v1682_v34, %v1682_v34 }
  0xab   : > { %1199 = vst.msk [vmem:[#allocation3 + $0x2c] sm:$0xf] %vm748_vm2, %v1106_v4  ;;  %v8328_v4 = vpack.c.bf16 %v2129_v60, %v2129_v60 }
  0xac   : > { %v2318_v20 = vld [vmem:[#allocation3] sm:$0xff]  ;;  %v659_v0 = vpop.permute.xlu1 %658  ;;  %1549 = vrot.lane.b32.xlu0 %v9904_v45, %s9568_s26  ;;  %v1681_v45 = vld [vmem:[#allocation2 + $0x6f] sm:$0xff]  ;;  %2287 = vst.msk [vmem:[#allocation3 + $0x24] sm:$0xf] %vm491_vm1, %v8326_v27  ;;  %1842 = vst.msk [vmem:[#allocation3 + $0x5c] sm:$0xf] %vm491_vm1, %v8265_v41 }
  0xad   : > { %4312 = vst.msk [vmem:[#allocation3 + $0x4] sm:$0xf] %vm491_vm1, %v9863_v30  ;;  %v8264_v57 = vpack.c.bf16 %v1681_v45, %v1681_v45  ;;  %v9322_v30 = vld [vmem:[%s11950_s1 + $0x80] sm:$0xff]   ;;  %2289 = vst.msk [vmem:[#allocation3 + $0x4c] sm:$0xf] %vm491_vm1, %v8328_v4  ;;  %v1683_v27 = vld [vmem:[#allocation2 + $0x8f] sm:$0xff] }
  0xae   : > { %752 = vst.msk [vmem:[#allocation3 + $0x3c] sm:$0xf] %vm748_vm2, %v659_v0  ;;  %1163 = vrot.lane.b32.xlu1 %v8196_v49, %s9568_s26  ;;  %v661_v53 = vpop.permute.xlu0 %660  ;;  %8773 = vmatpush3.bf16.msra.mxu1 %v9322_v30  ;;  %v8266_v60 = vpack.c.bf16 %v1683_v27, %v1683_v27  ;;  %v2130_v30 = vld [vmem:[#allocation2 + $0x89] sm:$0xff] }
  0xaf   : > { %753 = vst.msk [vmem:[#allocation3 + $0x50] sm:$0xf] %vm748_vm2, %v661_v53 }
  0xb0   : > { %v2321_v2 = vld [vmem:[#allocation3 + $0x14] sm:$0xff]  ;;  %v1108_v15 = vpop.permute.xlu1 %1107  ;;  %1998 = vrot.lane.b32.xlu0 %v9796_v63, %s9568_s26  ;;  %1841 = vst.msk [vmem:[#allocation3 + $0x48] sm:$0xf] %vm491_vm1, %v8264_v57  ;;  %v8202_v63 = vpack.c.bf16 %v1234_v19, %v1234_v19  ;;  %1843 = vst.msk [vmem:[#allocation3 + $0x70] sm:$0xf] %vm491_vm1, %v8266_v60 }
  0xb1   : > { %4313 = vst.msk [vmem:[#allocation3 + $0x18] sm:$0xf] %vm491_vm1, %v9888_v39  ;;  %v7511_v49 = vcombine.high %v2318_v20, %v2321_v2  ;;  %v7510_v5 = vcombine.low %v2318_v20, %v2321_v2  ;;  %v1233_v39 = vld [vmem:[#allocation2 + $0x68] sm:$0xff]  ;;  %v1236_v57 = vld [vmem:[#allocation2 + $0x90] sm:$0xff] }
  0xb2   : > { %1200 = vst.msk [vmem:[#allocation3 + $0x40] sm:$0xf] %vm748_vm2, %v1108_v15  ;;  %1551 = vrot.lane.b32.xlu1 %v9922_v52, %s9568_s26  ;;  %v1110_v7 = vpop.permute.xlu0 %1109  ;;  %v8201_v20 = vpack.c.bf16 %v1233_v39, %v1233_v39  ;;  %v2324_v45 = vld [vmem:[#allocation3 + $0x28] sm:$0xff]  ;;  %v8204_v2 = vpack.c.bf16 %v1236_v57, %v1236_v57  ;;  %v2131_v15 = vld [vmem:[#allocation2 + $0x91] sm:$0xff] }
  0xb3   : > { %3189 = vmatprep.mubr.bf16.mxu0 %v7511_v49  ;;  %1201 = vst.msk [vmem:[#allocation3 + $0x54] sm:$0xf] %vm748_vm2, %v1110_v7  ;;  %v8329_v49 = vpack.c.bf16 %v2130_v30, %v2130_v30  ;;  %v2133_v7 = vld [vmem:[#allocation2 + $0xb1] sm:$0xff]  ;;  %v1686_v57 = vld [vmem:[#allocation2 + $0xc7] sm:$0xff] }
  0xb4   : > { %3190 = vmatmul.mubr.bf16.vlgmr.msra.gmra.mxu0 %v7510_v5  ;;  %v663_v0 = vpop.permute.xlu1 %662  ;;  %1553 = vrot.lane.b32.xlu0 %v9931_v59, %s9568_s26  ;;  %1394 = vst.msk [vmem:[#allocation3 + $0x6c] sm:$0xf] %vm491_vm1, %v8202_v63  ;;  %v9293_v59 = vld [vmem:[%s11950_s1 + $0x108] sm:$0xff]   ;;  %1393 = vst.msk [vmem:[#allocation3 + $0x58] sm:$0xf] %vm491_vm1, %v8201_v20  ;;  %v8332_v63 = vpack.c.bf16 %v2133_v7, %v2133_v7 }
  0xb5   : > { %754 = vst.msk [vmem:[#allocation3 + $0x64] sm:$0xf] %vm748_vm2, %v663_v0  ;;  %9135 = vmatpush3.bf16.msra.mxu0 %v9942_v8  ;;  %v2132_v5 = vld [vmem:[#allocation2 + $0xa9] sm:$0xff] }
  0xb6   : > { %2000 = vrot.lane.b32.xlu1 %v9827_v11, %s9568_s26  ;;  %v665_v52 = vpop.permute.xlu0 %664  ;;  %9136 = vmatprep.subr.bf16.mxu0 %v9284_v26  ;;  %v8331_v19 = vpack.c.bf16 %v2132_v5, %v2132_v5  ;;  %1396 = vst.msk [vmem:[#allocation3 + $0x94] sm:$0xf] %vm491_vm1, %v8204_v2  ;;  %v1235_v0 = vld [vmem:[#allocation2 + $0x88] sm:$0xff]  ;;  %2290 = vst.msk [vmem:[#allocation3 + $0x60] sm:$0xf] %vm491_vm1, %v8329_v49  ;;  %v8269_v2 = vpack.c.bf16 %v1686_v57, %v1686_v57 }
  0xb7   : > { %755 = vst.msk [vmem:[#allocation3 + $0x78] sm:$0xf] %vm748_vm2, %v665_v52  ;;  %v1685_v39 = vld [vmem:[#allocation2 + $0xaf] sm:$0xff]  ;;  %v1684_v52 = vld [vmem:[#allocation2 + $0xa7] sm:$0xff]  ;;  %v8203_v27 = vpack.c.bf16 %v1235_v0, %v1235_v0 }
  0xb8   : > { %v1112_v8 = vpop.permute.xlu1 %1111  ;;  %2002 = vrot.lane.b32.xlu0 %v9842_v17, %s9568_s26  ;;  %v9310_v17 = vld [vmem:[%s11950_s1 + $0x100] sm:$0xff]   ;;  %v8267_v34 = vpack.c.bf16 %v1684_v52, %v1684_v52  ;;  %2292 = vst.msk [vmem:[#allocation3 + $0x88] sm:$0xf] %vm491_vm1, %v8331_v19  ;;  %2293 = vst.msk [vmem:[#allocation3 + $0x9c] sm:$0xf] %vm491_vm1, %v8332_v63  ;;  %v2136_v0 = vld [vmem:[#allocation2 + $0xe9] sm:$0xff] }
  0xb9   : > { %v2327_v43 = vld [vmem:[#allocation3 + $0x3c] sm:$0xff]  ;;  %1202 = vst.msk [vmem:[#allocation3 + $0x68] sm:$0xf] %vm748_vm2, %v1112_v8  ;;  %9137 = vmatpush3.bf16.msra.mxu0 %v9284_v26  ;;  %v1691_v57 = vld [vmem:[#allocation2 + $0x10f] sm:$0xff] }
  0xba   : > { %v9273_v11 = vld [vmem:[#allocation3 + $0x2c] ss:$20 sps:$4 sm:$0xff]   ;;  %v7515_v4 = vcombine.low %v2324_v45, %v2327_v43  ;;  %1555 = vrot.lane.b32.xlu1 %v9933_v61, %s9568_s26  ;;  %v1114_v53 = vpop.permute.xlu0 %1113  ;;  %9138 = vmatprep.subr.bf16.mxu0 %v9293_v59  ;;  %v8330_v61 = vpack.c.bf16 %v2131_v15, %v2131_v15  ;;  %v2330_v60 = vld [vmem:[#allocation3 + $0x50] sm:$0xff]  ;;  %1395 = vst.msk [vmem:[#allocation3 + $0x80] sm:$0xf] %vm491_vm1, %v8203_v27 }
  0xbb   : > { %3197 = vmatprep.mubr.bf16.mxu0 %v9273_v11  ;;  %1203 = vst.msk [vmem:[#allocation3 + $0x7c] sm:$0xf] %vm748_vm2, %v1114_v53  ;;  %v1238_v43 = vld [vmem:[#allocation2 + $0xb0] sm:$0xff]  ;;  %v8335_v27 = vpack.c.bf16 %v2136_v0, %v2136_v0 }
  0xbc   : > { %v667_v26 = vpop.permute.xlu1 %666  ;;  %3198 = vmatmul.mubr.bf16.gmra.mxu0 %v7515_v4  ;;  %1557 = vrot.lane.b32.xlu0 %v9935_v62, %s9568_s26  ;;  %v8268_v62 = vpack.c.bf16 %v1685_v39, %v1685_v39  ;;  %2291 = vst.msk [vmem:[#allocation3 + $0x74] sm:$0xf] %vm491_vm1, %v8330_v61  ;;  %1844 = vst.msk [vmem:[#allocation3 + $0x84] sm:$0xf] %vm491_vm1, %v8267_v34  ;;  %v8206_v11 = vpack.c.bf16 %v1238_v43, %v1238_v43  ;;  %v1237_v4 = vld [vmem:[#allocation2 + $0xa8] sm:$0xff]  ;;  %v2137_v39 = vld [vmem:[#allocation2 + $0xf1] sm:$0xff] }
  0xbd   : > { %756 = vst.msk [vmem:[#allocation3 + $0x8c] sm:$0xf] %vm748_vm2, %v667_v26  ;;  %9139 = vmatpush3.bf16.msra.mxu0 %v9293_v59  ;;  %v8205_v53 = vpack.c.bf16 %v1237_v4, %v1237_v4  ;;  %v1240_v26 = vld [vmem:[#allocation2 + $0xd0] sm:$0xff] }
  0xbe   : > { %2004 = vrot.lane.b32.xlu1 %v9867_v31, %s9568_s26  ;;  %v669_v20 = vpop.permute.xlu0 %668  ;;  %9140 = vmatprep.subr.bf16.mxu0 %v9310_v17  ;;  %1845 = vst.msk [vmem:[#allocation3 + $0x98] sm:$0xf] %vm491_vm1, %v8268_v62  ;;  %1398 = vst.msk [vmem:[#allocation3 + $0xbc] sm:$0xf] %vm491_vm1, %v8206_v11  ;;  %v2134_v61 = vld [vmem:[#allocation2 + $0xc9] sm:$0xff]  ;;  %v8208_v19 = vpack.c.bf16 %v1240_v26, %v1240_v26  ;;  %v8336_v62 = vpack.c.bf16 %v2137_v39, %v2137_v39 }
  0xbf   : > { %757 = vst.msk [vmem:[#allocation3 + $0xa0] sm:$0xf] %vm748_vm2, %v669_v20  ;;  %v8333_v63 = vpack.c.bf16 %v2134_v61, %v2134_v61  ;;  %v1689_v34 = vld [vmem:[#allocation2 + $0xef] sm:$0xff] }
  0xc0   : > { %v1116_v59 = vpop.permute.xlu1 %1115  ;;  %v2333_v41 = vld [vmem:[#allocation3 + $0x64] sm:$0xff]  ;;  %2006 = vrot.lane.b32.xlu0 %v9874_v32, %s9568_s26  ;;  %1397 = vst.msk [vmem:[#allocation3 + $0xa8] sm:$0xf] %vm491_vm1, %v8205_v53  ;;  %1846 = vst.msk [vmem:[#allocation3 + $0xac] sm:$0xf] %vm491_vm1, %v8269_v2  ;;  %v1242_v4 = vld [vmem:[#allocation2 + $0xf0] sm:$0xff]  ;;  %v8274_v2 = vpack.c.bf16 %v1691_v57, %v1691_v57 }
  0xc1   : > { %v9276_v8 = vld [vmem:[#allocation3 + $0x54] ss:$20 sps:$4 sm:$0xff]   ;;  %1204 = vst.msk [vmem:[#allocation3 + $0x90] sm:$0xf] %vm748_vm2, %v1116_v59  ;;  %v7520_v31 = vcombine.low %v2330_v60, %v2333_v41  ;;  %9141 = vmatpush3.bf16.msra.mxu0 %v9310_v17 }
  0xc2   : > { %1559 = vrot.lane.b32.xlu1 %v9937_v6, %s9568_s26  ;;  %3205 = vmatprep.mubr.bf16.mxu0 %v9276_v8  ;;  %v1118_v45 = vpop.permute.xlu0 %1117  ;;  %v1687_v17 = vld [vmem:[#allocation2 + $0xcf] sm:$0xff]  ;;  %v2336_v49 = vld [vmem:[#allocation3 + $0x78] sm:$0xff]  ;;  %1400 = vst.msk [vmem:[#allocation3 + $0xe4] sm:$0xf] %vm491_vm1, %v8208_v19  ;;  %v1688_v59 = vld [vmem:[#allocation2 + $0xe7] sm:$0xff]  ;;  %v8272_v8 = vpack.c.bf16 %v1689_v34, %v1689_v34 }
  0xc3   : > { %1205 = vst.msk [vmem:[#allocation3 + $0xa4] sm:$0xf] %vm748_vm2, %v1118_v45  ;;  %v8270_v30 = vpack.c.bf16 %v1687_v17, %v1687_v17  ;;  %v2138_v26 = vld [vmem:[#allocation2 + $0x109] sm:$0xff] }
  0xc4   : > { %v671_v32 = vpop.permute.xlu1 %670  ;;  %3206 = vmatmul.mubr.bf16.gmra.mxu0 %v7520_v31  ;;  %1561 = vrot.lane.b32.xlu0 %v9954_v12, %s9568_s26  ;;  %2294 = vst.msk [vmem:[#allocation3 + $0xb0] sm:$0xf] %vm491_vm1, %v8333_v63  ;;  %v8271_v31 = vpack.c.bf16 %v1688_v59, %v1688_v59  ;;  %2296 = vst.msk [vmem:[#allocation3 + $0xd8] sm:$0xf] %vm491_vm1, %v8335_v27  ;;  %v8337_v19 = vpack.c.bf16 %v2138_v26, %v2138_v26  ;;  %v2141_v63 = vld [vmem:[#allocation2 + $0x131] sm:$0xff] }
  0xc5   : > { %758 = vst.msk [vmem:[#allocation3 + $0xb4] sm:$0xf] %vm748_vm2, %v671_v32  ;;  %v1693_v27 = vld [vmem:[#allocation2 + $0x12f] sm:$0xff] }
  0xc6   : > { %2008 = vrot.lane.b32.xlu1 %v9896_v42, %s9568_s26  ;;  %v673_v6 = vpop.permute.xlu0 %672  ;;  %1847 = vst.msk [vmem:[#allocation3 + $0xc0] sm:$0xf] %vm491_vm1, %v8270_v30  ;;  %2297 = vst.msk [vmem:[#allocation3 + $0xec] sm:$0xf] %vm491_vm1, %v8336_v62  ;;  %v1690_v30 = vld [vmem:[#allocation2 + $0x107] sm:$0xff]  ;;  %v8276_v59 = vpack.c.bf16 %v1693_v27, %v1693_v27 }
  0xc7   : > { %759 = vst.msk [vmem:[#allocation3 + $0xc8] sm:$0xf] %vm748_vm2, %v673_v6  ;;  %v8210_v6 = vpack.c.bf16 %v1242_v4, %v1242_v4  ;;  %v1692_v62 = vld [vmem:[#allocation2 + $0x127] sm:$0xff] }
  0xc8   : > { %v1120_v15 = vpop.permute.xlu1 %1119  ;;  %v2339_v5 = vld [vmem:[#allocation3 + $0x8c] sm:$0xff]  ;;  %2010 = vrot.lane.b32.xlu0 %v9912_v48, %s9568_s26  ;;  %1849 = vst.msk [vmem:[#allocation3 + $0xe8] sm:$0xf] %vm491_vm1, %v8272_v8  ;;  %1848 = vst.msk [vmem:[#allocation3 + $0xd4] sm:$0xf] %vm491_vm1, %v8271_v31 }
  0xc9   : > { %v9278_v12 = vld [vmem:[#allocation3 + $0x7c] ss:$20 sps:$4 sm:$0xff]   ;;  %1206 = vst.msk [vmem:[#allocation3 + $0xb8] sm:$0xf] %vm748_vm2, %v1120_v15  ;;  %v7525_v42 = vcombine.low %v2336_v49, %v2339_v5  ;;  %v8273_v15 = vpack.c.bf16 %v1690_v30, %v1690_v30 }
  0xca   : > { %1563 = vrot.lane.b32.xlu1 %v9958_v55, %s9568_s26  ;;  %3213 = vmatprep.mubr.bf16.mxu0 %v9278_v12  ;;  %v1122_v7 = vpop.permute.xlu0 %1121  ;;  %v2135_v48 = vld [vmem:[#allocation2 + $0xd1] sm:$0xff]  ;;  %v1239_v55 = vld [vmem:[#allocation2 + $0xc8] sm:$0xff]  ;;  %v2342_v45 = vld [vmem:[#allocation3 + $0xa0] sm:$0xff]  ;;  %1402 = vst.msk [vmem:[#allocation3 + $0x10c] sm:$0xf] %vm491_vm1, %v8210_v6 }
  0xcb   : > { %1207 = vst.msk [vmem:[#allocation3 + $0xcc] sm:$0xf] %vm748_vm2, %v1122_v7  ;;  %v8334_v20 = vpack.c.bf16 %v2135_v48, %v2135_v48  ;;  %v8207_v41 = vpack.c.bf16 %v1239_v55, %v1239_v55  ;;  %v1244_v7 = vld [vmem:[#allocation2 + $0x110] sm:$0xff] }
  0xcc   : > { %v675_v52 = vpop.permute.xlu1 %674  ;;  %3214 = vmatmul.mubr.bf16.gmra.mxu0 %v7525_v42  ;;  %1565 = vrot.lane.b32.xlu0 %v9960_v16, %s9568_s26  ;;  %1851 = vst.msk [vmem:[#allocation3 + $0x110] sm:$0xf] %vm491_vm1, %v8274_v2  ;;  %1850 = vst.msk [vmem:[#allocation3 + $0xfc] sm:$0xf] %vm491_vm1, %v8273_v15  ;;  %v8212_v61 = vpack.c.bf16 %v1244_v7, %v1244_v7  ;;  %v2140_v48 = vld [vmem:[#allocation2 + $0x129] sm:$0xff]  ;;  %v2143_v7 = vld [vmem:[#allocation2 + $0x151] sm:$0xff] }
  0xcd   : > { %760 = vst.msk [vmem:[#allocation3 + $0xdc] sm:$0xf] %vm748_vm2, %v675_v52  ;;  %v8339_v52 = vpack.c.bf16 %v2140_v48, %v2140_v48  ;;  %v1695_v6 = vld [vmem:[#allocation2 + $0x14f] sm:$0xff]  ;;  %v8342_v48 = vpack.c.bf16 %v2143_v7, %v2143_v7 }
  0xce   : > { %2012 = vrot.lane.b32.xlu1 %v9946_v10, %s9568_s26  ;;  %v677_v60 = vpop.permute.xlu0 %676  ;;  %2295 = vst.msk [vmem:[#allocation3 + $0xc4] sm:$0xf] %vm491_vm1, %v8334_v20  ;;  %1399 = vst.msk [vmem:[#allocation3 + $0xd0] sm:$0xf] %vm491_vm1, %v8207_v41  ;;  %v8340_v20 = vpack.c.bf16 %v2141_v63, %v2141_v63 }
  0xcf   : > { %761 = vst.msk [vmem:[#allocation3 + $0xf0] sm:$0xf] %vm748_vm2, %v677_v60  ;;  %v8275_v60 = vpack.c.bf16 %v1692_v62, %v1692_v62 }
  0xd0   : > { %v1124_v16 = vpop.permute.xlu1 %1123  ;;  %v2345_v43 = vld [vmem:[#allocation3 + $0xb4] sm:$0xff]  ;;  %2014 = vrot.lane.b32.xlu0 %v9966_v21, %s9568_s26  ;;  %v1241_v21 = vld [vmem:[#allocation2 + $0xe8] sm:$0xff]  ;;  %1404 = vst.msk [vmem:[#allocation3 + $0x134] sm:$0xf] %vm491_vm1, %v8212_v61  ;;  %2298 = vst.msk [vmem:[#allocation3 + $0x100] sm:$0xf] %vm491_vm1, %v8337_v19 }
  0xd1   : > { %v9280_v11 = vld [vmem:[#allocation3 + $0xa4] ss:$20 sps:$4 sm:$0xff]   ;;  %1208 = vst.msk [vmem:[#allocation3 + $0xe0] sm:$0xf] %vm748_vm2, %v1124_v16  ;;  %v7530_v10 = vcombine.low %v2342_v45, %v2345_v43  ;;  %v8209_v17 = vpack.c.bf16 %v1241_v21, %v1241_v21  ;;  %v1884_v16 = vld [vmem:[#allocation2 + $0x128] sm:$0xff]  ;;  %v1246_v43 = vld [vmem:[#allocation2 + $0x130] sm:$0xff] }
  0xd2   : > { %1567 = vrot.lane.b32.xlu1 %v9962_v18, %s9568_s26  ;;  %3221 = vmatprep.mubr.bf16.mxu0 %v9280_v11  ;;  %v1126_v32 = vpop.permute.xlu0 %1125  ;;  %v2348_v5 = vld [vmem:[#allocation3 + $0xc8] sm:$0xff]  ;;  %2300 = vst.msk [vmem:[#allocation3 + $0x128] sm:$0xf] %vm491_vm1, %v8339_v52  ;;  %2301 = vst.msk [vmem:[#allocation3 + $0x13c] sm:$0xf] %vm491_vm1, %v8340_v20  ;;  %v8214_v11 = vpack.c.bf16 %v1246_v43, %v1246_v43  ;;  %v1885_v21 = vld [vmem:[#allocation2 + $0x130] sm:$0xff] }
  0xd3   : > { %1209 = vst.msk [vmem:[#allocation3 + $0xf4] sm:$0xf] %vm748_vm2, %v1126_v32  ;;  %v1245_v32 = vld [vmem:[#allocation2 + $0x128] sm:$0xff] }
  0xd4   : > { %v679_v53 = vpop.permute.xlu1 %678  ;;  %3222 = vmatmul.mubr.bf16.gmra.mxu0 %v7530_v10  ;;  %1569 = vrot.lane.b32.xlu0 %v9971_v22, %s9568_s26  ;;  %1401 = vst.msk [vmem:[#allocation3 + $0xf8] sm:$0xf] %vm491_vm1, %v8209_v17  ;;  %1853 = vst.msk [vmem:[#allocation3 + $0x138] sm:$0xf] %vm491_vm1, %v8276_v59  ;;  %v8307_v10 = vpack.c.bf16 %v1884_v16, %v1884_v16  ;;  %v8213_v4 = vpack.c.bf16 %v1245_v32, %v1245_v32  ;;  %v2144_v61 = vld [vmem:[#allocation2 + $0x169] sm:$0xff] }
  0xd5   : > { %762 = vst.msk [vmem:[#allocation3 + $0x104] sm:$0xf] %vm748_vm2, %v679_v53  ;;  %v1694_v53 = vld [vmem:[#allocation2 + $0x147] sm:$0xff]  ;;  %v8278_v17 = vpack.c.bf16 %v1695_v6, %v1695_v6 }
  0xd6   : > { %2016 = vrot.lane.b32.xlu1 %v9995_v28, %s9568_s26  ;;  %v681_v18 = vpop.permute.xlu0 %680  ;;  %1852 = vst.msk [vmem:[#allocation3 + $0x124] sm:$0xf] %vm491_vm1, %v8275_v60  ;;  %1406 = vst.msk [vmem:[#allocation3 + $0x15c] sm:$0xf] %vm491_vm1, %v8214_v11  ;;  %v8277_v57 = vpack.c.bf16 %v1694_v53, %v1694_v53  ;;  %v1696_v52 = vld [vmem:[#allocation2 + $0x167] sm:$0xff] }
  0xd7   : > { %763 = vst.msk [vmem:[#allocation3 + $0x118] sm:$0xf] %vm748_vm2, %v681_v18  ;;  %v1886_v18 = vld [vmem:[#allocation2 + $0x148] sm:$0xff]  ;;  %v8279_v62 = vpack.c.bf16 %v1696_v52, %v1696_v52 }
  0xd8   : > { %v1128_v49 = vpop.permute.xlu1 %1127  ;;  %v2351_v12 = vld [vmem:[#allocation3 + $0xdc] sm:$0xff]  ;;  %2018 = vrot.lane.b32.xlu0 %v10001_v33, %s9568_s26  ;;  %v2139_v33 = vld [vmem:[#allocation2 + $0x111] sm:$0xff]  ;;  %1405 = vst.msk [vmem:[#allocation3 + $0x148] sm:$0xf] %vm491_vm1, %v8213_v4  ;;  %1855 = vst.msk [vmem:[#allocation3 + $0x160] sm:$0xf] %vm491_vm1, %v8278_v17 }
  0xd9   : > { %v9282_v22 = vld [vmem:[#allocation3 + $0xcc] ss:$20 sps:$4 sm:$0xff]   ;;  %1210 = vst.msk [vmem:[#allocation3 + $0x108] sm:$0xf] %vm748_vm2, %v1128_v49  ;;  %v7535_v28 = vcombine.low %v2348_v5, %v2351_v12  ;;  %v8338_v39 = vpack.c.bf16 %v2139_v33, %v2139_v33  ;;  %v8308_v5 = vpack.c.bf16 %v1885_v21, %v1885_v21  ;;  %v1248_v12 = vld [vmem:[#allocation2 + $0x150] sm:$0xff] }
  0xda   : > { %1571 = vrot.lane.b32.xlu1 %v9973_v23, %s9568_s26  ;;  %3229 = vmatprep.mubr.bf16.mxu0 %v9282_v22  ;;  %v1130_v42 = vpop.permute.xlu0 %1129  ;;  %v1243_v23 = vld [vmem:[#allocation2 + $0x108] sm:$0xff]  ;;  %v2354_v41 = vld [vmem:[#allocation3 + $0xf0] sm:$0xff]  ;;  %1854 = vst.msk [vmem:[#allocation3 + $0x14c] sm:$0xf] %vm491_vm1, %v8277_v57  ;;  %2303 = vst.msk [vmem:[#allocation3 + $0x164] sm:$0xf] %vm491_vm1, %v8342_v48 }
  0xdb   : > { %1211 = vst.msk [vmem:[#allocation3 + $0x11c] sm:$0xf] %vm748_vm2, %v1130_v42  ;;  %v8211_v34 = vpack.c.bf16 %v1243_v23, %v1243_v23  ;;  %v2142_v22 = vld [vmem:[#allocation2 + $0x149] sm:$0xff]  ;;  %v8216_v42 = vpack.c.bf16 %v1248_v12, %v1248_v12  ;;  %v2145_v33 = vld [vmem:[#allocation2 + $0x171] sm:$0xff] }
  0xdc   : > { %v683_v0 = vpop.permute.xlu1 %682  ;;  %3230 = vmatmul.mubr.bf16.gmra.mxu0 %v7535_v28  ;;  %1573 = vrot.lane.b32.xlu0 %v9987_v25, %s9568_s26  ;;  %2299 = vst.msk [vmem:[#allocation3 + $0x114] sm:$0xf] %vm491_vm1, %v8338_v39  ;;  %v8309_v28 = vpack.c.bf16 %v1886_v18, %v1886_v18  ;;  %v8341_v26 = vpack.c.bf16 %v2142_v22, %v2142_v22  ;;  %v1697_v39 = vld [vmem:[#allocation2 + $0x16f] sm:$0xff]  ;;  %1856 = vst.msk [vmem:[#allocation3 + $0x174] sm:$0xf] %vm491_vm1, %v8279_v62  ;;  %v1698_v32 = vld [vmem:[#allocation2 + $0x187] sm:$0xff] }
  0xdd   : > { %764 = vst.msk [vmem:[#allocation3 + $0x12c] sm:$0xf] %vm748_vm2, %v683_v0  ;;  %v8344_v63 = vpack.c.bf16 %v2145_v33, %v2145_v33  ;;  %v1247_v0 = vld [vmem:[#allocation2 + $0x148] sm:$0xff]  ;;  %v8280_v27 = vpack.c.bf16 %v1697_v39, %v1697_v39  ;;  %v8281_v6 = vpack.c.bf16 %v1698_v32, %v1698_v32  ;;  %v2149_v12 = vld [vmem:[#allocation2 + $0x1b1] sm:$0xff] }
  0xde   : > { %2020 = vrot.lane.b32.xlu1 %v10015_v37, %s9568_s26  ;;  %v685_v55 = vpop.permute.xlu0 %684  ;;  %1403 = vst.msk [vmem:[#allocation3 + $0x120] sm:$0xf] %vm491_vm1, %v8211_v34  ;;  %1408 = vst.msk [vmem:[#allocation3 + $0x184] sm:$0xf] %vm491_vm1, %v8216_v42  ;;  %v8215_v23 = vpack.c.bf16 %v1247_v0, %v1247_v0  ;;  %v1249_v11 = vld [vmem:[#allocation2 + $0x168] sm:$0xff]  ;;  %v8348_v7 = vpack.c.bf16 %v2149_v12, %v2149_v12 }
  0xdf   : > { %765 = vst.msk [vmem:[#allocation3 + $0x140] sm:$0xf] %vm748_vm2, %v685_v55  ;;  %v1890_v57 = vld [vmem:[#allocation2 + $0x188] sm:$0xff] }
  0xe0   : > { %v1132_v25 = vpop.permute.xlu1 %1131  ;;  %v2357_v8 = vld [vmem:[#allocation3 + $0x104] sm:$0xff]  ;;  %2022 = vrot.lane.b32.xlu0 %v10021_v40, %s9568_s26  ;;  %2302 = vst.msk [vmem:[#allocation3 + $0x150] sm:$0xf] %vm491_vm1, %v8341_v26  ;;  %2305 = vst.msk [vmem:[#allocation3 + $0x18c] sm:$0xf] %vm491_vm1, %v8344_v63 }
  0xe1   : > { %v9285_v31 = vld [vmem:[#allocation3 + $0xf4] ss:$20 sps:$4 sm:$0xff]   ;;  %1212 = vst.msk [vmem:[#allocation3 + $0x130] sm:$0xf] %vm748_vm2, %v1132_v25  ;;  %v7540_v37 = vcombine.low %v2354_v41, %v2357_v8 }
  0xe2   : > { %1575 = vrot.lane.b32.xlu1 %v9997_v29, %s9568_s26  ;;  %3237 = vmatprep.mubr.bf16.mxu0 %v9285_v31  ;;  %v1134_v45 = vpop.permute.xlu0 %1133  ;;  %v2360_v30 = vld [vmem:[#allocation3 + $0x118] sm:$0xff]  ;;  %1407 = vst.msk [vmem:[#allocation3 + $0x170] sm:$0xf] %vm491_vm1, %v8215_v23  ;;  %1857 = vst.msk [vmem:[#allocation3 + $0x188] sm:$0xf] %vm491_vm1, %v8280_v27  ;;  %v1888_v41 = vld [vmem:[#allocation2 + $0x168] sm:$0xff] }
  0xe3   : > { %1213 = vst.msk [vmem:[#allocation3 + $0x144] sm:$0xf] %vm748_vm2, %v1134_v45  ;;  %v8311_v16 = vpack.c.bf16 %v1888_v41, %v1888_v41  ;;  %v1250_v45 = vld [vmem:[#allocation2 + $0x170] sm:$0xff]  ;;  %v1251_v26 = vld [vmem:[#allocation2 + $0x188] sm:$0xff] }
  0xe4   : > { %v687_v40 = vpop.permute.xlu1 %686  ;;  %3238 = vmatmul.mubr.bf16.gmra.mxu0 %v7540_v37  ;;  %1577 = vrot.lane.b32.xlu0 %v10007_v36, %s9568_s26  ;;  %v8218_v43 = vpack.c.bf16 %v1250_v45, %v1250_v45  ;;  %1858 = vst.msk [vmem:[#allocation3 + $0x19c] sm:$0xf] %vm491_vm1, %v8281_v6  ;;  %v8219_v48 = vpack.c.bf16 %v1251_v26, %v1251_v26  ;;  %v1700_v63 = vld [vmem:[#allocation2 + $0x1a7] sm:$0xff]  ;;  %2309 = vst.msk [vmem:[#allocation3 + $0x1dc] sm:$0xf] %vm491_vm1, %v8348_v7  ;;  %v1703_v41 = vld [vmem:[#allocation2 + $0x1cf] sm:$0xff] }
  0xe5   : > { %766 = vst.msk [vmem:[#allocation3 + $0x154] sm:$0xf] %vm748_vm2, %v687_v40  ;;  %v8283_v0 = vpack.c.bf16 %v1700_v63, %v1700_v63  ;;  %v1892_v62 = vld [vmem:[#allocation2 + $0x1a8] sm:$0xff]  ;;  %v1893_v45 = vld [vmem:[#allocation2 + $0x1b0] sm:$0xff] }
  0xe6   : > { %2024 = vrot.lane.b32.xlu1 %v10036_v50, %s9568_s26  ;;  %v689_v29 = vpop.permute.xlu0 %688  ;;  %1410 = vst.msk [vmem:[#allocation3 + $0x1ac] sm:$0xf] %vm491_vm1, %v8218_v43  ;;  %1411 = vst.msk [vmem:[#allocation3 + $0x1c0] sm:$0xf] %vm491_vm1, %v8219_v48  ;;  %v1894_v32 = vld [vmem:[#allocation2 + $0x1c8] sm:$0xff] }
  0xe7   : > { %767 = vst.msk [vmem:[#allocation3 + $0x168] sm:$0xf] %vm748_vm2, %v689_v29  ;;  %v1889_v29 = vld [vmem:[#allocation2 + $0x170] sm:$0xff] }
  0xe8   : > { %v1136_v36 = vpop.permute.xlu1 %1135  ;;  %v2363_v2 = vld [vmem:[#allocation3 + $0x12c] sm:$0xff]  ;;  %2026 = vrot.lane.b32.xlu0 %v8307_v10, %s9568_s26  ;;  %1860 = vst.msk [vmem:[#allocation3 + $0x1c4] sm:$0xf] %vm491_vm1, %v8283_v0 }
  0xe9   : > { %v9287_v15 = vld [vmem:[#allocation3 + $0x11c] ss:$20 sps:$4 sm:$0xff]   ;;  %1214 = vst.msk [vmem:[#allocation3 + $0x158] sm:$0xf] %vm748_vm2, %v1136_v36  ;;  %v7545_v50 = vcombine.low %v2360_v30, %v2363_v2  ;;  %v8312_v30 = vpack.c.bf16 %v1889_v29, %v1889_v29 }
  0xea   : > { %1579 = vrot.lane.b32.xlu1 %v10017_v38, %s9568_s26  ;;  %3245 = vmatprep.mubr.bf16.mxu0 %v9287_v15  ;;  %v1138_v49 = vpop.permute.xlu0 %1137  ;;  %v8343_v38 = vpack.c.bf16 %v2144_v61, %v2144_v61  ;;  %v2366_v34 = vld [vmem:[#allocation3 + $0x140] sm:$0xff]  ;;  %v1699_v10 = vld [vmem:[#allocation2 + $0x18f] sm:$0xff] }
  0xeb   : > { %1215 = vst.msk [vmem:[#allocation3 + $0x16c] sm:$0xf] %vm748_vm2, %v1138_v49  ;;  %v8282_v4 = vpack.c.bf16 %v1699_v10, %v1699_v10  ;;  %v2146_v2 = vld [vmem:[#allocation2 + $0x189] sm:$0xff]  ;;  %v2147_v15 = vld [vmem:[#allocation2 + $0x191] sm:$0xff] }
  0xec   : > { %v691_v19 = vpop.permute.xlu1 %690  ;;  %3246 = vmatmul.mubr.bf16.gmra.mxu0 %v7545_v50  ;;  %1581 = vrot.lane.b32.xlu0 %v10027_v46, %s9568_s26  ;;  %2304 = vst.msk [vmem:[#allocation3 + $0x178] sm:$0xf] %vm491_vm1, %v8343_v38  ;;  %v1887_v46 = vld [vmem:[#allocation2 + $0x150] sm:$0xff]  ;;  %v8345_v50 = vpack.c.bf16 %v2146_v2, %v2146_v2  ;;  %v8346_v49 = vpack.c.bf16 %v2147_v15, %v2147_v15  ;;  %v1255_v15 = vld [vmem:[#allocation2 + $0x1c8] sm:$0xff] }
  0xed   : > { %768 = vst.msk [vmem:[#allocation3 + $0x17c] sm:$0xf] %vm748_vm2, %v691_v19  ;;  %v8310_v31 = vpack.c.bf16 %v1887_v46, %v1887_v46  ;;  %v1701_v61 = vld [vmem:[#allocation2 + $0x1af] sm:$0xff]  ;;  %v8223_v12 = vpack.c.bf16 %v1255_v15, %v1255_v15 }
  0xee   : > { %2028 = vrot.lane.b32.xlu1 %v8308_v5, %s9568_s26  ;;  %v693_v20 = vpop.permute.xlu0 %692  ;;  %1859 = vst.msk [vmem:[#allocation3 + $0x1b0] sm:$0xf] %vm491_vm1, %v8282_v4  ;;  %v2148_v5 = vld [vmem:[#allocation2 + $0x1a9] sm:$0xff]  ;;  %2306 = vst.msk [vmem:[#allocation3 + $0x1a0] sm:$0xf] %vm491_vm1, %v8345_v50  ;;  %v8284_v38 = vpack.c.bf16 %v1701_v61, %v1701_v61  ;;  %v8316_v4 = vpack.c.bf16 %v1893_v45, %v1893_v45 }
  0xef   : > { %769 = vst.msk [vmem:[#allocation3 + $0x190] sm:$0xf] %vm748_vm2, %v693_v20  ;;  %v8347_v42 = vpack.c.bf16 %v2148_v5, %v2148_v5  ;;  %v2150_v6 = vld [vmem:[#allocation2 + $0x1c9] sm:$0xff] }
  0xf0   : > { %v1140_v55 = vpop.permute.xlu1 %1139  ;;  %v2369_v59 = vld [vmem:[#allocation3 + $0x154] sm:$0xff]  ;;  %2030 = vrot.lane.b32.xlu0 %v8309_v28, %s9568_s26  ;;  %v8313_v28 = vpack.c.bf16 %v1890_v57, %v1890_v57  ;;  %2307 = vst.msk [vmem:[#allocation3 + $0x1b4] sm:$0xf] %vm491_vm1, %v8346_v49  ;;  %1861 = vst.msk [vmem:[#allocation3 + $0x1d8] sm:$0xf] %vm491_vm1, %v8284_v38 }
  0xf1   : > { %v9289_v60 = vld [vmem:[#allocation3 + $0x144] ss:$20 sps:$4 sm:$0xff]   ;;  %1216 = vst.msk [vmem:[#allocation3 + $0x180] sm:$0xf] %vm748_vm2, %v1140_v55  ;;  %v7550_v25 = vcombine.low %v2366_v34, %v2369_v59  ;;  %v8315_v59 = vpack.c.bf16 %v1892_v62, %v1892_v62  ;;  %v1705_v50 = vld [vmem:[#allocation2 + $0x1ef] sm:$0xff] }
  0xf2   : > { %1583 = vrot.lane.b32.xlu1 %v10038_v51, %s9568_s26  ;;  %3253 = vmatprep.mubr.bf16.mxu0 %v9289_v60  ;;  %v1142_v8 = vpop.permute.xlu0 %1141  ;;  %v8217_v51 = vpack.c.bf16 %v1249_v11, %v1249_v11  ;;  %v2372_v53 = vld [vmem:[#allocation3 + $0x168] sm:$0xff]  ;;  %2308 = vst.msk [vmem:[#allocation3 + $0x1c8] sm:$0xf] %vm491_vm1, %v8347_v42  ;;  %v1254_v60 = vld [vmem:[#allocation2 + $0x1b0] sm:$0xff]  ;;  %1415 = vst.msk [vmem:[#allocation3 + $0x210] sm:$0xf] %vm491_vm1, %v8223_v12 }
  0xf3   : > { %1217 = vst.msk [vmem:[#allocation3 + $0x194] sm:$0xf] %vm748_vm2, %v1142_v8  ;;  %v1258_v0 = vld [vmem:[#allocation2 + $0x1f0] sm:$0xff]  ;;  %v1706_v62 = vld [vmem:[#allocation2 + $0x207] sm:$0xff] }
  0xf4   : > { %v695_v37 = vpop.permute.xlu1 %694  ;;  %3254 = vmatmul.mubr.bf16.gmra.mxu0 %v7550_v25  ;;  %1585 = vrot.lane.b32.xlu0 %v10046_v13, %s9568_s26  ;;  %1409 = vst.msk [vmem:[#allocation3 + $0x198] sm:$0xf] %vm491_vm1, %v8217_v51  ;;  %v1253_v25 = vld [vmem:[#allocation2 + $0x1a8] sm:$0xff]  ;;  %v1452_v12 = vld [vmem:[#allocation2 + $0x211] sm:$0xff] }
  0xf5   : > { %770 = vst.msk [vmem:[#allocation3 + $0x1a4] sm:$0xf] %vm748_vm2, %v695_v37  ;;  %v8286_v37 = vpack.c.bf16 %v1703_v41, %v1703_v41  ;;  %v1898_v41 = vld [vmem:[#allocation2 + $0x208] sm:$0xff] }
  0xf6   : > { %2032 = vrot.lane.b32.xlu1 %v8310_v31, %s9568_s26  ;;  %v697_v40 = vpop.permute.xlu0 %696  ;;  %v8221_v31 = vpack.c.bf16 %v1253_v25, %v1253_v25 }
  0xf7   : > { %771 = vst.msk [vmem:[#allocation3 + $0x1b8] sm:$0xf] %vm748_vm2, %v697_v40 }
  0xf8   : > { %v1144_v13 = vpop.permute.xlu1 %1143  ;;  %v2375_v21 = vld [vmem:[#allocation3 + $0x17c] sm:$0xff]  ;;  %2034 = vrot.lane.b32.xlu0 %v8311_v16, %s9568_s26  ;;  %v1702_v16 = vld [vmem:[#allocation2 + $0x1c7] sm:$0xff]  ;;  %1413 = vst.msk [vmem:[#allocation3 + $0x1e8] sm:$0xf] %vm491_vm1, %v8221_v31  ;;  %1863 = vst.msk [vmem:[#allocation3 + $0x200] sm:$0xf] %vm491_vm1, %v8286_v37 }
  0xf9   : > { %v9291_v18 = vld [vmem:[#allocation3 + $0x16c] ss:$20 sps:$4 sm:$0xff]   ;;  %1218 = vst.msk [vmem:[#allocation3 + $0x1a8] sm:$0xf] %vm748_vm2, %v1144_v13  ;;  %v7555_v17 = vcombine.low %v2372_v53, %v2375_v21  ;;  %v8285_v43 = vpack.c.bf16 %v1702_v16, %v1702_v16  ;;  %v2151_v13 = vld [vmem:[#allocation2 + $0x1d1] sm:$0xff]  ;;  %v8349_v53 = vpack.c.bf16 %v2150_v6, %v2150_v6 }
  0xfa   : > { %1587 = vrot.lane.b32.xlu1 %v10054_v58, %s9568_s26  ;;  %3261 = vmatprep.mubr.bf16.mxu0 %v9291_v18  ;;  %v1146_v36 = vpop.permute.xlu0 %1145  ;;  %v1252_v58 = vld [vmem:[#allocation2 + $0x190] sm:$0xff]  ;;  %v8350_v21 = vpack.c.bf16 %v2151_v13, %v2151_v13 }
  0xfb   : > { %1219 = vst.msk [vmem:[#allocation3 + $0x1bc] sm:$0xf] %vm748_vm2, %v1146_v36  ;;  %v8220_v19 = vpack.c.bf16 %v1252_v58, %v1252_v58  ;;  %v2378_v52 = vld [vmem:[#allocation3 + $0x190] sm:$0xff]  ;;  %v8317_v36 = vpack.c.bf16 %v1894_v32, %v1894_v32 }
  0xfc   : > { %v699_v22 = vpop.permute.xlu1 %698  ;;  %3262 = vmatmul.mubr.bf16.gmra.mxu0 %v7555_v17  ;;  %1589 = vrot.lane.b32.xlu0 %v10060_v44, %s9568_s26  ;;  %v1891_v44 = vld [vmem:[#allocation2 + $0x190] sm:$0xff]  ;;  %1862 = vst.msk [vmem:[#allocation3 + $0x1ec] sm:$0xf] %vm491_vm1, %v8285_v43  ;;  %2310 = vst.msk [vmem:[#allocation3 + $0x1f0] sm:$0xf] %vm491_vm1, %v8349_v53 }
  0xfd   : > { %772 = vst.msk [vmem:[#allocation3 + $0x1cc] sm:$0xf] %vm748_vm2, %v699_v22  ;;  %v8314_v55 = vpack.c.bf16 %v1891_v44, %v1891_v44  ;;  %v2152_v18 = vld [vmem:[#allocation2 + $0x1e9] sm:$0xff]  ;;  %v2153_v17 = vld [vmem:[#allocation2 + $0x1f1] sm:$0xff]  ;;  %v8288_v22 = vpack.c.bf16 %v1705_v50, %v1705_v50 }
  0xfe   : > { %2036 = vrot.lane.b32.xlu1 %v8312_v30, %s9568_s26  ;;  %v701_v33 = vpop.permute.xlu0 %700  ;;  %1412 = vst.msk [vmem:[#allocation3 + $0x1d4] sm:$0xf] %vm491_vm1, %v8220_v19  ;;  %v8351_v30 = vpack.c.bf16 %v2152_v18, %v2152_v18  ;;  %v8352_v2 = vpack.c.bf16 %v2153_v17, %v2153_v17  ;;  %2311 = vst.msk [vmem:[#allocation3 + $0x204] sm:$0xf] %vm491_vm1, %v8350_v21  ;;  %v1896_v19 = vld [vmem:[#allocation2 + $0x1e8] sm:$0xff]  ;;  %v2155_v37 = vld [vmem:[#allocation2 + $0x211] sm:$0xff] }
  0xff   : > { %773 = vst.msk [vmem:[#allocation3 + $0x1e0] sm:$0xf] %vm748_vm2, %v701_v33  ;;  %v8319_v44 = vpack.c.bf16 %v1896_v19, %v1896_v19  ;;  %v2154_v31 = vld [vmem:[#allocation2 + $0x209] sm:$0xff]  ;;  %v8354_v45 = vpack.c.bf16 %v2155_v37, %v2155_v37 }
 0x100   : > { %v1148_v39 = vpop.permute.xlu1 %1147  ;;  %v2381_v20 = vld [vmem:[#allocation3 + $0x1a4] sm:$0xff]  ;;  %2038 = vrot.lane.b32.xlu0 %v8313_v28, %s9568_s26  ;;  %2312 = vst.msk [vmem:[#allocation3 + $0x218] sm:$0xf] %vm491_vm1, %v8351_v30  ;;  %2313 = vst.msk [vmem:[#allocation3 + $0x22c] sm:$0xf] %vm491_vm1, %v8352_v2  ;;  %v8353_v16 = vpack.c.bf16 %v2154_v31, %v2154_v31  ;;  %v1260_v32 = vld [vmem:[#allocation2 + $0x210] sm:$0xff] }
 0x101   : > { %v9294_v23 = vld [vmem:[#allocation3 + $0x194] ss:$20 sps:$4 sm:$0xff]   ;;  %1220 = vst.msk [vmem:[#allocation3 + $0x1d0] sm:$0xf] %vm748_vm2, %v1148_v39  ;;  %v7560_v27 = vcombine.low %v2378_v52, %v2381_v20  ;;  %v8228_v13 = vpack.c.bf16 %v1260_v32, %v1260_v32 }
 0x102   : > { %1591 = vrot.lane.b32.xlu1 %v10068_v56, %s9568_s26  ;;  %3269 = vmatprep.mubr.bf16.mxu0 %v9294_v23  ;;  %v1150_v46 = vpop.permute.xlu0 %1149  ;;  %v8222_v56 = vpack.c.bf16 %v1254_v60, %v1254_v60  ;;  %v2384_v40 = vld [vmem:[#allocation3 + $0x1b8] sm:$0xff]  ;;  %v1704_v28 = vld [vmem:[#allocation2 + $0x1e7] sm:$0xff]  ;;  %1865 = vst.msk [vmem:[#allocation3 + $0x228] sm:$0xf] %vm491_vm1, %v8288_v22  ;;  %v1707_v52 = vld [vmem:[#allocation2 + $0x20f] sm:$0xff] }
 0x103   : > { %1221 = vst.msk [vmem:[#allocation3 + $0x1e4] sm:$0xf] %vm748_vm2, %v1150_v46  ;;  %v8287_v42 = vpack.c.bf16 %v1704_v28, %v1704_v28  ;;  %v1257_v39 = vld [vmem:[#allocation2 + $0x1e8] sm:$0xff]  ;;  %v1897_v46 = vld [vmem:[#allocation2 + $0x1f0] sm:$0xff] }
 0x104   : > { %v703_v34 = vpop.permute.xlu1 %702  ;;  %3270 = vmatmul.mubr.bf16.gmra.mxu0 %v7560_v27  ;;  %1593 = vrot.lane.b32.xlu0 %v10074_v24, %s9568_s26  ;;  %1414 = vst.msk [vmem:[#allocation3 + $0x1fc] sm:$0xf] %vm491_vm1, %v8222_v56  ;;  %v8225_v23 = vpack.c.bf16 %v1257_v39, %v1257_v39  ;;  %v8290_v27 = vpack.c.bf16 %v1707_v52, %v1707_v52  ;;  %v2156_v43 = vld [vmem:[#allocation2 + $0x229] sm:$0xff]  ;;  %2314 = vst.msk [vmem:[#allocation3 + $0x240] sm:$0xf] %vm491_vm1, %v8353_v16 }
 0x105   : > { %774 = vst.msk [vmem:[#allocation3 + $0x1f4] sm:$0xf] %vm748_vm2, %v703_v34  ;;  %v8320_v56 = vpack.c.bf16 %v1897_v46, %v1897_v46  ;;  %v1899_v18 = vld [vmem:[#allocation2 + $0x210] sm:$0xff]  ;;  %v1900_v50 = vld [vmem:[#allocation2 + $0x228] sm:$0xff] }
 0x106   : > { %2040 = vrot.lane.b32.xlu1 %v8314_v55, %s9568_s26  ;;  %v705_v8 = vpop.permute.xlu0 %704  ;;  %1864 = vst.msk [vmem:[#allocation3 + $0x214] sm:$0xf] %vm491_vm1, %v8287_v42  ;;  %v8289_v55 = vpack.c.bf16 %v1706_v62, %v1706_v62  ;;  %1417 = vst.msk [vmem:[#allocation3 + $0x238] sm:$0xf] %vm491_vm1, %v8225_v23  ;;  %v8323_v28 = vpack.c.bf16 %v1900_v50, %v1900_v50  ;;  %v9326_v39 = vld [vmem:[#allocation3 + $0x38] ss:$20 sps:$4 sm:$0xff]  }
 0x107   : > { %775 = vst.msk [vmem:[#allocation3 + $0x208] sm:$0xf] %vm748_vm2, %v705_v8  ;;  %v9331_v62 = vld [vmem:[#allocation3 + $0x60] ss:$20 sps:$4 sm:$0xff]  }
 0x108   : > { %v1152_v11 = vpop.permute.xlu1 %1151  ;;  %v2387_v24 = vld [vmem:[#allocation3 + $0x1cc] sm:$0xff]  ;;  %2042 = vrot.lane.b32.xlu0 %v8315_v59, %s9568_s26  ;;  %1867 = vst.msk [vmem:[#allocation3 + $0x250] sm:$0xf] %vm491_vm1, %v8290_v27  ;;  %1866 = vst.msk [vmem:[#allocation3 + $0x23c] sm:$0xf] %vm491_vm1, %v8289_v55 }
 0x109   : > { %v9296_v51 = vld [vmem:[#allocation3 + $0x1bc] ss:$20 sps:$4 sm:$0xff]   ;;  %1222 = vst.msk [vmem:[#allocation3 + $0x1f8] sm:$0xf] %vm748_vm2, %v1152_v11  ;;  %v7565_v10 = vcombine.low %v2384_v40, %v2387_v24  ;;  %v8321_v24 = vpack.c.bf16 %v1898_v41, %v1898_v41 }
 0x10a   : > { %1595 = vrot.lane.b32.xlu1 %v10082_v35, %s9568_s26  ;;  %3277 = vmatprep.mubr.bf16.mxu0 %v9296_v51  ;;  %v1154_v29 = vpop.permute.xlu0 %1153  ;;  %v1256_v35 = vld [vmem:[#allocation2 + $0x1d0] sm:$0xff]  ;;  %v2390_v58 = vld [vmem:[#allocation3 + $0x1e0] sm:$0xff]  ;;  %2315 = vst.msk [vmem:[#allocation3 + $0x254] sm:$0xf] %vm491_vm1, %v8354_v45  ;;  %1420 = vst.msk [vmem:[#allocation3 + $0x274] sm:$0xf] %vm491_vm1, %v8228_v13 }
 0x10b   : > { %1223 = vst.msk [vmem:[#allocation3 + $0x20c] sm:$0xf] %vm748_vm2, %v1154_v29  ;;  %v8224_v5 = vpack.c.bf16 %v1256_v35, %v1256_v35  ;;  %v2157_v11 = vld [vmem:[#allocation2 + $0x231] sm:$0xff]  ;;  %v1451_v51 = vld [vmem:[#allocation2 + $0x209] sm:$0xff] }
 0x10c   : > { %v707_v57 = vpop.permute.xlu1 %706  ;;  %3278 = vmatmul.mubr.bf16.gmra.mxu0 %v7565_v10  ;;  %1597 = vrot.lane.b32.xlu0 %v10088_v54, %s9568_s26  ;;  %v1895_v54 = vld [vmem:[#allocation2 + $0x1d0] sm:$0xff]  ;;  %v8355_v10 = vpack.c.bf16 %v2156_v43, %v2156_v43  ;;  %v1259_v29 = vld [vmem:[#allocation2 + $0x208] sm:$0xff]  ;;  %v8259_v35 = vpack.c.bf16 %v1451_v51, %v1451_v51 }
 0x10d   : > { %776 = vst.msk [vmem:[#allocation3 + $0x21c] sm:$0xf] %vm748_vm2, %v707_v57  ;;  %v8318_v38 = vpack.c.bf16 %v1895_v54, %v1895_v54  ;;  %v8227_v53 = vpack.c.bf16 %v1259_v29, %v1259_v29 }
 0x10e   : > { %2044 = vrot.lane.b32.xlu1 %v8316_v4, %s9568_s26  ;;  %v709_v49 = vpop.permute.xlu0 %708  ;;  %1416 = vst.msk [vmem:[#allocation3 + $0x224] sm:$0xf] %vm491_vm1, %v8224_v5  ;;  %v1709_v4 = vld [vmem:[#allocation2 + $0x22f] sm:$0xff]  ;;  %2316 = vst.msk [vmem:[#allocation3 + $0x268] sm:$0xf] %vm491_vm1, %v8355_v10  ;;  %v8322_v5 = vpack.c.bf16 %v1899_v18, %v1899_v18 }
 0x10f   : > { %777 = vst.msk [vmem:[#allocation3 + $0x230] sm:$0xf] %vm748_vm2, %v709_v49  ;;  %v10450_v21 = vpack.c.bf16 %v1709_v4, %v1709_v4 }
 0x110   : > { %v1156_v7 = vpop.permute.xlu1 %1155  ;;  %v2393_v26 = vld [vmem:[#allocation3 + $0x1f4] sm:$0xff]  ;;  %2046 = vrot.lane.b32.xlu0 %v8317_v36, %s9568_s26  ;;  %1419 = vst.msk [vmem:[#allocation3 + $0x260] sm:$0xf] %vm491_vm1, %v8227_v53 }
 0x111   : > { %v9298_v61 = vld [vmem:[#allocation3 + $0x1e4] ss:$20 sps:$4 sm:$0xff]   ;;  %1224 = vst.msk [vmem:[#allocation3 + $0x220] sm:$0xf] %vm748_vm2, %v1156_v7  ;;  %v7570_v33 = vcombine.low %v2390_v58, %v2393_v26  ;;  %v8260_v7 = vpack.c.bf16 %v1452_v12, %v1452_v12 }
 0x112   : > { %1599 = vrot.lane.b32.xlu1 %v10096_v14, %s9568_s26  ;;  %3285 = vmatprep.mubr.bf16.mxu0 %v9298_v61  ;;  %v1158_v48 = vpop.permute.xlu0 %1157  ;;  %v8226_v14 = vpack.c.bf16 %v1258_v0, %v1258_v0  ;;  %v2396_v59 = vld [vmem:[#allocation3 + $0x208] sm:$0xff]  ;;  %1869 = vst.msk [vmem:[#allocation3 + $0x278] sm:$0xf] %vm491_vm1, %v10450_v21 }
 0x113   : > { %1225 = vst.msk [vmem:[#allocation3 + $0x234] sm:$0xf] %vm748_vm2, %v1158_v48  ;;  %v9325_v48 = vld [vmem:[#allocation3 + $0x10] ss:$20 sps:$4 sm:$0xff]  }
 0x114   : > { %v711_v63 = vpop.permute.xlu1 %710  ;;  %3286 = vmatmul.mubr.bf16.gmra.mxu0 %v7570_v33  ;;  %1601 = vrot.lane.b32.xlu0 %v10108_v47, %s9568_s26  ;;  %1418 = vst.msk [vmem:[#allocation3 + $0x24c] sm:$0xf] %vm491_vm1, %v8226_v14 }
 0x115   : > { %778 = vst.msk [vmem:[#allocation3 + $0x244] sm:$0xf] %vm748_vm2, %v711_v63 }
 0x116   : > { %2048 = vrot.lane.b32.xlu1 %v8318_v38, %s9568_s26  ;;  %v713_v20 = vpop.permute.xlu0 %712 }
 0x117   : > { %779 = vst.msk [vmem:[#allocation3 + $0x258] sm:$0xf] %vm748_vm2, %v713_v20 }
 0x118   : > { %v1160_v34 = vpop.permute.xlu1 %1159  ;;  %v2399_v47 = vld [vmem:[#allocation3 + $0x21c] sm:$0xff]  ;;  %2050 = vrot.lane.b32.xlu0 %v8319_v44, %s9568_s26 }
 0x119   : > { %v9304_v60 = vld [vmem:[#allocation3 + $0x20c] ss:$20 sps:$4 sm:$0xff]   ;;  %1226 = vst.msk [vmem:[#allocation3 + $0x248] sm:$0xf] %vm748_vm2, %v1160_v34  ;;  %v7575_v25 = vcombine.low %v2396_v59, %v2399_v47  ;;  %v9332_v59 = vld [vmem:[#allocation3 + $0x88] ss:$20 sps:$4 sm:$0xff]  }
 0x11a   : > { %1603 = vrot.lane.b32.xlu1 %v10119_v3, %s9568_s26  ;;  %3293 = vmatprep.mubr.bf16.mxu0 %v9304_v60  ;;  %v1162_v8 = vpop.permute.xlu0 %1161  ;;  %v8356_v3 = vpack.c.bf16 %v2157_v11, %v2157_v11  ;;  %v2402_v36 = vld [vmem:[#allocation3 + $0x230] sm:$0xff] }
 0x11b   : > { %1227 = vst.msk [vmem:[#allocation3 + $0x25c] sm:$0xf] %vm748_vm2, %v1162_v8 }
 0x11c   : > { %v715_v40 = vpop.permute.xlu1 %714  ;;  %3294 = vmatmul.mubr.bf16.gmra.mxu0 %v7575_v25  ;;  %1605 = vrot.lane.b32.xlu0 %v10134_v1, %s9568_s26  ;;  %v1708_v1 = vld [vmem:[#allocation2 + $0x227] sm:$0xff]  ;;  %2317 = vst.msk [vmem:[#allocation3 + $0x27c] sm:$0xf] %vm491_vm1, %v8356_v3 }
 0x11d   : > { %780 = vst.msk [vmem:[#allocation3 + $0x26c] sm:$0xf] %vm748_vm2, %v715_v40  ;;  %v10455_v17 = vpack.c.bf16 %v1708_v1, %v1708_v1  ;;  %v9344_v1 = vld [vmem:[#allocation3 + $0x128] ss:$20 sps:$4 sm:$0xff]  }
 0x11e   : > { %2052 = vrot.lane.b32.xlu1 %v8320_v56, %s9568_s26  ;;  %v1550_v6 = vpop.permute.xlu0 %1549  ;;  %v9337_v56 = vld [vmem:[#allocation3 + $0xb0] ss:$20 sps:$4 sm:$0xff]  }
 0x11f   : > { %1645 = vst.msk [vmem:[#allocation3 + $0x8] sm:$0xf] %vm748_vm2, %v1550_v6 }
 0x120   : > { %v1164_v57 = vpop.permute.xlu1 %1163  ;;  %v2405_v30 = vld [vmem:[#allocation3 + $0x244] sm:$0xff]  ;;  %2054 = vrot.lane.b32.xlu0 %v8321_v24, %s9568_s26  ;;  %1868 = vst.msk [vmem:[#allocation3 + $0x264] sm:$0xf] %vm491_vm1, %v10455_v17  ;;  %v9338_v24 = vld [vmem:[#allocation3 + $0xd8] ss:$20 sps:$4 sm:$0xff]  }
 0x121   : > { %v9311_v2 = vld [vmem:[#allocation3 + $0x234] ss:$20 sps:$4 sm:$0xff]   ;;  %1228 = vst.msk [vmem:[#allocation3 + $0x270] sm:$0xf] %vm748_vm2, %v1164_v57  ;;  %v7580_v15 = vcombine.low %v2402_v36, %v2405_v30  ;;  %v9349_v57 = vld [vmem:[#allocation3 + $0x150] ss:$20 sps:$4 sm:$0xff]  }
 0x122   : > { %1607 = vrot.lane.b32.xlu1 %v10145_v9, %s9568_s26  ;;  %3301 = vmatprep.mubr.bf16.mxu0 %v9311_v2  ;;  %v1999_v49 = vpop.permute.xlu0 %1998  ;;  %v1901_v9 = vld [vmem:[#allocation2 + $0x230] sm:$0xff]  ;;  %v2408_v26 = vld [vmem:[#allocation3 + $0x258] sm:$0xff] }
 0x123   : > { %2094 = vst.msk [vmem:[#allocation3 + $0xc] sm:$0xf] %vm748_vm2, %v1999_v49  ;;  %v10470_v54 = vld [vmem:[#allocation3 + $0x268] ss:$20 sps:$4 sm:$0xff]   ;;  %v8324_v63 = vpack.c.bf16 %v1901_v9, %v1901_v9 }
 0x124   : > { %v1552_v22 = vpop.permute.xlu1 %1551  ;;  %3302 = vmatmul.mubr.bf16.gmra.mxu0 %v7580_v15  ;;  %1609 = vrot.lane.b32.xlu0 %v8259_v35, %s9568_s26  ;;  %5686 = vst.msk [vmem:[#allocation3 + $0x268] sm:$0xf] %vm491_vm1, %v8355_v10  ;;  %5687 = vst.msk [vmem:[#allocation3 + $0x27c] sm:$0xf] %vm491_vm1, %v8356_v3  ;;  %v9343_v10 = vld [vmem:[#allocation3 + $0x100] ss:$20 sps:$4 sm:$0xff]  }
 0x125   : > { %1646 = vst.msk [vmem:[#allocation3 + $0x1c] sm:$0xf] %vm748_vm2, %v1552_v22  ;;  %v9355_v22 = vld [vmem:[#allocation3 + $0x1a0] ss:$20 sps:$4 sm:$0xff]  }
 0x126   : > { %2056 = vrot.lane.b32.xlu1 %v8322_v5, %s9568_s26  ;;  %v1554_v42 = vpop.permute.xlu0 %1553  ;;  %v9350_v5 = vld [vmem:[#allocation3 + $0x178] ss:$20 sps:$4 sm:$0xff]  }
 0x127   : > { %1647 = vst.msk [vmem:[#allocation3 + $0x30] sm:$0xf] %vm748_vm2, %v1554_v42 }
 0x128   : > { %v2001_v58 = vpop.permute.xlu1 %2000  ;;  %v2411_v61 = vld [vmem:[#allocation3 + $0x26c] sm:$0xff]  ;;  %2058 = vrot.lane.b32.xlu0 %v8323_v28, %s9568_s26 }
 0x129   : > { %v9317_v33 = vld [vmem:[#allocation3 + $0x25c] ss:$20 sps:$4 sm:$0xff]   ;;  %2095 = vst.msk [vmem:[#allocation3 + $0x20] sm:$0xf] %vm748_vm2, %v2001_v58  ;;  %v7585_v19 = vcombine.low %v2408_v26, %v2411_v61 }
 0x12a   : > { %1611 = vrot.lane.b32.xlu1 %v8260_v7, %s9568_s26  ;;  %3309 = vmatprep.mubr.bf16.mxu0 %v9317_v33  ;;  %v2003_v38 = vpop.permute.xlu0 %2002  ;;  %v2319_v20 = vld [vmem:[#allocation3 + $0x8] sm:$0xff] }
 0x12b   : > { %2096 = vst.msk [vmem:[#allocation3 + $0x34] sm:$0xf] %vm748_vm2, %v2003_v38  ;;  %v9356_v33 = vld [vmem:[#allocation3 + $0x1c8] ss:$20 sps:$4 sm:$0xff]  }
 0x12c   : > { %v1556_v44 = vpop.permute.xlu1 %1555  ;;  %3310 = vmatmul.mubr.bf16.gmra.mxu0 %v7585_v19 }
 0x12d   : > { %1648 = vst.msk [vmem:[#allocation3 + $0x44] sm:$0xf] %vm748_vm2, %v1556_v44  ;;  %9142 = vmatprep.mubr.msk.bf16.mxu0 %vm224_vm0, %v9325_v48  ;;  %v9361_v48 = vld [vmem:[#allocation3 + $0x1f0] ss:$20 sps:$4 sm:$0xff]  }
 0x12e   : > { %2060 = vrot.lane.b32.xlu1 %v8324_v63, %s9568_s26  ;;  %v1558_v0 = vpop.permute.xlu0 %1557 }
 0x12f   : > { %1649 = vst.msk [vmem:[#allocation3 + $0x58] sm:$0xf] %vm748_vm2, %v1558_v0 }
 0x130   : > { %v2005_v52 = vpop.permute.xlu1 %2004  ;;  %v2322_v14 = vld [vmem:[#allocation3 + $0x1c] sm:$0xff] }
 0x131   : > { %v9323_v23 = vld [vmem:[#allocation3 + $0xc] ss:$20 sps:$4 sm:$0xff]   ;;  %2097 = vst.msk [vmem:[#allocation3 + $0x48] sm:$0xf] %vm748_vm2, %v2005_v52  ;;  %v7512_v27 = vcombine.low %v2319_v20, %v2322_v14 }
 0x132   : > { %3350 = vmatprep.mubr.bf16.mxu1 %v9323_v23  ;;  %v2007_v46 = vpop.permute.xlu0 %2006  ;;  %v2325_v60 = vld [vmem:[#allocation3 + $0x30] sm:$0xff]  ;;  %v9362_v14 = vld [vmem:[#allocation3 + $0x218] ss:$20 sps:$4 sm:$0xff]  }
 0x133   : > { %3351 = vmatmul.mubr.bf16.vlgmr.msra.gmra.mxu1 %v7512_v27  ;;  %2098 = vst.msk [vmem:[#allocation3 + $0x5c] sm:$0xf] %vm748_vm2, %v2007_v46  ;;  %v9368_v27 = vld [vmem:[#allocation3 + $0x240] ss:$20 sps:$4 sm:$0xff]  }
 0x134   : > { %v1560_v55 = vpop.permute.xlu1 %1559  ;;  %9143 = vmatmul.mubr.msk.bf16.vlgmr.msra.gmra.mxu0 %vm224_vm0, %v9326_v39 }
 0x135   : > { %1650 = vst.msk [vmem:[#allocation3 + $0x6c] sm:$0xf] %vm748_vm2, %v1560_v55  ;;  %9146 = vmatprep.mubr.msk.bf16.mxu0 %vm224_vm0, %v9331_v62 }
 0x136   : > { %v1562_v34 = vpop.permute.xlu0 %1561 }
 0x137   : > { %1651 = vst.msk [vmem:[#allocation3 + $0x80] sm:$0xf] %vm748_vm2, %v1562_v34 }
 0x138   : > { %v2009_v47 = vpop.permute.xlu1 %2008  ;;  %v2328_v25 = vld [vmem:[#allocation3 + $0x44] sm:$0xff] }
 0x139   : > { %v9327_v41 = vld [vmem:[#allocation3 + $0x34] ss:$20 sps:$4 sm:$0xff]   ;;  %2099 = vst.msk [vmem:[#allocation3 + $0x70] sm:$0xf] %vm748_vm2, %v2009_v47  ;;  %v7517_v8 = vcombine.low %v2325_v60, %v2328_v25 }
 0x13a   : > { %3358 = vmatprep.mubr.bf16.mxu1 %v9327_v41  ;;  %v2011_v31 = vpop.permute.xlu0 %2010  ;;  %v2331_v16 = vld [vmem:[#allocation3 + $0x58] sm:$0xff] }
 0x13b   : > { %3359 = vmatmul.mubr.bf16.gmra.mxu1 %v7517_v8  ;;  %2100 = vst.msk [vmem:[#allocation3 + $0x84] sm:$0xf] %vm748_vm2, %v2011_v31 }
 0x13c   : > { %v1564_v37 = vpop.permute.xlu1 %1563  ;;  %9147 = vmatmul.mubr.msk.bf16.gmra.mxu0 %vm224_vm0, %v9332_v59 }
 0x13d   : > { %1652 = vst.msk [vmem:[#allocation3 + $0x94] sm:$0xf] %vm748_vm2, %v1564_v37  ;;  %9150 = vmatprep.mubr.msk.bf16.mxu0 %vm224_vm0, %v9337_v56 }
 0x13e   : > { %v1566_v45 = vpop.permute.xlu0 %1565 }
 0x13f   : > { %1653 = vst.msk [vmem:[#allocation3 + $0xa8] sm:$0xf] %vm748_vm2, %v1566_v45 }
 0x140   : > { %v2013_v43 = vpop.permute.xlu1 %2012  ;;  %v2334_v11 = vld [vmem:[#allocation3 + $0x6c] sm:$0xff] }
 0x141   : > { %v9329_v40 = vld [vmem:[#allocation3 + $0x5c] ss:$20 sps:$4 sm:$0xff]   ;;  %2101 = vst.msk [vmem:[#allocation3 + $0x98] sm:$0xf] %vm748_vm2, %v2013_v43  ;;  %v7522_v51 = vcombine.low %v2331_v16, %v2334_v11 }
 0x142   : > { %3366 = vmatprep.mubr.bf16.mxu1 %v9329_v40  ;;  %v2015_v3 = vpop.permute.xlu0 %2014  ;;  %v2337_v29 = vld [vmem:[#allocation3 + $0x80] sm:$0xff] }
 0x143   : > { %3367 = vmatmul.mubr.bf16.gmra.mxu1 %v7522_v51  ;;  %2102 = vst.msk [vmem:[#allocation3 + $0xac] sm:$0xf] %vm748_vm2, %v2015_v3 }
 0x144   : > { %v1568_v32 = vpop.permute.xlu1 %1567  ;;  %9151 = vmatmul.mubr.msk.bf16.gmra.mxu0 %vm224_vm0, %v9338_v24 }
 0x145   : > { %1654 = vst.msk [vmem:[#allocation3 + $0xbc] sm:$0xf] %vm748_vm2, %v1568_v32  ;;  %9154 = vmatprep.mubr.msk.bf16.mxu0 %vm224_vm0, %v9343_v10 }
 0x146   : > { %v1570_v4 = vpop.permute.xlu0 %1569 }
 0x147   : > { %1655 = vst.msk [vmem:[#allocation3 + $0xd0] sm:$0xf] %vm748_vm2, %v1570_v4 }
 0x148   : > { %v2017_v6 = vpop.permute.xlu1 %2016  ;;  %v2340_v13 = vld [vmem:[#allocation3 + $0x94] sm:$0xff] }
 0x149   : > { %v9333_v53 = vld [vmem:[#allocation3 + $0x84] ss:$20 sps:$4 sm:$0xff]   ;;  %2103 = vst.msk [vmem:[#allocation3 + $0xc0] sm:$0xf] %vm748_vm2, %v2017_v6  ;;  %v7527_v18 = vcombine.low %v2337_v29, %v2340_v13 }
 0x14a   : > { %3374 = vmatprep.mubr.bf16.mxu1 %v9333_v53  ;;  %v2019_v36 = vpop.permute.xlu0 %2018  ;;  %v2343_v2 = vld [vmem:[#allocation3 + $0xa8] sm:$0xff] }
 0x14b   : > { %3375 = vmatmul.mubr.bf16.gmra.mxu1 %v7527_v18  ;;  %2104 = vst.msk [vmem:[#allocation3 + $0xd4] sm:$0xf] %vm748_vm2, %v2019_v36 }
 0x14c   : > { %v1572_v30 = vpop.permute.xlu1 %1571  ;;  %9155 = vmatmul.mubr.msk.bf16.gmra.mxu0 %vm224_vm0, %v9344_v1 }
 0x14d   : > { %1656 = vst.msk [vmem:[#allocation3 + $0xe4] sm:$0xf] %vm748_vm2, %v1572_v30  ;;  %9158 = vmatprep.mubr.msk.bf16.mxu0 %vm224_vm0, %v9349_v57 }
 0x14e   : > { %v1574_v35 = vpop.permute.xlu0 %1573 }
 0x14f   : > { %1657 = vst.msk [vmem:[#allocation3 + $0xf8] sm:$0xf] %vm748_vm2, %v1574_v35 }
 0x150   : > { %v2021_v15 = vpop.permute.xlu1 %2020  ;;  %v2346_v50 = vld [vmem:[#allocation3 + $0xbc] sm:$0xff] }
 0x151   : > { %v9335_v49 = vld [vmem:[#allocation3 + $0xac] ss:$20 sps:$4 sm:$0xff]   ;;  %2105 = vst.msk [vmem:[#allocation3 + $0xe8] sm:$0xf] %vm748_vm2, %v2021_v15  ;;  %v7532_v12 = vcombine.low %v2343_v2, %v2346_v50 }
 0x152   : > { %3382 = vmatprep.mubr.bf16.mxu1 %v9335_v49  ;;  %v2023_v28 = vpop.permute.xlu0 %2022  ;;  %v2349_v7 = vld [vmem:[#allocation3 + $0xd0] sm:$0xff] }
 0x153   : > { %3383 = vmatmul.mubr.bf16.gmra.mxu1 %v7532_v12  ;;  %2106 = vst.msk [vmem:[#allocation3 + $0xfc] sm:$0xf] %vm748_vm2, %v2023_v28 }
 0x154   : > { %v1576_v42 = vpop.permute.xlu1 %1575  ;;  %9159 = vmatmul.mubr.msk.bf16.gmra.mxu0 %vm224_vm0, %v9350_v5 }
 0x155   : > { %1658 = vst.msk [vmem:[#allocation3 + $0x10c] sm:$0xf] %vm748_vm2, %v1576_v42  ;;  %9162 = vmatprep.mubr.msk.bf16.mxu0 %vm224_vm0, %v9355_v22 }
 0x156   : > { %v1578_v9 = vpop.permute.xlu0 %1577 }
 0x157   : > { %1659 = vst.msk [vmem:[#allocation3 + $0x120] sm:$0xf] %vm748_vm2, %v1578_v9 }
 0x158   : > { %v2025_v58 = vpop.permute.xlu1 %2024  ;;  %v2352_v26 = vld [vmem:[#allocation3 + $0xe4] sm:$0xff] }
 0x159   : > { %v9339_v61 = vld [vmem:[#allocation3 + $0xd4] ss:$20 sps:$4 sm:$0xff]   ;;  %2107 = vst.msk [vmem:[#allocation3 + $0x110] sm:$0xf] %vm748_vm2, %v2025_v58  ;;  %v7537_v19 = vcombine.low %v2349_v7, %v2352_v26 }
 0x15a   : > { %3390 = vmatprep.mubr.bf16.mxu1 %v9339_v61  ;;  %v2027_v38 = vpop.permute.xlu0 %2026  ;;  %v2355_v44 = vld [vmem:[#allocation3 + $0xf8] sm:$0xff] }
 0x15b   : > { %3391 = vmatmul.mubr.bf16.gmra.mxu1 %v7537_v19  ;;  %2108 = vst.msk [vmem:[#allocation3 + $0x124] sm:$0xf] %vm748_vm2, %v2027_v38 }
 0x15c   : > { %v1580_v63 = vpop.permute.xlu1 %1579  ;;  %9163 = vmatmul.mubr.msk.bf16.gmra.mxu0 %vm224_vm0, %v9356_v33 }
 0x15d   : > { %1660 = vst.msk [vmem:[#allocation3 + $0x134] sm:$0xf] %vm748_vm2, %v1580_v63  ;;  %9166 = vmatprep.mubr.msk.bf16.mxu0 %vm224_vm0, %v9361_v48 }
 0x15e   : > { %v1582_v0 = vpop.permute.xlu0 %1581 }
 0x15f   : > { %1661 = vst.msk [vmem:[#allocation3 + $0x148] sm:$0xf] %vm748_vm2, %v1582_v0 }
 0x160   : > { %v2029_v39 = vpop.permute.xlu1 %2028  ;;  %v2358_v52 = vld [vmem:[#allocation3 + $0x10c] sm:$0xff] }
 0x161   : > { %v9341_v20 = vld [vmem:[#allocation3 + $0xfc] ss:$20 sps:$4 sm:$0xff]   ;;  %2109 = vst.msk [vmem:[#allocation3 + $0x138] sm:$0xf] %vm748_vm2, %v2029_v39  ;;  %v7542_v23 = vcombine.low %v2355_v44, %v2358_v52  ;;  %v3896_v44 = vld [vmem:[#allocation2 + $0x8] sm:$0xff] }
 0x162   : > { %3398 = vmatprep.mubr.bf16.mxu1 %v9341_v20  ;;  %v2031_v62 = vpop.permute.xlu0 %2030  ;;  %v2361_v55 = vld [vmem:[#allocation3 + $0x120] sm:$0xff]  ;;  %v8389_v52 = vpack.c.bf16 %v3896_v44, %v3896_v44 }
 0x163   : > { %3399 = vmatmul.mubr.bf16.gmra.mxu1 %v7542_v23  ;;  %2110 = vst.msk [vmem:[#allocation3 + $0x14c] sm:$0xf] %vm748_vm2, %v2031_v62  ;;  %v3897_v23 = vld [vmem:[#allocation2 + $0x10] sm:$0xff] }
 0x164   : > { %v1584_v46 = vpop.permute.xlu1 %1583  ;;  %9167 = vmatmul.mubr.msk.bf16.gmra.mxu0 %vm224_vm0, %v9362_v14  ;;  %4024 = vrot.lane.b32.xlu0 %v8389_v52, %s9568_s26 }
 0x165   : > { %1662 = vst.msk [vmem:[#allocation3 + $0x15c] sm:$0xf] %vm748_vm2, %v1584_v46  ;;  %9170 = vmatprep.mubr.msk.bf16.mxu0 %vm224_vm0, %v9368_v27 }
 0x166   : > { %v1586_v34 = vpop.permute.xlu0 %1585 }
 0x167   : > { %1663 = vst.msk [vmem:[#allocation3 + $0x170] sm:$0xf] %vm748_vm2, %v1586_v34 }
 0x168   : > { %v2033_v59 = vpop.permute.xlu1 %2032  ;;  %v2364_v47 = vld [vmem:[#allocation3 + $0x134] sm:$0xff] }
 0x169   : > { %v9345_v60 = vld [vmem:[#allocation3 + $0x124] ss:$20 sps:$4 sm:$0xff]   ;;  %2111 = vst.msk [vmem:[#allocation3 + $0x160] sm:$0xf] %vm748_vm2, %v2033_v59  ;;  %v7547_v25 = vcombine.low %v2361_v55, %v2364_v47  ;;  %v8390_v55 = vpack.c.bf16 %v3897_v23, %v3897_v23 }
 0x16a   : > { %3406 = vmatprep.mubr.bf16.mxu1 %v9345_v60  ;;  %v2035_v41 = vpop.permute.xlu0 %2034  ;;  %v2367_v56 = vld [vmem:[#allocation3 + $0x148] sm:$0xff] }
 0x16b   : > { %3407 = vmatmul.mubr.bf16.gmra.mxu1 %v7547_v25  ;;  %2112 = vst.msk [vmem:[#allocation3 + $0x174] sm:$0xf] %vm748_vm2, %v2035_v41  ;;  %4026 = vrot.lane.b32.xlu1 %v8390_v55, %s9568_s26 }
 0x16c   : > { %v1588_v8 = vpop.permute.xlu1 %1587  ;;  %9171 = vmatmul.mubr.msk.bf16.gmra.mxu0 %vm224_vm0, %v10470_v54 }
 0x16d   : > { %1664 = vst.msk [vmem:[#allocation3 + $0x184] sm:$0xf] %vm748_vm2, %v1588_v8 }
 0x16e   : > { %v1590_v31 = vpop.permute.xlu0 %1589 }
 0x16f   : > { %1665 = vst.msk [vmem:[#allocation3 + $0x198] sm:$0xf] %vm748_vm2, %v1590_v31 }
 0x170   : > { %v2037_v37 = vpop.permute.xlu1 %2036  ;;  %v2370_v16 = vld [vmem:[#allocation3 + $0x15c] sm:$0xff] }
 0x171   : > { %v9347_v45 = vld [vmem:[#allocation3 + $0x14c] ss:$20 sps:$4 sm:$0xff]   ;;  %2113 = vst.msk [vmem:[#allocation3 + $0x188] sm:$0xf] %vm748_vm2, %v2037_v37  ;;  %v7552_v43 = vcombine.low %v2367_v56, %v2370_v16 }
 0x172   : > { %3414 = vmatprep.mubr.bf16.mxu1 %v9347_v45  ;;  %v2039_v11 = vpop.permute.xlu0 %2038  ;;  %v2373_v51 = vld [vmem:[#allocation3 + $0x170] sm:$0xff] }
 0x173   : > { %3415 = vmatmul.mubr.bf16.gmra.mxu1 %v7552_v43  ;;  %2114 = vst.msk [vmem:[#allocation3 + $0x19c] sm:$0xf] %vm748_vm2, %v2039_v11 }
 0x174   : > { %v8662_v40 = vpop.f32.mrf.mxu0  ;;  %v1592_v24 = vpop.permute.xlu1 %1591 }
 0x175   : > { %1666 = vst.msk [vmem:[#allocation3 + $0x1ac] sm:$0xf] %vm748_vm2, %v1592_v24 }
 0x176   : > { %v8663_v54 = vpop.f32.mrf.mxu0  ;;  %v1594_v10 = vpop.permute.xlu0 %1593 }
 0x177   : > { %v10535_v3 = vadd.f32 %v8663_v54, %v8662_v40  ;;  %1667 = vst.msk [vmem:[#allocation3 + $0x1c0] sm:$0xf] %vm748_vm2, %v1594_v10 }
 0x178   : > { %v10538_v32 = vpop.f32.mrf.mxu0  ;;  %v2041_v29 = vpop.permute.xlu1 %2040  ;;  %v2376_v4 = vld [vmem:[#allocation3 + $0x184] sm:$0xff] }
 0x179   : > { %v9351_v6 = vld [vmem:[#allocation3 + $0x174] ss:$20 sps:$4 sm:$0xff]   ;;  %2115 = vst.msk [vmem:[#allocation3 + $0x1b0] sm:$0xf] %vm748_vm2, %v2041_v29  ;;  %v7557_v13 = vcombine.low %v2373_v51, %v2376_v4 }
 0x17a   : > { %v10541_v53 = vpop.f32.mrf.mxu0  ;;  %3422 = vmatprep.mubr.bf16.mxu1 %v9351_v6  ;;  %v2043_v1 = vpop.permute.xlu0 %2042  ;;  %v2379_v30 = vld [vmem:[#allocation3 + $0x198] sm:$0xff] }
 0x17b   : > { %3423 = vmatmul.mubr.bf16.gmra.mxu1 %v7557_v13  ;;  %2116 = vst.msk [vmem:[#allocation3 + $0x1c4] sm:$0xf] %vm748_vm2, %v2043_v1 }
 0x17c   : > { %v1596_v18 = vpop.permute.xlu1 %1595  ;;  %v8668_v57 = vpop.f32.mrf.mxu0 }
 0x17d   : > { %1668 = vst.msk [vmem:[#allocation3 + $0x1d4] sm:$0xf] %vm748_vm2, %v1596_v18 }
 0x17e   : > { %v8669_v36 = vpop.f32.mrf.mxu0  ;;  %v1598_v2 = vpop.permute.xlu0 %1597 }
 0x17f   : > { %v10545_v35 = vadd.f32 %v8669_v36, %v8668_v57  ;;  %1669 = vst.msk [vmem:[#allocation3 + $0x1e8] sm:$0xf] %vm748_vm2, %v1598_v2 }
 0x180   : > { %v2045_v15 = vpop.permute.xlu1 %2044  ;;  %v10548_v50 = vpop.f32.mrf.mxu0  ;;  %v2382_v49 = vld [vmem:[#allocation3 + $0x1ac] sm:$0xff] }
 0x181   : > { %v9353_v5 = vld [vmem:[#allocation3 + $0x19c] ss:$20 sps:$4 sm:$0xff]   ;;  %2117 = vst.msk [vmem:[#allocation3 + $0x1d8] sm:$0xf] %vm748_vm2, %v2045_v15  ;;  %v7562_v12 = vcombine.low %v2379_v30, %v2382_v49 }
 0x182   : > { %v10551_v22 = vpop.f32.mrf.mxu0  ;;  %3430 = vmatprep.mubr.bf16.mxu1 %v9353_v5  ;;  %v2047_v28 = vpop.permute.xlu0 %2046  ;;  %v2385_v58 = vld [vmem:[#allocation3 + $0x1c0] sm:$0xff] }
 0x183   : > { %3431 = vmatmul.mubr.bf16.gmra.mxu1 %v7562_v12  ;;  %2118 = vst.msk [vmem:[#allocation3 + $0x1ec] sm:$0xf] %vm748_vm2, %v2047_v28 }
 0x184   : > { %v1600_v42 = vpop.permute.xlu1 %1599  ;;  %v8674_v7 = vpop.f32.mrf.mxu0 }
 0x185   : > { %1670 = vst.msk [vmem:[#allocation3 + $0x1fc] sm:$0xf] %vm748_vm2, %v1600_v42 }
 0x186   : > { %v8675_v9 = vpop.f32.mrf.mxu0  ;;  %v1602_v26 = vpop.permute.xlu0 %1601 }
 0x187   : > { %v10555_v61 = vadd.f32 %v8675_v9, %v8674_v7  ;;  %1671 = vst.msk [vmem:[#allocation3 + $0x210] sm:$0xf] %vm748_vm2, %v1602_v26 }
 0x188   : > { %v2049_v33 = vpop.permute.xlu1 %2048  ;;  %v10558_v19 = vpop.f32.mrf.mxu0  ;;  %v2388_v48 = vld [vmem:[#allocation3 + $0x1d4] sm:$0xff] }
 0x189   : > { %v9357_v38 = vld [vmem:[#allocation3 + $0x1c4] ss:$20 sps:$4 sm:$0xff]   ;;  %2119 = vst.msk [vmem:[#allocation3 + $0x200] sm:$0xf] %vm748_vm2, %v2049_v33  ;;  %v7567_v63 = vcombine.low %v2385_v58, %v2388_v48 }
 0x18a   : > { %v10561_v0 = vpop.f32.mrf.mxu0  ;;  %3438 = vmatprep.mubr.bf16.mxu1 %v9357_v38  ;;  %v2051_v39 = vpop.permute.xlu0 %2050  ;;  %v2391_v62 = vld [vmem:[#allocation3 + $0x1e8] sm:$0xff] }
 0x18b   : > { %3439 = vmatmul.mubr.bf16.gmra.mxu1 %v7567_v63  ;;  %2120 = vst.msk [vmem:[#allocation3 + $0x214] sm:$0xf] %vm748_vm2, %v2051_v39 }
 0x18c   : > { %v1604_v20 = vpop.permute.xlu1 %1603  ;;  %v8680_v14 = vpop.f32.mrf.mxu0 }
 0x18d   : > { %1672 = vst.msk [vmem:[#allocation3 + $0x224] sm:$0xf] %vm748_vm2, %v1604_v20 }
 0x18e   : > { %v8681_v27 = vpop.f32.mrf.mxu0  ;;  %v1606_v46 = vpop.permute.xlu0 %1605 }
 0x18f   : > { %v10566_v34 = vadd.f32 %v8681_v27, %v8680_v14  ;;  %1673 = vst.msk [vmem:[#allocation3 + $0x238] sm:$0xf] %vm748_vm2, %v1606_v46 }
 0x190   : > { %v2053_v59 = vpop.permute.xlu1 %2052  ;;  %v10569_v47 = vpop.f32.mrf.mxu0  ;;  %v2394_v60 = vld [vmem:[#allocation3 + $0x1fc] sm:$0xff] }
 0x191   : > { %v9359_v25 = vld [vmem:[#allocation3 + $0x1ec] ss:$20 sps:$4 sm:$0xff]   ;;  %2121 = vst.msk [vmem:[#allocation3 + $0x228] sm:$0xf] %vm748_vm2, %v2053_v59  ;;  %v7572_v41 = vcombine.low %v2391_v62, %v2394_v60 }
 0x192   : > { %v10573_v8 = vpop.f32.mrf.mxu0  ;;  %3446 = vmatprep.mubr.bf16.mxu1 %v9359_v25  ;;  %v2055_v56 = vpop.permute.xlu0 %2054  ;;  %v2397_v45 = vld [vmem:[#allocation3 + $0x210] sm:$0xff] }
 0x193   : > { %3447 = vmatmul.mubr.bf16.gmra.mxu1 %v7572_v41  ;;  %2122 = vst.msk [vmem:[#allocation3 + $0x23c] sm:$0xf] %vm748_vm2, %v2055_v56 }
 0x194   : > { %v1608_v31 = vpop.permute.xlu1 %1607  ;;  %v8686_v37 = vpop.f32.mrf.mxu0 }
 0x195   : > { %1674 = vst.msk [vmem:[#allocation3 + $0x24c] sm:$0xf] %vm748_vm2, %v1608_v31 }
 0x196   : > { %v8687_v16 = vpop.f32.mrf.mxu0  ;;  %v1610_v43 = vpop.permute.xlu0 %1609 }
 0x197   : > { %v10577_v11 = vadd.f32 %v8687_v16, %v8686_v37  ;;  %1675 = vst.msk [vmem:[#allocation3 + $0x260] sm:$0xf] %vm748_vm2, %v1610_v43 }
 0x198   : > { %v2057_v40 = vpop.permute.xlu1 %2056  ;;  %v10580_v24 = vpop.f32.mrf.mxu0  ;;  %v2400_v54 = vld [vmem:[#allocation3 + $0x224] sm:$0xff] }
 0x199   : > { %v9363_v51 = vld [vmem:[#allocation3 + $0x214] ss:$20 sps:$4 sm:$0xff]   ;;  %2123 = vst.msk [vmem:[#allocation3 + $0x250] sm:$0xf] %vm748_vm2, %v2057_v40  ;;  %v7577_v10 = vcombine.low %v2397_v45, %v2400_v54 }
 0x19a   : > { %v10583_v29 = vpop.f32.mrf.mxu0  ;;  %3454 = vmatprep.mubr.bf16.mxu1 %v9363_v51  ;;  %v2059_v4 = vpop.permute.xlu0 %2058 }
 0x19b   : > { %3455 = vmatmul.mubr.bf16.gmra.mxu1 %v7577_v10  ;;  %2124 = vst.msk [vmem:[#allocation3 + $0x264] sm:$0xf] %vm748_vm2, %v2059_v4  ;;  %v9370_v4 = vld [vmem:[%s11952_s3 + $0x78] sm:$0xff]  }
 0x19c   : > { %v1612_v6 = vpop.permute.xlu1 %1611  ;;  %v8692_v13 = vpop.f32.mrf.mxu0  ;;  %v9367_v2 = vld [vmem:[#allocation3 + $0x238] ss:$20 sps:$4 sm:$0xff]   ;;  %8890 = vmatprep.subr.bf16.mxu1 %v9370_v4 }
 0x19d   : > { %1676 = vst.msk [vmem:[#allocation3 + $0x274] sm:$0xf] %vm748_vm2, %v1612_v6  ;;  %v9371_v6 = vld [vmem:[%s11952_s3 + $0x38] sm:$0xff]  }
 0x19e   : > { %v8693_v1 = vpop.f32.mrf.mxu0  ;;  %8891 = vmatpush3.bf16.msra.mxu1 %v9371_v6  ;;  %v8667_v6 = vadd.f32 %v10541_v53, %v10538_v32 }
 0x19f   : > { %v10587_v18 = vadd.f32 %v8693_v1, %v8692_v13 }
 0x1a0   : > { %v2061_v57 = vpop.permute.xlu1 %2060  ;;  %v10589_v36 = vpop.f32.mrf.mxu0  ;;  %v9365_v30 = vld [vmem:[#allocation3 + $0x23c] ss:$20 sps:$4 sm:$0xff]  }
 0x1a1   : > { %2125 = vst.msk [vmem:[#allocation3 + $0x278] sm:$0xf] %vm748_vm2, %v2061_v57  ;;  %3462 = vmatprep.mubr.bf16.mxu1 %v9365_v30 }
 0x1a2   : > { %v2409_v15 = vld [vmem:[#allocation3 + $0x260] sm:$0xff]  ;;  %v10592_v49 = vpop.f32.mrf.mxu0 }
 0x1a3   : > { %5238 = vst.msk [vmem:[#allocation3 + $0x264] sm:$0xf] %vm491_vm1, %v10455_v17  ;;  %3463 = vmatmul.mubr.bf16.gmra.mxu1 %v9367_v2 }
 0x1a4   : > { %v8698_v5 = vpop.f32.mrf.mxu0 }
 0x1a6   : > { %v8699_v12 = vpop.f32.mrf.mxu0 }
 0x1a7   : > { %v10596_v28 = vadd.f32 %v8699_v12, %v8698_v5 }
 0x1a8   : > { %v2412_v42 = vld [vmem:[#allocation3 + $0x274] sm:$0xff]  ;;  %v10598_v7 = vpop.f32.mrf.mxu0 }
 0x1a9   : > { %5239 = vst.msk [vmem:[#allocation3 + $0x278] sm:$0xf] %vm491_vm1, %v10450_v21  ;;  %v7588_v9 = vcombine.high %v2409_v15, %v2412_v42  ;;  %v7587_v58 = vcombine.low %v2409_v15, %v2412_v42 }
 0x1aa   : > { %v10602_v26 = vpop.f32.mrf.mxu0 }
 0x1ab   : > { %3470 = vmatprep.mubr.bf16.mxu1 %v7588_v9 }
 0x1ac   : > { %v8704_v33 = vpop.f32.mrf.mxu0  ;;  %3471 = vmatmul.mubr.bf16.gmra.mxu1 %v7587_v58 }
 0x1ae   : > { %v8705_v48 = vpop.f32.mrf.mxu0 }
 0x1af   : > { %v10604_v17 = vadd.f32 %v8705_v48, %v8704_v33  ;;  %v9372_v48 = vld [vmem:[%s11952_s3 + $0x70] sm:$0xff]  }
 0x1b0   : > { %v10606_v38 = vpop.f32.mrf.mxu0  ;;  %8892 = vmatprep.subr.bf16.mxu1 %v9372_v48 }
 0x1b2   : > { %v10608_v63 = vpop.f32.mrf.mxu0 }
 0x1b4   : > { %v8710_v44 = vpop.f32.mrf.mxu0 }
 0x1b6   : > { %v8711_v39 = vpop.f32.mrf.mxu0 }
 0x1b7   : > { %v10610_v52 = vadd.f32 %v8711_v39, %v8710_v44  ;;  %v9373_v44 = vld [vmem:[%s11952_s3 + $0x30] sm:$0xff]  }
 0x1b8   : > { %v10612_v20 = vpop.f32.mrf.mxu0  ;;  %8893 = vmatpush3.bf16.msra.mxu1 %v9373_v44 }
 0x1ba   : > { %v10614_v21 = vpop.f32.mrf.mxu0 }
 0x1bc   : > { %v8716_v14 = vpop.f32.mrf.mxu0 }
 0x1be   : > { %v8717_v23 = vpop.f32.mrf.mxu0 }
 0x1bf   : > { %v10616_v27 = vadd.f32 %v8717_v23, %v8716_v14 }
 0x1c0   : > { %v10618_v62 = vpop.f32.mrf.mxu0 }
 0x1c2   : > { %v10620_v46 = vpop.f32.mrf.mxu0 }
 0x1c4   : > { %v8722_v55 = vpop.f32.mrf.mxu0 }
 0x1c6   : > { %v8723_v59 = vpop.f32.mrf.mxu0 }
 0x1c7   : > { %v10622_v60 = vadd.f32 %v8723_v59, %v8722_v55 }
 0x1c8   : > { %v10624_v25 = vpop.f32.mrf.mxu0 }
 0x1ca   : > { %v10626_v41 = vpop.f32.mrf.mxu0 }
 0x1cc   : > { %v8728_v56 = vpop.f32.mrf.mxu0 }
 0x1ce   : > { %v8729_v31 = vpop.f32.mrf.mxu0 }
 0x1cf   : > { %v10628_v37 = vadd.f32 %v8729_v31, %v8728_v56  ;;  %v10663_v31 = vld [vmem:[%s11951_s2] ss:$0 sm:$0xff] }
 0x1d0   : > { %v10630_v16 = vpop.f32.mrf.mxu0  ;;  %v3192_v4 = vadd.f32 %v10535_v3, %v10663_v31  ;;  %v9375_v3 = vld [vmem:[%s11952_s3 + $0x28] sm:$0xff]  }
 0x1d2   : > { %v10632_v45 = vpop.f32.mrf.mxu0 }
 0x1d4   : > { %v8734_v43 = vpop.f32.mrf.mxu0 }
 0x1d6   : > { %v8735_v40 = vpop.f32.mrf.mxu0 }
 0x1d7   : > { %v10634_v54 = vadd.f32 %v8735_v40, %v8734_v43 }
 0x1d8   : > { %v8737_v51 = vpop.f32.mrf.mxu0 }
 0x1da   : > { %v8738_v10 = vpop.f32.mrf.mxu0 }
 0x1db   : > { %v10642_v13 = vadd.f32 %v8738_v10, %v8737_v51 }
 0x1dc   : > { %v8740_v1 = vpop.f32.mrf.mxu0 }
 0x1de   : > { %v8741_v57 = vpop.f32.mrf.mxu0 }
 0x1df   : > { %v10644_v30 = vadd.f32 %v8741_v57, %v8740_v1 }
 0x1e0   : > { %v8743_v2 = vpop.f32.mrf.mxu0 }
 0x1e2   : > { %v8744_v15 = vpop.f32.mrf.mxu0 }
 0x1e3   : > { %v10646_v5 = vadd.f32 %v8744_v15, %v8743_v2 }
 0x1e4   : > { %v8746_v12 = vpop.f32.mrf.mxu0 }
 0x1e6   : > { %v8747_v42 = vpop.f32.mrf.mxu0 }
 0x1e7   : > { %v10648_v9 = vadd.f32 %v8747_v42, %v8746_v12 }
 0x1e8   : > { %v8749_v58 = vpop.f32.mrf.mxu0 }
 0x1ea   : > { %v8750_v33 = vpop.f32.mrf.mxu0 }
 0x1eb   : > { %v10656_v39 = vadd.f32 %v8750_v33, %v8749_v58  ;;  %v3195_v58 = vadd.f32 %v8667_v6, %v10663_v31 }
 0x1ec   : > { %v8752_v14 = vpop.f32.mrf.mxu0 }
 0x1ee   : > { %v8753_v23 = vpop.f32.mrf.mxu0 }
 0x1ef   : > { %v10658_v55 = vadd.f32 %v8753_v23, %v8752_v14  ;;  %v9374_v23 = vld [vmem:[%s11952_s3 + $0x68] sm:$0xff]  }
 0x1f0   : > { %v8755_v59 = vpop.f32.mrf.mxu0  ;;  %8894 = vmatprep.subr.bf16.mxu1 %v9374_v23 }
 0x1f1   : > { %8895 = vmatpush3.bf16.msra.mxu1 %v9375_v3 }
 0x1f2   : > { %v8756_v56 = vpop.f32.mrf.mxu0 }
 0x1f3   : > { %v10665_v43 = vadd.f32 %v8756_v56, %v8755_v59  ;;  %v8774_v40 = vpop.f32.mrf.mxu1  ;;  %v3704_v59 = vld [vmem:[#allocation2 + $0x7] sm:$0xff] }
 0x1f4   : > { %v9144_v51 = vpop.f32.mrf.mxu0 }
 0x1f5   : > { %v8775_v10 = vpop.f32.mrf.mxu1 }
 0x1f6   : > { %v8776_v1 = vadd.f32 %v8775_v10, %v8774_v40  ;;  %v3513_v57 = vpop.f32.mrf.mxu0  ;;  %v8357_v40 = vpack.c.bf16 %v3704_v59, %v3704_v59  ;;  %v3200_v10 = vadd.f32 %v10545_v35, %v10663_v31  ;;  %v9376_v59 = vld [vmem:[%s11952_s3 + $0x60] sm:$0xff]  }
 0x1f7   : > { %v8777_v2 = vpop.f32.mrf.mxu1  ;;  %8896 = vmatprep.subr.bf16.mxu1 %v9376_v59  ;;  %v9379_v59 = vld [vmem:[%s11952_s3 + $0xb8] sm:$0xff]  }
 0x1f8   : > { %v3353_v15 = vadd.f32 %v8776_v1, %v3192_v4  ;;  %v9145_v12 = vpop.f32.mrf.mxu0  ;;  %v8673_v4 = vadd.f32 %v10551_v22, %v10548_v50  ;;  %3864 = vst.msk [vmem:[#allocation3] sm:$0xf] %vm491_vm1, %v8357_v40  ;;  %v8679_v40 = vadd.f32 %v10561_v0, %v10558_v19  ;;  %v9378_v19 = vld [vmem:[%s11952_s3 + $0xf8] sm:$0xff]  }
 0x1f9   : > { %v8778_v42 = vpop.f32.mrf.mxu1  ;;  %9002 = vmatprep.subr.bf16.mxu0 %v9378_v19  ;;  %v9381_v19 = vld [vmem:[%s11952_s3 + $0xb0] sm:$0xff]  }
 0x1fa   : > { %v8779_v33 = vadd.f32 %v8778_v42, %v8777_v2  ;;  %v3514_v48 = vadd.f32 %v3513_v57, %v3353_v15  ;;  %v3516_v14 = vpop.f32.mrf.mxu0  ;;  %v4025_v15 = vpop.permute.xlu0 %4024  ;;  %v3203_v50 = vadd.f32 %v8673_v4, %v10663_v31  ;;  %v3211_v0 = vadd.f32 %v8679_v40, %v10663_v31  ;;  %9003 = vmatpush3.bf16.msra.mxu0 %v9379_v59 }
 0x1fb   : > { %v8780_v44 = vpop.f32.mrf.mxu1  ;;  %4120 = vst.msk [vmem:[#allocation3] sm:$0xf] %vm748_vm2, %v4025_v15 }
 0x1fc   : > { %v3640_v32 = vmax.f32 %v3514_v48, 0.0  ;;  %v3356_v53 = vadd.f32 %v8779_v33, %v3195_v58  ;;  %v10683_v57 = vpop.f32.mrf.mxu0  ;;  %v3705_v33 = vld [vmem:[#allocation2 + $0xf] sm:$0xff] }
 0x1fd   : > { %v8781_v56 = vpop.f32.mrf.mxu1  ;;  %v8358_v48 = vpack.c.bf16 %v3705_v33, %v3705_v33 }
 0x1fe   : > { %3672 = vst.msk [vmem:[#allocation2 + $0x28] sm:$0xff] %vm224_vm0, %v3640_v32  ;;  %v8782_v6 = vadd.f32 %v8781_v56, %v8780_v44  ;;  %v3517_v1 = vadd.f32 %v3516_v14, %v3356_v53  ;;  %v4027_v14 = vpop.permute.xlu1 %4026  ;;  %v3529_v3 = vpop.f32.mrf.mxu0  ;;  %v3208_v56 = vadd.f32 %v10555_v61, %v10663_v31 }
 0x1ff   : > { %v8783_v2 = vpop.f32.mrf.mxu1  ;;  %3865 = vst.msk [vmem:[#allocation3 + $0x14] sm:$0xf] %vm491_vm1, %v8358_v48 }
 0x200   : > { %v3361_v42 = vadd.f32 %v8782_v6, %v3200_v10  ;;  %v3641_v58 = vmax.f32 %v3517_v1, 0.0  ;;  %4121 = vst.msk [vmem:[#allocation3 + $0x14] sm:$0xf] %vm748_vm2, %v4027_v14  ;;  %v10706_v33 = vpop.f32.mrf.mxu0 }
 0x201   : > { %v8784_v35 = vpop.f32.mrf.mxu1 }
 0x202   : > { %v3522_v22 = vadd.f32 %v9144_v51, %v3361_v42  ;;  %3673 = vst.msk [vmem:[#allocation2 + $0x30] sm:$0xff] %vm224_vm0, %v3641_v58  ;;  %v8785_v44 = vadd.f32 %v8784_v35, %v8783_v2  ;;  %v9377_v51 = vld [vmem:[%s11952_s3 + $0x20] sm:$0xff]  }
 0x203   : > { %v8786_v23 = vpop.f32.mrf.mxu1  ;;  %8897 = vmatpush3.bf16.msra.mxu1 %v9377_v51 }
 0x204   : > { %v3642_v32 = vmax.f32 %v3522_v22, 0.0  ;;  %v3364_v53 = vadd.f32 %v8785_v44, %v3203_v50 }
 0x205   : > { %v8787_v10 = vpop.f32.mrf.mxu1  ;;  %v4344_v4 = vld [vmem:[#allocation2 + $0x27] sm:$0xff] }
 0x206   : > { %v3898_v6 = vld [vmem:[#allocation2 + $0x28] sm:$0xff]  ;;  %3674 = vst.msk [vmem:[#allocation2 + $0x48] sm:$0xff] %vm224_vm0, %v3642_v32  ;;  %v3525_v1 = vadd.f32 %v9145_v12, %v3364_v53  ;;  %v8788_v2 = vadd.f32 %v8787_v10, %v8786_v23  ;;  %v10702_v15 = vpack.c.bf16 %v4344_v4, %v4344_v4 }
 0x207   : > { %v10704_v42 = vpack.c.bf16 %v3898_v6, %v3898_v6  ;;  %v8789_v58 = vpop.f32.mrf.mxu1 }
 0x208   : > { %v3643_v61 = vmax.f32 %v3525_v1, 0.0  ;;  %v3369_v35 = vadd.f32 %v8788_v2, %v3208_v56  ;;  %3866 = vst.msk [vmem:[#allocation3 + $0x28] sm:$0xf] %vm491_vm1, %v10702_v15  ;;  %v3532_v56 = vpop.f32.mrf.mxu0  ;;  %v3216_v1 = vadd.f32 %v10566_v34, %v10663_v31  ;;  %v8685_v2 = vadd.f32 %v10573_v8, %v10569_v47 }
 0x209   : > { %4760 = vst.msk [vmem:[#allocation3 + $0x8] sm:$0xf] %vm491_vm1, %v10704_v42  ;;  %v8790_v12 = vpop.f32.mrf.mxu1  ;;  %v4345_v48 = vld [vmem:[#allocation2 + $0x2f] sm:$0xff] }
 0x20a   : > { %v3899_v50 = vld [vmem:[#allocation2 + $0x30] sm:$0xff]  ;;  %3675 = vst.msk [vmem:[#allocation2 + $0x50] sm:$0xff] %vm224_vm0, %v3643_v61  ;;  %v8791_v44 = vadd.f32 %v8790_v12, %v8789_v58  ;;  %v3530_v14 = vadd.f32 %v3529_v3, %v3369_v35  ;;  %v10717_v23 = vpack.c.bf16 %v4345_v48, %v4345_v48  ;;  %v10749_v8 = vpop.f32.mrf.mxu0 }
 0x20b   : > { %v4792_v22 = vld [vmem:[#allocation2 + $0x29] sm:$0xff]  ;;  %v10719_v32 = vpack.c.bf16 %v3899_v50, %v3899_v50  ;;  %v4793_v53 = vld [vmem:[#allocation2 + $0x31] sm:$0xff]  ;;  %v8792_v51 = vpop.f32.mrf.mxu1 }
 0x20c   : > { %v10724_v40 = vpack.c.bf16 %v4792_v22, %v4792_v22  ;;  %v10726_v10 = vpack.c.bf16 %v4793_v53, %v4793_v53  ;;  %v3644_v4 = vmax.f32 %v3530_v14, 0.0  ;;  %v3372_v6 = vadd.f32 %v8791_v44, %v3211_v0  ;;  %v9380_v3 = vld [vmem:[%s11952_s3 + $0xf0] sm:$0xff]   ;;  %3867 = vst.msk [vmem:[#allocation3 + $0x3c] sm:$0xf] %vm491_vm1, %v10717_v23  ;;  %v9382_v44 = vld [vmem:[%s11952_s3 + $0x58] sm:$0xff]   ;;  %v9383_v14 = vld [vmem:[%s11952_s3 + $0xe8] sm:$0xff]  }
 0x20d   : > { %4761 = vst.msk [vmem:[#allocation3 + $0x1c] sm:$0xf] %vm491_vm1, %v10719_v32  ;;  %v8793_v58 = vpop.f32.mrf.mxu1  ;;  %v4346_v61 = vld [vmem:[#allocation2 + $0x47] sm:$0xff]  ;;  %9004 = vmatprep.subr.bf16.mxu0 %v9380_v3  ;;  %v3219_v53 = vadd.f32 %v8685_v2, %v10663_v31  ;;  %8898 = vmatprep.subr.bf16.mxu1 %v9382_v44 }
 0x20e   : > { %v3900_v35 = vld [vmem:[#allocation2 + $0x48] sm:$0xff]  ;;  %4314 = vst.msk [vmem:[#allocation3 + $0x2c] sm:$0xf] %vm491_vm1, %v10724_v40  ;;  %4315 = vst.msk [vmem:[#allocation3 + $0x40] sm:$0xf] %vm491_vm1, %v10726_v10  ;;  %v8794_v0 = vadd.f32 %v8793_v58, %v8792_v51  ;;  %v3533_v34 = vadd.f32 %v3532_v56, %v3372_v6  ;;  %v8455_v12 = vpack.c.bf16 %v4346_v61, %v4346_v61  ;;  %9005 = vmatpush3.bf16.msra.mxu0 %v9381_v19  ;;  %v9384_v58 = vld [vmem:[%s11952_s3 + $0x18] sm:$0xff]  }
 0x20f   : > { %3676 = vst.msk [vmem:[#allocation2 + $0x68] sm:$0xff] %vm224_vm0, %v3644_v4  ;;  %v10747_v48 = vpack.c.bf16 %v3900_v35, %v3900_v35  ;;  %v8795_v47 = vpop.f32.mrf.mxu1  ;;  %v9385_v2 = vld [vmem:[%s11952_s3 + $0xa8] sm:$0xff]   ;;  %v3545_v35 = vpop.f32.mrf.mxu0  ;;  %9006 = vmatprep.subr.bf16.mxu0 %v9383_v14  ;;  %8899 = vmatpush3.bf16.msra.mxu1 %v9384_v58  ;;  %v9389_v58 = vld [vmem:[%s11952_s3 + $0xa0] sm:$0xff]  }
 0x210   : > { %v3377_v50 = vadd.f32 %v8794_v0, %v3216_v1  ;;  %v3645_v22 = vmax.f32 %v3533_v34, 0.0  ;;  %4476 = vrot.lane.b32.xlu0 %v8455_v12, %s9568_s26  ;;  %3868 = vst.msk [vmem:[#allocation3 + $0x50] sm:$0xf] %vm491_vm1, %v8455_v12  ;;  %5208 = vst.msk [vmem:[#allocation3 + $0xc] sm:$0xf] %vm491_vm1, %v8455_v12 }
 0x211   : > { %4762 = vst.msk [vmem:[#allocation3 + $0x30] sm:$0xf] %vm491_vm1, %v10747_v48  ;;  %v8796_v59 = vpop.f32.mrf.mxu1  ;;  %v4347_v51 = vld [vmem:[#allocation2 + $0x4f] sm:$0xff] }
 0x212   : > { %v3901_v56 = vld [vmem:[#allocation2 + $0x50] sm:$0xff]  ;;  %v3538_v4 = vadd.f32 %v10683_v57, %v3377_v50  ;;  %3677 = vst.msk [vmem:[#allocation2 + $0x70] sm:$0xff] %vm224_vm0, %v3645_v22  ;;  %v8797_v6 = vadd.f32 %v8796_v59, %v8795_v47  ;;  %v8456_v3 = vpack.c.bf16 %v4347_v51, %v4347_v51  ;;  %v9387_v50 = vld [vmem:[%s11952_s3 + $0xe0] sm:$0xff]   ;;  %9007 = vmatpush3.bf16.msra.mxu0 %v9385_v2 }
 0x213   : > { %v10765_v1 = vpack.c.bf16 %v3901_v56, %v3901_v56  ;;  %v8798_v61 = vpop.f32.mrf.mxu1  ;;  %v4156_v19 = vld [vmem:[#allocation2 + $0x49] sm:$0xff]  ;;  %v4157_v57 = vld [vmem:[#allocation2 + $0x51] sm:$0xff]  ;;  %9008 = vmatprep.subr.bf16.mxu0 %v9387_v50 }
 0x214   : > { %v5496_v0 = vld [vmem:[#allocation2 + $0x49] sm:$0xff]  ;;  %v3646_v34 = vmax.f32 %v3538_v4, 0.0  ;;  %v3380_v12 = vadd.f32 %v8797_v6, %v3219_v53  ;;  %4478 = vrot.lane.b32.xlu1 %v8456_v3, %s9568_s26  ;;  %4032 = vrot.lane.b32.xlu0 %v10747_v48, %s9568_s26  ;;  %3869 = vst.msk [vmem:[#allocation3 + $0x64] sm:$0xf] %vm491_vm1, %v8456_v3  ;;  %5209 = vst.msk [vmem:[#allocation3 + $0x20] sm:$0xf] %vm491_vm1, %v8456_v3  ;;  %v8425_v22 = vpack.c.bf16 %v4156_v19, %v4156_v19 }
 0x215   : > { %4763 = vst.msk [vmem:[#allocation3 + $0x44] sm:$0xf] %vm491_vm1, %v10765_v1  ;;  %v9386_v47 = vld [vmem:[%s11952_s3 + $0x50] sm:$0xff]   ;;  %v8426_v44 = vpack.c.bf16 %v4157_v57, %v4157_v57  ;;  %v8799_v53 = vpop.f32.mrf.mxu1  ;;  %v8613_v51 = vpack.c.bf16 %v5496_v0, %v5496_v0  ;;  %v3224_v4 = vadd.f32 %v10577_v11, %v10663_v31  ;;  %v8691_v6 = vadd.f32 %v10583_v29, %v10580_v24  ;;  %v10800_v0 = vpop.f32.mrf.mxu0 }
 0x216   : > { %v5497_v14 = vld [vmem:[#allocation2 + $0x51] sm:$0xff]  ;;  %3678 = vst.msk [vmem:[#allocation2 + $0x88] sm:$0xff] %vm224_vm0, %v3646_v34  ;;  %v3541_v3 = vadd.f32 %v10706_v33, %v3380_v12  ;;  %v8800_v19 = vadd.f32 %v8799_v53, %v8798_v61  ;;  %8900 = vmatprep.subr.bf16.mxu1 %v9386_v47  ;;  %v3710_v2 = vld [vmem:[#allocation2 + $0x67] sm:$0xff]  ;;  %9009 = vmatpush3.bf16.msra.mxu0 %v9389_v58 }
 0x217   : > { %v9388_v59 = vld [vmem:[%s11952_s3 + $0x10] sm:$0xff]   ;;  %v8614_v56 = vpack.c.bf16 %v5497_v14, %v5497_v14  ;;  %4316 = vst.msk [vmem:[#allocation3 + $0x54] sm:$0xf] %vm491_vm1, %v8425_v22  ;;  %4317 = vst.msk [vmem:[#allocation3 + $0x68] sm:$0xf] %vm491_vm1, %v8426_v44  ;;  %v4604_v57 = vld [vmem:[#allocation2 + $0x68] sm:$0xff]  ;;  %v8801_v11 = vpop.f32.mrf.mxu1  ;;  %v8363_v24 = vpack.c.bf16 %v3710_v2, %v3710_v2 }
 0x218   : > { %v8489_v29 = vpack.c.bf16 %v4604_v57, %v4604_v57  ;;  %5656 = vst.msk [vmem:[#allocation3 + $0x10] sm:$0xf] %vm491_vm1, %v8613_v51  ;;  %v3647_v33 = vmax.f32 %v3541_v3, 0.0  ;;  %4034 = vrot.lane.b32.xlu1 %v10765_v1, %s9568_s26  ;;  %5368 = vrot.lane.b32.xlu0 %v10747_v48, %s9568_s26  ;;  %v3385_v61 = vadd.f32 %v8800_v19, %v3224_v4  ;;  %v9390_v34 = vld [vmem:[%s11952_s3 + $0x48] sm:$0xff]   ;;  %v9391_v12 = vld [vmem:[%s11952_s3 + $0xd8] sm:$0xff]   ;;  %v3548_v4 = vpop.f32.mrf.mxu0 }
 0x219   : > { %5657 = vst.msk [vmem:[#allocation3 + $0x24] sm:$0xf] %vm491_vm1, %v8614_v56  ;;  %v8802_v47 = vpop.f32.mrf.mxu1  ;;  %v10814_v50 = vld [vmem:[#allocation2 + $0x51] sm:$0xff]  ;;  %v4796_v22 = vld [vmem:[#allocation2 + $0x69] sm:$0xff]  ;;  %8901 = vmatpush3.bf16.msra.mxu1 %v9388_v59  ;;  %3870 = vst.msk [vmem:[#allocation3 + $0x78] sm:$0xf] %vm491_vm1, %v8363_v24  ;;  %v3227_v48 = vadd.f32 %v8691_v6, %v10663_v31  ;;  %9010 = vmatprep.subr.bf16.mxu0 %v9391_v12 }
 0x21a   : > { %5210 = vst.msk [vmem:[#allocation3 + $0x34] sm:$0xf] %vm491_vm1, %v8363_v24  ;;  %4764 = vst.msk [vmem:[#allocation3 + $0x58] sm:$0xf] %vm491_vm1, %v8489_v29  ;;  %v8803_v44 = vadd.f32 %v8802_v47, %v8801_v11  ;;  %v3546_v14 = vadd.f32 %v3545_v35, %v3385_v61  ;;  %v4797_v53 = vld [vmem:[#allocation2 + $0x71] sm:$0xff]  ;;  %8902 = vmatprep.subr.bf16.mxu1 %v9390_v34  ;;  %v9392_v51 = vld [vmem:[%s11952_s3 + $0x8] sm:$0xff]   ;;  %v10827_v3 = vpack.c.bf16 %v4796_v22, %v4796_v22 }
 0x21b   : > { %3679 = vst.msk [vmem:[#allocation2 + $0x90] sm:$0xff] %vm224_vm0, %v3647_v33  ;;  %v9393_v59 = vld [vmem:[%s11952_s3 + $0x98] sm:$0xff]   ;;  %v8804_v56 = vpop.f32.mrf.mxu1  ;;  %v10829_v19 = vpack.c.bf16 %v4797_v53, %v4797_v53  ;;  %v3711_v6 = vld [vmem:[#allocation2 + $0x6f] sm:$0xff]  ;;  %v9394_v11 = vld [vmem:[%s11952_s3 + $0x40] sm:$0xff]   ;;  %v3232_v34 = vadd.f32 %v10587_v18, %v10663_v31  ;;  %v8697_v22 = vadd.f32 %v10592_v49, %v10589_v36 }
 0x21c   : > { %v4605_v58 = vld [vmem:[#allocation2 + $0x70] sm:$0xff]  ;;  %v3648_v2 = vmax.f32 %v3546_v14, 0.0  ;;  %5370 = vrot.lane.b32.xlu1 %v10765_v1, %s9568_s26  ;;  %4472 = vrot.lane.b32.xlu0 %v10702_v15, %s9568_s26  ;;  %v3388_v57 = vadd.f32 %v8803_v44, %v3227_v48  ;;  %v8364_v29 = vpack.c.bf16 %v3711_v6, %v3711_v6  ;;  %4318 = vst.msk [vmem:[#allocation3 + $0x7c] sm:$0xf] %vm491_vm1, %v10827_v3  ;;  %v9396_v15 = vld [vmem:[%s11952_s3] sm:$0xff]  }
 0x21d   : > { %v5498_v35 = vld [vmem:[#allocation2 + $0x69] sm:$0xff]  ;;  %v8490_v33 = vpack.c.bf16 %v4605_v58, %v4605_v58  ;;  %v5499_v61 = vld [vmem:[#allocation2 + $0x71] sm:$0xff]  ;;  %v8805_v12 = vpop.f32.mrf.mxu1  ;;  %8903 = vmatpush3.bf16.msra.mxu1 %v9392_v51  ;;  %9011 = vmatpush3.bf16.msra.mxu0 %v9393_v59  ;;  %4319 = vst.msk [vmem:[#allocation3 + $0x90] sm:$0xf] %vm491_vm1, %v10829_v19  ;;  %v8520_v44 = vpack.c.bf16 %v10814_v50, %v10814_v50  ;;  %v10861_v59 = vpop.f32.mrf.mxu0 }
 0x21e   : > { %v9395_v24 = vld [vmem:[%s11952_s3 + $0xd0] sm:$0xff]   ;;  %v8615_v1 = vpack.c.bf16 %v5498_v35, %v5498_v35  ;;  %v8616_v47 = vpack.c.bf16 %v5499_v61, %v5499_v61  ;;  %3680 = vst.msk [vmem:[#allocation2 + $0xa8] sm:$0xff] %vm224_vm0, %v3648_v2  ;;  %v8806_v18 = vadd.f32 %v8805_v12, %v8804_v56  ;;  %v3549_v48 = vadd.f32 %v3548_v4, %v3388_v57  ;;  %v3712_v53 = vld [vmem:[#allocation2 + $0x87] sm:$0xff] }
 0x21f   : > { %8904 = vmatprep.subr.bf16.mxu1 %v9394_v11  ;;  %v9397_v14 = vld [vmem:[%s11952_s3 + $0x90] sm:$0xff]   ;;  %3871 = vst.msk [vmem:[#allocation3 + $0x8c] sm:$0xf] %vm491_vm1, %v8364_v29  ;;  %v4606_v51 = vld [vmem:[#allocation2 + $0x88] sm:$0xff]  ;;  %5211 = vst.msk [vmem:[#allocation3 + $0x48] sm:$0xf] %vm491_vm1, %v8364_v29  ;;  %v8807_v36 = vpop.f32.mrf.mxu1  ;;  %9012 = vmatprep.subr.bf16.mxu0 %v9395_v24  ;;  %v8365_v56 = vpack.c.bf16 %v3712_v53, %v3712_v53  ;;  %v3235_v2 = vadd.f32 %v8697_v22, %v10663_v31  ;;  %v3561_v61 = vpop.f32.mrf.mxu0 }
 0x220   : > { %4765 = vst.msk [vmem:[#allocation3 + $0x6c] sm:$0xf] %vm491_vm1, %v8490_v33  ;;  %v4794_v49 = vld [vmem:[#allocation2 + $0x49] sm:$0xff]  ;;  %v8491_v50 = vpack.c.bf16 %v4606_v51, %v4606_v51  ;;  %5658 = vst.msk [vmem:[#allocation3 + $0x38] sm:$0xf] %vm491_vm1, %v8615_v1  ;;  %v3393_v4 = vadd.f32 %v8806_v18, %v3232_v34  ;;  %v3649_v6 = vmax.f32 %v3549_v48, 0.0  ;;  %4926 = vrot.lane.b32.xlu1 %v8520_v44, %s9568_s26  ;;  %4028 = vrot.lane.b32.xlu0 %v10704_v42, %s9568_s26 }
 0x221   : > { %5659 = vst.msk [vmem:[#allocation3 + $0x4c] sm:$0xf] %vm491_vm1, %v8616_v47  ;;  %v9401_v58 = vld [vmem:[%s11952_s3 + $0xc8] sm:$0xff]   ;;  %v8808_v35 = vpop.f32.mrf.mxu1  ;;  %8905 = vmatpush3.bf16.msra.mxu1 %v9396_v15  ;;  %9013 = vmatpush3.bf16.msra.mxu0 %v9397_v14  ;;  %3872 = vst.msk [vmem:[#allocation3 + $0xa0] sm:$0xf] %vm491_vm1, %v8365_v56  ;;  %v8519_v11 = vpack.c.bf16 %v4794_v49, %v4794_v49  ;;  %v9406_v51 = vld [vmem:[%s11952_s3 + $0x80] sm:$0xff]  }
 0x222   : > { %5212 = vst.msk [vmem:[#allocation3 + $0x5c] sm:$0xf] %vm491_vm1, %v8365_v56  ;;  %4766 = vst.msk [vmem:[#allocation3 + $0x80] sm:$0xf] %vm491_vm1, %v8491_v50  ;;  %v3554_v57 = vadd.f32 %v10749_v8, %v3393_v4  ;;  %v8809_v42 = vadd.f32 %v8808_v35, %v8807_v36  ;;  %9014 = vmatprep.subr.bf16.mxu0 %v9401_v58  ;;  %v9402_v24 = vld [vmem:[%s11952_s3 + $0x88] sm:$0xff]   ;;  %v4607_v12 = vld [vmem:[#allocation2 + $0x90] sm:$0xff]  ;;  %v3240_v56 = vadd.f32 %v10596_v28, %v10663_v31 }
 0x223   : > { %3681 = vst.msk [vmem:[#allocation2 + $0xb0] sm:$0xff] %vm224_vm0, %v3649_v6  ;;  %v3713_v29 = vld [vmem:[#allocation2 + $0x8f] sm:$0xff]  ;;  %v8810_v33 = vpop.f32.mrf.mxu1  ;;  %v9405_v8 = vld [vmem:[%s11952_s3 + $0xc0] sm:$0xff]   ;;  %v8492_v18 = vpack.c.bf16 %v4607_v12, %v4607_v12  ;;  %v8703_v50 = vadd.f32 %v10602_v26, %v10598_v7 }
 0x224   : > { %v8366_v34 = vpack.c.bf16 %v3713_v29, %v3713_v29  ;;  %v4160_v15 = vld [vmem:[#allocation2 + $0x89] sm:$0xff]  ;;  %v4161_v1 = vld [vmem:[#allocation2 + $0x91] sm:$0xff]  ;;  %v3650_v47 = vmax.f32 %v3554_v57, 0.0  ;;  %v3396_v22 = vadd.f32 %v8809_v42, %v3235_v2  ;;  %4474 = vrot.lane.b32.xlu1 %v10717_v23, %s9568_s26  ;;  %4924 = vrot.lane.b32.xlu0 %v8519_v11, %s9568_s26  ;;  %v10899_v57 = vpop.f32.mrf.mxu0 }
 0x225   : > { %v8429_v48 = vpack.c.bf16 %v4160_v15, %v4160_v15  ;;  %v5500_v44 = vld [vmem:[#allocation2 + $0x89] sm:$0xff]  ;;  %v5501_v14 = vld [vmem:[#allocation2 + $0x91] sm:$0xff]  ;;  %v8811_v53 = vpop.f32.mrf.mxu1  ;;  %9015 = vmatpush3.bf16.msra.mxu0 %v9402_v24  ;;  %v8430_v23 = vpack.c.bf16 %v4161_v1, %v4161_v1  ;;  %4767 = vst.msk [vmem:[#allocation3 + $0x94] sm:$0xf] %vm491_vm1, %v8492_v18 }
 0x226   : > { %3873 = vst.msk [vmem:[#allocation3 + $0xb4] sm:$0xf] %vm491_vm1, %v8366_v34  ;;  %5213 = vst.msk [vmem:[#allocation3 + $0x70] sm:$0xf] %vm491_vm1, %v8366_v34  ;;  %v8617_v36 = vpack.c.bf16 %v5500_v44, %v5500_v44  ;;  %v8618_v49 = vpack.c.bf16 %v5501_v14, %v5501_v14  ;;  %v3557_v4 = vadd.f32 %v10800_v0, %v3396_v22  ;;  %9016 = vmatprep.subr.bf16.mxu0 %v9405_v8  ;;  %v3714_v58 = vld [vmem:[#allocation2 + $0xa7] sm:$0xff]  ;;  %v3564_v22 = vpop.f32.mrf.mxu0  ;;  %v4351_v8 = vld [vmem:[#allocation2 + $0x8f] sm:$0xff] }
 0x227   : > { %3682 = vst.msk [vmem:[#allocation2 + $0xc8] sm:$0xff] %vm224_vm0, %v3650_v47  ;;  %v8812_v6 = vadd.f32 %v8811_v53, %v8810_v33  ;;  %v4608_v35 = vld [vmem:[#allocation2 + $0xa8] sm:$0xff]  ;;  %v8813_v2 = vpop.f32.mrf.mxu1  ;;  %v8367_v28 = vpack.c.bf16 %v3714_v58, %v3714_v58  ;;  %v3243_v33 = vadd.f32 %v8703_v50, %v10663_v31  ;;  %v8709_v50 = vadd.f32 %v10608_v63, %v10606_v38 }
 0x228   : > { %4320 = vst.msk [vmem:[#allocation3 + $0xa4] sm:$0xf] %vm491_vm1, %v8429_v48  ;;  %v4350_v42 = vld [vmem:[#allocation2 + $0x87] sm:$0xff]  ;;  %4321 = vst.msk [vmem:[#allocation3 + $0xb8] sm:$0xf] %vm491_vm1, %v8430_v23  ;;  %v8493_v7 = vpack.c.bf16 %v4608_v35, %v4608_v35  ;;  %v3651_v26 = vmax.f32 %v3557_v4, 0.0  ;;  %4030 = vrot.lane.b32.xlu1 %v10719_v32, %s9568_s26  ;;  %4920 = vrot.lane.b32.xlu0 %v10724_v40, %s9568_s26  ;;  %v8460_v58 = vpack.c.bf16 %v4351_v8, %v4351_v8 }
 0x229   : > { %5660 = vst.msk [vmem:[#allocation3 + $0x60] sm:$0xf] %vm491_vm1, %v8617_v36  ;;  %5661 = vst.msk [vmem:[#allocation3 + $0x74] sm:$0xf] %vm491_vm1, %v8618_v49  ;;  %v3401_v0 = vadd.f32 %v8812_v6, %v3240_v56  ;;  %v8814_v11 = vpop.f32.mrf.mxu1  ;;  %v3904_v24 = vld [vmem:[#allocation2 + $0x88] sm:$0xff]  ;;  %9017 = vmatpush3.bf16.msra.mxu0 %v9406_v51  ;;  %v8459_v12 = vpack.c.bf16 %v4350_v42, %v4350_v42  ;;  %v3248_v56 = vadd.f32 %v10604_v17, %v10663_v31  ;;  %v10934_v42 = vpop.f32.mrf.mxu0 }
 0x22a   : > { %v4800_v29 = vld [vmem:[#allocation2 + $0xa9] sm:$0xff]  ;;  %3874 = vst.msk [vmem:[#allocation3 + $0xc8] sm:$0xf] %vm491_vm1, %v8367_v28  ;;  %5214 = vst.msk [vmem:[#allocation3 + $0x84] sm:$0xf] %vm491_vm1, %v8367_v28  ;;  %v8815_v34 = vadd.f32 %v8814_v11, %v8813_v2  ;;  %v4801_v15 = vld [vmem:[#allocation2 + $0xb1] sm:$0xff]  ;;  %v8397_v38 = vpack.c.bf16 %v3904_v24, %v3904_v24  ;;  %v3251_v24 = vadd.f32 %v8709_v50, %v10663_v31 }
 0x22b   : > { %4768 = vst.msk [vmem:[#allocation3 + $0xa8] sm:$0xf] %vm491_vm1, %v8493_v7  ;;  %v3562_v32 = vadd.f32 %v3561_v61, %v3401_v0  ;;  %v3715_v40 = vld [vmem:[#allocation2 + $0xaf] sm:$0xff]  ;;  %v8816_v47 = vpop.f32.mrf.mxu1  ;;  %v10913_v18 = vpack.c.bf16 %v4800_v29, %v4800_v29  ;;  %v10915_v48 = vpack.c.bf16 %v4801_v15, %v4801_v15 }
 0x22c   : > { %3683 = vst.msk [vmem:[#allocation2 + $0xd0] sm:$0xff] %vm224_vm0, %v3651_v26  ;;  %v4609_v1 = vld [vmem:[#allocation2 + $0xb0] sm:$0xff]  ;;  %v8368_v44 = vpack.c.bf16 %v3715_v40, %v3715_v40  ;;  %4922 = vrot.lane.b32.xlu1 %v10726_v10, %s9568_s26  ;;  %4484 = vrot.lane.b32.xlu0 %v8459_v12, %s9568_s26  ;;  %v3404_v61 = vadd.f32 %v8815_v34, %v3243_v33  ;;  %v4348_v40 = vld [vmem:[#allocation2 + $0x67] sm:$0xff] }
 0x22d   : > { %v8494_v14 = vpack.c.bf16 %v4609_v1, %v4609_v1  ;;  %v5502_v53 = vld [vmem:[#allocation2 + $0xa9] sm:$0xff]  ;;  %v5503_v51 = vld [vmem:[#allocation2 + $0xb1] sm:$0xff]  ;;  %v3652_v23 = vmax.f32 %v3562_v32, 0.0  ;;  %v8817_v4 = vpop.f32.mrf.mxu1  ;;  %4322 = vst.msk [vmem:[#allocation3 + $0xcc] sm:$0xf] %vm491_vm1, %v10913_v18  ;;  %v3577_v1 = vpop.f32.mrf.mxu0 }
 0x22e   : > { %v8619_v36 = vpack.c.bf16 %v5502_v53, %v5502_v53  ;;  %v8620_v49 = vpack.c.bf16 %v5503_v51, %v5503_v51  ;;  %4323 = vst.msk [vmem:[#allocation3 + $0xe0] sm:$0xf] %vm491_vm1, %v10915_v48  ;;  %v3716_v6 = vld [vmem:[#allocation2 + $0xc7] sm:$0xff]  ;;  %3875 = vst.msk [vmem:[#allocation3 + $0xdc] sm:$0xf] %vm491_vm1, %v8368_v44  ;;  %v8818_v17 = vadd.f32 %v8817_v4, %v8816_v47  ;;  %v3905_v2 = vld [vmem:[#allocation2 + $0x90] sm:$0xff] }
 0x22f   : > { %5215 = vst.msk [vmem:[#allocation3 + $0x98] sm:$0xf] %vm491_vm1, %v8368_v44  ;;  %4769 = vst.msk [vmem:[#allocation3 + $0xbc] sm:$0xf] %vm491_vm1, %v8494_v14  ;;  %v3565_v10 = vadd.f32 %v3564_v22, %v3404_v61  ;;  %v4610_v63 = vld [vmem:[#allocation2 + $0xc8] sm:$0xff]  ;;  %v8819_v35 = vpop.f32.mrf.mxu1  ;;  %v8369_v28 = vpack.c.bf16 %v3716_v6, %v3716_v6  ;;  %v8398_v34 = vpack.c.bf16 %v3905_v2, %v3905_v2  ;;  %v10959_v6 = vpop.f32.mrf.mxu0 }
 0x230   : > { %3684 = vst.msk [vmem:[#allocation2 + $0xe8] sm:$0xff] %vm224_vm0, %v3652_v23  ;;  %v8495_v7 = vpack.c.bf16 %v4610_v63, %v4610_v63  ;;  %v3409_v26 = vadd.f32 %v8818_v17, %v3248_v56  ;;  %4486 = vrot.lane.b32.xlu1 %v8460_v58, %s9568_s26  ;;  %4040 = vrot.lane.b32.xlu0 %v8397_v38, %s9568_s26  ;;  %v4799_v17 = vld [vmem:[#allocation2 + $0x91] sm:$0xff] }
 0x231   : > { %5662 = vst.msk [vmem:[#allocation3 + $0x88] sm:$0xf] %vm491_vm1, %v8619_v36  ;;  %5663 = vst.msk [vmem:[#allocation3 + $0x9c] sm:$0xf] %vm491_vm1, %v8620_v49  ;;  %v3653_v0 = vmax.f32 %v3565_v10, 0.0  ;;  %v8820_v11 = vpop.f32.mrf.mxu1  ;;  %v8715_v23 = vadd.f32 %v10614_v21, %v10612_v20  ;;  %v3256_v49 = vadd.f32 %v10610_v52, %v10663_v31  ;;  %v8457_v4 = vpack.c.bf16 %v4348_v40, %v4348_v40  ;;  %v3902_v52 = vld [vmem:[#allocation2 + $0x68] sm:$0xff] }
 0x232   : > { %3876 = vst.msk [vmem:[#allocation3 + $0xf0] sm:$0xf] %vm491_vm1, %v8369_v28  ;;  %5216 = vst.msk [vmem:[#allocation3 + $0xac] sm:$0xf] %vm491_vm1, %v8369_v28  ;;  %v3570_v29 = vadd.f32 %v10861_v59, %v3409_v26  ;;  %v8821_v33 = vadd.f32 %v8820_v11, %v8819_v35  ;;  %v8524_v26 = vpack.c.bf16 %v4799_v17, %v4799_v17 }
 0x233   : > { %4770 = vst.msk [vmem:[#allocation3 + $0xd0] sm:$0xf] %vm491_vm1, %v8495_v7  ;;  %v3717_v32 = vld [vmem:[#allocation2 + $0xcf] sm:$0xff]  ;;  %v8822_v15 = vpop.f32.mrf.mxu1  ;;  %v3259_v63 = vadd.f32 %v8715_v23, %v10663_v31 }
 0x234   : > { %3685 = vst.msk [vmem:[#allocation2 + $0xf0] sm:$0xff] %vm224_vm0, %v3653_v0  ;;  %v4611_v12 = vld [vmem:[#allocation2 + $0xd0] sm:$0xff]  ;;  %v8370_v47 = vpack.c.bf16 %v3717_v32, %v3717_v32  ;;  %v3654_v14 = vmax.f32 %v3570_v29, 0.0  ;;  %v3412_v53 = vadd.f32 %v8821_v33, %v3251_v24  ;;  %4042 = vrot.lane.b32.xlu1 %v8398_v34, %s9568_s26  ;;  %5376 = vrot.lane.b32.xlu0 %v8397_v38, %s9568_s26 }
 0x235   : > { %v8496_v22 = vpack.c.bf16 %v4611_v12, %v4611_v12  ;;  %v4164_v8 = vld [vmem:[#allocation2 + $0xc9] sm:$0xff]  ;;  %v4165_v44 = vld [vmem:[#allocation2 + $0xd1] sm:$0xff]  ;;  %v8823_v61 = vpop.f32.mrf.mxu1  ;;  %v8395_v0 = vpack.c.bf16 %v3902_v52, %v3902_v52 }
 0x236   : > { %v8433_v59 = vpack.c.bf16 %v4164_v8, %v4164_v8  ;;  %v8434_v51 = vpack.c.bf16 %v4165_v44, %v4165_v44  ;;  %3877 = vst.msk [vmem:[#allocation3 + $0x104] sm:$0xf] %vm491_vm1, %v8370_v47  ;;  %5217 = vst.msk [vmem:[#allocation3 + $0xc0] sm:$0xf] %vm491_vm1, %v8370_v47  ;;  %v3573_v56 = vadd.f32 %v10899_v57, %v3412_v53  ;;  %v4349_v32 = vld [vmem:[#allocation2 + $0x6f] sm:$0xff] }
 0x237   : > { %4771 = vst.msk [vmem:[#allocation3 + $0xe4] sm:$0xf] %vm491_vm1, %v8496_v22  ;;  %v3718_v36 = vld [vmem:[#allocation2 + $0xe7] sm:$0xff]  ;;  %v8824_v50 = vadd.f32 %v8823_v61, %v8822_v15  ;;  %v8825_v21 = vpop.f32.mrf.mxu1  ;;  %v3264_v61 = vadd.f32 %v10616_v27, %v10663_v31 }
 0x238   : > { %3686 = vst.msk [vmem:[#allocation2 + $0x108] sm:$0xff] %vm224_vm0, %v3654_v14  ;;  %v4612_v20 = vld [vmem:[#allocation2 + $0xe8] sm:$0xff]  ;;  %v8371_v10 = vpack.c.bf16 %v3718_v36, %v3718_v36  ;;  %v3655_v38 = vmax.f32 %v3573_v56, 0.0  ;;  %5378 = vrot.lane.b32.xlu1 %v8398_v34, %s9568_s26  ;;  %4480 = vrot.lane.b32.xlu0 %v8457_v4, %s9568_s26  ;;  %v3580_v34 = vpop.f32.mrf.mxu0  ;;  %v8458_v36 = vpack.c.bf16 %v4349_v32, %v4349_v32 }
 0x239   : > { %4324 = vst.msk [vmem:[#allocation3 + $0xf4] sm:$0xf] %vm491_vm1, %v8433_v59  ;;  %4325 = vst.msk [vmem:[#allocation3 + $0x108] sm:$0xf] %vm491_vm1, %v8434_v51  ;;  %v8497_v58 = vpack.c.bf16 %v4612_v20, %v4612_v20  ;;  %v3417_v57 = vadd.f32 %v8824_v50, %v3256_v49  ;;  %v8826_v35 = vpop.f32.mrf.mxu1  ;;  %v3903_v50 = vld [vmem:[#allocation2 + $0x70] sm:$0xff] }
 0x23a   : > { %5664 = vst.msk [vmem:[#allocation3 + $0xb0] sm:$0xf] %vm491_vm1, %v8433_v59  ;;  %5665 = vst.msk [vmem:[#allocation3 + $0xc4] sm:$0xf] %vm491_vm1, %v8434_v51  ;;  %v8827_v28 = vadd.f32 %v8826_v35, %v8825_v21  ;;  %v8721_v59 = vadd.f32 %v10620_v46, %v10618_v62  ;;  %v4798_v4 = vld [vmem:[#allocation2 + $0x89] sm:$0xff]  ;;  %v10988_v20 = vpop.f32.mrf.mxu0 }
 0x23b   : > { %v4804_v2 = vld [vmem:[#allocation2 + $0xe9] sm:$0xff]  ;;  %3878 = vst.msk [vmem:[#allocation3 + $0x118] sm:$0xf] %vm491_vm1, %v8371_v10  ;;  %5218 = vst.msk [vmem:[#allocation3 + $0xd4] sm:$0xf] %vm491_vm1, %v8371_v10  ;;  %v3578_v7 = vadd.f32 %v3577_v1, %v3417_v57  ;;  %v4805_v11 = vld [vmem:[#allocation2 + $0xf1] sm:$0xff]  ;;  %v8828_v33 = vpop.f32.mrf.mxu1  ;;  %v8523_v35 = vpack.c.bf16 %v4798_v4, %v4798_v4 }
 0x23c   : > { %4772 = vst.msk [vmem:[#allocation3 + $0xf8] sm:$0xf] %vm491_vm1, %v8497_v58  ;;  %v3719_v24 = vld [vmem:[#allocation2 + $0xef] sm:$0xff]  ;;  %v10968_v12 = vpack.c.bf16 %v4804_v2, %v4804_v2  ;;  %v10970_v15 = vpack.c.bf16 %v4805_v11, %v4805_v11  ;;  %4934 = vrot.lane.b32.xlu1 %v8524_v26, %s9568_s26  ;;  %4036 = vrot.lane.b32.xlu0 %v8395_v0, %s9568_s26  ;;  %v3593_v26 = vpop.f32.mrf.mxu0 }
 0x23d   : > { %3687 = vst.msk [vmem:[#allocation2 + $0x110] sm:$0xff] %vm224_vm0, %v3655_v38  ;;  %v4613_v29 = vld [vmem:[#allocation2 + $0xf0] sm:$0xff]  ;;  %v8372_v40 = vpack.c.bf16 %v3719_v24, %v3719_v24  ;;  %v3656_v44 = vmax.f32 %v3578_v7, 0.0  ;;  %v3420_v1 = vadd.f32 %v8827_v28, %v3259_v63  ;;  %v8829_v51 = vpop.f32.mrf.mxu1  ;;  %v3267_v27 = vadd.f32 %v8721_v59, %v10663_v31 }
 0x23e   : > { %v8498_v47 = vpack.c.bf16 %v4613_v29, %v4613_v29  ;;  %v5506_v22 = vld [vmem:[#allocation2 + $0xe9] sm:$0xff]  ;;  %v5507_v8 = vld [vmem:[#allocation2 + $0xf1] sm:$0xff]  ;;  %4326 = vst.msk [vmem:[#allocation3 + $0x11c] sm:$0xf] %vm491_vm1, %v10968_v12  ;;  %4327 = vst.msk [vmem:[#allocation3 + $0x130] sm:$0xf] %vm491_vm1, %v10970_v15  ;;  %v8830_v62 = vadd.f32 %v8829_v51, %v8828_v33  ;;  %v8396_v63 = vpack.c.bf16 %v3903_v50, %v3903_v50  ;;  %v11013_v59 = vpop.f32.mrf.mxu0 }
 0x23f   : > { %v8623_v14 = vpack.c.bf16 %v5506_v22, %v5506_v22  ;;  %v8624_v53 = vpack.c.bf16 %v5507_v8, %v5507_v8  ;;  %v3720_v23 = vld [vmem:[#allocation2 + $0x107] sm:$0xff]  ;;  %3879 = vst.msk [vmem:[#allocation3 + $0x12c] sm:$0xf] %vm491_vm1, %v8372_v40  ;;  %5219 = vst.msk [vmem:[#allocation3 + $0xe8] sm:$0xf] %vm491_vm1, %v8372_v40  ;;  %v3581_v46 = vadd.f32 %v3580_v34, %v3420_v1  ;;  %v8831_v56 = vpop.f32.mrf.mxu1 }
 0x240   : > { %4773 = vst.msk [vmem:[#allocation3 + $0x10c] sm:$0xf] %vm491_vm1, %v8498_v47  ;;  %v4614_v49 = vld [vmem:[#allocation2 + $0x108] sm:$0xff]  ;;  %v8373_v21 = vpack.c.bf16 %v3720_v23, %v3720_v23  ;;  %v3425_v52 = vadd.f32 %v8830_v62, %v3264_v61  ;;  %4482 = vrot.lane.b32.xlu1 %v8458_v36, %s9568_s26  ;;  %5372 = vrot.lane.b32.xlu0 %v8395_v0, %s9568_s26  ;;  %v11024_v62 = vld [vmem:[%s11951_s2] ss:$0 sm:$0xff] }
 0x241   : > { %3688 = vst.msk [vmem:[#allocation2 + $0x128] sm:$0xff] %vm224_vm0, %v3656_v44  ;;  %v8499_v17 = vpack.c.bf16 %v4614_v49, %v4614_v49  ;;  %v3657_v10 = vmax.f32 %v3581_v46, 0.0  ;;  %v8832_v58 = vpop.f32.mrf.mxu1  ;;  %v3272_v22 = vadd.f32 %v10622_v60, %v10663_v31  ;;  %v8727_v8 = vadd.f32 %v10626_v41, %v10624_v25  ;;  %v4354_v60 = vld [vmem:[#allocation2 + $0xc7] sm:$0xff] }
 0x242   : > { %5666 = vst.msk [vmem:[#allocation3 + $0xd8] sm:$0xf] %vm491_vm1, %v8623_v14  ;;  %5667 = vst.msk [vmem:[#allocation3 + $0xec] sm:$0xf] %vm491_vm1, %v8624_v53  ;;  %v3586_v38 = vadd.f32 %v10934_v42, %v3425_v52  ;;  %v8833_v57 = vadd.f32 %v8832_v58, %v8831_v56  ;;  %v3908_v23 = vld [vmem:[#allocation2 + $0xc8] sm:$0xff]  ;;  %v8463_v49 = vpack.c.bf16 %v4354_v60, %v4354_v60 }
 0x243   : > { %3880 = vst.msk [vmem:[#allocation3 + $0x140] sm:$0xf] %vm491_vm1, %v8373_v21  ;;  %5220 = vst.msk [vmem:[#allocation3 + $0xfc] sm:$0xf] %vm491_vm1, %v8373_v21  ;;  %v8834_v7 = vpop.f32.mrf.mxu1  ;;  %v3275_v46 = vadd.f32 %v11024_v62, %v8727_v8  ;;  %v4355_v52 = vld [vmem:[#allocation2 + $0xcf] sm:$0xff] }
 0x244   : > { %4774 = vst.msk [vmem:[#allocation3 + $0x120] sm:$0xf] %vm491_vm1, %v8499_v17  ;;  %v3721_v2 = vld [vmem:[#allocation2 + $0x10f] sm:$0xff]  ;;  %v3658_v33 = vmax.f32 %v3586_v38, 0.0  ;;  %v3428_v34 = vadd.f32 %v8833_v57, %v3267_v27  ;;  %4038 = vrot.lane.b32.xlu1 %v8396_v63, %s9568_s26  ;;  %4932 = vrot.lane.b32.xlu0 %v8523_v35, %s9568_s26  ;;  %v3596_v17 = vpop.f32.mrf.mxu0 }
 0x245   : > { %3689 = vst.msk [vmem:[#allocation2 + $0x130] sm:$0xff] %vm224_vm0, %v3657_v10  ;;  %v4615_v28 = vld [vmem:[#allocation2 + $0x110] sm:$0xff]  ;;  %v8374_v0 = vpack.c.bf16 %v3721_v2, %v3721_v2  ;;  %v8835_v40 = vpop.f32.mrf.mxu1 }
 0x246   : > { %v8500_v11 = vpack.c.bf16 %v4615_v28, %v4615_v28  ;;  %v4168_v24 = vld [vmem:[#allocation2 + $0x109] sm:$0xff]  ;;  %v4169_v29 = vld [vmem:[#allocation2 + $0x111] sm:$0xff]  ;;  %3690 = vst.msk [vmem:[#allocation2 + $0x148] sm:$0xff] %vm224_vm0, %v3658_v33  ;;  %v3589_v44 = vadd.f32 %v10959_v6, %v3428_v34  ;;  %v8836_v1 = vadd.f32 %v8835_v40, %v8834_v7 }
 0x247   : > { %v8437_v42 = vpack.c.bf16 %v4168_v24, %v4168_v24  ;;  %v8438_v32 = vpack.c.bf16 %v4169_v29, %v4169_v29  ;;  %3881 = vst.msk [vmem:[#allocation3 + $0x154] sm:$0xf] %vm491_vm1, %v8374_v0  ;;  %5221 = vst.msk [vmem:[#allocation3 + $0x110] sm:$0xf] %vm491_vm1, %v8374_v0  ;;  %v8837_v53 = vpop.f32.mrf.mxu1  ;;  %v8733_v0 = vadd.f32 %v10632_v45, %v10630_v16  ;;  %v3909_v34 = vld [vmem:[#allocation2 + $0xd0] sm:$0xff] }
 0x248   : > { %4775 = vst.msk [vmem:[#allocation3 + $0x134] sm:$0xf] %vm491_vm1, %v8500_v11  ;;  %v3722_v47 = vld [vmem:[#allocation2 + $0x127] sm:$0xff]  ;;  %v3659_v41 = vmax.f32 %v3589_v44, 0.0  ;;  %5374 = vrot.lane.b32.xlu1 %v8396_v63, %s9568_s26  ;;  %4928 = vrot.lane.b32.xlu0 %v10827_v3, %s9568_s26  ;;  %v3433_v6 = vadd.f32 %v8836_v1, %v3272_v22  ;;  %v8464_v29 = vpack.c.bf16 %v4355_v52, %v4355_v52 }
 0x249   : > { %4328 = vst.msk [vmem:[#allocation3 + $0x144] sm:$0xf] %vm491_vm1, %v8437_v42  ;;  %4329 = vst.msk [vmem:[#allocation3 + $0x158] sm:$0xf] %vm491_vm1, %v8438_v32  ;;  %v4616_v14 = vld [vmem:[#allocation2 + $0x128] sm:$0xff]  ;;  %v8375_v31 = vpack.c.bf16 %v3722_v47, %v3722_v47  ;;  %v8838_v51 = vpop.f32.mrf.mxu1  ;;  %v8401_v16 = vpack.c.bf16 %v3908_v23, %v3908_v23  ;;  %v3283_v1 = vadd.f32 %v11024_v62, %v8733_v0 }
 0x24a   : > { %5668 = vst.msk [vmem:[#allocation3 + $0x100] sm:$0xf] %vm491_vm1, %v8437_v42  ;;  %5669 = vst.msk [vmem:[#allocation3 + $0x114] sm:$0xf] %vm491_vm1, %v8438_v32  ;;  %v8501_v25 = vpack.c.bf16 %v4616_v14, %v4616_v14  ;;  %v8839_v3 = vadd.f32 %v8838_v51, %v8837_v53  ;;  %v3594_v36 = vadd.f32 %v3593_v26, %v3433_v6  ;;  %v11049_v42 = vpop.f32.mrf.mxu0  ;;  %v4352_v51 = vld [vmem:[#allocation2 + $0xa7] sm:$0xff] }
 0x24b   : > { %3882 = vst.msk [vmem:[#allocation3 + $0x168] sm:$0xf] %vm491_vm1, %v8375_v31  ;;  %5222 = vst.msk [vmem:[#allocation3 + $0x124] sm:$0xf] %vm491_vm1, %v8375_v31  ;;  %v8840_v21 = vpop.f32.mrf.mxu1  ;;  %v3280_v26 = vadd.f32 %v11024_v62, %v10628_v37  ;;  %v8402_v60 = vpack.c.bf16 %v3909_v34, %v3909_v34  ;;  %v3906_v0 = vld [vmem:[#allocation2 + $0xa8] sm:$0xff] }
 0x24c   : > { %v4808_v61 = vld [vmem:[#allocation2 + $0x129] sm:$0xff]  ;;  %4776 = vst.msk [vmem:[#allocation3 + $0x148] sm:$0xf] %vm491_vm1, %v8501_v25  ;;  %v4809_v56 = vld [vmem:[#allocation2 + $0x131] sm:$0xff]  ;;  %v3660_v35 = vmax.f32 %v3594_v36, 0.0  ;;  %4930 = vrot.lane.b32.xlu1 %v10829_v19, %s9568_s26  ;;  %4492 = vrot.lane.b32.xlu0 %v8463_v49, %s9568_s26  ;;  %v3436_v2 = vadd.f32 %v8839_v3, %v3275_v46  ;;  %v3609_v23 = vpop.f32.mrf.mxu0  ;;  %v8399_v34 = vpack.c.bf16 %v3906_v0, %v3906_v0 }
 0x24d   : > { %3691 = vst.msk [vmem:[#allocation2 + $0x150] sm:$0xff] %vm224_vm0, %v3659_v41  ;;  %v3723_v50 = vld [vmem:[#allocation2 + $0x12f] sm:$0xff]  ;;  %v11028_v10 = vpack.c.bf16 %v4808_v61, %v4808_v61  ;;  %v11030_v27 = vpack.c.bf16 %v4809_v56, %v4809_v56  ;;  %v8841_v11 = vpop.f32.mrf.mxu1  ;;  %v3724_v24 = vld [vmem:[#allocation2 + $0x147] sm:$0xff] }
 0x24e   : > { %v4617_v4 = vld [vmem:[#allocation2 + $0x130] sm:$0xff]  ;;  %v8376_v58 = vpack.c.bf16 %v3723_v50, %v3723_v50  ;;  %3692 = vst.msk [vmem:[#allocation2 + $0x168] sm:$0xff] %vm224_vm0, %v3660_v35  ;;  %v8842_v37 = vadd.f32 %v8841_v11, %v8840_v21  ;;  %v3597_v19 = vadd.f32 %v3596_v17, %v3436_v2  ;;  %v4618_v45 = vld [vmem:[#allocation2 + $0x148] sm:$0xff]  ;;  %v8377_v32 = vpack.c.bf16 %v3724_v24, %v3724_v24 }
 0x24f   : > { %v8502_v38 = vpack.c.bf16 %v4617_v4, %v4617_v4  ;;  %v5510_v57 = vld [vmem:[#allocation2 + $0x129] sm:$0xff]  ;;  %v5511_v63 = vld [vmem:[#allocation2 + $0x131] sm:$0xff]  ;;  %4330 = vst.msk [vmem:[#allocation3 + $0x16c] sm:$0xf] %vm491_vm1, %v11028_v10  ;;  %4331 = vst.msk [vmem:[#allocation3 + $0x180] sm:$0xf] %vm491_vm1, %v11030_v27  ;;  %v8843_v33 = vpop.f32.mrf.mxu1  ;;  %v8503_v40 = vpack.c.bf16 %v4618_v45, %v4618_v45  ;;  %v8461_v35 = vpack.c.bf16 %v4352_v51, %v4352_v51 }
 0x250   : > { %v8627_v28 = vpack.c.bf16 %v5510_v57, %v5510_v57  ;;  %v8628_v7 = vpack.c.bf16 %v5511_v63, %v5511_v63  ;;  %3883 = vst.msk [vmem:[#allocation3 + $0x17c] sm:$0xf] %vm491_vm1, %v8376_v58  ;;  %5223 = vst.msk [vmem:[#allocation3 + $0x138] sm:$0xf] %vm491_vm1, %v8376_v58  ;;  %v3441_v47 = vadd.f32 %v8842_v37, %v3280_v26  ;;  %v3661_v22 = vmax.f32 %v3597_v19, 0.0  ;;  %v11068_v4 = vld [vmem:[%s11952_s3 + $0x118] sm:$0xff]  }
 0x251   : > { %4777 = vst.msk [vmem:[#allocation3 + $0x15c] sm:$0xf] %vm491_vm1, %v8502_v38  ;;  %4494 = vrot.lane.b32.xlu1 %v8464_v29, %s9568_s26  ;;  %4048 = vrot.lane.b32.xlu0 %v8401_v16, %s9568_s26  ;;  %v8844_v8 = vpop.f32.mrf.mxu1  ;;  %3884 = vst.msk [vmem:[#allocation3 + $0x190] sm:$0xf] %vm491_vm1, %v8377_v32  ;;  %v3288_v38 = vadd.f32 %v11024_v62, %v10634_v54  ;;  %v4803_v26 = vld [vmem:[#allocation2 + $0xd1] sm:$0xff]  ;;  %v3291_v37 = vadd.f32 %v11024_v62, %v10642_v13 }
 0x252   : > { %5670 = vst.msk [vmem:[#allocation3 + $0x128] sm:$0xf] %vm491_vm1, %v8627_v28  ;;  %5671 = vst.msk [vmem:[#allocation3 + $0x13c] sm:$0xf] %vm491_vm1, %v8628_v7  ;;  %v3602_v14 = vadd.f32 %v10988_v20, %v3441_v47  ;;  %v8845_v53 = vadd.f32 %v8844_v8, %v8843_v33  ;;  %9174 = vmatprep.subr.bf16.mxu1 %v11068_v4  ;;  %v11084_v7 = vpop.f32.mrf.mxu0  ;;  %v8528_v33 = vpack.c.bf16 %v4803_v26, %v4803_v26  ;;  %v4353_v13 = vld [vmem:[#allocation2 + $0xaf] sm:$0xff] }
 0x253   : > { %5224 = vst.msk [vmem:[#allocation3 + $0x14c] sm:$0xf] %vm491_vm1, %v8377_v32  ;;  %4778 = vst.msk [vmem:[#allocation3 + $0x170] sm:$0xf] %vm491_vm1, %v8503_v40  ;;  %v8846_v6 = vpop.f32.mrf.mxu1 }
 0x254   : > { %v4810_v44 = vld [vmem:[#allocation2 + $0x149] sm:$0xff]  ;;  %3693 = vst.msk [vmem:[#allocation2 + $0x170] sm:$0xff] %vm224_vm0, %v3661_v22  ;;  %v4811_v31 = vld [vmem:[#allocation2 + $0x151] sm:$0xff]  ;;  %v3662_v50 = vmax.f32 %v3602_v14, 0.0  ;;  %v3444_v20 = vadd.f32 %v8845_v53, %v3283_v1  ;;  %v3612_v8 = vpop.f32.mrf.mxu0 }
 0x255   : > { %v3725_v25 = vld [vmem:[#allocation2 + $0x14f] sm:$0xff]  ;;  %v11059_v61 = vpack.c.bf16 %v4810_v44, %v4810_v44  ;;  %v11061_v46 = vpack.c.bf16 %v4811_v31, %v4811_v31  ;;  %4050 = vrot.lane.b32.xlu1 %v8402_v60, %s9568_s26  ;;  %5384 = vrot.lane.b32.xlu0 %v8401_v16, %s9568_s26  ;;  %v8847_v52 = vpop.f32.mrf.mxu1  ;;  %v3726_v58 = vld [vmem:[#allocation2 + $0x167] sm:$0xff] }
 0x256   : > { %v4619_v41 = vld [vmem:[#allocation2 + $0x150] sm:$0xff]  ;;  %v8378_v3 = vpack.c.bf16 %v3725_v25, %v3725_v25  ;;  %3694 = vst.msk [vmem:[#allocation2 + $0x188] sm:$0xff] %vm224_vm0, %v3662_v50  ;;  %v3605_v57 = vadd.f32 %v11013_v59, %v3444_v20  ;;  %v8848_v63 = vadd.f32 %v8847_v52, %v8846_v6  ;;  %v4620_v2 = vld [vmem:[#allocation2 + $0x168] sm:$0xff]  ;;  %v8379_v11 = vpack.c.bf16 %v3726_v58, %v3726_v58  ;;  %v11112_v58 = vpop.f32.mrf.mxu0 }
 0x257   : > { %v8504_v36 = vpack.c.bf16 %v4619_v41, %v4619_v41  ;;  %v5512_v49 = vld [vmem:[#allocation2 + $0x149] sm:$0xff]  ;;  %v5513_v56 = vld [vmem:[#allocation2 + $0x151] sm:$0xff]  ;;  %4332 = vst.msk [vmem:[#allocation3 + $0x194] sm:$0xf] %vm491_vm1, %v11059_v61  ;;  %4333 = vst.msk [vmem:[#allocation3 + $0x1a8] sm:$0xf] %vm491_vm1, %v11061_v46  ;;  %v8849_v28 = vpop.f32.mrf.mxu1  ;;  %v8505_v54 = vpack.c.bf16 %v4620_v2, %v4620_v2  ;;  %v8462_v50 = vpack.c.bf16 %v4353_v13, %v4353_v13 }
 0x258   : > { %v8629_v21 = vpack.c.bf16 %v5512_v49, %v5512_v49  ;;  %v8630_v17 = vpack.c.bf16 %v5513_v56, %v5513_v56  ;;  %3885 = vst.msk [vmem:[#allocation3 + $0x1a4] sm:$0xf] %vm491_vm1, %v8378_v3  ;;  %5225 = vst.msk [vmem:[#allocation3 + $0x160] sm:$0xf] %vm491_vm1, %v8378_v3  ;;  %v3663_v24 = vmax.f32 %v3605_v57, 0.0  ;;  %v3449_v59 = vadd.f32 %v8848_v63, %v3288_v38  ;;  %v4802_v52 = vld [vmem:[#allocation2 + $0xc9] sm:$0xff] }
 0x259   : > { %4779 = vst.msk [vmem:[#allocation3 + $0x184] sm:$0xf] %vm491_vm1, %v8504_v36  ;;  %5386 = vrot.lane.b32.xlu1 %v8402_v60, %s9568_s26  ;;  %4488 = vrot.lane.b32.xlu0 %v8461_v35, %s9568_s26  ;;  %v8850_v19 = vpop.f32.mrf.mxu1  ;;  %3886 = vst.msk [vmem:[#allocation3 + $0x1b8] sm:$0xf] %vm491_vm1, %v8379_v11  ;;  %v3296_v36 = vadd.f32 %v11024_v62, %v10644_v30  ;;  %v3299_v30 = vadd.f32 %v11024_v62, %v10646_v5  ;;  %v3625_v5 = vpop.f32.mrf.mxu0 }
 0x25a   : > { %5672 = vst.msk [vmem:[#allocation3 + $0x150] sm:$0xf] %vm491_vm1, %v8629_v21  ;;  %5673 = vst.msk [vmem:[#allocation3 + $0x164] sm:$0xf] %vm491_vm1, %v8630_v17  ;;  %v8851_v16 = vadd.f32 %v8850_v19, %v8849_v28  ;;  %v3610_v45 = vadd.f32 %v3609_v23, %v3449_v59  ;;  %v3907_v17 = vld [vmem:[#allocation2 + $0xb0] sm:$0xff] }
 0x25b   : > { %v4812_v29 = vld [vmem:[#allocation2 + $0x169] sm:$0xff]  ;;  %5226 = vst.msk [vmem:[#allocation3 + $0x174] sm:$0xf] %vm491_vm1, %v8379_v11  ;;  %4780 = vst.msk [vmem:[#allocation3 + $0x198] sm:$0xf] %vm491_vm1, %v8505_v54  ;;  %v4813_v32 = vld [vmem:[#allocation2 + $0x171] sm:$0xff]  ;;  %v8852_v22 = vpop.f32.mrf.mxu1  ;;  %v8400_v11 = vpack.c.bf16 %v3907_v17, %v3907_v17  ;;  %v8527_v54 = vpack.c.bf16 %v4802_v52, %v4802_v52 }
 0x25c   : > { %3695 = vst.msk [vmem:[#allocation2 + $0x190] sm:$0xff] %vm224_vm0, %v3663_v24  ;;  %v3727_v40 = vld [vmem:[#allocation2 + $0x16f] sm:$0xff]  ;;  %v11094_v44 = vpack.c.bf16 %v4812_v29, %v4812_v29  ;;  %v11096_v1 = vpack.c.bf16 %v4813_v32, %v4813_v32  ;;  %v3664_v25 = vmax.f32 %v3610_v45, 0.0  ;;  %v3452_v41 = vadd.f32 %v8851_v16, %v3291_v37 }
 0x25d   : > { %v4621_v47 = vld [vmem:[#allocation2 + $0x170] sm:$0xff]  ;;  %v8380_v14 = vpack.c.bf16 %v3727_v40, %v3727_v40  ;;  %4942 = vrot.lane.b32.xlu1 %v8528_v33, %s9568_s26  ;;  %4044 = vrot.lane.b32.xlu0 %v8399_v34, %s9568_s26  ;;  %v8853_v23 = vpop.f32.mrf.mxu1  ;;  %v3728_v3 = vld [vmem:[#allocation2 + $0x187] sm:$0xff] }
 0x25e   : > { %v8506_v53 = vpack.c.bf16 %v4621_v47, %v4621_v47  ;;  %v5514_v60 = vld [vmem:[#allocation2 + $0x169] sm:$0xff]  ;;  %v5515_v31 = vld [vmem:[#allocation2 + $0x171] sm:$0xff]  ;;  %4334 = vst.msk [vmem:[#allocation3 + $0x1bc] sm:$0xf] %vm491_vm1, %v11094_v44  ;;  %4335 = vst.msk [vmem:[#allocation3 + $0x1d0] sm:$0xf] %vm491_vm1, %v11096_v1  ;;  %v8854_v49 = vadd.f32 %v8853_v23, %v8852_v22  ;;  %v3613_v56 = vadd.f32 %v3612_v8, %v3452_v41  ;;  %v11142_v41 = vpop.f32.mrf.mxu0 }
 0x25f   : > { %v8631_v6 = vpack.c.bf16 %v5514_v60, %v5514_v60  ;;  %v8632_v51 = vpack.c.bf16 %v5515_v31, %v5515_v31  ;;  %3887 = vst.msk [vmem:[#allocation3 + $0x1cc] sm:$0xf] %vm491_vm1, %v8380_v14  ;;  %5227 = vst.msk [vmem:[#allocation3 + $0x188] sm:$0xf] %vm491_vm1, %v8380_v14  ;;  %v4622_v20 = vld [vmem:[#allocation2 + $0x188] sm:$0xff]  ;;  %v8855_v21 = vpop.f32.mrf.mxu1  ;;  %v8381_v38 = vpack.c.bf16 %v3728_v3, %v3728_v3 }
 0x260   : > { %4781 = vst.msk [vmem:[#allocation3 + $0x1ac] sm:$0xf] %vm491_vm1, %v8506_v53  ;;  %v8507_v57 = vpack.c.bf16 %v4622_v20, %v4622_v20  ;;  %v3457_v63 = vadd.f32 %v8854_v49, %v3296_v36  ;;  %v3665_v35 = vmax.f32 %v3613_v56, 0.0  ;;  %v3304_v14 = vadd.f32 %v11024_v62, %v10648_v9  ;;  %v3912_v36 = vld [vmem:[#allocation2 + $0x108] sm:$0xff] }
 0x261   : > { %3696 = vst.msk [vmem:[#allocation2 + $0x1a8] sm:$0xff] %vm224_vm0, %v3664_v25  ;;  %4490 = vrot.lane.b32.xlu1 %v8462_v50, %s9568_s26  ;;  %5380 = vrot.lane.b32.xlu0 %v8399_v34, %s9568_s26  ;;  %v8856_v2 = vpop.f32.mrf.mxu1  ;;  %v3307_v56 = vadd.f32 %v11024_v62, %v10656_v39 }
 0x262   : > { %5674 = vst.msk [vmem:[#allocation3 + $0x178] sm:$0xf] %vm491_vm1, %v8631_v6  ;;  %5675 = vst.msk [vmem:[#allocation3 + $0x18c] sm:$0xf] %vm491_vm1, %v8632_v51  ;;  %v3618_v26 = vadd.f32 %v11049_v42, %v3457_v63  ;;  %v8857_v0 = vadd.f32 %v8856_v2, %v8855_v21  ;;  %v4358_v6 = vld [vmem:[#allocation2 + $0x107] sm:$0xff] }
 0x263   : > { %v4814_v28 = vld [vmem:[#allocation2 + $0x189] sm:$0xff]  ;;  %3888 = vst.msk [vmem:[#allocation3 + $0x1e0] sm:$0xf] %vm491_vm1, %v8381_v38  ;;  %5228 = vst.msk [vmem:[#allocation3 + $0x19c] sm:$0xf] %vm491_vm1, %v8381_v38  ;;  %v4815_v24 = vld [vmem:[#allocation2 + $0x191] sm:$0xff]  ;;  %v8858_v19 = vpop.f32.mrf.mxu1  ;;  %v8467_v21 = vpack.c.bf16 %v4358_v6, %v4358_v6  ;;  %v3628_v38 = vpop.f32.mrf.mxu0 }
 0x264   : > { %4782 = vst.msk [vmem:[#allocation3 + $0x1c0] sm:$0xf] %vm491_vm1, %v8507_v57  ;;  %v3729_v59 = vld [vmem:[#allocation2 + $0x18f] sm:$0xff]  ;;  %v11123_v29 = vpack.c.bf16 %v4814_v28, %v4814_v28  ;;  %v11125_v16 = vpack.c.bf16 %v4815_v24, %v4815_v24  ;;  %v3666_v40 = vmax.f32 %v3618_v26, 0.0  ;;  %v3460_v42 = vadd.f32 %v8857_v0, %v3299_v30 }
 0x265   : > { %3697 = vst.msk [vmem:[#allocation2 + $0x1b0] sm:$0xff] %vm224_vm0, %v3665_v35  ;;  %v4623_v37 = vld [vmem:[#allocation2 + $0x190] sm:$0xff]  ;;  %v8382_v45 = vpack.c.bf16 %v3729_v59, %v3729_v59  ;;  %4046 = vrot.lane.b32.xlu1 %v8400_v11, %s9568_s26  ;;  %4940 = vrot.lane.b32.xlu0 %v8527_v54, %s9568_s26  ;;  %v8859_v8 = vpop.f32.mrf.mxu1 }
 0x266   : > { %v8508_v33 = vpack.c.bf16 %v4623_v37, %v4623_v37  ;;  %v5516_v34 = vld [vmem:[#allocation2 + $0x189] sm:$0xff]  ;;  %v5517_v32 = vld [vmem:[#allocation2 + $0x191] sm:$0xff]  ;;  %4336 = vst.msk [vmem:[#allocation3 + $0x1e4] sm:$0xf] %vm491_vm1, %v11123_v29  ;;  %4337 = vst.msk [vmem:[#allocation3 + $0x1f8] sm:$0xf] %vm491_vm1, %v11125_v16  ;;  %v3621_v53 = vadd.f32 %v11084_v7, %v3460_v42  ;;  %v8860_v60 = vadd.f32 %v8859_v8, %v8858_v19 }
 0x267   : > { %v8633_v47 = vpack.c.bf16 %v5516_v34, %v5516_v34  ;;  %v8634_v22 = vpack.c.bf16 %v5517_v32, %v5517_v32  ;;  %3889 = vst.msk [vmem:[#allocation3 + $0x1f4] sm:$0xf] %vm491_vm1, %v8382_v45  ;;  %5229 = vst.msk [vmem:[#allocation3 + $0x1b0] sm:$0xf] %vm491_vm1, %v8382_v45  ;;  %v8861_v25 = vpop.f32.mrf.mxu1  ;;  %v4359_v57 = vld [vmem:[#allocation2 + $0x10f] sm:$0xff]  ;;  %v3312_v34 = vadd.f32 %v11024_v62, %v10658_v55 }
 0x268   : > { %v3730_v13 = vld [vmem:[#allocation2 + $0x1a7] sm:$0xff]  ;;  %4783 = vst.msk [vmem:[#allocation3 + $0x1d4] sm:$0xf] %vm491_vm1, %v8508_v33  ;;  %v3667_v3 = vmax.f32 %v3621_v53, 0.0  ;;  %v3465_v9 = vadd.f32 %v8860_v60, %v3304_v14  ;;  %v8468_v19 = vpack.c.bf16 %v4359_v57, %v4359_v57  ;;  %v3315_v55 = vadd.f32 %v11024_v62, %v10665_v43 }
 0x269   : > { %3698 = vst.msk [vmem:[#allocation2 + $0x1c8] sm:$0xff] %vm224_vm0, %v3666_v40  ;;  %v4624_v31 = vld [vmem:[#allocation2 + $0x1a8] sm:$0xff]  ;;  %v8383_v51 = vpack.c.bf16 %v3730_v13, %v3730_v13  ;;  %5382 = vrot.lane.b32.xlu1 %v8400_v11, %s9568_s26  ;;  %4936 = vrot.lane.b32.xlu0 %v10913_v18, %s9568_s26  ;;  %v8862_v7 = vpop.f32.mrf.mxu1  ;;  %v3913_v40 = vld [vmem:[#allocation2 + $0x110] sm:$0xff] }
 0x26a   : > { %5676 = vst.msk [vmem:[#allocation3 + $0x1a0] sm:$0xf] %vm491_vm1, %v8633_v47  ;;  %5677 = vst.msk [vmem:[#allocation3 + $0x1b4] sm:$0xf] %vm491_vm1, %v8634_v22  ;;  %v8509_v23 = vpack.c.bf16 %v4624_v31, %v4624_v31  ;;  %v8863_v50 = vadd.f32 %v8862_v7, %v8861_v25  ;;  %v3626_v20 = vadd.f32 %v3625_v5, %v3465_v9  ;;  %v3910_v57 = vld [vmem:[#allocation2 + $0xe8] sm:$0xff] }
 0x26b   : > { %3890 = vst.msk [vmem:[#allocation3 + $0x208] sm:$0xf] %vm491_vm1, %v8383_v51  ;;  %5230 = vst.msk [vmem:[#allocation3 + $0x1c4] sm:$0xf] %vm491_vm1, %v8383_v51  ;;  %v8405_v5 = vpack.c.bf16 %v3912_v36, %v3912_v36  ;;  %v8406_v53 = vpack.c.bf16 %v3913_v40, %v3913_v40  ;;  %v3911_v40 = vld [vmem:[#allocation2 + $0xf0] sm:$0xff] }
 0x26c   : > { %v4816_v49 = vld [vmem:[#allocation2 + $0x1a9] sm:$0xff]  ;;  %4784 = vst.msk [vmem:[#allocation3 + $0x1e8] sm:$0xf] %vm491_vm1, %v8509_v23  ;;  %v4817_v17 = vld [vmem:[#allocation2 + $0x1b1] sm:$0xff]  ;;  %v3668_v0 = vmax.f32 %v3626_v20, 0.0  ;;  %v8864_v39 = vpop.f32.mrf.mxu1  ;;  %v3468_v11 = vadd.f32 %v8863_v50, %v3307_v56 }
 0x26d   : > { %3699 = vst.msk [vmem:[#allocation2 + $0x1d0] sm:$0xff] %vm224_vm0, %v3667_v3  ;;  %v3731_v18 = vld [vmem:[#allocation2 + $0x1af] sm:$0xff]  ;;  %v11153_v63 = vpack.c.bf16 %v4816_v49, %v4816_v49  ;;  %v11155_v35 = vpack.c.bf16 %v4817_v17, %v4817_v17  ;;  %4938 = vrot.lane.b32.xlu1 %v10915_v48, %s9568_s26  ;;  %4500 = vrot.lane.b32.xlu0 %v8467_v21, %s9568_s26  ;;  %v4356_v3 = vld [vmem:[#allocation2 + $0xe7] sm:$0xff] }
 0x26e   : > { %v4625_v52 = vld [vmem:[#allocation2 + $0x1b0] sm:$0xff]  ;;  %v8384_v30 = vpack.c.bf16 %v3731_v18, %v3731_v18  ;;  %3700 = vst.msk [vmem:[#allocation2 + $0x1e8] sm:$0xff] %vm224_vm0, %v3668_v0  ;;  %v8865_v48 = vpop.f32.mrf.mxu1  ;;  %v3629_v37 = vadd.f32 %v3628_v38, %v3468_v11  ;;  %v8465_v21 = vpack.c.bf16 %v4356_v3, %v4356_v3  ;;  %v8403_v0 = vpack.c.bf16 %v3910_v57, %v3910_v57 }
 0x26f   : > { %v8510_v2 = vpack.c.bf16 %v4625_v52, %v4625_v52  ;;  %v5518_v28 = vld [vmem:[#allocation2 + $0x1a9] sm:$0xff]  ;;  %v5519_v26 = vld [vmem:[#allocation2 + $0x1b1] sm:$0xff]  ;;  %4338 = vst.msk [vmem:[#allocation3 + $0x20c] sm:$0xf] %vm491_vm1, %v11153_v63  ;;  %4339 = vst.msk [vmem:[#allocation3 + $0x220] sm:$0xf] %vm491_vm1, %v11155_v35  ;;  %v8866_v32 = vadd.f32 %v8865_v48, %v8864_v39 }
 0x270   : > { %v8635_v54 = vpack.c.bf16 %v5518_v28, %v5518_v28  ;;  %v8636_v24 = vpack.c.bf16 %v5519_v26, %v5519_v26  ;;  %v3732_v59 = vld [vmem:[#allocation2 + $0x1c7] sm:$0xff]  ;;  %3891 = vst.msk [vmem:[#allocation3 + $0x21c] sm:$0xf] %vm491_vm1, %v8384_v30  ;;  %5231 = vst.msk [vmem:[#allocation3 + $0x1d8] sm:$0xf] %vm491_vm1, %v8384_v30  ;;  %v3669_v47 = vmax.f32 %v3629_v37, 0.0  ;;  %v8867_v22 = vpop.f32.mrf.mxu1 }
 0x271   : > { %4785 = vst.msk [vmem:[#allocation3 + $0x1fc] sm:$0xf] %vm491_vm1, %v8510_v2  ;;  %v8385_v45 = vpack.c.bf16 %v3732_v59, %v3732_v59  ;;  %v4626_v33 = vld [vmem:[#allocation2 + $0x1c8] sm:$0xff]  ;;  %4502 = vrot.lane.b32.xlu1 %v8468_v19, %s9568_s26  ;;  %4056 = vrot.lane.b32.xlu0 %v8405_v5, %s9568_s26  ;;  %v3473_v8 = vadd.f32 %v8866_v32, %v3312_v34  ;;  %v4807_v38 = vld [vmem:[#allocation2 + $0x111] sm:$0xff] }
 0x272   : > { %5678 = vst.msk [vmem:[#allocation3 + $0x1c8] sm:$0xf] %vm491_vm1, %v8635_v54  ;;  %5679 = vst.msk [vmem:[#allocation3 + $0x1dc] sm:$0xf] %vm491_vm1, %v8636_v24  ;;  %v8511_v42 = vpack.c.bf16 %v4626_v33, %v4626_v33  ;;  %v8868_v14 = vpop.f32.mrf.mxu1  ;;  %v8532_v26 = vpack.c.bf16 %v4807_v38, %v4807_v38  ;;  %v4357_v24 = vld [vmem:[#allocation2 + $0xef] sm:$0xff]  ;;  %v4360_v38 = vld [vmem:[#allocation2 + $0x127] sm:$0xff] }
 0x273   : > { %3892 = vst.msk [vmem:[#allocation3 + $0x230] sm:$0xf] %vm491_vm1, %v8385_v45  ;;  %5232 = vst.msk [vmem:[#allocation3 + $0x1ec] sm:$0xf] %vm491_vm1, %v8385_v45  ;;  %v3634_v51 = vadd.f32 %v11112_v58, %v3473_v8  ;;  %v8869_v23 = vadd.f32 %v8868_v14, %v8867_v22  ;;  %v8466_v34 = vpack.c.bf16 %v4357_v24, %v4357_v24  ;;  %v3915_v24 = vld [vmem:[#allocation2 + $0x130] sm:$0xff] }
 0x274   : > { %v4818_v13 = vld [vmem:[#allocation2 + $0x1c9] sm:$0xff]  ;;  %4786 = vst.msk [vmem:[#allocation3 + $0x210] sm:$0xf] %vm491_vm1, %v8511_v42  ;;  %v4819_v31 = vld [vmem:[#allocation2 + $0x1d1] sm:$0xff] }
 0x275   : > { %3701 = vst.msk [vmem:[#allocation2 + $0x1f0] sm:$0xff] %vm224_vm0, %v3669_v47  ;;  %v11180_v60 = vpack.c.bf16 %v4818_v13, %v4818_v13  ;;  %v3733_v25 = vld [vmem:[#allocation2 + $0x1cf] sm:$0xff]  ;;  %v11183_v9 = vpack.c.bf16 %v4819_v31, %v4819_v31  ;;  %4058 = vrot.lane.b32.xlu1 %v8406_v53, %s9568_s26  ;;  %5392 = vrot.lane.b32.xlu0 %v8405_v5, %s9568_s26  ;;  %v3670_v50 = vmax.f32 %v3634_v51, 0.0  ;;  %v3734_v58 = vld [vmem:[#allocation2 + $0x1e7] sm:$0xff] }
 0x276   : > { %v4627_v6 = vld [vmem:[#allocation2 + $0x1d0] sm:$0xff]  ;;  %v8386_v7 = vpack.c.bf16 %v3733_v25, %v3733_v25  ;;  %v3476_v20 = vadd.f32 %v8869_v23, %v3315_v55  ;;  %v8387_v17 = vpack.c.bf16 %v3734_v58, %v3734_v58  ;;  %v4628_v18 = vld [vmem:[#allocation2 + $0x1e8] sm:$0xff]  ;;  %v8404_v55 = vpack.c.bf16 %v3911_v40, %v3911_v40 }
 0x277   : > { %v5520_v36 = vld [vmem:[#allocation2 + $0x1c9] sm:$0xff]  ;;  %v5521_v49 = vld [vmem:[#allocation2 + $0x1d1] sm:$0xff]  ;;  %4340 = vst.msk [vmem:[#allocation3 + $0x234] sm:$0xf] %vm491_vm1, %v11180_v60  ;;  %v8512_v43 = vpack.c.bf16 %v4627_v6, %v4627_v6  ;;  %4341 = vst.msk [vmem:[#allocation3 + $0x248] sm:$0xf] %vm491_vm1, %v11183_v9  ;;  %v8513_v30 = vpack.c.bf16 %v4628_v18, %v4628_v18 }
 0x278   : > { %v8637_v62 = vpack.c.bf16 %v5520_v36, %v5520_v36  ;;  %v8638_v56 = vpack.c.bf16 %v5521_v49, %v5521_v49  ;;  %3893 = vst.msk [vmem:[#allocation3 + $0x244] sm:$0xf] %vm491_vm1, %v8386_v7  ;;  %5233 = vst.msk [vmem:[#allocation3 + $0x200] sm:$0xf] %vm491_vm1, %v8386_v7  ;;  %v3637_v52 = vadd.f32 %v11142_v41, %v3476_v20  ;;  %v4806_v42 = vld [vmem:[#allocation2 + $0x109] sm:$0xff] }
 0x279   : > { %4787 = vst.msk [vmem:[#allocation3 + $0x224] sm:$0xf] %vm491_vm1, %v8512_v43  ;;  %5394 = vrot.lane.b32.xlu1 %v8406_v53, %s9568_s26  ;;  %4496 = vrot.lane.b32.xlu0 %v8465_v21, %s9568_s26  ;;  %3894 = vst.msk [vmem:[#allocation3 + $0x258] sm:$0xf] %vm491_vm1, %v8387_v17  ;;  %v8531_v14 = vpack.c.bf16 %v4806_v42, %v4806_v42  ;;  %v4362_v43 = vld [vmem:[#allocation2 + $0x147] sm:$0xff]  ;;  %v4363_v20 = vld [vmem:[#allocation2 + $0x14f] sm:$0xff] }
 0x27a   : > { %5680 = vst.msk [vmem:[#allocation3 + $0x1f0] sm:$0xf] %vm491_vm1, %v8637_v62  ;;  %5681 = vst.msk [vmem:[#allocation3 + $0x204] sm:$0xf] %vm491_vm1, %v8638_v56  ;;  %v3671_v2 = vmax.f32 %v3637_v52, 0.0  ;;  %v3916_v58 = vld [vmem:[#allocation2 + $0x148] sm:$0xff]  ;;  %v8472_v18 = vpack.c.bf16 %v4363_v20, %v4363_v20 }
 0x27b   : > { %3702 = vst.msk [vmem:[#allocation2 + $0x208] sm:$0xff] %vm224_vm0, %v3670_v50  ;;  %v8471_v50 = vpack.c.bf16 %v4362_v43, %v4362_v43  ;;  %v11240_v52 = vpack.c.bf16 %v3916_v58, %v3916_v58  ;;  %v3919_v58 = vld [vmem:[#allocation2 + $0x170] sm:$0xff] }
 0x27c   : > { %5234 = vst.msk [vmem:[#allocation3 + $0x214] sm:$0xf] %vm491_vm1, %v8387_v17  ;;  %v4820_v28 = vld [vmem:[#allocation2 + $0x1e9] sm:$0xff]  ;;  %4788 = vst.msk [vmem:[#allocation3 + $0x238] sm:$0xf] %vm491_vm1, %v8513_v30  ;;  %v4821_v41 = vld [vmem:[#allocation2 + $0x1f1] sm:$0xff] }
 0x27d   : > { %v11203_v39 = vpack.c.bf16 %v4820_v28, %v4820_v28  ;;  %v3735_v11 = vld [vmem:[#allocation2 + $0x1ef] sm:$0xff]  ;;  %3703 = vst.msk [vmem:[#allocation2 + $0x210] sm:$0xff] %vm224_vm0, %v3671_v2  ;;  %v11206_v59 = vpack.c.bf16 %v4821_v41, %v4821_v41  ;;  %4950 = vrot.lane.b32.xlu1 %v8532_v26, %s9568_s26  ;;  %4052 = vrot.lane.b32.xlu0 %v8403_v0, %s9568_s26 }
 0x27e   : > { %v4629_v54 = vld [vmem:[#allocation2 + $0x1f0] sm:$0xff]  ;;  %v8388_v48 = vpack.c.bf16 %v3735_v11, %v3735_v11  ;;  %v8469_v2 = vpack.c.bf16 %v4360_v38, %v4360_v38  ;;  %v3914_v26 = vld [vmem:[#allocation2 + $0x128] sm:$0xff]  ;;  %v11296_v38 = vpack.c.bf16 %v3919_v58, %v3919_v58 }
 0x27f   : > { %v8514_v37 = vpack.c.bf16 %v4629_v54, %v4629_v54  ;;  %v5522_v19 = vld [vmem:[#allocation2 + $0x1e9] sm:$0xff]  ;;  %v5523_v5 = vld [vmem:[#allocation2 + $0x1f1] sm:$0xff]  ;;  %4342 = vst.msk [vmem:[#allocation3 + $0x25c] sm:$0xf] %vm491_vm1, %v11203_v39  ;;  %4343 = vst.msk [vmem:[#allocation3 + $0x270] sm:$0xf] %vm491_vm1, %v11206_v59  ;;  %v11254_v54 = vpack.c.bf16 %v3914_v26, %v3914_v26 }
 0x280   : > { %v8639_v45 = vpack.c.bf16 %v5522_v19, %v5522_v19  ;;  %v8640_v33 = vpack.c.bf16 %v5523_v5, %v5523_v5  ;;  %3895 = vst.msk [vmem:[#allocation3 + $0x26c] sm:$0xf] %vm491_vm1, %v8388_v48  ;;  %5235 = vst.msk [vmem:[#allocation3 + $0x228] sm:$0xf] %vm491_vm1, %v8388_v48  ;;  %v4361_v28 = vld [vmem:[#allocation2 + $0x12f] sm:$0xff]  ;;  %v4366_v48 = vld [vmem:[#allocation2 + $0x187] sm:$0xff]  ;;  %v11261_v5 = vpack.c.bf16 %v3915_v24, %v3915_v24 }
 0x281   : > { %4789 = vst.msk [vmem:[#allocation3 + $0x24c] sm:$0xf] %vm491_vm1, %v8514_v37  ;;  %4498 = vrot.lane.b32.xlu1 %v8466_v34, %s9568_s26  ;;  %5388 = vrot.lane.b32.xlu0 %v8403_v0, %s9568_s26  ;;  %v8470_v11 = vpack.c.bf16 %v4361_v28, %v4361_v28  ;;  %v3920_v34 = vld [vmem:[#allocation2 + $0x188] sm:$0xff] }
 0x282   : > { %v5076_v32 = vld [vmem:[#allocation2 + $0x207] sm:$0xff]  ;;  %5682 = vst.msk [vmem:[#allocation3 + $0x218] sm:$0xf] %vm491_vm1, %v8639_v45  ;;  %5683 = vst.msk [vmem:[#allocation3 + $0x22c] sm:$0xf] %vm491_vm1, %v8640_v33  ;;  %v4477_v13 = vpop.permute.xlu0 %4476  ;;  %v8475_v45 = vpack.c.bf16 %v4366_v48, %v4366_v48  ;;  %v4367_v33 = vld [vmem:[#allocation2 + $0x18f] sm:$0xff] }
 0x283   : > { %v8577_v47 = vpack.c.bf16 %v5076_v32, %v5076_v32  ;;  %v4630_v22 = vld [vmem:[#allocation2 + $0x208] sm:$0xff]  ;;  %4570 = vst.msk [vmem:[#allocation3 + $0x2c] sm:$0xf] %vm748_vm2, %v4477_v13  ;;  %v8476_v42 = vpack.c.bf16 %v4367_v33, %v4367_v33  ;;  %v3921_v13 = vld [vmem:[#allocation2 + $0x190] sm:$0xff] }
 0x284   : > { %v8515_v8 = vpack.c.bf16 %v4630_v22, %v4630_v22  ;;  %v5077_v53 = vld [vmem:[#allocation2 + $0x20f] sm:$0xff]  ;;  %v4368_v24 = vld [vmem:[#allocation2 + $0x1a7] sm:$0xff] }
 0x285   : > { %5236 = vst.msk [vmem:[#allocation3 + $0x23c] sm:$0xf] %vm491_vm1, %v8577_v47  ;;  %v4631_v31 = vld [vmem:[#allocation2 + $0x210] sm:$0xff]  ;;  %4054 = vrot.lane.b32.xlu1 %v8404_v55, %s9568_s26  ;;  %4948 = vrot.lane.b32.xlu0 %v8531_v14, %s9568_s26  ;;  %v8578_v25 = vpack.c.bf16 %v5077_v53, %v5077_v53  ;;  %v11268_v47 = vpack.c.bf16 %v3920_v34, %v3920_v34  ;;  %v9451_v34 = vld [vmem:[%s11952_s3 + $0x100] sm:$0xff]  }
 0x286   : > { %4790 = vst.msk [vmem:[#allocation3 + $0x260] sm:$0xf] %vm491_vm1, %v8515_v8  ;;  %v8516_v6 = vpack.c.bf16 %v4631_v31, %v4631_v31  ;;  %v5524_v51 = vld [vmem:[#allocation2 + $0x209] sm:$0xff]  ;;  %v5525_v23 = vld [vmem:[#allocation2 + $0x211] sm:$0xff]  ;;  %v4479_v36 = vpop.permute.xlu1 %4478  ;;  %v4033_v49 = vpop.permute.xlu0 %4032 }
 0x287   : > { %v8641_v3 = vpack.c.bf16 %v5524_v51, %v5524_v51  ;;  %v8642_v7 = vpack.c.bf16 %v5525_v23, %v5525_v23  ;;  %5237 = vst.msk [vmem:[#allocation3 + $0x250] sm:$0xf] %vm491_vm1, %v8578_v25  ;;  %v9398_v22 = vld [vmem:[#allocation3] ss:$20 sps:$4 sm:$0xff]   ;;  %v11278_v25 = vpack.c.bf16 %v3921_v13, %v3921_v13 }
 0x288   : > { %4791 = vst.msk [vmem:[#allocation3 + $0x274] sm:$0xf] %vm491_vm1, %v8516_v6  ;;  %v9428_v14 = vld [vmem:[%s11952_s3 + $0x110] sm:$0xff]  }
 0x289   : > { %4571 = vst.msk [vmem:[#allocation3 + $0x40] sm:$0xf] %vm748_vm2, %v4479_v36  ;;  %4124 = vst.msk [vmem:[#allocation3 + $0x50] sm:$0xf] %vm748_vm2, %v4033_v49  ;;  %5390 = vrot.lane.b32.xlu1 %v8404_v55, %s9568_s26  ;;  %4944 = vrot.lane.b32.xlu0 %v10968_v12, %s9568_s26  ;;  %v3917_v12 = vld [vmem:[#allocation2 + $0x150] sm:$0xff]  ;;  %v4364_v55 = vld [vmem:[#allocation2 + $0x167] sm:$0xff] }
 0x28a   : > { %5684 = vst.msk [vmem:[#allocation3 + $0x240] sm:$0xf] %vm491_vm1, %v8641_v3  ;;  %5685 = vst.msk [vmem:[#allocation3 + $0x254] sm:$0xf] %vm491_vm1, %v8642_v7  ;;  %v4035_v62 = vpop.permute.xlu1 %4034  ;;  %v5369_v56 = vpop.permute.xlu0 %5368  ;;  %v11247_v30 = vpack.c.bf16 %v3917_v12, %v3917_v12  ;;  %v8473_v6 = vpack.c.bf16 %v4364_v55, %v4364_v55  ;;  %v4365_v23 = vld [vmem:[#allocation2 + $0x16f] sm:$0xff] }
 0x28b   : > { %4125 = vst.msk [vmem:[#allocation3 + $0x64] sm:$0xf] %vm748_vm2, %v4035_v62  ;;  %5464 = vst.msk [vmem:[#allocation3 + $0xc] sm:$0xf] %vm748_vm2, %v5369_v56  ;;  %v3918_v3 = vld [vmem:[#allocation2 + $0x168] sm:$0xff]  ;;  %v8474_v62 = vpack.c.bf16 %v4365_v23, %v4365_v23 }
 0x28c   : > { %v9441_v36 = vld [vmem:[%s11952_s3 + $0x108] sm:$0xff]   ;;  %v11289_v56 = vpack.c.bf16 %v3918_v3, %v3918_v3 }
 0x28d   : > { %4946 = vrot.lane.b32.xlu1 %v10970_v15, %s9568_s26  ;;  %4508 = vrot.lane.b32.xlu0 %v8471_v50, %s9568_s26  ;;  %v4369_v33 = vld [vmem:[#allocation2 + $0x1af] sm:$0xff]  ;;  %v4374_v23 = vld [vmem:[#allocation2 + $0x207] sm:$0xff] }
 0x28e   : > { %v5371_v21 = vpop.permute.xlu1 %5370  ;;  %v4473_v17 = vpop.permute.xlu0 %4472 }
 0x28f   : > { %5465 = vst.msk [vmem:[#allocation3 + $0x20] sm:$0xf] %vm748_vm2, %v5371_v21  ;;  %4568 = vst.msk [vmem:[#allocation3 + $0x4] sm:$0xf] %vm748_vm2, %v4473_v17  ;;  %v4370_v21 = vld [vmem:[#allocation2 + $0x1c7] sm:$0xff] }
 0x290   : > { %v9403_v51 = vld [vmem:[#allocation3 + $0x2c] ss:$20 sps:$4 sm:$0xff]  }
 0x291   : > { %4510 = vrot.lane.b32.xlu1 %v8472_v18, %s9568_s26  ;;  %4064 = vrot.lane.b32.xlu0 %v11240_v52, %s9568_s26 }
 0x292   : > { %v4927_v57 = vpop.permute.xlu1 %4926  ;;  %v4029_v15 = vpop.permute.xlu0 %4028 }
 0x293   : > { %5019 = vst.msk [vmem:[#allocation3 + $0x44] sm:$0xf] %vm748_vm2, %v4927_v57  ;;  %4122 = vst.msk [vmem:[#allocation3 + $0x28] sm:$0xf] %vm748_vm2, %v4029_v15  ;;  %v8479_v57 = vpack.c.bf16 %v4370_v21, %v4370_v21  ;;  %v4371_v15 = vld [vmem:[#allocation2 + $0x1cf] sm:$0xff] }
 0x295   : > { %4066 = vrot.lane.b32.xlu1 %v11247_v30, %s9568_s26  ;;  %4504 = vrot.lane.b32.xlu0 %v8469_v2, %s9568_s26  ;;  %v3924_v2 = vld [vmem:[#allocation2 + $0x1c8] sm:$0xff] }
 0x296   : > { %v4475_v0 = vpop.permute.xlu1 %4474  ;;  %v4925_v41 = vpop.permute.xlu0 %4924  ;;  %v9409_v20 = vld [vmem:[#allocation3 + $0xc] ss:$20 sps:$4 sm:$0xff]  }
 0x297   : > { %4569 = vst.msk [vmem:[#allocation3 + $0x18] sm:$0xf] %vm748_vm2, %v4475_v0  ;;  %5018 = vst.msk [vmem:[#allocation3 + $0x30] sm:$0xf] %vm748_vm2, %v4925_v41  ;;  %6720 = vmatprep.mubr.bf16.mxu0 %v9409_v20  ;;  %v8480_v0 = vpack.c.bf16 %v4371_v15, %v4371_v15  ;;  %v11303_v41 = vpack.c.bf16 %v3924_v2, %v3924_v2  ;;  %v4373_v15 = vld [vmem:[#allocation2 + $0x1ef] sm:$0xff] }
 0x299   : > { %4506 = vrot.lane.b32.xlu1 %v8470_v11, %s9568_s26  ;;  %4060 = vrot.lane.b32.xlu0 %v11254_v54, %s9568_s26  ;;  %v3925_v11 = vld [vmem:[#allocation2 + $0x1d0] sm:$0xff] }
 0x29a   : > { %v4031_v37 = vpop.permute.xlu1 %4030  ;;  %v4921_v19 = vpop.permute.xlu0 %4920 }
 0x29b   : > { %4123 = vst.msk [vmem:[#allocation3 + $0x3c] sm:$0xf] %vm748_vm2, %v4031_v37  ;;  %5016 = vst.msk [vmem:[#allocation3 + $0x8] sm:$0xf] %vm748_vm2, %v4921_v19  ;;  %v11310_v19 = vpack.c.bf16 %v3925_v11, %v3925_v11 }
 0x29d   : > { %4062 = vrot.lane.b32.xlu1 %v11261_v5, %s9568_s26  ;;  %4516 = vrot.lane.b32.xlu0 %v8475_v45, %s9568_s26  ;;  %v8477_v45 = vpack.c.bf16 %v4368_v24, %v4368_v24  ;;  %v3926_v24 = vld [vmem:[#allocation2 + $0x1e8] sm:$0xff] }
 0x29e   : > { %v4923_v32 = vpop.permute.xlu1 %4922  ;;  %v4485_v40 = vpop.permute.xlu0 %4484  ;;  %v9400_v8 = vld [vmem:[#allocation3 + $0x4] ss:$20 sps:$4 sm:$0xff]  }
 0x29f   : > { %5017 = vst.msk [vmem:[#allocation3 + $0x1c] sm:$0xf] %vm748_vm2, %v4923_v32  ;;  %4574 = vst.msk [vmem:[#allocation3 + $0x7c] sm:$0xf] %vm748_vm2, %v4485_v40  ;;  %6559 = vmatprep.mubr.bf16.mxu1 %v9400_v8 }
 0x2a0   : > { %6560 = vmatmul.mubr.bf16.vlgmr.msra.gmra.mxu1 %v9398_v22  ;;  %v3922_v22 = vld [vmem:[#allocation2 + $0x1a8] sm:$0xff] }
 0x2a1   : > { %4518 = vrot.lane.b32.xlu1 %v8476_v42, %s9568_s26  ;;  %4072 = vrot.lane.b32.xlu0 %v11268_v47, %s9568_s26  ;;  %v8478_v42 = vpack.c.bf16 %v4369_v33, %v4369_v33  ;;  %v11325_v55 = vpack.c.bf16 %v3922_v22, %v3922_v22  ;;  %v11349_v33 = vpack.c.bf16 %v3926_v24, %v3926_v24 }
 0x2a2   : > { %v4487_v53 = vpop.permute.xlu1 %4486  ;;  %v4041_v31 = vpop.permute.xlu0 %4040  ;;  %9175 = vmatpush3.bf16.msra.mxu1 %v11068_v4  ;;  %v5697_v7 = vld [vmem:[#allocation3 + $0x3c] sm:$0xff]  ;;  %6567 = vmatprep.mubr.bf16.mxu1 %v9403_v51  ;;  %v5694_v4 = vld [vmem:[#allocation3 + $0x28] sm:$0xff]  ;;  %v3923_v51 = vld [vmem:[#allocation2 + $0x1b0] sm:$0xff] }
 0x2a3   : > { %4575 = vst.msk [vmem:[#allocation3 + $0x90] sm:$0xf] %vm748_vm2, %v4487_v53  ;;  %4128 = vst.msk [vmem:[#allocation3 + $0xa0] sm:$0xf] %vm748_vm2, %v4041_v31  ;;  %9176 = vmatprep.subr.bf16.mxu1 %v9428_v14  ;;  %v7936_v17 = vcombine.low %v5694_v4, %v5697_v7  ;;  %v11333_v7 = vpack.c.bf16 %v3923_v51, %v3923_v51 }
 0x2a5   : > { %4074 = vrot.lane.b32.xlu1 %v11278_v25, %s9568_s26  ;;  %4512 = vrot.lane.b32.xlu0 %v8473_v6, %s9568_s26 }
 0x2a6   : > { %v4043_v49 = vpop.permute.xlu1 %4042  ;;  %v5377_v43 = vpop.permute.xlu0 %5376  ;;  %v9407_v50 = vld [vmem:[#allocation3 + $0x8] ss:$20 sps:$4 sm:$0xff]   ;;  %9177 = vmatpush3.bf16.msra.mxu1 %v9428_v14 }
 0x2a7   : > { %4129 = vst.msk [vmem:[#allocation3 + $0xb4] sm:$0xf] %vm748_vm2, %v4043_v49  ;;  %5468 = vst.msk [vmem:[#allocation3 + $0x5c] sm:$0xf] %vm748_vm2, %v5377_v43  ;;  %9178 = vmatprep.subr.bf16.mxu1 %v9441_v36  ;;  %6721 = vmatmul.mubr.bf16.vlgmr.msra.gmra.mxu0 %v9407_v50  ;;  %v4375_v43 = vld [vmem:[#allocation2 + $0x20f] sm:$0xff] }
 0x2a8   : > { %6568 = vmatmul.mubr.bf16.gmra.mxu1 %v7936_v17  ;;  %v8484_v4 = vpack.c.bf16 %v4375_v43, %v4375_v43 }
 0x2a9   : > { %4514 = vrot.lane.b32.xlu1 %v8474_v62, %s9568_s26  ;;  %4068 = vrot.lane.b32.xlu0 %v11289_v56, %s9568_s26  ;;  %v4372_v62 = vld [vmem:[#allocation2 + $0x1e7] sm:$0xff] }
 0x2aa   : > { %v5379_v18 = vpop.permute.xlu1 %5378  ;;  %v4481_v12 = vpop.permute.xlu0 %4480  ;;  %9179 = vmatpush3.bf16.msra.mxu1 %v9441_v36  ;;  %v8483_v36 = vpack.c.bf16 %v4374_v23, %v4374_v23  ;;  %v9412_v49 = vld [vmem:[#allocation3 + $0x7c] ss:$20 sps:$4 sm:$0xff]   ;;  %v8481_v58 = vpack.c.bf16 %v4372_v62, %v4372_v62 }
 0x2ab   : > { %5469 = vst.msk [vmem:[#allocation3 + $0x70] sm:$0xf] %vm748_vm2, %v5379_v18  ;;  %4572 = vst.msk [vmem:[#allocation3 + $0x54] sm:$0xf] %vm748_vm2, %v4481_v12  ;;  %9180 = vmatprep.subr.bf16.mxu1 %v9451_v34 }
 0x2ad   : > { %4070 = vrot.lane.b32.xlu1 %v11296_v38, %s9568_s26  ;;  %4524 = vrot.lane.b32.xlu0 %v8479_v57, %s9568_s26 }
 0x2ae   : > { %v4935_v28 = vpop.permute.xlu1 %4934  ;;  %v4037_v26 = vpop.permute.xlu0 %4036  ;;  %9181 = vmatpush3.bf16.msra.mxu1 %v9451_v34 }
 0x2af   : > { %5023 = vst.msk [vmem:[#allocation3 + $0x94] sm:$0xf] %vm748_vm2, %v4935_v28  ;;  %4126 = vst.msk [vmem:[#allocation3 + $0x78] sm:$0xf] %vm748_vm2, %v4037_v26 }
 0x2b1   : > { %4526 = vrot.lane.b32.xlu1 %v8480_v0, %s9568_s26  ;;  %4080 = vrot.lane.b32.xlu0 %v11303_v41, %s9568_s26  ;;  %v8482_v0 = vpack.c.bf16 %v4373_v15, %v4373_v15 }
 0x2b2   : > { %v4483_v48 = vpop.permute.xlu1 %4482  ;;  %v5373_v37 = vpop.permute.xlu0 %5372  ;;  %v5700_v14 = vld [vmem:[#allocation3 + $0x50] sm:$0xff] }
 0x2b3   : > { %4573 = vst.msk [vmem:[#allocation3 + $0x68] sm:$0xf] %vm748_vm2, %v4483_v48  ;;  %5466 = vst.msk [vmem:[#allocation3 + $0x34] sm:$0xf] %vm748_vm2, %v5373_v37  ;;  %v9416_v11 = vld [vmem:[#allocation3 + $0x5c] ss:$20 sps:$4 sm:$0xff]  }
 0x2b5   : > { %4082 = vrot.lane.b32.xlu1 %v11310_v19, %s9568_s26  ;;  %4520 = vrot.lane.b32.xlu0 %v8477_v45, %s9568_s26 }
 0x2b6   : > { %v4039_v32 = vpop.permute.xlu1 %4038  ;;  %v4933_v40 = vpop.permute.xlu0 %4932  ;;  %v5706_v12 = vld [vmem:[#allocation3 + $0x78] sm:$0xff] }
 0x2b7   : > { %4127 = vst.msk [vmem:[#allocation3 + $0x8c] sm:$0xf] %vm748_vm2, %v4039_v32  ;;  %5022 = vst.msk [vmem:[#allocation3 + $0x80] sm:$0xf] %vm748_vm2, %v4933_v40  ;;  %v3927_v32 = vld [vmem:[#allocation2 + $0x1f0] sm:$0xff] }
 0x2b8   : > { %v11357_v22 = vpack.c.bf16 %v3927_v32, %v3927_v32 }
 0x2b9   : > { %4522 = vrot.lane.b32.xlu1 %v8478_v42, %s9568_s26  ;;  %5396 = vrot.lane.b32.xlu0 %v11254_v54, %s9568_s26 }
 0x2ba   : > { %v5375_v8 = vpop.permute.xlu1 %5374  ;;  %v4929_v13 = vpop.permute.xlu0 %4928  ;;  %v5703_v53 = vld [vmem:[#allocation3 + $0x64] sm:$0xff]  ;;  %v5695_v21 = vld [vmem:[#allocation3 + $0x30] sm:$0xff] }
 0x2bb   : > { %v9410_v31 = vld [vmem:[#allocation3 + $0x54] ss:$20 sps:$4 sm:$0xff]   ;;  %5467 = vst.msk [vmem:[#allocation3 + $0x48] sm:$0xf] %vm748_vm2, %v5375_v8  ;;  %5020 = vst.msk [vmem:[#allocation3 + $0x58] sm:$0xf] %vm748_vm2, %v4929_v13  ;;  %v7941_v6 = vcombine.low %v5700_v14, %v5703_v53 }
 0x2bc   : > { %6575 = vmatprep.mubr.bf16.mxu1 %v9410_v31 }
 0x2bd   : > { %5398 = vrot.lane.b32.xlu1 %v11261_v5, %s9568_s26  ;;  %4076 = vrot.lane.b32.xlu0 %v11325_v55, %s9568_s26 }
 0x2be   : > { %v4931_v54 = vpop.permute.xlu1 %4930  ;;  %v4493_v3 = vpop.permute.xlu0 %4492  ;;  %6576 = vmatmul.mubr.bf16.gmra.mxu1 %v7941_v6  ;;  %v5709_v5 = vld [vmem:[#allocation3 + $0x8c] sm:$0xff] }
 0x2bf   : > { %5021 = vst.msk [vmem:[#allocation3 + $0x6c] sm:$0xf] %vm748_vm2, %v4931_v54  ;;  %4578 = vst.msk [vmem:[#allocation3 + $0xcc] sm:$0xf] %vm748_vm2, %v4493_v3  ;;  %6583 = vmatprep.mubr.bf16.mxu1 %v9412_v49  ;;  %v7946_v2 = vcombine.low %v5706_v12, %v5709_v5  ;;  %v5269_v12 = vld [vmem:[#allocation2 + $0x210] sm:$0xff] }
 0x2c0   : > { %v8610_v15 = vpack.c.bf16 %v5269_v12, %v5269_v12 }
 0x2c1   : > { %4078 = vrot.lane.b32.xlu1 %v11333_v7, %s9568_s26  ;;  %4532 = vrot.lane.b32.xlu0 %v8483_v36, %s9568_s26 }
 0x2c2   : > { %v5698_v17 = vld [vmem:[#allocation3 + $0x44] sm:$0xff]  ;;  %v5701_v34 = vld [vmem:[#allocation3 + $0x58] sm:$0xff] }
 0x2c3   : > { %v4495_v50 = vpop.permute.xlu1 %4494  ;;  %v4049_v20 = vpop.permute.xlu0 %4048  ;;  %v9414_v18 = vld [vmem:[#allocation3 + $0x34] ss:$20 sps:$4 sm:$0xff]   ;;  %v7938_v57 = vcombine.low %v5695_v21, %v5698_v17 }
 0x2c4   : > { %4579 = vst.msk [vmem:[#allocation3 + $0xe0] sm:$0xf] %vm748_vm2, %v4495_v50  ;;  %4132 = vst.msk [vmem:[#allocation3 + $0xf0] sm:$0xf] %vm748_vm2, %v4049_v20  ;;  %6728 = vmatprep.mubr.bf16.mxu0 %v9414_v18 }
 0x2c5   : > { %4534 = vrot.lane.b32.xlu1 %v8484_v4, %s9568_s26  ;;  %4528 = vrot.lane.b32.xlu0 %v8481_v58, %s9568_s26 }
 0x2c6   : > { %6729 = vmatmul.mubr.bf16.gmra.mxu0 %v7938_v57  ;;  %6584 = vmatmul.mubr.bf16.gmra.mxu1 %v7946_v2  ;;  %v5704_v48 = vld [vmem:[#allocation3 + $0x6c] sm:$0xff] }
 0x2c7   : > { %v4051_v28 = vpop.permute.xlu1 %4050  ;;  %v5385_v26 = vpop.permute.xlu0 %5384  ;;  %6736 = vmatprep.mubr.bf16.mxu0 %v9416_v11  ;;  %v7943_v40 = vcombine.low %v5701_v34, %v5704_v48  ;;  %v4823_v34 = vld [vmem:[#allocation2 + $0x211] sm:$0xff] }
 0x2c8   : > { %4133 = vst.msk [vmem:[#allocation3 + $0x104] sm:$0xf] %vm748_vm2, %v4051_v28  ;;  %5472 = vst.msk [vmem:[#allocation3 + $0xac] sm:$0xf] %vm748_vm2, %v5385_v26  ;;  %v4822_v28 = vld [vmem:[#allocation2 + $0x209] sm:$0xff] }
 0x2c9   : > { %4530 = vrot.lane.b32.xlu1 %v8482_v0, %s9568_s26  ;;  %4952 = vrot.lane.b32.xlu0 %v11028_v10, %s9568_s26  ;;  %v5270_v0 = vld [vmem:[#allocation2 + $0x228] sm:$0xff]  ;;  %v8547_v48 = vpack.c.bf16 %v4822_v28, %v4822_v28 }
 0x2ca   : > { %v8611_v32 = vpack.c.bf16 %v5270_v0, %v5270_v0 }
 0x2cb   : > { %v5387_v37 = vpop.permute.xlu1 %5386  ;;  %v4489_v45 = vpop.permute.xlu0 %4488 }
 0x2cc   : > { %5473 = vst.msk [vmem:[#allocation3 + $0xc0] sm:$0xf] %vm748_vm2, %v5387_v37  ;;  %4576 = vst.msk [vmem:[#allocation3 + $0xa4] sm:$0xf] %vm748_vm2, %v4489_v45 }
 0x2cd   : > { %4954 = vrot.lane.b32.xlu1 %v11030_v27, %s9568_s26  ;;  %4084 = vrot.lane.b32.xlu0 %v11349_v33, %s9568_s26 }
 0x2ce   : > { %6737 = vmatmul.mubr.bf16.gmra.mxu0 %v7943_v40  ;;  %v5271_v40 = vld [vmem:[#allocation2 + $0x230] sm:$0xff] }
 0x2cf   : > { %v4943_v10 = vpop.permute.xlu1 %4942  ;;  %v4045_v42 = vpop.permute.xlu0 %4044 }
 0x2d0   : > { %5027 = vst.msk [vmem:[#allocation3 + $0xe4] sm:$0xf] %vm748_vm2, %v4943_v10  ;;  %4130 = vst.msk [vmem:[#allocation3 + $0xc8] sm:$0xf] %vm748_vm2, %v4045_v42 }
 0x2d1   : > { %4086 = vrot.lane.b32.xlu1 %v11357_v22, %s9568_s26  ;;  %5400 = vrot.lane.b32.xlu0 %v11240_v52, %s9568_s26 }
 0x2d3   : > { %v4491_v27 = vpop.permute.xlu1 %4490  ;;  %v5381_v8 = vpop.permute.xlu0 %5380  ;;  %v5712_v31 = vld [vmem:[#allocation3 + $0xa0] sm:$0xff] }
 0x2d4   : > { %4577 = vst.msk [vmem:[#allocation3 + $0xb8] sm:$0xf] %vm748_vm2, %v4491_v27  ;;  %5470 = vst.msk [vmem:[#allocation3 + $0x84] sm:$0xf] %vm748_vm2, %v5381_v8  ;;  %v9427_v5 = vld [vmem:[#allocation3 + $0xac] ss:$20 sps:$4 sm:$0xff]  }
 0x2d5   : > { %5402 = vrot.lane.b32.xlu1 %v11247_v30, %s9568_s26  ;;  %4956 = vrot.lane.b32.xlu0 %v11059_v61, %s9568_s26 }
 0x2d7   : > { %v4047_v13 = vpop.permute.xlu1 %4046  ;;  %v4941_v14 = vpop.permute.xlu0 %4940  ;;  %v5718_v49 = vld [vmem:[#allocation3 + $0xc8] sm:$0xff] }
 0x2d8   : > { %4131 = vst.msk [vmem:[#allocation3 + $0xdc] sm:$0xf] %vm748_vm2, %v4047_v13  ;;  %5026 = vst.msk [vmem:[#allocation3 + $0xd0] sm:$0xf] %vm748_vm2, %v4941_v14 }
 0x2d9   : > { %4958 = vrot.lane.b32.xlu1 %v11061_v46, %s9568_s26  ;;  %5404 = vrot.lane.b32.xlu0 %v11289_v56, %s9568_s26  ;;  %v9421_v56 = vld [vmem:[#allocation3 + $0xcc] ss:$20 sps:$4 sm:$0xff]  }
 0x2db   : > { %v5383_v52 = vpop.permute.xlu1 %5382  ;;  %v4937_v53 = vpop.permute.xlu0 %4936  ;;  %v5715_v6 = vld [vmem:[#allocation3 + $0xb4] sm:$0xff] }
 0x2dc   : > { %v9419_v30 = vld [vmem:[#allocation3 + $0xa4] ss:$20 sps:$4 sm:$0xff]   ;;  %5471 = vst.msk [vmem:[#allocation3 + $0x98] sm:$0xf] %vm748_vm2, %v5383_v52  ;;  %5024 = vst.msk [vmem:[#allocation3 + $0xa8] sm:$0xf] %vm748_vm2, %v4937_v53  ;;  %v7951_v61 = vcombine.low %v5712_v31, %v5715_v6 }
 0x2dd   : > { %5406 = vrot.lane.b32.xlu1 %v11296_v38, %s9568_s26  ;;  %4960 = vrot.lane.b32.xlu0 %v11094_v44, %s9568_s26  ;;  %v5707_v38 = vld [vmem:[#allocation3 + $0x80] sm:$0xff] }
 0x2de   : > { %6591 = vmatprep.mubr.bf16.mxu1 %v9419_v30 }
 0x2df   : > { %v4939_v46 = vpop.permute.xlu1 %4938  ;;  %v4501_v51 = vpop.permute.xlu0 %4500  ;;  %6592 = vmatmul.mubr.bf16.gmra.mxu1 %v7951_v61  ;;  %v5721_v23 = vld [vmem:[#allocation3 + $0xdc] sm:$0xff]  ;;  %v9433_v37 = vld [vmem:[#allocation3 + $0xd0] ss:$20 sps:$4 sm:$0xff]  }
 0x2e0   : > { %5025 = vst.msk [vmem:[#allocation3 + $0xbc] sm:$0xf] %vm748_vm2, %v4939_v46  ;;  %4582 = vst.msk [vmem:[#allocation3 + $0x11c] sm:$0xf] %vm748_vm2, %v4501_v51  ;;  %6599 = vmatprep.mubr.bf16.mxu1 %v9421_v56 }
 0x2e1   : > { %4962 = vrot.lane.b32.xlu1 %v11096_v1, %s9568_s26  ;;  %5408 = vrot.lane.b32.xlu0 %v11268_v47, %s9568_s26  ;;  %v7956_v1 = vcombine.low %v5718_v49, %v5721_v23 }
 0x2e3   : > { %v4503_v54 = vpop.permute.xlu1 %4502  ;;  %v4057_v44 = vpop.permute.xlu0 %4056  ;;  %v5710_v3 = vld [vmem:[#allocation3 + $0x94] sm:$0xff] }
 0x2e4   : > { %v9423_v36 = vld [vmem:[#allocation3 + $0x84] ss:$20 sps:$4 sm:$0xff]   ;;  %4583 = vst.msk [vmem:[#allocation3 + $0x130] sm:$0xf] %vm748_vm2, %v4503_v54  ;;  %4136 = vst.msk [vmem:[#allocation3 + $0x140] sm:$0xf] %vm748_vm2, %v4057_v44  ;;  %v7948_v43 = vcombine.low %v5707_v38, %v5710_v3 }
 0x2e5   : > { %5410 = vrot.lane.b32.xlu1 %v11278_v25, %s9568_s26  ;;  %4964 = vrot.lane.b32.xlu0 %v11123_v29, %s9568_s26 }
 0x2e6   : > { %6744 = vmatprep.mubr.bf16.mxu0 %v9423_v36 }
 0x2e7   : > { %v4059_v47 = vpop.permute.xlu1 %4058  ;;  %6745 = vmatmul.mubr.bf16.gmra.mxu0 %v7948_v43  ;;  %v5393_v62 = vpop.permute.xlu0 %5392  ;;  %6600 = vmatmul.mubr.bf16.gmra.mxu1 %v7956_v1  ;;  %v9425_v50 = vld [vmem:[#allocation3 + $0xa8] ss:$20 sps:$4 sm:$0xff]  }
 0x2e8   : > { %4137 = vst.msk [vmem:[#allocation3 + $0x154] sm:$0xf] %vm748_vm2, %v4059_v47  ;;  %5476 = vst.msk [vmem:[#allocation3 + $0xfc] sm:$0xf] %vm748_vm2, %v5393_v62  ;;  %6752 = vmatprep.mubr.bf16.mxu0 %v9427_v5 }
 0x2e9   : > { %4966 = vrot.lane.b32.xlu1 %v11125_v16, %s9568_s26  ;;  %5412 = vrot.lane.b32.xlu0 %v11325_v55, %s9568_s26 }
 0x2eb   : > { %v5395_v25 = vpop.permute.xlu1 %5394  ;;  %v4497_v29 = vpop.permute.xlu0 %4496  ;;  %v9431_v2 = vld [vmem:[#allocation3 + $0x11c] ss:$20 sps:$4 sm:$0xff]  }
 0x2ec   : > { %5477 = vst.msk [vmem:[#allocation3 + $0x110] sm:$0xf] %vm748_vm2, %v5395_v25  ;;  %4580 = vst.msk [vmem:[#allocation3 + $0xf4] sm:$0xf] %vm748_vm2, %v4497_v29 }
 0x2ed   : > { %5414 = vrot.lane.b32.xlu1 %v11333_v7, %s9568_s26  ;;  %4968 = vrot.lane.b32.xlu0 %v11153_v63, %s9568_s26 }
 0x2ef   : > { %v4951_v20 = vpop.permute.xlu1 %4950  ;;  %6753 = vmatmul.mubr.bf16.gmra.mxu0 %v9425_v50  ;;  %v4053_v16 = vpop.permute.xlu0 %4052 }
 0x2f0   : > { %5031 = vst.msk [vmem:[#allocation3 + $0x134] sm:$0xf] %vm748_vm2, %v4951_v20  ;;  %4134 = vst.msk [vmem:[#allocation3 + $0x118] sm:$0xf] %vm748_vm2, %v4053_v16 }
 0x2f1   : > { %4970 = vrot.lane.b32.xlu1 %v11155_v35, %s9568_s26  ;;  %5416 = vrot.lane.b32.xlu0 %v11303_v41, %s9568_s26  ;;  %v5268_v35 = vld [vmem:[#allocation2 + $0x208] sm:$0xff] }
 0x2f3   : > { %v4499_v55 = vpop.permute.xlu1 %4498  ;;  %v5389_v4 = vpop.permute.xlu0 %5388  ;;  %v5724_v41 = vld [vmem:[#allocation3 + $0xf0] sm:$0xff] }
 0x2f4   : > { %4581 = vst.msk [vmem:[#allocation3 + $0x108] sm:$0xf] %vm748_vm2, %v4499_v55  ;;  %5474 = vst.msk [vmem:[#allocation3 + $0xd4] sm:$0xf] %vm748_vm2, %v5389_v4  ;;  %v9438_v27 = vld [vmem:[#allocation3 + $0xfc] ss:$20 sps:$4 sm:$0xff]  }
 0x2f5   : > { %5418 = vrot.lane.b32.xlu1 %v11310_v19, %s9568_s26  ;;  %4972 = vrot.lane.b32.xlu0 %v11180_v60, %s9568_s26  ;;  %v8609_v19 = vpack.c.bf16 %v5268_v35, %v5268_v35 }
 0x2f7   : > { %v4055_v63 = vpop.permute.xlu1 %4054  ;;  %v4949_v7 = vpop.permute.xlu0 %4948 }
 0x2f8   : > { %4135 = vst.msk [vmem:[#allocation3 + $0x12c] sm:$0xf] %vm748_vm2, %v4055_v63  ;;  %5030 = vst.msk [vmem:[#allocation3 + $0x120] sm:$0xf] %vm748_vm2, %v4949_v7 }
 0x2f9   : > { %4974 = vrot.lane.b32.xlu1 %v11183_v9, %s9568_s26  ;;  %5420 = vrot.lane.b32.xlu0 %v11349_v33, %s9568_s26  ;;  %v5730_v33 = vld [vmem:[#allocation3 + $0x118] sm:$0xff] }
 0x2fb   : > { %v5391_v58 = vpop.permute.xlu1 %5390  ;;  %v4945_v21 = vpop.permute.xlu0 %4944  ;;  %v5727_v17 = vld [vmem:[#allocation3 + $0x104] sm:$0xff] }
 0x2fc   : > { %v9429_v18 = vld [vmem:[#allocation3 + $0xf4] ss:$20 sps:$4 sm:$0xff]   ;;  %5475 = vst.msk [vmem:[#allocation3 + $0xe8] sm:$0xf] %vm748_vm2, %v5391_v58  ;;  %5028 = vst.msk [vmem:[#allocation3 + $0xf8] sm:$0xf] %vm748_vm2, %v4945_v21  ;;  %v7961_v60 = vcombine.low %v5724_v41, %v5727_v17 }
 0x2fd   : > { %5422 = vrot.lane.b32.xlu1 %v11357_v22, %s9568_s26  ;;  %5424 = vrot.lane.b32.xlu0 %v8609_v19, %s9568_s26  ;;  %v8548_v22 = vpack.c.bf16 %v4823_v34, %v4823_v34 }
 0x2fe   : > { %6607 = vmatprep.mubr.bf16.mxu1 %v9429_v18 }
 0x2ff   : > { %v4947_v9 = vpop.permute.xlu1 %4946  ;;  %v4509_v57 = vpop.permute.xlu0 %4508  ;;  %6608 = vmatmul.mubr.bf16.gmra.mxu1 %v7961_v60  ;;  %v5733_v26 = vld [vmem:[#allocation3 + $0x12c] sm:$0xff] }
 0x300   : > { %5029 = vst.msk [vmem:[#allocation3 + $0x10c] sm:$0xf] %vm748_vm2, %v4947_v9  ;;  %4586 = vst.msk [vmem:[#allocation3 + $0x16c] sm:$0xf] %vm748_vm2, %v4509_v57  ;;  %6615 = vmatprep.mubr.bf16.mxu1 %v9431_v2  ;;  %v9452_v57 = vld [vmem:[#allocation3 + $0x120] ss:$20 sps:$4 sm:$0xff]  }
 0x301   : > { %5426 = vrot.lane.b32.xlu1 %v8610_v15, %s9568_s26  ;;  %4976 = vrot.lane.b32.xlu0 %v11203_v39, %s9568_s26  ;;  %v7966_v39 = vcombine.low %v5730_v33, %v5733_v26 }
 0x303   : > { %v4511_v11 = vpop.permute.xlu1 %4510  ;;  %v4065_v24 = vpop.permute.xlu0 %4064  ;;  %v9435_v45 = vld [vmem:[#allocation3 + $0xd4] ss:$20 sps:$4 sm:$0xff]  }
 0x304   : > { %4587 = vst.msk [vmem:[#allocation3 + $0x180] sm:$0xf] %vm748_vm2, %v4511_v11  ;;  %4140 = vst.msk [vmem:[#allocation3 + $0x190] sm:$0xf] %vm748_vm2, %v4065_v24  ;;  %6760 = vmatprep.mubr.bf16.mxu0 %v9435_v45 }
 0x305   : > { %4978 = vrot.lane.b32.xlu1 %v11206_v59, %s9568_s26  ;;  %4980 = vrot.lane.b32.xlu0 %v8547_v48, %s9568_s26  ;;  %v8612_v59 = vpack.c.bf16 %v5271_v40, %v5271_v40 }
 0x306   : > { %6761 = vmatmul.mubr.bf16.gmra.mxu0 %v9433_v37 }
 0x307   : > { %v4067_v10 = vpop.permute.xlu1 %4066  ;;  %v4505_v42 = vpop.permute.xlu0 %4504  ;;  %6616 = vmatmul.mubr.bf16.gmra.mxu1 %v7966_v39  ;;  %6768 = vmatprep.mubr.bf16.mxu0 %v9438_v27  ;;  %v9436_v14 = vld [vmem:[#allocation3 + $0xf8] ss:$20 sps:$4 sm:$0xff]  }
 0x308   : > { %4141 = vst.msk [vmem:[#allocation3 + $0x1a4] sm:$0xf] %vm748_vm2, %v4067_v10  ;;  %4584 = vst.msk [vmem:[#allocation3 + $0x144] sm:$0xf] %vm748_vm2, %v4505_v42 }
 0x309   : > { %4982 = vrot.lane.b32.xlu1 %v8548_v22, %s9568_s26  ;;  %5428 = vrot.lane.b32.xlu0 %v8611_v32, %s9568_s26  ;;  %v9464_v22 = vld [vmem:[#allocation3 + $0x10] ss:$20 sps:$4 sm:$0xff]  }
 0x30b   : > { %v4507_v8 = vpop.permute.xlu1 %4506  ;;  %v4061_v13 = vpop.permute.xlu0 %4060  ;;  %v9442_v38 = vld [vmem:[#allocation3 + $0x16c] ss:$20 sps:$4 sm:$0xff]  }
 0x30c   : > { %4585 = vst.msk [vmem:[#allocation3 + $0x158] sm:$0xf] %vm748_vm2, %v4507_v8  ;;  %4138 = vst.msk [vmem:[#allocation3 + $0x168] sm:$0xf] %vm748_vm2, %v4061_v13 }
 0x30d   : > { %5430 = vrot.lane.b32.xlu1 %v8612_v59, %s9568_s26 }
 0x30e   : > { %6769 = vmatmul.mubr.bf16.gmra.mxu0 %v9436_v14 }
 0x30f   : > { %v4063_v52 = vpop.permute.xlu1 %4062  ;;  %v4517_v53 = vpop.permute.xlu0 %4516  ;;  %v5736_v30 = vld [vmem:[#allocation3 + $0x140] sm:$0xff] }
 0x310   : > { %4139 = vst.msk [vmem:[#allocation3 + $0x17c] sm:$0xf] %vm748_vm2, %v4063_v52  ;;  %4590 = vst.msk [vmem:[#allocation3 + $0x1bc] sm:$0xf] %vm748_vm2, %v4517_v53  ;;  %v9468_v53 = vld [vmem:[#allocation3 + $0x38] ss:$20 sps:$4 sm:$0xff]  }
 0x313   : > { %v4519_v31 = vpop.permute.xlu1 %4518  ;;  %v4073_v6 = vpop.permute.xlu0 %4072  ;;  %v5739_v61 = vld [vmem:[#allocation3 + $0x154] sm:$0xff]  ;;  %v5742_v44 = vld [vmem:[#allocation3 + $0x168] sm:$0xff] }
 0x314   : > { %v9439_v46 = vld [vmem:[#allocation3 + $0x144] ss:$20 sps:$4 sm:$0xff]   ;;  %4591 = vst.msk [vmem:[#allocation3 + $0x1d0] sm:$0xf] %vm748_vm2, %v4519_v31  ;;  %4144 = vst.msk [vmem:[#allocation3 + $0x1e0] sm:$0xf] %vm748_vm2, %v4073_v6  ;;  %v7971_v51 = vcombine.low %v5736_v30, %v5739_v61 }
 0x315   : > { %6623 = vmatprep.mubr.bf16.mxu1 %v9439_v46  ;;  %v9469_v31 = vld [vmem:[#allocation3 + $0x60] ss:$20 sps:$4 sm:$0xff]  }
 0x316   : > { %6624 = vmatmul.mubr.bf16.gmra.mxu1 %v7971_v51 }
 0x317   : > { %v4075_v56 = vpop.permute.xlu1 %4074  ;;  %v4513_v23 = vpop.permute.xlu0 %4512  ;;  %v5745_v54 = vld [vmem:[#allocation3 + $0x17c] sm:$0xff]  ;;  %6631 = vmatprep.mubr.bf16.mxu1 %v9442_v38  ;;  %v9474_v38 = vld [vmem:[#allocation3 + $0xb0] ss:$20 sps:$4 sm:$0xff]  }
 0x318   : > { %4145 = vst.msk [vmem:[#allocation3 + $0x1f4] sm:$0xf] %vm748_vm2, %v4075_v56  ;;  %4588 = vst.msk [vmem:[#allocation3 + $0x194] sm:$0xf] %vm748_vm2, %v4513_v23  ;;  %v7976_v49 = vcombine.low %v5742_v44, %v5745_v54  ;;  %v9473_v23 = vld [vmem:[#allocation3 + $0x88] ss:$20 sps:$4 sm:$0xff]  }
 0x31b   : > { %v4515_v3 = vpop.permute.xlu1 %4514  ;;  %v4069_v36 = vpop.permute.xlu0 %4068  ;;  %v9446_v55 = vld [vmem:[#allocation3 + $0x1bc] ss:$20 sps:$4 sm:$0xff]  }
 0x31c   : > { %4589 = vst.msk [vmem:[#allocation3 + $0x1a8] sm:$0xf] %vm748_vm2, %v4515_v3  ;;  %4142 = vst.msk [vmem:[#allocation3 + $0x1b8] sm:$0xf] %vm748_vm2, %v4069_v36 }
 0x31e   : > { %6632 = vmatmul.mubr.bf16.gmra.mxu1 %v7976_v49 }
 0x31f   : > { %v4071_v43 = vpop.permute.xlu1 %4070  ;;  %v4525_v1 = vpop.permute.xlu0 %4524  ;;  %v5748_v5 = vld [vmem:[#allocation3 + $0x190] sm:$0xff] }
 0x320   : > { %4143 = vst.msk [vmem:[#allocation3 + $0x1cc] sm:$0xf] %vm748_vm2, %v4071_v43  ;;  %4594 = vst.msk [vmem:[#allocation3 + $0x20c] sm:$0xf] %vm748_vm2, %v4525_v1  ;;  %v9448_v18 = vld [vmem:[#allocation3 + $0x1e0] ss:$20 sps:$4 sm:$0xff]  }
 0x323   : > { %v4527_v47 = vpop.permute.xlu1 %4526  ;;  %v4081_v62 = vpop.permute.xlu0 %4080  ;;  %v5751_v25 = vld [vmem:[#allocation3 + $0x1a4] sm:$0xff]  ;;  %v5754_v63 = vld [vmem:[#allocation3 + $0x1b8] sm:$0xff] }
 0x324   : > { %v9444_v29 = vld [vmem:[#allocation3 + $0x194] ss:$20 sps:$4 sm:$0xff]   ;;  %4595 = vst.msk [vmem:[#allocation3 + $0x220] sm:$0xf] %vm748_vm2, %v4527_v47  ;;  %4148 = vst.msk [vmem:[#allocation3 + $0x230] sm:$0xf] %vm748_vm2, %v4081_v62  ;;  %v7981_v50 = vcombine.low %v5748_v5, %v5751_v25 }
 0x325   : > { %6639 = vmatprep.mubr.bf16.mxu1 %v9444_v29  ;;  %v9478_v47 = vld [vmem:[#allocation3 + $0xd8] ss:$20 sps:$4 sm:$0xff]   ;;  %v9479_v5 = vld [vmem:[#allocation3 + $0x100] ss:$20 sps:$4 sm:$0xff]  }
 0x326   : > { %6640 = vmatmul.mubr.bf16.gmra.mxu1 %v7981_v50 }
 0x327   : > { %v4083_v20 = vpop.permute.xlu1 %4082  ;;  %v4521_v16 = vpop.permute.xlu0 %4520  ;;  %v5757_v4 = vld [vmem:[#allocation3 + $0x1cc] sm:$0xff]  ;;  %6647 = vmatprep.mubr.bf16.mxu1 %v9446_v55 }
 0x328   : > { %4149 = vst.msk [vmem:[#allocation3 + $0x244] sm:$0xf] %vm748_vm2, %v4083_v20  ;;  %4592 = vst.msk [vmem:[#allocation3 + $0x1e4] sm:$0xf] %vm748_vm2, %v4521_v16  ;;  %v7986_v41 = vcombine.low %v5754_v63, %v5757_v4 }
 0x32b   : > { %v4523_v7 = vpop.permute.xlu1 %4522  ;;  %v5397_v35 = vpop.permute.xlu0 %5396  ;;  %v9457_v0 = vld [vmem:[#allocation3 + $0x20c] ss:$20 sps:$4 sm:$0xff]  }
 0x32c   : > { %4593 = vst.msk [vmem:[#allocation3 + $0x1f8] sm:$0xf] %vm748_vm2, %v4523_v7  ;;  %5478 = vst.msk [vmem:[#allocation3 + $0x124] sm:$0xf] %vm748_vm2, %v5397_v35 }
 0x32e   : > { %6648 = vmatmul.mubr.bf16.gmra.mxu1 %v7986_v41  ;;  %v11503_v41 = vld [vmem:[%s11953_s4] ss:$0 sm:$0xff] }
 0x32f   : > { %v5399_v58 = vpop.permute.xlu1 %5398  ;;  %v4077_v21 = vpop.permute.xlu0 %4076  ;;  %v9458_v45 = vld [vmem:[#allocation3 + $0x230] ss:$20 sps:$4 sm:$0xff]  }
 0x330   : > { %5479 = vst.msk [vmem:[#allocation3 + $0x138] sm:$0xf] %vm748_vm2, %v5399_v58  ;;  %4146 = vst.msk [vmem:[#allocation3 + $0x208] sm:$0xf] %vm748_vm2, %v4077_v21 }
 0x333   : > { %v4079_v19 = vpop.permute.xlu1 %4078  ;;  %v4533_v17 = vpop.permute.xlu0 %4532  ;;  %v9450_v60 = vld [vmem:[#allocation3 + $0x1e4] ss:$20 sps:$4 sm:$0xff]  }
 0x334   : > { %4147 = vst.msk [vmem:[#allocation3 + $0x21c] sm:$0xf] %vm748_vm2, %v4079_v19  ;;  %4598 = vst.msk [vmem:[#allocation3 + $0x25c] sm:$0xf] %vm748_vm2, %v4533_v17  ;;  %6655 = vmatprep.mubr.bf16.mxu1 %v9450_v60  ;;  %v9483_v19 = vld [vmem:[#allocation3 + $0x128] ss:$20 sps:$4 sm:$0xff]  }
 0x336   : > { %6656 = vmatmul.mubr.bf16.gmra.mxu1 %v9448_v18  ;;  %v9484_v18 = vld [vmem:[#allocation3 + $0x150] ss:$20 sps:$4 sm:$0xff]  }
 0x337   : > { %v4535_v12 = vpop.permute.xlu1 %4534  ;;  %v4529_v9 = vpop.permute.xlu0 %4528  ;;  %v9454_v15 = vld [vmem:[#allocation3 + $0x124] ss:$20 sps:$4 sm:$0xff]   ;;  %6663 = vmatprep.mubr.bf16.mxu1 %v9457_v0 }
 0x338   : > { %4599 = vst.msk [vmem:[#allocation3 + $0x270] sm:$0xf] %vm748_vm2, %v4535_v12  ;;  %4596 = vst.msk [vmem:[#allocation3 + $0x234] sm:$0xf] %vm748_vm2, %v4529_v9  ;;  %6776 = vmatprep.mubr.bf16.mxu0 %v9454_v15 }
 0x339   : > { %6777 = vmatmul.mubr.bf16.gmra.mxu0 %v9452_v57 }
 0x33b   : > { %v4531_v2 = vpop.permute.xlu1 %4530  ;;  %v4953_v28 = vpop.permute.xlu0 %4952  ;;  %v9455_v26 = vld [vmem:[#allocation3 + $0x208] ss:$20 sps:$4 sm:$0xff]  }
 0x33c   : > { %4597 = vst.msk [vmem:[#allocation3 + $0x248] sm:$0xf] %vm748_vm2, %v4531_v2  ;;  %5032 = vst.msk [vmem:[#allocation3 + $0x148] sm:$0xf] %vm748_vm2, %v4953_v28 }
 0x33e   : > { %6664 = vmatmul.mubr.bf16.gmra.mxu1 %v9455_v26 }
 0x33f   : > { %v4955_v11 = vpop.permute.xlu1 %4954  ;;  %v4085_v24 = vpop.permute.xlu0 %4084  ;;  %v9463_v42 = vld [vmem:[#allocation3 + $0x25c] ss:$20 sps:$4 sm:$0xff]  }
 0x340   : > { %5033 = vst.msk [vmem:[#allocation3 + $0x15c] sm:$0xf] %vm748_vm2, %v4955_v11  ;;  %4150 = vst.msk [vmem:[#allocation3 + $0x258] sm:$0xf] %vm748_vm2, %v4085_v24 }
 0x343   : > { %v4087_v48 = vpop.permute.xlu1 %4086  ;;  %v5401_v37 = vpop.permute.xlu0 %5400  ;;  %v9460_v33 = vld [vmem:[#allocation3 + $0x234] ss:$20 sps:$4 sm:$0xff]  }
 0x344   : > { %4151 = vst.msk [vmem:[#allocation3 + $0x26c] sm:$0xf] %vm748_vm2, %v4087_v48  ;;  %5480 = vst.msk [vmem:[#allocation3 + $0x14c] sm:$0xf] %vm748_vm2, %v5401_v37  ;;  %6671 = vmatprep.mubr.bf16.mxu1 %v9460_v33 }
 0x346   : > { %6672 = vmatmul.mubr.bf16.gmra.mxu1 %v9458_v45 }
 0x347   : > { %v5403_v34 = vpop.permute.xlu1 %5402  ;;  %v4957_v39 = vpop.permute.xlu0 %4956  ;;  %6679 = vmatprep.mubr.bf16.mxu1 %v9463_v42  ;;  %v9465_v8 = vld [vmem:[#allocation3 + $0x148] ss:$20 sps:$4 sm:$0xff]  }
 0x348   : > { %5481 = vst.msk [vmem:[#allocation3 + $0x160] sm:$0xf] %vm748_vm2, %v5403_v34  ;;  %5034 = vst.msk [vmem:[#allocation3 + $0x170] sm:$0xf] %vm748_vm2, %v4957_v39 }
 0x34b   : > { %v4959_v32 = vpop.permute.xlu1 %4958  ;;  %v5405_v40 = vpop.permute.xlu0 %5404  ;;  %v9461_v10 = vld [vmem:[#allocation3 + $0x258] ss:$20 sps:$4 sm:$0xff]  }
 0x34c   : > { %5035 = vst.msk [vmem:[#allocation3 + $0x184] sm:$0xf] %vm748_vm2, %v4959_v32  ;;  %5482 = vst.msk [vmem:[#allocation3 + $0x174] sm:$0xf] %vm748_vm2, %v5405_v40  ;;  %v9488_v40 = vld [vmem:[#allocation3 + $0x178] ss:$20 sps:$4 sm:$0xff]  }
 0x34e   : > { %6680 = vmatmul.mubr.bf16.gmra.mxu1 %v9461_v10  ;;  %v9489_v10 = vld [vmem:[#allocation3 + $0x1a0] ss:$20 sps:$4 sm:$0xff]  }
 0x34f   : > { %v5407_v27 = vpop.permute.xlu1 %5406  ;;  %v4961_v59 = vpop.permute.xlu0 %4960  ;;  %9182 = vmatprep.mubr.msk.bf16.mxu1 %vm224_vm0, %v9464_v22  ;;  %v9467_v13 = vld [vmem:[#allocation3 + $0x14c] ss:$20 sps:$4 sm:$0xff]  }
 0x350   : > { %5483 = vst.msk [vmem:[#allocation3 + $0x188] sm:$0xf] %vm748_vm2, %v5407_v27  ;;  %5036 = vst.msk [vmem:[#allocation3 + $0x198] sm:$0xf] %vm748_vm2, %v4961_v59  ;;  %6784 = vmatprep.mubr.bf16.mxu0 %v9467_v13 }
 0x351   : > { %6785 = vmatmul.mubr.bf16.gmra.mxu0 %v9465_v8 }
 0x353   : > { %v4963_v14 = vpop.permute.xlu1 %4962  ;;  %v5409_v52 = vpop.permute.xlu0 %5408  ;;  %v9470_v61 = vld [vmem:[#allocation3 + $0x170] ss:$20 sps:$4 sm:$0xff]  }
 0x354   : > { %5037 = vst.msk [vmem:[#allocation3 + $0x1ac] sm:$0xf] %vm748_vm2, %v4963_v14  ;;  %5484 = vst.msk [vmem:[#allocation3 + $0x19c] sm:$0xf] %vm748_vm2, %v5409_v52  ;;  %v9493_v52 = vld [vmem:[#allocation3 + $0x1c8] ss:$20 sps:$4 sm:$0xff]  }
 0x356   : > { %9183 = vmatmul.mubr.msk.bf16.vlgmr.msra.gmra.mxu1 %vm224_vm0, %v9468_v53  ;;  %v9494_v53 = vld [vmem:[#allocation3 + $0x1f0] ss:$20 sps:$4 sm:$0xff]  }
 0x357   : > { %v5411_v6 = vpop.permute.xlu1 %5410  ;;  %v4965_v30 = vpop.permute.xlu0 %4964  ;;  %9186 = vmatprep.mubr.msk.bf16.mxu1 %vm224_vm0, %v9469_v31  ;;  %v9472_v46 = vld [vmem:[#allocation3 + $0x174] ss:$20 sps:$4 sm:$0xff]  }
 0x358   : > { %5485 = vst.msk [vmem:[#allocation3 + $0x1b0] sm:$0xf] %vm748_vm2, %v5411_v6  ;;  %5038 = vst.msk [vmem:[#allocation3 + $0x1c0] sm:$0xf] %vm748_vm2, %v4965_v30  ;;  %6792 = vmatprep.mubr.bf16.mxu0 %v9472_v46 }
 0x359   : > { %6793 = vmatmul.mubr.bf16.gmra.mxu0 %v9470_v61 }
 0x35b   : > { %v4967_v51 = vpop.permute.xlu1 %4966  ;;  %v5413_v56 = vpop.permute.xlu0 %5412  ;;  %v9475_v3 = vld [vmem:[#allocation3 + $0x198] ss:$20 sps:$4 sm:$0xff]  }
 0x35c   : > { %5039 = vst.msk [vmem:[#allocation3 + $0x1d4] sm:$0xf] %vm748_vm2, %v4967_v51  ;;  %5486 = vst.msk [vmem:[#allocation3 + $0x1c4] sm:$0xf] %vm748_vm2, %v5413_v56 }
 0x35e   : > { %9187 = vmatmul.mubr.msk.bf16.gmra.mxu1 %vm224_vm0, %v9473_v23  ;;  %v9498_v23 = vld [vmem:[#allocation3 + $0x218] ss:$20 sps:$4 sm:$0xff]  }
 0x35f   : > { %v5415_v54 = vpop.permute.xlu1 %5414  ;;  %v4969_v44 = vpop.permute.xlu0 %4968  ;;  %9190 = vmatprep.mubr.msk.bf16.mxu1 %vm224_vm0, %v9474_v38  ;;  %v9477_v36 = vld [vmem:[#allocation3 + $0x19c] ss:$20 sps:$4 sm:$0xff]  }
 0x360   : > { %5487 = vst.msk [vmem:[#allocation3 + $0x1d8] sm:$0xf] %vm748_vm2, %v5415_v54  ;;  %5040 = vst.msk [vmem:[#allocation3 + $0x1e8] sm:$0xf] %vm748_vm2, %v4969_v44  ;;  %6800 = vmatprep.mubr.bf16.mxu0 %v9477_v36  ;;  %v8906_v43 = vpop.f32.mrf.mxu1  ;;  %v9499_v54 = vld [vmem:[#allocation3 + $0x240] ss:$20 sps:$4 sm:$0xff]  }
 0x361   : > { %6801 = vmatmul.mubr.bf16.gmra.mxu0 %v9475_v3 }
 0x362   : > { %v8907_v62 = vpop.f32.mrf.mxu1 }
 0x363   : > { %v4971_v49 = vpop.permute.xlu1 %4970  ;;  %v5417_v1 = vpop.permute.xlu0 %5416  ;;  %v8908_v25 = vadd.f32 %v8907_v62, %v8906_v43  ;;  %v9480_v20 = vld [vmem:[#allocation3 + $0x1c0] ss:$20 sps:$4 sm:$0xff]  }
 0x364   : > { %5041 = vst.msk [vmem:[#allocation3 + $0x1fc] sm:$0xf] %vm748_vm2, %v4971_v49  ;;  %5488 = vst.msk [vmem:[#allocation3 + $0x1ec] sm:$0xf] %vm748_vm2, %v5417_v1  ;;  %v8909_v50 = vpop.f32.mrf.mxu1 }
 0x365   : > { %v6562_v9 = vadd.f32 %v8908_v25, %v11503_v41 }
 0x366   : > { %9191 = vmatmul.mubr.msk.bf16.gmra.mxu1 %vm224_vm0, %v9478_v47  ;;  %v8910_v4 = vpop.f32.mrf.mxu1  ;;  %v9503_v47 = vld [vmem:[#allocation3 + $0x268] ss:$20 sps:$4 sm:$0xff]  }
 0x367   : > { %v5419_v29 = vpop.permute.xlu1 %5418  ;;  %9194 = vmatprep.mubr.msk.bf16.mxu1 %vm224_vm0, %v9479_v5  ;;  %v9482_v16 = vld [vmem:[#allocation3 + $0x1c4] ss:$20 sps:$4 sm:$0xff]   ;;  %v4973_v55 = vpop.permute.xlu0 %4972  ;;  %v8911_v63 = vadd.f32 %v8910_v4, %v8909_v50 }
 0x368   : > { %5489 = vst.msk [vmem:[#allocation3 + $0x200] sm:$0xf] %vm748_vm2, %v5419_v29  ;;  %5042 = vst.msk [vmem:[#allocation3 + $0x210] sm:$0xf] %vm748_vm2, %v4973_v55  ;;  %6808 = vmatprep.mubr.bf16.mxu0 %v9482_v16  ;;  %v8912_v35 = vpop.f32.mrf.mxu1  ;;  %v9018_v58 = vpop.f32.mrf.mxu0 }
 0x369   : > { %6809 = vmatmul.mubr.bf16.gmra.mxu0 %v9480_v20  ;;  %v6565_v33 = vadd.f32 %v8911_v63, %v11503_v41 }
 0x36a   : > { %v8913_v17 = vpop.f32.mrf.mxu1  ;;  %v9019_v12 = vpop.f32.mrf.mxu0 }
 0x36b   : > { %v4975_v7 = vpop.permute.xlu1 %4974  ;;  %v5421_v21 = vpop.permute.xlu0 %5420  ;;  %v11507_v60 = vadd.f32 %v8913_v17, %v8912_v35  ;;  %v9020_v57 = vadd.f32 %v9019_v12, %v9018_v58  ;;  %v9485_v28 = vld [vmem:[#allocation3 + $0x1e8] ss:$20 sps:$4 sm:$0xff]  }
 0x36c   : > { %5043 = vst.msk [vmem:[#allocation3 + $0x224] sm:$0xf] %vm748_vm2, %v4975_v7  ;;  %5490 = vst.msk [vmem:[#allocation3 + $0x214] sm:$0xf] %vm748_vm2, %v5421_v21  ;;  %v8915_v2 = vpop.f32.mrf.mxu1  ;;  %v9021_v0 = vpop.f32.mrf.mxu0 }
 0x36d   : > { %v11514_v48 = vadd.f32 %v9020_v57, %v6562_v9 }
 0x36e   : > { %9195 = vmatmul.mubr.msk.bf16.gmra.mxu1 %vm224_vm0, %v9483_v19  ;;  %v8916_v24 = vpop.f32.mrf.mxu1  ;;  %v9022_v45 = vpop.f32.mrf.mxu0 }
 0x36f   : > { %v5423_v15 = vpop.permute.xlu1 %5422  ;;  %9198 = vmatprep.mubr.msk.bf16.mxu1 %vm224_vm0, %v9484_v18  ;;  %v9487_v26 = vld [vmem:[#allocation3 + $0x1ec] ss:$20 sps:$4 sm:$0xff]   ;;  %v5425_v11 = vpop.permute.xlu0 %5424  ;;  %v11516_v37 = vadd.f32 %v8916_v24, %v8915_v2  ;;  %v9023_v34 = vadd.f32 %v9022_v45, %v9021_v0 }
 0x370   : > { %5491 = vst.msk [vmem:[#allocation3 + $0x228] sm:$0xf] %vm748_vm2, %v5423_v15  ;;  %5492 = vst.msk [vmem:[#allocation3 + $0x23c] sm:$0xf] %vm748_vm2, %v5425_v11  ;;  %6816 = vmatprep.mubr.bf16.mxu0 %v9487_v26 }
 0x371   : > { %6817 = vmatmul.mubr.bf16.gmra.mxu0 %v9485_v28  ;;  %v11521_v42 = vadd.f32 %v9023_v34, %v6565_v33 }
 0x373   : > { %v5427_v39 = vpop.permute.xlu1 %5426  ;;  %v4977_v32 = vpop.permute.xlu0 %4976  ;;  %v9490_v27 = vld [vmem:[#allocation3 + $0x210] ss:$20 sps:$4 sm:$0xff]  }
 0x374   : > { %5493 = vst.msk [vmem:[#allocation3 + $0x250] sm:$0xf] %vm748_vm2, %v5427_v39  ;;  %5044 = vst.msk [vmem:[#allocation3 + $0x238] sm:$0xf] %vm748_vm2, %v4977_v32 }
 0x376   : > { %9199 = vmatmul.mubr.msk.bf16.gmra.mxu1 %vm224_vm0, %v9488_v40 }
 0x377   : > { %v4979_v22 = vpop.permute.xlu1 %4978  ;;  %9202 = vmatprep.mubr.msk.bf16.mxu1 %vm224_vm0, %v9489_v10  ;;  %v9492_v59 = vld [vmem:[#allocation3 + $0x214] ss:$20 sps:$4 sm:$0xff]   ;;  %v4981_v8 = vpop.permute.xlu0 %4980 }
 0x378   : > { %5045 = vst.msk [vmem:[#allocation3 + $0x24c] sm:$0xf] %vm748_vm2, %v4979_v22  ;;  %5046 = vst.msk [vmem:[#allocation3 + $0x260] sm:$0xf] %vm748_vm2, %v4981_v8  ;;  %6824 = vmatprep.mubr.bf16.mxu0 %v9492_v59 }
 0x379   : > { %6825 = vmatmul.mubr.bf16.gmra.mxu0 %v9490_v27 }
 0x37b   : > { %v4983_v13 = vpop.permute.xlu1 %4982  ;;  %v5429_v14 = vpop.permute.xlu0 %5428  ;;  %v9497_v61 = vld [vmem:[#allocation3 + $0x23c] ss:$20 sps:$4 sm:$0xff]  }
 0x37c   : > { %5047 = vst.msk [vmem:[#allocation3 + $0x274] sm:$0xf] %vm748_vm2, %v4983_v13  ;;  %5494 = vst.msk [vmem:[#allocation3 + $0x264] sm:$0xf] %vm748_vm2, %v5429_v14  ;;  %6832 = vmatprep.mubr.bf16.mxu0 %v9497_v61 }
 0x37e   : > { %9203 = vmatmul.mubr.msk.bf16.gmra.mxu1 %vm224_vm0, %v9493_v52  ;;  %v8918_v6 = vpop.f32.mrf.mxu1 }
 0x37f   : > { %v5431_v31 = vpop.permute.xlu1 %5430  ;;  %9206 = vmatprep.mubr.msk.bf16.mxu1 %vm224_vm0, %v9494_v53  ;;  %v9495_v30 = vld [vmem:[#allocation3 + $0x238] ss:$20 sps:$4 sm:$0xff]  }
 0x380   : > { %5495 = vst.msk [vmem:[#allocation3 + $0x278] sm:$0xf] %vm748_vm2, %v5431_v31  ;;  %v8919_v46 = vpop.f32.mrf.mxu1 }
 0x381   : > { %v11532_v51 = vadd.f32 %v8919_v46, %v8918_v6  ;;  %6833 = vmatmul.mubr.bf16.gmra.mxu0 %v9495_v30 }
 0x382   : > { %v8921_v56 = vpop.f32.mrf.mxu1 }
 0x383   : > { %v9500_v36 = vld [vmem:[#allocation3 + $0x260] ss:$20 sps:$4 sm:$0xff]  }
 0x384   : > { %v8922_v38 = vpop.f32.mrf.mxu1 }
 0x385   : > { %v11534_v44 = vadd.f32 %v8922_v38, %v8921_v56 }
 0x386   : > { %9207 = vmatmul.mubr.msk.bf16.gmra.mxu1 %vm224_vm0, %v9498_v23  ;;  %v8924_v3 = vpop.f32.mrf.mxu1  ;;  %v11547_v35 = vpop.f32.mrf.mxu0 }
 0x387   : > { %9210 = vmatprep.mubr.msk.bf16.mxu1 %vm224_vm0, %v9499_v54  ;;  %v9502_v49 = vld [vmem:[#allocation3 + $0x264] ss:$20 sps:$4 sm:$0xff]  }
 0x388   : > { %v8925_v43 = vpop.f32.mrf.mxu1  ;;  %6840 = vmatprep.mubr.bf16.mxu0 %v9502_v49  ;;  %v11551_v17 = vpop.f32.mrf.mxu0 }
 0x389   : > { %v11538_v1 = vadd.f32 %v8925_v43, %v8924_v3  ;;  %6841 = vmatmul.mubr.bf16.gmra.mxu0 %v9500_v36 }
 0x38a   : > { %v8927_v62 = vpop.f32.mrf.mxu1  ;;  %v11555_v12 = vpop.f32.mrf.mxu0 }
 0x38c   : > { %v8928_v5 = vpop.f32.mrf.mxu1  ;;  %v11557_v9 = vpop.f32.mrf.mxu0 }
 0x38d   : > { %v11540_v25 = vadd.f32 %v8928_v5, %v8927_v62 }
 0x38e   : > { %9211 = vmatmul.mubr.msk.bf16.gmra.mxu1 %vm224_vm0, %v9503_v47  ;;  %v11559_v57 = vpop.f32.mrf.mxu0 }
 0x390   : > { %v11561_v15 = vpop.f32.mrf.mxu0 }
 0x392   : > { %v11563_v26 = vpop.f32.mrf.mxu0 }
 0x394   : > { %v11567_v45 = vpop.f32.mrf.mxu0 }
 0x39f   : > { %v8930_v29 = vpop.f32.mrf.mxu1 }
 0x3a1   : > { %v8931_v50 = vpop.f32.mrf.mxu1 }
 0x3a2   : > { %v11543_v20 = vadd.f32 %v8931_v50, %v8930_v29 }
 0x3a3   : > { %v8933_v16 = vpop.f32.mrf.mxu1 }
 0x3a5   : > { %v8934_v55 = vpop.f32.mrf.mxu1 }
 0x3a6   : > { %v11545_v4 = vadd.f32 %v8934_v55, %v8933_v16 }
 0x3a7   : > { %v8936_v63 = vpop.f32.mrf.mxu1  ;;  %v11571_v39 = vpop.f32.mrf.mxu0 }
 0x3a9   : > { %v8937_v7 = vpop.f32.mrf.mxu1  ;;  %v11575_v22 = vpop.f32.mrf.mxu0 }
 0x3aa   : > { %v11549_v58 = vadd.f32 %v8937_v7, %v8936_v63 }
 0x3ab   : > { %v8939_v21 = vpop.f32.mrf.mxu1  ;;  %v11579_v8 = vpop.f32.mrf.mxu0 }
 0x3ad   : > { %v8940_v19 = vpop.f32.mrf.mxu1  ;;  %v11581_v13 = vpop.f32.mrf.mxu0 }
 0x3ae   : > { %v11553_v18 = vadd.f32 %v8940_v19, %v8939_v21 }
 0x3af   : > { %v11583_v52 = vpop.f32.mrf.mxu0 }
 0x3b1   : > { %v11587_v30 = vpop.f32.mrf.mxu0 }
 0x3b3   : > { %v11591_v23 = vpop.f32.mrf.mxu0 }
 0x3b5   : > { %v11595_v36 = vpop.f32.mrf.mxu0 }
 0x3bf   : > { %v8942_v2 = vpop.f32.mrf.mxu1 }
 0x3c1   : > { %v8943_v28 = vpop.f32.mrf.mxu1 }
 0x3c2   : > { %v11565_v0 = vadd.f32 %v8943_v28, %v8942_v2 }
 0x3c3   : > { %v8945_v11 = vpop.f32.mrf.mxu1 }
 0x3c5   : > { %v8946_v24 = vpop.f32.mrf.mxu1 }
 0x3c6   : > { %v11569_v33 = vadd.f32 %v8946_v24, %v8945_v11  ;;  %v11599_v47 = vpop.f32.mrf.mxu0 }
 0x3c7   : > { %v8948_v34 = vpop.f32.mrf.mxu1 }
 0x3c8   : > { %v11603_v50 = vpop.f32.mrf.mxu0 }
 0x3c9   : > { %v8949_v32 = vpop.f32.mrf.mxu1 }
 0x3ca   : > { %v11573_v40 = vadd.f32 %v8949_v32, %v8948_v34  ;;  %v11607_v7 = vpop.f32.mrf.mxu0 }
 0x3cb   : > { %v8951_v10 = vpop.f32.mrf.mxu1 }
 0x3cc   : > { %v11611_v28 = vpop.f32.mrf.mxu0 }
 0x3cd   : > { %v8952_v27 = vpop.f32.mrf.mxu1 }
 0x3ce   : > { %v11577_v59 = vadd.f32 %v8952_v27, %v8951_v10  ;;  %v11615_v32 = vpop.f32.mrf.mxu0 }
 0x3d6   : > { %v8954_v14 = vpop.f32.mrf.mxu1 }
 0x3d8   : > { %v8955_v53 = vpop.f32.mrf.mxu1 }
 0x3d9   : > { %v11585_v31 = vadd.f32 %v8955_v53, %v8954_v14  ;;  %v11619_v53 = vpop.f32.mrf.mxu0 }
 0x3da   : > { %v8957_v6 = vpop.f32.mrf.mxu1 }
 0x3dc   : > { %v8958_v61 = vpop.f32.mrf.mxu1 }
 0x3dd   : > { %v11589_v46 = vadd.f32 %v8958_v61, %v8957_v6 }
 0x3de   : > { %v8960_v56 = vpop.f32.mrf.mxu1 }
 0x3e0   : > { %v8961_v38 = vpop.f32.mrf.mxu1 }
 0x3e1   : > { %v11593_v54 = vadd.f32 %v8961_v38, %v8960_v56  ;;  %v11623_v38 = vpop.f32.mrf.mxu0 }
 0x3e2   : > { %v8963_v3 = vpop.f32.mrf.mxu1 }
 0x3e4   : > { %v8964_v49 = vpop.f32.mrf.mxu1 }
 0x3e5   : > { %v11597_v43 = vadd.f32 %v8964_v49, %v8963_v3 }
 0x3e6   : > { %v8966_v62 = vpop.f32.mrf.mxu1 }
 0x3e8   : > { %v8967_v5 = vpop.f32.mrf.mxu1 }
 0x3e9   : > { %v11601_v29 = vadd.f32 %v8967_v5, %v8966_v62  ;;  %v11627_v5 = vpop.f32.mrf.mxu0 }
 0x3ea   : > { %v8969_v16 = vpop.f32.mrf.mxu1 }
 0x3eb   : > { %11957 = vst [vmem:[#allocation7_spill] sm:$0xff] %v11601_v29  ;;  %v7045_v29 = vld [vmem:[%s9709_s17 + $0x18] sm:$0xff] }
 0x3ec   : > { %v8970_v55 = vpop.f32.mrf.mxu1 }
 0x3ed   : > { %v11605_v63 = vadd.f32 %v8970_v55, %v8969_v16 }
 0x3ee   : > { %v8972_v21 = vpop.f32.mrf.mxu1 }
 0x3ef   : > { %11958 = vst [vmem:[#allocation8_spill] sm:$0xff] %v11605_v63  ;;  %v7042_v63 = vld [vmem:[%s9709_s17] sm:$0xff] }
 0x3f0   : > { %v8973_v19 = vpop.f32.mrf.mxu1 }
 0x3f1   : > { %v11609_v2 = vadd.f32 %v8973_v19, %v8972_v21 }
 0x3f2   : > { %v8975_v11 = vpop.f32.mrf.mxu1 }
 0x3f4   : > { %v8976_v24 = vpop.f32.mrf.mxu1 }
 0x3f5   : > { %v11613_v34 = vadd.f32 %v8976_v24, %v8975_v11 }
 0x3f6   : > { %v8978_v10 = vpop.f32.mrf.mxu1 }
 0x3f7   : > { %11959 = vst [vmem:[#allocation9_spill] sm:$0xff] %v11613_v34 }
 0x3f8   : > { %v8979_v27 = vpop.f32.mrf.mxu1 }
 0x3f9   : > { %v11617_v14 = vadd.f32 %v8979_v27, %v8978_v10  ;;  %v11629_v55 = vpop.f32.mrf.mxu0 }
 0x3fa   : > { %v8981_v6 = vpop.f32.mrf.mxu1 }
 0x3fb   : > { %11960 = vst [vmem:[#allocation10_spill] sm:$0xff] %v11617_v14  ;;  %v11633_v24 = vpop.f32.mrf.mxu0 }
 0x3fc   : > { %v8982_v61 = vpop.f32.mrf.mxu1 }
 0x3fd   : > { %v11621_v56 = vadd.f32 %v8982_v61, %v8981_v6  ;;  %v11637_v61 = vpop.f32.mrf.mxu0 }
 0x3fe   : > { %v8984_v3 = vpop.f32.mrf.mxu1 }
 0x3ff   : > { %11961 = vst [vmem:[#allocation11_spill] sm:$0xff] %v11621_v56  ;;  %v11643_v14 = vpop.f32.mrf.mxu0 }
 0x400   : > { %v8985_v49 = vpop.f32.mrf.mxu1 }
 0x401   : > { %v11625_v62 = vadd.f32 %v8985_v49, %v8984_v3 }
 0x402   : > { %v8987_v16 = vpop.f32.mrf.mxu1 }
 0x403   : > { %11962 = vst [vmem:[#allocation12_spill] sm:$0xff] %v11625_v62 }
 0x404   : > { %v8988_v21 = vpop.f32.mrf.mxu1 }
 0x405   : > { %v11631_v19 = vadd.f32 %v8988_v21, %v8987_v16  ;;  %v9026_v21 = vadd.f32 %v11551_v17, %v11547_v35  ;;  %v6573_v17 = vadd.f32 %v11516_v37, %v11503_v41  ;;  %v9032_v37 = vadd.f32 %v11561_v15, %v11559_v57 }
 0x406   : > { %v8990_v11 = vpop.f32.mrf.mxu1 }
 0x407   : > { %11963 = vst [vmem:[#allocation13_spill] sm:$0xff] %v11631_v19 }
 0x408   : > { %v8991_v10 = vpop.f32.mrf.mxu1 }
 0x409   : > { %v11635_v27 = vadd.f32 %v8991_v10, %v8990_v11  ;;  %v6570_v10 = vadd.f32 %v11507_v60, %v11503_v41  ;;  %v9038_v60 = vadd.f32 %v11575_v22, %v11571_v39 }
 0x40a   : > { %v8993_v6 = vpop.f32.mrf.mxu1 }
 0x40b   : > { %11964 = vst [vmem:[#allocation14_spill] sm:$0xff] %v11635_v27  ;;  %v6731_v27 = vadd.f32 %v9026_v21, %v6570_v10  ;;  %v6586_v10 = vadd.f32 %v11538_v1, %v11503_v41  ;;  %v9041_v1 = vadd.f32 %v11581_v13, %v11579_v8  ;;  %v9035_v13 = vadd.f32 %v11567_v45, %v11563_v26 }
 0x40c   : > { %v8994_v3 = vpop.f32.mrf.mxu1 }
 0x40d   : > { %v11639_v49 = vadd.f32 %v8994_v3, %v8993_v6 }
 0x40e   : > { %v11641_v56 = vpop.f32.mrf.mxu1 }
 0x40f   : > { %11965 = vst [vmem:[#allocation15_spill] sm:$0xff] %v11639_v49  ;;  %11966 = vst [vmem:[#allocation16_spill] sm:$0xff] %v11641_v56  ;;  %v9029_v49 = vadd.f32 %v11557_v9, %v11555_v12 }
 0x410   : > { %v11645_v16 = vpop.f32.mrf.mxu1 }
 0x411   : > { %11967 = vst [vmem:[#allocation17_spill] sm:$0xff] %v11645_v16  ;;  %v11651_v11 = vpop.f32.mrf.mxu0  ;;  %v6734_v21 = vadd.f32 %v9029_v49, %v6573_v17  ;;  %v6747_v49 = vadd.f32 %v9038_v60, %v6586_v10  ;;  %v7043_v17 = vld [vmem:[%s9709_s17 + $0x8] sm:$0xff] }
 0x412   : > { %v11649_v19 = vpop.f32.mrf.mxu1 }
 0x413   : > { %11968 = vst [vmem:[#allocation18_spill] sm:$0xff] %v11649_v19  ;;  %v11657_v3 = vpop.f32.mrf.mxu0 }
 0x414   : > { %v11655_v6 = vpop.f32.mrf.mxu1 }
 0x415   : > { %11969 = vst [vmem:[#allocation19_spill] sm:$0xff] %v11655_v6  ;;  %v11662_v16 = vpop.f32.mrf.mxu0  ;;  %v7044_v6 = vld [vmem:[%s9709_s17 + $0x10] sm:$0xff] }
 0x416   : > { %v9184_v35 = vpop.f32.mrf.mxu1 }
 0x417   : > { %v6892_v19 = vadd.f32 %v9184_v35, %v6731_v27  ;;  %v11671_v56 = vpop.f32.mrf.mxu0 }
 0x418   : > { %v6883_v62 = vpop.f32.mrf.mxu1 }
 0x419   : > { %v7012_v12 = vmax.f32 %v6892_v19, 0.0  ;;  %v6884_v9 = vadd.f32 %v6883_v62, %v11514_v48  ;;  %v11679_v27 = vpop.f32.mrf.mxu0  ;;  %v6578_v19 = vadd.f32 %v11532_v51, %v11503_v41  ;;  %v6589_v51 = vadd.f32 %v11540_v25, %v11503_v41 }
 0x41a   : > { %v9185_v35 = vpop.f32.mrf.mxu1  ;;  %v9050_v25 = vadd.f32 %v11603_v50, %v11599_v47 }
 0x41b   : > { %v7076_v39 = vadd.f32 %v7044_v6, %v7012_v12  ;;  %v7010_v22 = vmax.f32 %v6884_v9, 0.0  ;;  %v6895_v34 = vadd.f32 %v9185_v35, %v6734_v21  ;;  %v11684_v48 = vpop.f32.mrf.mxu0  ;;  %v6739_v8 = vadd.f32 %v9032_v37, %v6578_v19  ;;  %v7048_v21 = vld [vmem:[%s9709_s17 + $0x30] sm:$0xff] }
 0x41c   : > { %v6886_v62 = vpop.f32.mrf.mxu1 }
 0x41d   : > { %7108 = vst.msk [vmem:[%s11688_s6 + $0x10] sm:$0xff] %vm224_vm0, %v7076_v39  ;;  %v7074_v57 = vadd.f32 %v7042_v63, %v7010_v22  ;;  %v7013_v15 = vmax.f32 %v6895_v34, 0.0  ;;  %v6887_v6 = vadd.f32 %v6886_v62, %v11521_v42  ;;  %v11696_v60 = vpop.f32.mrf.mxu0  ;;  %v6581_v42 = vadd.f32 %v11534_v44, %v11503_v41  ;;  %v7046_v22 = vld [vmem:[%s9709_s17 + $0x20] sm:$0xff] }
 0x41e   : > { %v9188_v12 = vpop.f32.mrf.mxu1  ;;  %v6602_v39 = vadd.f32 %v11549_v58, %v11503_v41  ;;  %v9044_v44 = vadd.f32 %v11587_v30, %v11583_v52  ;;  %v7049_v58 = vld [vmem:[%s9709_s17 + $0x38] sm:$0xff]  ;;  %v9053_v30 = vadd.f32 %v11611_v28, %v11607_v7 }
 0x41f   : > { %7106 = vst.msk [vmem:[%s11688_s6] sm:$0xff] %vm224_vm0, %v7074_v57  ;;  %v7077_v9 = vadd.f32 %v7045_v29, %v7013_v15  ;;  %v7011_v63 = vmax.f32 %v6887_v6, 0.0  ;;  %v6908_v34 = vadd.f32 %v9188_v12, %v6747_v49  ;;  %v11707_v10 = vpop.f32.mrf.mxu0  ;;  %v6750_v29 = vadd.f32 %v9041_v1, %v6589_v51 }
 0x420   : > { %v6899_v37 = vpop.f32.mrf.mxu1  ;;  %v6742_v57 = vadd.f32 %v9035_v13, %v6581_v42  ;;  %v6594_v1 = vadd.f32 %v11543_v20, %v11503_v41  ;;  %v6763_v52 = vadd.f32 %v9050_v25, %v6602_v39  ;;  %v7047_v20 = vld [vmem:[%s9709_s17 + $0x28] sm:$0xff]  ;;  %v6597_v25 = vadd.f32 %v11545_v4, %v11503_v41  ;;  %v7050_v39 = vld [vmem:[%s9709_s17 + $0x40] sm:$0xff] }
 0x421   : > { %7109 = vst.msk [vmem:[%s11688_s6 + $0x18] sm:$0xff] %vm224_vm0, %v7077_v9  ;;  %v7075_v26 = vadd.f32 %v7043_v17, %v7011_v63  ;;  %v7016_v45 = vmax.f32 %v6908_v34, 0.0  ;;  %v6900_v35 = vadd.f32 %v6899_v37, %v6739_v8  ;;  %v11716_v47 = vpop.f32.mrf.mxu0  ;;  %v6605_v8 = vadd.f32 %v11553_v18, %v11503_v41 }
 0x422   : > { %v9189_v50 = vpop.f32.mrf.mxu1  ;;  %v6755_v63 = vadd.f32 %v9044_v44, %v6594_v1  ;;  %v9047_v34 = vadd.f32 %v11595_v36, %v11591_v23  ;;  %v9062_v18 = vadd.f32 %v11633_v24, %v11629_v55  ;;  %v9056_v4 = vadd.f32 %v11619_v53, %v11615_v32 }
 0x423   : > { %7107 = vst.msk [vmem:[%s11688_s6 + $0x8] sm:$0xff] %vm224_vm0, %v7075_v26  ;;  %v7080_v19 = vadd.f32 %v7048_v21, %v7016_v45  ;;  %v7014_v62 = vmax.f32 %v6900_v35, 0.0  ;;  %v6911_v49 = vadd.f32 %v9189_v50, %v6750_v29  ;;  %v11723_v15 = vpop.f32.mrf.mxu0  ;;  %v7052_v21 = vld [vmem:[%s9709_s17 + $0x50] sm:$0xff]  ;;  %v6766_v35 = vadd.f32 %v9053_v30, %v6605_v8  ;;  %v7051_v30 = vld [vmem:[%s9709_s17 + $0x48] sm:$0xff] }
 0x424   : > { %v6902_v6 = vpop.f32.mrf.mxu1  ;;  %v6618_v29 = vadd.f32 %v11573_v40, %v11503_v41  ;;  %v7053_v40 = vld [vmem:[%s9709_s17 + $0x58] sm:$0xff]  ;;  %v9065_v32 = vadd.f32 %v11643_v14, %v11637_v61 }
 0x425   : > { %7112 = vst.msk [vmem:[%s11688_s6 + $0x30] sm:$0xff] %vm224_vm0, %v7080_v19  ;;  %v7078_v51 = vadd.f32 %v7046_v22, %v7014_v62  ;;  %v7017_v17 = vmax.f32 %v6911_v49, 0.0  ;;  %v6903_v12 = vadd.f32 %v6902_v6, %v6742_v57  ;;  %v11732_v13 = vpop.f32.mrf.mxu0  ;;  %v6758_v19 = vadd.f32 %v9047_v34, %v6597_v25  ;;  %v7054_v25 = vld [vmem:[%s9709_s17 + $0x60] sm:$0xff] }
 0x426   : > { %v9192_v9 = vpop.f32.mrf.mxu1  ;;  %v6610_v62 = vadd.f32 %v11565_v0, %v11503_v41  ;;  %v6779_v1 = vadd.f32 %v9062_v18, %v6618_v29 }
 0x427   : > { %7110 = vst.msk [vmem:[%s11688_s6 + $0x20] sm:$0xff] %vm224_vm0, %v7078_v51  ;;  %v7081_v7 = vadd.f32 %v7049_v58, %v7017_v17  ;;  %v7015_v28 = vmax.f32 %v6903_v12, 0.0  ;;  %v6924_v42 = vadd.f32 %v9192_v9, %v6763_v52  ;;  %v11743_v37 = vpop.f32.mrf.mxu0  ;;  %v6621_v52 = vadd.f32 %v11577_v59, %v11503_v41  ;;  %v7056_v9 = vld [vmem:[%s9709_s17 + $0x70] sm:$0xff] }
 0x428   : > { %v6915_v26 = vpop.f32.mrf.mxu1  ;;  %v6771_v17 = vadd.f32 %v9056_v4, %v6610_v62  ;;  %v9059_v12 = vadd.f32 %v11627_v5, %v11623_v38  ;;  %v9074_v59 = vadd.f32 %v11684_v48, %v11679_v27 }
 0x429   : > { %7113 = vst.msk [vmem:[%s11688_s6 + $0x38] sm:$0xff] %vm224_vm0, %v7081_v7  ;;  %v7079_v23 = vadd.f32 %v7047_v20, %v7015_v28  ;;  %v7020_v36 = vmax.f32 %v6924_v42, 0.0  ;;  %v6916_v45 = vadd.f32 %v6915_v26, %v6755_v63  ;;  %v11752_v55 = vpop.f32.mrf.mxu0  ;;  %v6613_v20 = vadd.f32 %v11569_v33, %v11503_v41 }
 0x42a   : > { %v9193_v24 = vpop.f32.mrf.mxu1  ;;  %v6782_v28 = vadd.f32 %v9065_v32, %v6621_v52  ;;  %v6634_v42 = vadd.f32 %v11593_v54, %v11503_v41  ;;  %v9068_v33 = vadd.f32 %v11657_v3, %v11651_v11  ;;  %v7057_v54 = vld [vmem:[%s9709_s17 + $0x78] sm:$0xff]  ;;  %v9077_v3 = vadd.f32 %v11707_v10, %v11696_v60  ;;  %v7058_v52 = vld [vmem:[%s9709_s17 + $0x80] sm:$0xff] }
 0x42b   : > { %7111 = vst.msk [vmem:[%s11688_s6 + $0x28] sm:$0xff] %vm224_vm0, %v7079_v23  ;;  %v7084_v44 = vadd.f32 %v7052_v21, %v7020_v36  ;;  %v7018_v22 = vmax.f32 %v6916_v45, 0.0  ;;  %v6927_v50 = vadd.f32 %v9193_v24, %v6766_v35  ;;  %v9085_v49 = vpop.f32.mrf.mxu0  ;;  %v6774_v23 = vadd.f32 %v9059_v12, %v6613_v20 }
 0x42c   : > { %v6918_v57 = vpop.f32.mrf.mxu1  ;;  %v6626_v36 = vadd.f32 %v11585_v31, %v11503_v41  ;;  %v6795_v11 = vadd.f32 %v9074_v59, %v6634_v42  ;;  %v6637_v24 = vadd.f32 %v11597_v43, %v11503_v41  ;;  %v7055_v31 = vld [vmem:[%s9709_s17 + $0x68] sm:$0xff]  ;;  %v9086_v43 = vadd.f32 %v9085_v49, %v11752_v55 }
 0x42d   : > { %7116 = vst.msk [vmem:[%s11688_s6 + $0x50] sm:$0xff] %vm224_vm0, %v7084_v44  ;;  %v7082_v53 = vadd.f32 %v7050_v39, %v7018_v22  ;;  %v7021_v58 = vmax.f32 %v6927_v50, 0.0  ;;  %v6919_v6 = vadd.f32 %v6918_v57, %v6758_v19  ;;  %v11766_v0 = vpop.f32.mrf.mxu0  ;;  %v9071_v19 = vadd.f32 %v11671_v56, %v11662_v16  ;;  %v7060_v57 = vld [vmem:[%s9709_s17 + $0x90] sm:$0xff] }
 0x42e   : > { %v9196_v51 = vpop.f32.mrf.mxu1  ;;  %v6787_v50 = vadd.f32 %v9068_v33, %v6626_v36 }
 0x42f   : > { %7114 = vst.msk [vmem:[%s11688_s6 + $0x40] sm:$0xff] %vm224_vm0, %v7082_v53  ;;  %v7085_v14 = vadd.f32 %v7053_v40, %v7021_v58  ;;  %v7019_v61 = vmax.f32 %v6919_v6, 0.0  ;;  %v6940_v8 = vadd.f32 %v9196_v51, %v6779_v1  ;;  %v9088_v63 = vpop.f32.mrf.mxu0  ;;  %v6629_v40 = vadd.f32 %v11589_v46, %v11503_v41 }
 0x430   : > { %v6931_v34 = vpop.f32.mrf.mxu1  ;;  %v6798_v58 = vadd.f32 %v9077_v3, %v6637_v24  ;;  %v6650_v6 = vadd.f32 %v11609_v2, %v11503_v41  ;;  %v9080_v46 = vadd.f32 %v11723_v15, %v11716_v47  ;;  %v9089_v47 = vadd.f32 %v9088_v63, %v11766_v0  ;;  %v11973_v3 = vld [vmem:[#allocation12_spill] sm:$0xff] }
 0x431   : > { %7117 = vst.msk [vmem:[%s11688_s6 + $0x58] sm:$0xff] %vm224_vm0, %v7085_v14  ;;  %v7083_v38 = vadd.f32 %v7051_v30, %v7019_v61  ;;  %v7024_v5 = vmax.f32 %v6940_v8, 0.0  ;;  %v6932_v7 = vadd.f32 %v6931_v34, %v6771_v17  ;;  %v11784_v18 = vpop.f32.mrf.mxu0  ;;  %v6790_v12 = vadd.f32 %v9071_v19, %v6629_v40  ;;  %v11970_v14 = vld [vmem:[#allocation7_spill] sm:$0xff]  ;;  %v7061_v8 = vld [vmem:[%s9709_s17 + $0x98] sm:$0xff] }
 0x432   : > { %v9197_v27 = vpop.f32.mrf.mxu1  ;;  %v6642_v61 = vadd.f32 %v11970_v14, %v11503_v41  ;;  %v6811_v59 = vadd.f32 %v9086_v43, %v6650_v6  ;;  %v7065_v40 = vld [vmem:[%s9709_s17 + $0xb8] sm:$0xff]  ;;  %v7063_v6 = vld [vmem:[%s9709_s17 + $0xa8] sm:$0xff] }
 0x433   : > { %7115 = vst.msk [vmem:[%s11688_s6 + $0x48] sm:$0xff] %vm224_vm0, %v7083_v38  ;;  %v7088_v48 = vadd.f32 %v7056_v9, %v7024_v5  ;;  %v7022_v21 = vmax.f32 %v6932_v7, 0.0  ;;  %v6943_v26 = vadd.f32 %v9197_v27, %v6782_v28  ;;  %v11791_v45 = vpop.f32.mrf.mxu0  ;;  %v11971_v38 = vld [vmem:[#allocation9_spill] sm:$0xff]  ;;  %v7059_v7 = vld [vmem:[%s9709_s17 + $0x88] sm:$0xff] }
 0x434   : > { %v6934_v35 = vpop.f32.mrf.mxu1  ;;  %v6653_v5 = vadd.f32 %v11971_v38, %v11503_v41  ;;  %v6803_v33 = vadd.f32 %v9080_v46, %v6642_v61  ;;  %v11977_v61 = vld [vmem:[#allocation16_spill] sm:$0xff]  ;;  %v7066_v38 = vld [vmem:[%s9709_s17 + $0xc0] sm:$0xff] }
 0x435   : > { %7120 = vst.msk [vmem:[%s11688_s6 + $0x70] sm:$0xff] %vm224_vm0, %v7088_v48  ;;  %v7086_v29 = vadd.f32 %v7054_v25, %v7022_v21  ;;  %v7025_v4 = vmax.f32 %v6943_v26, 0.0  ;;  %v6935_v39 = vadd.f32 %v6934_v35, %v6774_v23  ;;  %v11800_v44 = vpop.f32.mrf.mxu0  ;;  %v9083_v25 = vadd.f32 %v11743_v37, %v11732_v13  ;;  %v11972_v48 = vld [vmem:[#allocation8_spill] sm:$0xff]  ;;  %v7064_v23 = vld [vmem:[%s9709_s17 + $0xb0] sm:$0xff] }
 0x436   : > { %v9200_v22 = vpop.f32.mrf.mxu1  ;;  %v6645_v21 = vadd.f32 %v11972_v48, %v11503_v41  ;;  %v6814_v37 = vadd.f32 %v9089_v47, %v6653_v5  ;;  %v11980_v48 = vld [vmem:[#allocation18_spill] sm:$0xff] }
 0x437   : > { %7118 = vst.msk [vmem:[%s11688_s6 + $0x60] sm:$0xff] %vm224_vm0, %v7086_v29  ;;  %v7089_v60 = vadd.f32 %v7057_v54, %v7025_v4  ;;  %v7023_v10 = vmax.f32 %v6935_v39, 0.0  ;;  %v6956_v62 = vadd.f32 %v9200_v22, %v6795_v11  ;;  %v11810_v1 = vpop.f32.mrf.mxu0  ;;  %v6666_v29 = vadd.f32 %v11973_v3, %v11503_v41  ;;  %v7062_v39 = vld [vmem:[%s9709_s17 + $0xa0] sm:$0xff]  ;;  %v7067_v3 = vld [vmem:[%s9709_s17 + $0xc8] sm:$0xff] }
 0x438   : > { %v6947_v32 = vpop.f32.mrf.mxu1  ;;  %v9092_v4 = vadd.f32 %v11791_v45, %v11784_v18 }
 0x439   : > { %7121 = vst.msk [vmem:[%s11688_s6 + $0x78] sm:$0xff] %vm224_vm0, %v7089_v60  ;;  %v7087_v56 = vadd.f32 %v7055_v31, %v7023_v10  ;;  %v7028_v16 = vmax.f32 %v6956_v62, 0.0  ;;  %v6948_v53 = vadd.f32 %v6947_v32, %v6787_v50  ;;  %v9096_v55 = vpop.f32.mrf.mxu0  ;;  %v6806_v60 = vadd.f32 %v9083_v25, %v6645_v21  ;;  %v11974_v10 = vld [vmem:[#allocation10_spill] sm:$0xff]  ;;  %v11981_v21 = vld [vmem:[#allocation19_spill] sm:$0xff] }
 0x43a   : > { %v9201_v49 = vpop.f32.mrf.mxu1  ;;  %v6658_v62 = vadd.f32 %v11974_v10, %v11503_v41 }
 0x43b   : > { %7119 = vst.msk [vmem:[%s11688_s6 + $0x68] sm:$0xff] %vm224_vm0, %v7087_v56  ;;  %v7092_v30 = vadd.f32 %v7060_v57, %v7028_v16  ;;  %v7026_v51 = vmax.f32 %v6948_v53, 0.0  ;;  %v6959_v17 = vadd.f32 %v9201_v49, %v6798_v58  ;;  %v9097_v2 = vpop.f32.mrf.mxu0  ;;  %v11975_v53 = vld [vmem:[#allocation13_spill] sm:$0xff]  ;;  %v9095_v49 = vadd.f32 %v11810_v1, %v11800_v44 }
 0x43c   : > { %v6950_v20 = vpop.f32.mrf.mxu1  ;;  %v9098_v26 = vadd.f32 %v9097_v2, %v9096_v55  ;;  %v6669_v58 = vadd.f32 %v11975_v53, %v11503_v41  ;;  %v6819_v55 = vadd.f32 %v9092_v4, %v6658_v62 }
 0x43d   : > { %7124 = vst.msk [vmem:[%s11688_s6 + $0x90] sm:$0xff] %vm224_vm0, %v7092_v30  ;;  %v7090_v15 = vadd.f32 %v7058_v52, %v7026_v51  ;;  %v7029_v9 = vmax.f32 %v6959_v17, 0.0  ;;  %v6951_v34 = vadd.f32 %v6950_v20, %v6790_v12  ;;  %v9099_v28 = vpop.f32.mrf.mxu0  ;;  %v11976_v12 = vld [vmem:[#allocation11_spill] sm:$0xff]  ;;  %v7068_v20 = vld [vmem:[%s9709_s17 + $0xd0] sm:$0xff] }
 0x43e   : > { %v9204_v42 = vpop.f32.mrf.mxu1  ;;  %v6827_v32 = vadd.f32 %v9098_v26, %v6666_v29  ;;  %v6661_v14 = vadd.f32 %v11976_v12, %v11503_v41  ;;  %v9001_v26 = vadd.f32 %v11981_v21, %v11980_v48 }
 0x43f   : > { %7122 = vst.msk [vmem:[%s11688_s6 + $0x80] sm:$0xff] %vm224_vm0, %v7090_v15  ;;  %v7093_v0 = vadd.f32 %v7061_v8, %v7029_v9  ;;  %v7027_v63 = vmax.f32 %v6951_v34, 0.0  ;;  %v6972_v27 = vadd.f32 %v9204_v42, %v6811_v59  ;;  %v9100_v36 = vpop.f32.mrf.mxu0  ;;  %v11978_v8 = vld [vmem:[#allocation17_spill] sm:$0xff] }
 0x440   : > { %v6963_v54 = vpop.f32.mrf.mxu1  ;;  %v9101_v18 = vadd.f32 %v9100_v36, %v9099_v28  ;;  %v8998_v2 = vadd.f32 %v11978_v8, %v11977_v61  ;;  %v6822_v25 = vadd.f32 %v9095_v49, %v6661_v14  ;;  %v6685_v10 = vadd.f32 %v9001_v26, %v11503_v41 }
 0x441   : > { %7125 = vst.msk [vmem:[%s11688_s6 + $0x98] sm:$0xff] %vm224_vm0, %v7093_v0  ;;  %v7091_v35 = vadd.f32 %v7059_v7, %v7027_v63  ;;  %v7032_v11 = vmax.f32 %v6972_v27, 0.0  ;;  %v6964_v13 = vadd.f32 %v6963_v54, %v6803_v33  ;;  %v9102_v24 = vpop.f32.mrf.mxu0  ;;  %v11979_v0 = vld [vmem:[#allocation14_spill] sm:$0xff] }
 0x442   : > { %v9205_v31 = vpop.f32.mrf.mxu1  ;;  %v6830_v9 = vadd.f32 %v9101_v18, %v6669_v58  ;;  %v6674_v63 = vadd.f32 %v11979_v0, %v11503_v41  ;;  %v6682_v27 = vadd.f32 %v8998_v2, %v11503_v41 }
 0x443   : > { %7123 = vst.msk [vmem:[%s11688_s6 + $0x88] sm:$0xff] %vm224_vm0, %v7091_v35  ;;  %v7096_v22 = vadd.f32 %v7064_v23, %v7032_v11  ;;  %v7030_v50 = vmax.f32 %v6964_v13, 0.0  ;;  %v6975_v19 = vadd.f32 %v9205_v31, %v6814_v37  ;;  %v9103_v43 = vpop.f32.mrf.mxu0  ;;  %v7069_v23 = vld [vmem:[%s9709_s17 + $0xd8] sm:$0xff] }
 0x444   : > { %v6966_v57 = vpop.f32.mrf.mxu1  ;;  %v9104_v34 = vadd.f32 %v9103_v43, %v9102_v24 }
 0x445   : > { %7128 = vst.msk [vmem:[%s11688_s6 + $0xb0] sm:$0xff] %vm224_vm0, %v7096_v22  ;;  %v7094_v45 = vadd.f32 %v7062_v39, %v7030_v50  ;;  %v7033_v56 = vmax.f32 %v6975_v19, 0.0  ;;  %v6967_v16 = vadd.f32 %v6966_v57, %v6806_v60  ;;  %v9105_v46 = vpop.f32.mrf.mxu0  ;;  %v11982_v19 = vld [vmem:[#allocation15_spill] sm:$0xff] }
 0x446   : > { %v9208_v52 = vpop.f32.mrf.mxu1  ;;  %v6835_v39 = vadd.f32 %v9104_v34, %v6674_v63  ;;  %v6677_v60 = vadd.f32 %v11982_v19, %v11503_v41 }
 0x447   : > { %7126 = vst.msk [vmem:[%s11688_s6 + $0xa0] sm:$0xff] %vm224_vm0, %v7094_v45  ;;  %v7097_v30 = vadd.f32 %v7065_v40, %v7033_v56  ;;  %v7031_v51 = vmax.f32 %v6967_v16, 0.0  ;;  %v6988_v17 = vadd.f32 %v9208_v52, %v6827_v32  ;;  %v9106_v59 = vpop.f32.mrf.mxu0  ;;  %v7072_v45 = vld [vmem:[%s9709_s17 + $0xf0] sm:$0xff]  ;;  %v7070_v56 = vld [vmem:[%s9709_s17 + $0xe0] sm:$0xff] }
 0x448   : > { %v6979_v47 = vpop.f32.mrf.mxu1  ;;  %v9107_v24 = vadd.f32 %v9106_v59, %v9105_v46 }
 0x449   : > { %7129 = vst.msk [vmem:[%s11688_s6 + $0xb8] sm:$0xff] %vm224_vm0, %v7097_v30  ;;  %v7095_v15 = vadd.f32 %v7063_v6, %v7031_v51  ;;  %v7036_v44 = vmax.f32 %v6988_v17, 0.0  ;;  %v6980_v1 = vadd.f32 %v6979_v47, %v6819_v55  ;;  %v9108_v5 = vpop.f32.mrf.mxu0  ;;  %v7073_v51 = vld [vmem:[%s9709_s17 + $0xf8] sm:$0xff]  ;;  %v7071_v17 = vld [vmem:[%s9709_s17 + $0xe8] sm:$0xff]  ;;  %s9505_s17 = scalar_lea.vmem %s11901_s8, 4096 }
 0x44a   : > { %v9209_v7 = vpop.f32.mrf.mxu1  ;;  %v6838_v6 = vadd.f32 %v9107_v24, %v6677_v60  ;;  %p9506_p11 = scmp.ne.s32.totalorder %s11901_s8, %s9505_s17  ;;  %p9513_p1 = scmp.lt.s32.totalorder %s9511_s14, %s9505_s17 }
 0x44b   : > { %7127 = vst.msk [vmem:[%s11688_s6 + $0xa8] sm:$0xff] %vm224_vm0, %v7095_v15  ;;  %v7100_v28 = vadd.f32 %v7068_v20, %v7036_v44  ;;  %v7034_v42 = vmax.f32 %v6980_v1, 0.0  ;;  %v6991_v33 = vadd.f32 %v9209_v7, %v6830_v9  ;;  %v9109_v36 = vpop.f32.mrf.mxu0 }
 0x44c   : > { %v6982_v54 = vpop.f32.mrf.mxu1  ;;  %v9110_v13 = vadd.f32 %v9109_v36, %v9108_v5  ;;  %p9507_p12 = pnand %p9506_p11, %p9640_p5  ;;  %p9514_p2 = por %p9513_p1, %p9512_p0 }
 0x44d   : > { %7132 = vst.msk [vmem:[%s11688_s6 + $0xd0] sm:$0xff] %vm224_vm0, %v7100_v28  ;;  %v7098_v35 = vadd.f32 %v7066_v38, %v7034_v42  ;;  %v7037_v11 = vmax.f32 %v6991_v33, 0.0  ;;  %v6983_v37 = vadd.f32 %v6982_v54, %v6822_v25  ;;  %v9111_v29 = vpop.f32.mrf.mxu0 }
 0x44e   : > { %v9212_v4 = vpop.f32.mrf.mxu1  ;;  %v6843_v50 = vadd.f32 %v9110_v13, %v6682_v27  ;;  %p9508_p13 = pneg %p9507_p12 }
 0x44f   : > { %7130 = vst.msk [vmem:[%s11688_s6 + $0xc0] sm:$0xff] %vm224_vm0, %v7098_v35  ;;  %v7101_v31 = vadd.f32 %v7069_v23, %v7037_v11  ;;  %v7035_v22 = vmax.f32 %v6983_v37, 0.0  ;;  %v9112_v62 = vpop.f32.mrf.mxu0 }
 0x450   : > { %v6995_v40 = vpop.f32.mrf.mxu1  ;;  %v7004_v57 = vadd.f32 %v9212_v4, %v6843_v50  ;;  %v9113_v32 = vadd.f32 %v9112_v62, %v9111_v29  ;;  %p9515_p3 = pnand %p9514_p2, %p9508_p13 }
 0x451   : > { %7133 = vst.msk [vmem:[%s11688_s6 + $0xd8] sm:$0xff] %vm224_vm0, %v7101_v31  ;;  %v7099_v43 = vadd.f32 %v7067_v3, %v7035_v22  ;;  %v6996_v18 = vadd.f32 %v6995_v40, %v6835_v39 }
 0x452   : > { %v9213_v16 = vpop.f32.mrf.mxu1  ;;  %v7040_v41 = vmax.f32 %v7004_v57, 0.0  ;;  %v6846_v58 = vadd.f32 %v9113_v32, %v6685_v10 }
 0x453   : > { %7131 = vst.msk [vmem:[%s11688_s6 + $0xc8] sm:$0xff] %vm224_vm0, %v7099_v43  ;;  %v7038_v53 = vmax.f32 %v6996_v18, 0.0 }
 0x454   : > { %v6998_v46 = vpop.f32.mrf.mxu1  ;;  %v7104_v52 = vadd.f32 %v7072_v45, %v7040_v41  ;;  %v7007_v49 = vadd.f32 %v9213_v16, %v6846_v58 }
 0x455   : > { %v7102_v55 = vadd.f32 %v7070_v56, %v7038_v53  ;;  %v6999_v30 = vadd.f32 %v6998_v46, %v6838_v6 }
 0x456   : > { %7136 = vst.msk [vmem:[%s11688_s6 + $0xf0] sm:$0xff] %vm224_vm0, %v7104_v52  ;;  %v7041_v12 = vmax.f32 %v7007_v49, 0.0 }
 0x457   : > { %7134 = vst.msk [vmem:[%s11688_s6 + $0xe0] sm:$0xff] %vm224_vm0, %v7102_v55  ;;  %v7039_v14 = vmax.f32 %v6999_v30, 0.0 }
 0x458   : > { %v7105_v61 = vadd.f32 %v7073_v51, %v7041_v12 }
 0x459   : > { %v7103_v8 = vadd.f32 %v7071_v17, %v7039_v14 }
 0x45a   : > { %7137 = vst.msk [vmem:[%s11688_s6 + $0xf8] sm:$0xff] %vm224_vm0, %v7105_v61 }
 0x45b   : > { %7135 = vst.msk [vmem:[%s11688_s6 + $0xe8] sm:$0xff] %vm224_vm0, %v7103_v8 }
 0x45c   : > { %9518 = shalt.err (!%p9515_p3)
}
 0x45d   : > { %s9519_s15 = scalar_lea.hbm %s11899_s11, 4096  ;;  %s9523_s23 = scalar_lea.hbm %s11954_s5, 8192 }
 0x45e   : > { %p9520_p4 = scmp.ne.s32.totalorder %s11899_s11, %s9519_s15  ;;  %p9524_p9 = scmp.lt.s32.totalorder %s11899_s11, %s11954_s5 }
 0x45f   : > { %p9525_p10 = scmp.lt.s32.totalorder %s9523_s23, %s9519_s15 }
 0x460   : > { %p9521_p7 = pnand %p9520_p4, %p9640_p5 }
 0x461   : > { %p9526_p11 = por %p9525_p10, %p9524_p9 }
 0x462   : > { %p9522_p8 = pneg %p9521_p7 }
 0x464   : > { %p9527_p12 = pnand %p9526_p11, %p9522_p8 }
 0x466   : > { %9530 = shalt.err (!%p9527_p12)
}
 0x467   : > { %s9570_s6 = smov 128   ;;  %s9571_s7 = smov 8  }
 0x468   : > { %9214 = dma.vmem_to_hbm [thread:$0]  (%p9640_p5), %s11901_s8, 4096, %s11899_s11, %s11909_s22, %s9570_s6, %s9570_s6, %s9571_s7  }
 0x469 PF: > { %p9220_p13 = scmp.ge.s32.totalorder %s9565_s21, 2  ;;  %s7167_s9 = sand.u32 1, %s9553_s18  }
 0x46a   : > { %s7168_s10 = scalar_lea.sflag [#allocation5], %s7167_s9 }
 0x46b   : > { %p9217_p0 = pnand %p9220_p13, %p9644_p6 }
 0x46d   : > { %p9218_p1 = pneg %p9217_p0 }
 0x46f   : > { %9548 = dma.done.wait (%p9218_p1), %s7168_s10, 4096  }
 0x470   : > { %9550 = vsyncadd (%p9218_p1), %s7168_s10, 4294963200  ;;  %p15_p2 = scmp.ge.s32.totalorder %s9627_s24, 4   ;;  %s11983_s18 = smov %s9557_s19 }
 0x471   : > { %s11984_s19 = smov %s9561_s20  ;;  %s11985_s20 = smov %s9638_s27 }
 0x472   : > { %s11986_s21 = smov %s9627_s24  ;;  %17 = sbr.rel (!%p15_p2) target bundleno = 3 (0x3), region = 78 }
 0x477   :  { %7173 = vsyncpa [#allocation5], 1 }
 0x478   :  { %7175 = vsyncpa [#allocation5 + $0x1], 1 }

</bundles_post_ra>
